<compile_context>
chip_gen: v7x
topology: tpu7x:2x2x1
jax: 0.10.0
libtpu: 0.0.40
codegen_flags: <defaults>
</compile_context>

<pallas_src>
import functools

import jax
import jax.numpy as jnp
import numpy as np
from jax import lax
from jax.experimental import pallas as pl
from jax.experimental.pallas import tpu as pltpu


# ------------------------- fused forward kernel (B images per grid step) -----------
def _maml_fused_kernel(x_ref, mask_ref, w1_ref, b1_ref, w2_ref, b2_ref,
                       sel_ref, wl_ref, bl_ref,
                       o_ref,
                       a1p_ref, c2_ref, hm_ref, pooled_ref,
                       *, H, W, Ch, B, Hp, Wp):
    f32 = jnp.float32
    bf16 = jnp.bfloat16
    Wr = W + 2                     # padded row stride of the flattened layout
    Ppad = (H + 2) * Wr            # one image's zero-padded slab (lane) length
    Lw = B * Ppad                  # B images concatenated along lanes
    Lout = Lw - 2 * Wr - 2         # "wide" conv-output length (valid + junk positions)
    Lh = Lout - 2 * Wr - 2         # 3x3-max slab length
    R = Hp * Wp
    Lsel = sel_ref.shape[0]

    # ---------- conv1 (3x3, pad=1) + bias + SiLU : 9 batched tap matmuls ------------
    acc1 = None
    for ky in range(3):
        for kx in range(3):
            t = ky * 3 + kx
            off = ky * Wr + kx
            p = jnp.dot(w1_ref[t], x_ref[0, :, off:off + Lout],
                        preferred_element_type=f32)
            acc1 = p if acc1 is None else acc1 + p
    acc1 = acc1 + b1_ref[...]
    a1 = acc1 * jax.nn.sigmoid(acc1)              # SiLU / swish
    a1 = a1 * mask_ref[...]                       # zero junk/halo positions (const mask)

    # ---------- stage conv2's zero-padded input once in VMEM ------------------------
    # Only the two tiny halo strips are never overwritten by the shifted write; re-zero
    # them every step (2*(Wr+1) lanes, ~free, megacore-safe).
    zstrip = jnp.zeros((Ch, Wr + 1), bf16)
    a1p_ref[:, 0:Wr + 1] = zstrip
    a1p_ref[:, Lw - Wr - 1:Lw] = zstrip
    a1p_ref[:, Wr + 1:Wr + 1 + Lout] = a1.astype(bf16)

    # ---------- conv2 (3x3, pad=1) + bias --------------------------------------------
    acc2 = None
    for ky in range(3):
        for kx in range(3):
            t = ky * 3 + kx
            off = ky * Wr + kx
            p = jnp.dot(w2_ref[t], a1p_ref[:, off:off + Lout],
                        preferred_element_type=f32)
            acc2 = p if acc2 is None else acc2 + p
    c2_ref[...] = (acc2 + b2_ref[...]).astype(bf16)

    # ---------- MaxPool2d(kernel=3, stride=3) -----------------------------------------
    # 3x3 shifted maxima over the whole batched slab ...
    hm = None
    for dy in range(3):
        for dx in range(3):
            off = dy * Wr + dx
            sl = c2_ref[:, off:off + Lh]
            hm = sl if hm is None else jnp.maximum(hm, sl)
    hm_ref[...] = hm
    # ... then one stride-3x3 selection matmul per image (constant 0/1 matrix), with
    # Ch row copies laying the features out lane-dense, c-major, per batch row.
    for b in range(B):
        pim = jnp.dot(hm_ref[:, b * Ppad:b * Ppad + Lsel], sel_ref[...],
                      preferred_element_type=f32).astype(bf16)
        for c in range(Ch):
            pooled_ref[b:b + 1, c * R:(c + 1) * R] = pim[c:c + 1, :]

    # ---------- Flatten + Linear + Softmax : one (B, Ch*R) x (Ch*R, 128) matmul -------
    logits = jnp.dot(pooled_ref[...], wl_ref[...],
                     preferred_element_type=f32) + bl_ref[...]    # padded lanes = -1e30
    mx = jnp.max(logits, axis=-1, keepdims=True)
    ex = jnp.exp(logits - mx)
    inv = pl.reciprocal(jnp.sum(ex, axis=-1, keepdims=True), approx=True)
    o_ref[0, :, :] = (ex * inv).astype(o_ref.dtype)


# ------------------------- wrapper: PyTorch semantics -------------------------------
def maml_forward(x_nchw, w1, b1, w2, b2, wl, bl, step_batch=4):
    N, Cin, H, W = x_nchw.shape
    Ch = w1.shape[0]
    O = wl.shape[0]
    Hp, Wp = H // 3, W // 3
    R = Hp * Wp
    F = Ch * R
    assert wl.shape[1] == F, "l1.in_features must equal hidn_dim*(H//3)*(W//3)"
    B = step_batch
    assert N % B == 0, "batch must be divisible by step_batch"
    G = N // B
    Wr = W + 2
    Ppad = (H + 2) * Wr
    Lw = B * Ppad
    Lout = Lw - 2 * Wr - 2
    Lsel = 3 * (Hp - 1) * Wr + 3 * (Wp - 1) + 1
    Opad = ((O + 127) // 128) * 128
    bf16 = jnp.bfloat16
    f32 = jnp.float32

    # -------- one-time layout glue (would be hoisted to parameter setup) ------------
    xp = jnp.pad(x_nchw, ((0, 0), (0, 0), (1, 1), (1, 1))).reshape(N, Cin, Ppad)
    xg = (xp.reshape(G, B, Cin, Ppad).transpose(0, 2, 1, 3)
            .reshape(G, Cin, Lw).astype(bf16))                      # B slabs on lanes
    w1t = jnp.transpose(w1, (2, 3, 0, 1)).reshape(9, Ch, Cin).astype(bf16)   # tap-major
    w2t = jnp.transpose(w2, (2, 3, 0, 1)).reshape(9, Ch, Ch).astype(bf16)
    b1c = b1.reshape(Ch, 1).astype(f32)
    b2c = b2.reshape(Ch, 1).astype(f32)

    # constant junk-position mask of the wide conv-output layout (no in-kernel modulo)
    lane = np.arange(Lout)
    loc = lane % Ppad
    mask = (((loc // Wr) < H) & ((loc % Wr) < W)).astype(np.float32)[None, :]
    mask = jnp.asarray(mask)

    # constant stride-3x3 pool-selection matrix (PyTorch flatten order i*Wp + j)
    selm = np.zeros((Lsel, R), np.float32)
    for i in range(Hp):
        for j in range(Wp):
            selm[3 * i * Wr + 3 * j, i * Wp + j] = 1.0
    selm = jnp.asarray(selm).astype(bf16)

    # linear weight in flatten order (c*R + i*Wp + j); bias padded with -1e30 so the
    # padded logit lanes vanish in softmax without an in-kernel mask.
    wlt = jnp.pad(wl.T.astype(bf16), ((0, 0), (0, Opad - O)))
    blp = jnp.full((1, Opad), -1e30, f32).at[0, :O].set(bl.astype(f32))

    kern = functools.partial(_maml_fused_kernel,
                             H=H, W=W, Ch=Ch, B=B, Hp=Hp, Wp=Wp)
    out = pl.pallas_call(
        kern,
        out_shape=jax.ShapeDtypeStruct((G, B, Opad), f32),
        grid=(G,),
        in_specs=[
            pl.BlockSpec((1, Cin, Lw), lambda g: (g, 0, 0)),     # batched input slab
            pl.BlockSpec((1, Lout), lambda g: (0, 0)),           # junk-position mask
            pl.BlockSpec((9, Ch, Cin), lambda g: (0, 0, 0)),     # conv1 taps
            pl.BlockSpec((Ch, 1), lambda g: (0, 0)),             # conv1 bias
            pl.BlockSpec((9, Ch, Ch), lambda g: (0, 0, 0)),      # conv2 taps
            pl.BlockSpec((Ch, 1), lambda g: (0, 0)),             # conv2 bias
            pl.BlockSpec((Lsel, R), lambda g: (0, 0)),           # pool selection
            pl.BlockSpec((F, Opad), lambda g: (0, 0)),           # linear weight
            pl.BlockSpec((1, Opad), lambda g: (0, 0)),           # linear bias (-1e30 pad)
        ],
        out_specs=pl.BlockSpec((1, B, Opad), lambda g: (g, 0, 0)),
        scratch_shapes=[
            pltpu.VMEM((Ch, Lw), bf16),                  # conv2 padded input
            pltpu.VMEM((Ch, Lout), bf16),                # conv2 output (wide)
            pltpu.VMEM((Ch, Lout - 2 * Wr - 2), bf16),   # 3x3 max slab
            pltpu.VMEM((B, F), bf16),                    # pooled, (B, Ch*R) lane-dense
        ],
        compiler_params=pltpu.CompilerParams(
            dimension_semantics=("parallel",)),
    )(xg, mask, w1t, b1c, w2t, b2c, selm, wlt, blp)
    return out.reshape(N, Opad)[:, :O]


# ------------------------- pure-JAX f32 reference for validation --------------------
def jax_reference(x_nchw, w1, b1, w2, b2, wl, bl):
    dn = ("NCHW", "OIHW", "NCHW")
    hp = lax.Precision.HIGHEST
    h = lax.conv_general_dilated(x_nchw, w1, (1, 1), ((1, 1), (1, 1)),
                                 dimension_numbers=dn, precision=hp)
    h = h + b1[None, :, None, None]
    h = h * jax.nn.sigmoid(h)
    h = lax.conv_general_dilated(h, w2, (1, 1), ((1, 1), (1, 1)),
                                 dimension_numbers=dn, precision=hp)
    h = h + b2[None, :, None, None]
    h = lax.reduce_window(h, -jnp.inf, lax.max, (1, 1, 3, 3), (1, 1, 3, 3), "VALID")
    flat = h.reshape(h.shape[0], -1)
    logits = jnp.dot(flat, wl.T, precision=hp) + bl
    return jax.nn.softmax(logits, axis=1)


if __name__ == "__main__":
    key = jax.random.PRNGKey(0)
    N, Cin, H, W = 8, 4, 24, 24          # inpt_dim=4, small spatial (pool -> 8x8)
    Ch, O = 8, 10                        # hidn_dim, oupt_dim
    Hp, Wp = H // 3, W // 3
    F = Ch * Hp * Wp                     # l1.in_features implied by these shapes

    ks = jax.random.split(key, 7)
    x = jax.random.normal(ks[0], (N, Cin, H, W), jnp.float32)
    w1 = jax.random.normal(ks[1], (Ch, Cin, 3, 3), jnp.float32) * (1.0 / (Cin * 9) ** 0.5)
    b1 = jax.random.normal(ks[2], (Ch,), jnp.float32) * 0.1
    w2 = jax.random.normal(ks[3], (Ch, Ch, 3, 3), jnp.float32) * (1.0 / (Ch * 9) ** 0.5)
    b2 = jax.random.normal(ks[4], (Ch,), jnp.float32) * 0.1
    wl = jax.random.normal(ks[5], (O, F), jnp.float32) * (1.0 / F ** 0.5)   # (out, in)
    bl = jax.random.normal(ks[6], (O,), jnp.float32) * 0.1

    fwd = jax.jit(maml_forward, static_argnames=("step_batch",))
    out = jax.block_until_ready(fwd(x, w1, b1, w2, b2, wl, bl, step_batch=4))
    ref = jax.block_until_ready(jax_reference(x, w1, b1, w2, b2, wl, bl))

    assert out.shape == (N, O), out.shape
    # bf16 MXU operands (f32 accumulation) vs the f32 reference: deliberately loosened.
    np.testing.assert_allclose(np.asarray(out), np.asarray(ref), rtol=0.1, atol=3e-2)
    print("KERNEL_OK")
</pallas_src>

<mosaic_0001>
module attributes {stable_mosaic.version = 11 : i64} {
  func.func @_maml_fused_kernel(%arg0: i32, %arg1: memref<1x4x2704xbf16, #tpu.memory_space<vmem>>, %arg2: memref<1x2650xf32, #tpu.memory_space<vmem>>, %arg3: memref<9x8x4xbf16, #tpu.memory_space<vmem>>, %arg4: memref<8x1xf32, #tpu.memory_space<vmem>>, %arg5: memref<9x8x8xbf16, #tpu.memory_space<vmem>>, %arg6: memref<8x1xf32, #tpu.memory_space<vmem>>, %arg7: memref<568x64xbf16, #tpu.memory_space<vmem>>, %arg8: memref<512x128xbf16, #tpu.memory_space<vmem>>, %arg9: memref<1x128xf32, #tpu.memory_space<vmem>>, %arg10: memref<1x4x128xf32, #tpu.memory_space<vmem>>, %arg11: memref<8x2704xbf16, #tpu.memory_space<vmem>>, %arg12: memref<8x2650xbf16, #tpu.memory_space<vmem>>, %arg13: memref<8x2596xbf16, #tpu.memory_space<vmem>>, %arg14: memref<4x512xbf16, #tpu.memory_space<vmem>>) attributes {dimension_semantics = [#tpu.dimension_semantics<parallel>], iteration_bounds = array<i64: 2>, scalar_prefetch = 0 : i64, scratch_operands = 4 : i64, tpu.core_type = #tpu.core_type<tc>, window_params = [{transform_indices = @transform_0, window_bounds = array<i64: 1, 4, 2704>}, {pipeline_mode = #tpu.pipeline_mode<synchronous>, transform_indices = @transform_1, window_bounds = array<i64: 1, 2650>}, {pipeline_mode = #tpu.pipeline_mode<synchronous>, transform_indices = @transform_2, window_bounds = array<i64: 9, 8, 4>}, {pipeline_mode = #tpu.pipeline_mode<synchronous>, transform_indices = @transform_3, window_bounds = array<i64: 8, 1>}, {pipeline_mode = #tpu.pipeline_mode<synchronous>, transform_indices = @transform_4, window_bounds = array<i64: 9, 8, 8>}, {pipeline_mode = #tpu.pipeline_mode<synchronous>, transform_indices = @transform_5, window_bounds = array<i64: 8, 1>}, {pipeline_mode = #tpu.pipeline_mode<synchronous>, transform_indices = @transform_6, window_bounds = array<i64: 568, 64>}, {pipeline_mode = #tpu.pipeline_mode<synchronous>, transform_indices = @transform_7, window_bounds = array<i64: 512, 128>}, {pipeline_mode = #tpu.pipeline_mode<synchronous>, transform_indices = @transform_8, window_bounds = array<i64: 1, 128>}, {transform_indices = @transform_9, window_bounds = array<i64: 1, 4, 128>}]} {
    %c0 = arith.constant 0 : index
    %c0_0 = arith.constant 0 : index
    %c0_1 = arith.constant 0 : index
    %0 = vector.load %arg3[%c0, %c0_0, %c0_1] : memref<9x8x4xbf16, #tpu.memory_space<vmem>>, vector<1x8x4xbf16>
    %1 = vector.shape_cast %0 : vector<1x8x4xbf16> to vector<8x4xbf16>
    %c0_2 = arith.constant 0 : index
    %c0_3 = arith.constant 0 : index
    %c0_4 = arith.constant 0 : index
    %2 = vector.load %arg1[%c0_2, %c0_3, %c0_4] : memref<1x4x2704xbf16, #tpu.memory_space<vmem>>, vector<1x4x2650xbf16>
    %3 = vector.shape_cast %2 : vector<1x4x2650xbf16> to vector<4x2650xbf16>
    %cst = arith.constant dense<0.000000e+00> : vector<8x2650xf32>
    %4 = tpu.matmul %1, %3, %cst {dimension_numbers = #tpu.dot_dimension_numbers<[1], [0], [0], [1], [0, 0, 1, 1], [], []>} : vector<8x4xbf16>, vector<4x2650xbf16>, vector<8x2650xf32> -> vector<8x2650xf32>
    %c1 = arith.constant 1 : index
    %c0_5 = arith.constant 0 : index
    %c0_6 = arith.constant 0 : index
    %5 = vector.load %arg3[%c1, %c0_5, %c0_6] : memref<9x8x4xbf16, #tpu.memory_space<vmem>>, vector<1x8x4xbf16>
    %6 = vector.shape_cast %5 : vector<1x8x4xbf16> to vector<8x4xbf16>
    %c0_7 = arith.constant 0 : index
    %c0_8 = arith.constant 0 : index
    %c1_9 = arith.constant 1 : index
    %7 = vector.load %arg1[%c0_7, %c0_8, %c1_9] : memref<1x4x2704xbf16, #tpu.memory_space<vmem>>, vector<1x4x2650xbf16>
    %8 = vector.shape_cast %7 : vector<1x4x2650xbf16> to vector<4x2650xbf16>
    %cst_10 = arith.constant dense<0.000000e+00> : vector<8x2650xf32>
    %9 = tpu.matmul %6, %8, %cst_10 {dimension_numbers = #tpu.dot_dimension_numbers<[1], [0], [0], [1], [0, 0, 1, 1], [], []>} : vector<8x4xbf16>, vector<4x2650xbf16>, vector<8x2650xf32> -> vector<8x2650xf32>
    %10 = arith.addf %4, %9 : vector<8x2650xf32>
    %c2 = arith.constant 2 : index
    %c0_11 = arith.constant 0 : index
    %c0_12 = arith.constant 0 : index
    %11 = vector.load %arg3[%c2, %c0_11, %c0_12] : memref<9x8x4xbf16, #tpu.memory_space<vmem>>, vector<1x8x4xbf16>
    %12 = vector.shape_cast %11 : vector<1x8x4xbf16> to vector<8x4xbf16>
    %c0_13 = arith.constant 0 : index
    %c0_14 = arith.constant 0 : index
    %c2_15 = arith.constant 2 : index
    %13 = vector.load %arg1[%c0_13, %c0_14, %c2_15] : memref<1x4x2704xbf16, #tpu.memory_space<vmem>>, vector<1x4x2650xbf16>
    %14 = vector.shape_cast %13 : vector<1x4x2650xbf16> to vector<4x2650xbf16>
    %cst_16 = arith.constant dense<0.000000e+00> : vector<8x2650xf32>
    %15 = tpu.matmul %12, %14, %cst_16 {dimension_numbers = #tpu.dot_dimension_numbers<[1], [0], [0], [1], [0, 0, 1, 1], [], []>} : vector<8x4xbf16>, vector<4x2650xbf16>, vector<8x2650xf32> -> vector<8x2650xf32>
    %16 = arith.addf %10, %15 : vector<8x2650xf32>
    %c3 = arith.constant 3 : index
    %c0_17 = arith.constant 0 : index
    %c0_18 = arith.constant 0 : index
    %17 = vector.load %arg3[%c3, %c0_17, %c0_18] : memref<9x8x4xbf16, #tpu.memory_space<vmem>>, vector<1x8x4xbf16>
    %18 = vector.shape_cast %17 : vector<1x8x4xbf16> to vector<8x4xbf16>
    %c0_19 = arith.constant 0 : index
    %c0_20 = arith.constant 0 : index
    %c26 = arith.constant 26 : index
    %19 = vector.load %arg1[%c0_19, %c0_20, %c26] : memref<1x4x2704xbf16, #tpu.memory_space<vmem>>, vector<1x4x2650xbf16>
    %20 = vector.shape_cast %19 : vector<1x4x2650xbf16> to vector<4x2650xbf16>
    %cst_21 = arith.constant dense<0.000000e+00> : vector<8x2650xf32>
    %21 = tpu.matmul %18, %20, %cst_21 {dimension_numbers = #tpu.dot_dimension_numbers<[1], [0], [0], [1], [0, 0, 1, 1], [], []>} : vector<8x4xbf16>, vector<4x2650xbf16>, vector<8x2650xf32> -> vector<8x2650xf32>
    %22 = arith.addf %16, %21 : vector<8x2650xf32>
    %c4 = arith.constant 4 : index
    %c0_22 = arith.constant 0 : index
    %c0_23 = arith.constant 0 : index
    %23 = vector.load %arg3[%c4, %c0_22, %c0_23] : memref<9x8x4xbf16, #tpu.memory_space<vmem>>, vector<1x8x4xbf16>
    %24 = vector.shape_cast %23 : vector<1x8x4xbf16> to vector<8x4xbf16>
    %c0_24 = arith.constant 0 : index
    %c0_25 = arith.constant 0 : index
    %c27 = arith.constant 27 : index
    %25 = vector.load %arg1[%c0_24, %c0_25, %c27] : memref<1x4x2704xbf16, #tpu.memory_space<vmem>>, vector<1x4x2650xbf16>
    %26 = vector.shape_cast %25 : vector<1x4x2650xbf16> to vector<4x2650xbf16>
    %cst_26 = arith.constant dense<0.000000e+00> : vector<8x2650xf32>
    %27 = tpu.matmul %24, %26, %cst_26 {dimension_numbers = #tpu.dot_dimension_numbers<[1], [0], [0], [1], [0, 0, 1, 1], [], []>} : vector<8x4xbf16>, vector<4x2650xbf16>, vector<8x2650xf32> -> vector<8x2650xf32>
    %28 = arith.addf %22, %27 : vector<8x2650xf32>
    %c5 = arith.constant 5 : index
    %c0_27 = arith.constant 0 : index
    %c0_28 = arith.constant 0 : index
    %29 = vector.load %arg3[%c5, %c0_27, %c0_28] : memref<9x8x4xbf16, #tpu.memory_space<vmem>>, vector<1x8x4xbf16>
    %30 = vector.shape_cast %29 : vector<1x8x4xbf16> to vector<8x4xbf16>
    %c0_29 = arith.constant 0 : index
    %c0_30 = arith.constant 0 : index
    %c28 = arith.constant 28 : index
    %31 = vector.load %arg1[%c0_29, %c0_30, %c28] : memref<1x4x2704xbf16, #tpu.memory_space<vmem>>, vector<1x4x2650xbf16>
    %32 = vector.shape_cast %31 : vector<1x4x2650xbf16> to vector<4x2650xbf16>
    %cst_31 = arith.constant dense<0.000000e+00> : vector<8x2650xf32>
    %33 = tpu.matmul %30, %32, %cst_31 {dimension_numbers = #tpu.dot_dimension_numbers<[1], [0], [0], [1], [0, 0, 1, 1], [], []>} : vector<8x4xbf16>, vector<4x2650xbf16>, vector<8x2650xf32> -> vector<8x2650xf32>
    %34 = arith.addf %28, %33 : vector<8x2650xf32>
    %c6 = arith.constant 6 : index
    %c0_32 = arith.constant 0 : index
    %c0_33 = arith.constant 0 : index
    %35 = vector.load %arg3[%c6, %c0_32, %c0_33] : memref<9x8x4xbf16, #tpu.memory_space<vmem>>, vector<1x8x4xbf16>
    %36 = vector.shape_cast %35 : vector<1x8x4xbf16> to vector<8x4xbf16>
    %c0_34 = arith.constant 0 : index
    %c0_35 = arith.constant 0 : index
    %c52 = arith.constant 52 : index
    %37 = vector.load %arg1[%c0_34, %c0_35, %c52] : memref<1x4x2704xbf16, #tpu.memory_space<vmem>>, vector<1x4x2650xbf16>
    %38 = vector.shape_cast %37 : vector<1x4x2650xbf16> to vector<4x2650xbf16>
    %cst_36 = arith.constant dense<0.000000e+00> : vector<8x2650xf32>
    %39 = tpu.matmul %36, %38, %cst_36 {dimension_numbers = #tpu.dot_dimension_numbers<[1], [0], [0], [1], [0, 0, 1, 1], [], []>} : vector<8x4xbf16>, vector<4x2650xbf16>, vector<8x2650xf32> -> vector<8x2650xf32>
    %40 = arith.addf %34, %39 : vector<8x2650xf32>
    %c7 = arith.constant 7 : index
    %c0_37 = arith.constant 0 : index
    %c0_38 = arith.constant 0 : index
    %41 = vector.load %arg3[%c7, %c0_37, %c0_38] : memref<9x8x4xbf16, #tpu.memory_space<vmem>>, vector<1x8x4xbf16>
    %42 = vector.shape_cast %41 : vector<1x8x4xbf16> to vector<8x4xbf16>
    %c0_39 = arith.constant 0 : index
    %c0_40 = arith.constant 0 : index
    %c53 = arith.constant 53 : index
    %43 = vector.load %arg1[%c0_39, %c0_40, %c53] : memref<1x4x2704xbf16, #tpu.memory_space<vmem>>, vector<1x4x2650xbf16>
    %44 = vector.shape_cast %43 : vector<1x4x2650xbf16> to vector<4x2650xbf16>
    %cst_41 = arith.constant dense<0.000000e+00> : vector<8x2650xf32>
    %45 = tpu.matmul %42, %44, %cst_41 {dimension_numbers = #tpu.dot_dimension_numbers<[1], [0], [0], [1], [0, 0, 1, 1], [], []>} : vector<8x4xbf16>, vector<4x2650xbf16>, vector<8x2650xf32> -> vector<8x2650xf32>
    %46 = arith.addf %40, %45 : vector<8x2650xf32>
    %c8 = arith.constant 8 : index
    %c0_42 = arith.constant 0 : index
    %c0_43 = arith.constant 0 : index
    %47 = vector.load %arg3[%c8, %c0_42, %c0_43] : memref<9x8x4xbf16, #tpu.memory_space<vmem>>, vector<1x8x4xbf16>
    %48 = vector.shape_cast %47 : vector<1x8x4xbf16> to vector<8x4xbf16>
    %c0_44 = arith.constant 0 : index
    %c0_45 = arith.constant 0 : index
    %c54 = arith.constant 54 : index
    %49 = vector.load %arg1[%c0_44, %c0_45, %c54] : memref<1x4x2704xbf16, #tpu.memory_space<vmem>>, vector<1x4x2650xbf16>
    %50 = vector.shape_cast %49 : vector<1x4x2650xbf16> to vector<4x2650xbf16>
    %cst_46 = arith.constant dense<0.000000e+00> : vector<8x2650xf32>
    %51 = tpu.matmul %48, %50, %cst_46 {dimension_numbers = #tpu.dot_dimension_numbers<[1], [0], [0], [1], [0, 0, 1, 1], [], []>} : vector<8x4xbf16>, vector<4x2650xbf16>, vector<8x2650xf32> -> vector<8x2650xf32>
    %52 = arith.addf %46, %51 : vector<8x2650xf32>
    %c0_47 = arith.constant 0 : index
    %c0_48 = arith.constant 0 : index
    %53 = vector.load %arg4[%c0_47, %c0_48] : memref<8x1xf32, #tpu.memory_space<vmem>>, vector<8x1xf32>
    %54 = vector.broadcast %53 : vector<8x1xf32> to vector<8x2650xf32>
    %55 = arith.addf %52, %54 : vector<8x2650xf32>
    %56 = arith.negf %55 : vector<8x2650xf32>
    %57 = math.exp %56 : vector<8x2650xf32>
    %cst_49 = arith.constant 1.000000e+00 : f32
    %58 = vector.broadcast %cst_49 : f32 to vector<8x2650xf32>
    %59 = arith.addf %58, %57 : vector<8x2650xf32>
    %60 = arith.divf %58, %59 : vector<8x2650xf32>
    %61 = arith.mulf %55, %60 : vector<8x2650xf32>
    %c0_50 = arith.constant 0 : index
    %c0_51 = arith.constant 0 : index
    %62 = vector.load %arg2[%c0_50, %c0_51] : memref<1x2650xf32, #tpu.memory_space<vmem>>, vector<1x2650xf32>
    %63 = vector.broadcast %62 : vector<1x2650xf32> to vector<8x2650xf32>
    %64 = arith.mulf %61, %63 : vector<8x2650xf32>
    %cst_52 = arith.constant 0.000000e+00 : bf16
    %65 = vector.broadcast %cst_52 : bf16 to vector<8x27xbf16>
    %c0_53 = arith.constant 0 : index
    %c0_54 = arith.constant 0 : index
    %66 = vector.load %arg11[%c0_53, %c0_54] : memref<8x2704xbf16, #tpu.memory_space<vmem>>, vector<8x27xbf16>
    tpu.vector_store %arg11[%c0_53, %c0_54], %65 {strides = array<i32>} : memref<8x2704xbf16, #tpu.memory_space<vmem>>, vector<8x27xbf16>,
    %c0_55 = arith.constant 0 : index
    %c2677 = arith.constant 2677 : index
    %67 = vector.load %arg11[%c0_55, %c2677] : memref<8x2704xbf16, #tpu.memory_space<vmem>>, vector<8x27xbf16>
    tpu.vector_store %arg11[%c0_55, %c2677], %65 {strides = array<i32>} : memref<8x2704xbf16, #tpu.memory_space<vmem>>, vector<8x27xbf16>,
    %68 = arith.truncf %64 : vector<8x2650xf32> to vector<8x2650xbf16>
    %c0_56 = arith.constant 0 : index
    %c27_57 = arith.constant 27 : index
    %69 = vector.load %arg11[%c0_56, %c27_57] : memref<8x2704xbf16, #tpu.memory_space<vmem>>, vector<8x2650xbf16>
    tpu.vector_store %arg11[%c0_56, %c27_57], %68 {strides = array<i32>} : memref<8x2704xbf16, #tpu.memory_space<vmem>>, vector<8x2650xbf16>,
    %c0_58 = arith.constant 0 : index
    %c0_59 = arith.constant 0 : index
    %c0_60 = arith.constant 0 : index
    %70 = vector.load %arg5[%c0_58, %c0_59, %c0_60] : memref<9x8x8xbf16, #tpu.memory_space<vmem>>, vector<1x8x8xbf16>
    %71 = vector.shape_cast %70 : vector<1x8x8xbf16> to vector<8x8xbf16>
    %c0_61 = arith.constant 0 : index
    %c0_62 = arith.constant 0 : index
    %72 = vector.load %arg11[%c0_61, %c0_62] : memref<8x2704xbf16, #tpu.memory_space<vmem>>, vector<8x2650xbf16>
    %cst_63 = arith.constant dense<0.000000e+00> : vector<8x2650xf32>
    %73 = tpu.matmul %71, %72, %cst_63 {dimension_numbers = #tpu.dot_dimension_numbers<[1], [0], [0], [1], [0, 0, 1, 1], [], []>} : vector<8x8xbf16>, vector<8x2650xbf16>, vector<8x2650xf32> -> vector<8x2650xf32>
    %c1_64 = arith.constant 1 : index
    %c0_65 = arith.constant 0 : index
    %c0_66 = arith.constant 0 : index
    %74 = vector.load %arg5[%c1_64, %c0_65, %c0_66] : memref<9x8x8xbf16, #tpu.memory_space<vmem>>, vector<1x8x8xbf16>
    %75 = vector.shape_cast %74 : vector<1x8x8xbf16> to vector<8x8xbf16>
    %c0_67 = arith.constant 0 : index
    %c1_68 = arith.constant 1 : index
    %76 = vector.load %arg11[%c0_67, %c1_68] : memref<8x2704xbf16, #tpu.memory_space<vmem>>, vector<8x2650xbf16>
    %cst_69 = arith.constant dense<0.000000e+00> : vector<8x2650xf32>
    %77 = tpu.matmul %75, %76, %cst_69 {dimension_numbers = #tpu.dot_dimension_numbers<[1], [0], [0], [1], [0, 0, 1, 1], [], []>} : vector<8x8xbf16>, vector<8x2650xbf16>, vector<8x2650xf32> -> vector<8x2650xf32>
    %78 = arith.addf %73, %77 : vector<8x2650xf32>
    %c2_70 = arith.constant 2 : index
    %c0_71 = arith.constant 0 : index
    %c0_72 = arith.constant 0 : index
    %79 = vector.load %arg5[%c2_70, %c0_71, %c0_72] : memref<9x8x8xbf16, #tpu.memory_space<vmem>>, vector<1x8x8xbf16>
    %80 = vector.shape_cast %79 : vector<1x8x8xbf16> to vector<8x8xbf16>
    %c0_73 = arith.constant 0 : index
    %c2_74 = arith.constant 2 : index
    %81 = vector.load %arg11[%c0_73, %c2_74] : memref<8x2704xbf16, #tpu.memory_space<vmem>>, vector<8x2650xbf16>
    %cst_75 = arith.constant dense<0.000000e+00> : vector<8x2650xf32>
    %82 = tpu.matmul %80, %81, %cst_75 {dimension_numbers = #tpu.dot_dimension_numbers<[1], [0], [0], [1], [0, 0, 1, 1], [], []>} : vector<8x8xbf16>, vector<8x2650xbf16>, vector<8x2650xf32> -> vector<8x2650xf32>
    %83 = arith.addf %78, %82 : vector<8x2650xf32>
    %c3_76 = arith.constant 3 : index
    %c0_77 = arith.constant 0 : index
    %c0_78 = arith.constant 0 : index
    %84 = vector.load %arg5[%c3_76, %c0_77, %c0_78] : memref<9x8x8xbf16, #tpu.memory_space<vmem>>, vector<1x8x8xbf16>
    %85 = vector.shape_cast %84 : vector<1x8x8xbf16> to vector<8x8xbf16>
    %c0_79 = arith.constant 0 : index
    %c26_80 = arith.constant 26 : index
    %86 = vector.load %arg11[%c0_79, %c26_80] : memref<8x2704xbf16, #tpu.memory_space<vmem>>, vector<8x2650xbf16>
    %cst_81 = arith.constant dense<0.000000e+00> : vector<8x2650xf32>
    %87 = tpu.matmul %85, %86, %cst_81 {dimension_numbers = #tpu.dot_dimension_numbers<[1], [0], [0], [1], [0, 0, 1, 1], [], []>} : vector<8x8xbf16>, vector<8x2650xbf16>, vector<8x2650xf32> -> vector<8x2650xf32>
    %88 = arith.addf %83, %87 : vector<8x2650xf32>
    %c4_82 = arith.constant 4 : index
    %c0_83 = arith.constant 0 : index
    %c0_84 = arith.constant 0 : index
    %89 = vector.load %arg5[%c4_82, %c0_83, %c0_84] : memref<9x8x8xbf16, #tpu.memory_space<vmem>>, vector<1x8x8xbf16>
    %90 = vector.shape_cast %89 : vector<1x8x8xbf16> to vector<8x8xbf16>
    %c0_85 = arith.constant 0 : index
    %c27_86 = arith.constant 27 : index
    %91 = vector.load %arg11[%c0_85, %c27_86] : memref<8x2704xbf16, #tpu.memory_space<vmem>>, vector<8x2650xbf16>
    %cst_87 = arith.constant dense<0.000000e+00> : vector<8x2650xf32>
    %92 = tpu.matmul %90, %91, %cst_87 {dimension_numbers = #tpu.dot_dimension_numbers<[1], [0], [0], [1], [0, 0, 1, 1], [], []>} : vector<8x8xbf16>, vector<8x2650xbf16>, vector<8x2650xf32> -> vector<8x2650xf32>
    %93 = arith.addf %88, %92 : vector<8x2650xf32>
    %c5_88 = arith.constant 5 : index
    %c0_89 = arith.constant 0 : index
    %c0_90 = arith.constant 0 : index
    %94 = vector.load %arg5[%c5_88, %c0_89, %c0_90] : memref<9x8x8xbf16, #tpu.memory_space<vmem>>, vector<1x8x8xbf16>
    %95 = vector.shape_cast %94 : vector<1x8x8xbf16> to vector<8x8xbf16>
    %c0_91 = arith.constant 0 : index
    %c28_92 = arith.constant 28 : index
    %96 = vector.load %arg11[%c0_91, %c28_92] : memref<8x2704xbf16, #tpu.memory_space<vmem>>, vector<8x2650xbf16>
    %cst_93 = arith.constant dense<0.000000e+00> : vector<8x2650xf32>
    %97 = tpu.matmul %95, %96, %cst_93 {dimension_numbers = #tpu.dot_dimension_numbers<[1], [0], [0], [1], [0, 0, 1, 1], [], []>} : vector<8x8xbf16>, vector<8x2650xbf16>, vector<8x2650xf32> -> vector<8x2650xf32>
    %98 = arith.addf %93, %97 : vector<8x2650xf32>
    %c6_94 = arith.constant 6 : index
    %c0_95 = arith.constant 0 : index
    %c0_96 = arith.constant 0 : index
    %99 = vector.load %arg5[%c6_94, %c0_95, %c0_96] : memref<9x8x8xbf16, #tpu.memory_space<vmem>>, vector<1x8x8xbf16>
    %100 = vector.shape_cast %99 : vector<1x8x8xbf16> to vector<8x8xbf16>
    %c0_97 = arith.constant 0 : index
    %c52_98 = arith.constant 52 : index
    %101 = vector.load %arg11[%c0_97, %c52_98] : memref<8x2704xbf16, #tpu.memory_space<vmem>>, vector<8x2650xbf16>
    %cst_99 = arith.constant dense<0.000000e+00> : vector<8x2650xf32>
    %102 = tpu.matmul %100, %101, %cst_99 {dimension_numbers = #tpu.dot_dimension_numbers<[1], [0], [0], [1], [0, 0, 1, 1], [], []>} : vector<8x8xbf16>, vector<8x2650xbf16>, vector<8x2650xf32> -> vector<8x2650xf32>
    %103 = arith.addf %98, %102 : vector<8x2650xf32>
    %c7_100 = arith.constant 7 : index
    %c0_101 = arith.constant 0 : index
    %c0_102 = arith.constant 0 : index
    %104 = vector.load %arg5[%c7_100, %c0_101, %c0_102] : memref<9x8x8xbf16, #tpu.memory_space<vmem>>, vector<1x8x8xbf16>
    %105 = vector.shape_cast %104 : vector<1x8x8xbf16> to vector<8x8xbf16>
    %c0_103 = arith.constant 0 : index
    %c53_104 = arith.constant 53 : index
    %106 = vector.load %arg11[%c0_103, %c53_104] : memref<8x2704xbf16, #tpu.memory_space<vmem>>, vector<8x2650xbf16>
    %cst_105 = arith.constant dense<0.000000e+00> : vector<8x2650xf32>
    %107 = tpu.matmul %105, %106, %cst_105 {dimension_numbers = #tpu.dot_dimension_numbers<[1], [0], [0], [1], [0, 0, 1, 1], [], []>} : vector<8x8xbf16>, vector<8x2650xbf16>, vector<8x2650xf32> -> vector<8x2650xf32>
    %108 = arith.addf %103, %107 : vector<8x2650xf32>
    %c8_106 = arith.constant 8 : index
    %c0_107 = arith.constant 0 : index
    %c0_108 = arith.constant 0 : index
    %109 = vector.load %arg5[%c8_106, %c0_107, %c0_108] : memref<9x8x8xbf16, #tpu.memory_space<vmem>>, vector<1x8x8xbf16>
    %110 = vector.shape_cast %109 : vector<1x8x8xbf16> to vector<8x8xbf16>
    %c0_109 = arith.constant 0 : index
    %c54_110 = arith.constant 54 : index
    %111 = vector.load %arg11[%c0_109, %c54_110] : memref<8x2704xbf16, #tpu.memory_space<vmem>>, vector<8x2650xbf16>
    %cst_111 = arith.constant dense<0.000000e+00> : vector<8x2650xf32>
    %112 = tpu.matmul %110, %111, %cst_111 {dimension_numbers = #tpu.dot_dimension_numbers<[1], [0], [0], [1], [0, 0, 1, 1], [], []>} : vector<8x8xbf16>, vector<8x2650xbf16>, vector<8x2650xf32> -> vector<8x2650xf32>
    %113 = arith.addf %108, %112 : vector<8x2650xf32>
    %c0_112 = arith.constant 0 : index
    %c0_113 = arith.constant 0 : index
    %114 = vector.load %arg6[%c0_112, %c0_113] : memref<8x1xf32, #tpu.memory_space<vmem>>, vector<8x1xf32>
    %115 = vector.broadcast %114 : vector<8x1xf32> to vector<8x2650xf32>
    %116 = arith.addf %113, %115 : vector<8x2650xf32>
    %117 = arith.truncf %116 : vector<8x2650xf32> to vector<8x2650xbf16>
    %c0_114 = arith.constant 0 : index
    %c0_115 = arith.constant 0 : index
    %118 = vector.load %arg12[%c0_114, %c0_115] : memref<8x2650xbf16, #tpu.memory_space<vmem>>, vector<8x2650xbf16>
    tpu.vector_store %arg12[%c0_114, %c0_115], %117 {strides = array<i32>} : memref<8x2650xbf16, #tpu.memory_space<vmem>>, vector<8x2650xbf16>,
    %c0_116 = arith.constant 0 : index
    %c0_117 = arith.constant 0 : index
    %119 = vector.load %arg12[%c0_116, %c0_117] : memref<8x2650xbf16, #tpu.memory_space<vmem>>, vector<8x2596xbf16>
    %c0_118 = arith.constant 0 : index
    %c1_119 = arith.constant 1 : index
    %120 = vector.load %arg12[%c0_118, %c1_119] : memref<8x2650xbf16, #tpu.memory_space<vmem>>, vector<8x2596xbf16>
    %121 = arith.maximumf %119, %120 : vector<8x2596xbf16>
    %c0_120 = arith.constant 0 : index
    %c2_121 = arith.constant 2 : index
    %122 = vector.load %arg12[%c0_120, %c2_121] : memref<8x2650xbf16, #tpu.memory_space<vmem>>, vector<8x2596xbf16>
    %123 = arith.maximumf %121, %122 : vector<8x2596xbf16>
    %c0_122 = arith.constant 0 : index
    %c26_123 = arith.constant 26 : index
    %124 = vector.load %arg12[%c0_122, %c26_123] : memref<8x2650xbf16, #tpu.memory_space<vmem>>, vector<8x2596xbf16>
    %125 = arith.maximumf %123, %124 : vector<8x2596xbf16>
    %c0_124 = arith.constant 0 : index
    %c27_125 = arith.constant 27 : index
    %126 = vector.load %arg12[%c0_124, %c27_125] : memref<8x2650xbf16, #tpu.memory_space<vmem>>, vector<8x2596xbf16>
    %127 = arith.maximumf %125, %126 : vector<8x2596xbf16>
    %c0_126 = arith.constant 0 : index
    %c28_127 = arith.constant 28 : index
    %128 = vector.load %arg12[%c0_126, %c28_127] : memref<8x2650xbf16, #tpu.memory_space<vmem>>, vector<8x2596xbf16>
    %129 = arith.maximumf %127, %128 : vector<8x2596xbf16>
    %c0_128 = arith.constant 0 : index
    %c52_129 = arith.constant 52 : index
    %130 = vector.load %arg12[%c0_128, %c52_129] : memref<8x2650xbf16, #tpu.memory_space<vmem>>, vector<8x2596xbf16>
    %131 = arith.maximumf %129, %130 : vector<8x2596xbf16>
    %c0_130 = arith.constant 0 : index
    %c53_131 = arith.constant 53 : index
    %132 = vector.load %arg12[%c0_130, %c53_131] : memref<8x2650xbf16, #tpu.memory_space<vmem>>, vector<8x2596xbf16>
    %133 = arith.maximumf %131, %132 : vector<8x2596xbf16>
    %c0_132 = arith.constant 0 : index
    %c54_133 = arith.constant 54 : index
    %134 = vector.load %arg12[%c0_132, %c54_133] : memref<8x2650xbf16, #tpu.memory_space<vmem>>, vector<8x2596xbf16>
    %135 = arith.maximumf %133, %134 : vector<8x2596xbf16>
    %c0_134 = arith.constant 0 : index
    %c0_135 = arith.constant 0 : index
    %136 = vector.load %arg13[%c0_134, %c0_135] : memref<8x2596xbf16, #tpu.memory_space<vmem>>, vector<8x2596xbf16>
    tpu.vector_store %arg13[%c0_134, %c0_135], %135 {strides = array<i32>} : memref<8x2596xbf16, #tpu.memory_space<vmem>>, vector<8x2596xbf16>,
    %c0_136 = arith.constant 0 : index
    %c0_137 = arith.constant 0 : index
    %137 = vector.load %arg13[%c0_136, %c0_137] : memref<8x2596xbf16, #tpu.memory_space<vmem>>, vector<8x568xbf16>
    %c0_138 = arith.constant 0 : index
    %c0_139 = arith.constant 0 : index
    %138 = vector.load %arg7[%c0_138, %c0_139] : memref<568x64xbf16, #tpu.memory_space<vmem>>, vector<568x64xbf16>
    %cst_140 = arith.constant dense<0.000000e+00> : vector<8x64xf32>
    %139 = tpu.matmul %137, %138, %cst_140 {dimension_numbers = #tpu.dot_dimension_numbers<[1], [0], [0], [1], [0, 0, 1, 1], [], []>} : vector<8x568xbf16>, vector<568x64xbf16>, vector<8x64xf32> -> vector<8x64xf32>
    %140 = arith.truncf %139 : vector<8x64xf32> to vector<8x64xbf16>
    %141 = vector.extract_strided_slice %140 {offsets = [0, 0], sizes = [1, 64], strides = [1, 1]} : vector<8x64xbf16> to vector<1x64xbf16>
    %c0_141 = arith.constant 0 : index
    %c0_142 = arith.constant 0 : index
    %142 = vector.load %arg14[%c0_141, %c0_142] : memref<4x512xbf16, #tpu.memory_space<vmem>>, vector<1x64xbf16>
    tpu.vector_store %arg14[%c0_141, %c0_142], %141 {strides = array<i32>} : memref<4x512xbf16, #tpu.memory_space<vmem>>, vector<1x64xbf16>,
    %143 = vector.extract_strided_slice %140 {offsets = [1, 0], sizes = [1, 64], strides = [1, 1]} : vector<8x64xbf16> to vector<1x64xbf16>
    %c0_143 = arith.constant 0 : index
    %c64 = arith.constant 64 : index
    %144 = vector.load %arg14[%c0_143, %c64] : memref<4x512xbf16, #tpu.memory_space<vmem>>, vector<1x64xbf16>
    tpu.vector_store %arg14[%c0_143, %c64], %143 {strides = array<i32>} : memref<4x512xbf16, #tpu.memory_space<vmem>>, vector<1x64xbf16>,
    %145 = vector.extract_strided_slice %140 {offsets = [2, 0], sizes = [1, 64], strides = [1, 1]} : vector<8x64xbf16> to vector<1x64xbf16>
    %c0_144 = arith.constant 0 : index
    %c128 = arith.constant 128 : index
    %146 = vector.load %arg14[%c0_144, %c128] : memref<4x512xbf16, #tpu.memory_space<vmem>>, vector<1x64xbf16>
    tpu.vector_store %arg14[%c0_144, %c128], %145 {strides = array<i32>} : memref<4x512xbf16, #tpu.memory_space<vmem>>, vector<1x64xbf16>,
    %147 = vector.extract_strided_slice %140 {offsets = [3, 0], sizes = [1, 64], strides = [1, 1]} : vector<8x64xbf16> to vector<1x64xbf16>
    %c0_145 = arith.constant 0 : index
    %c192 = arith.constant 192 : index
    %148 = vector.load %arg14[%c0_145, %c192] : memref<4x512xbf16, #tpu.memory_space<vmem>>, vector<1x64xbf16>
    tpu.vector_store %arg14[%c0_145, %c192], %147 {strides = array<i32>} : memref<4x512xbf16, #tpu.memory_space<vmem>>, vector<1x64xbf16>,
    %149 = vector.extract_strided_slice %140 {offsets = [4, 0], sizes = [1, 64], strides = [1, 1]} : vector<8x64xbf16> to vector<1x64xbf16>
    %c0_146 = arith.constant 0 : index
    %c256 = arith.constant 256 : index
    %150 = vector.load %arg14[%c0_146, %c256] : memref<4x512xbf16, #tpu.memory_space<vmem>>, vector<1x64xbf16>
    tpu.vector_store %arg14[%c0_146, %c256], %149 {strides = array<i32>} : memref<4x512xbf16, #tpu.memory_space<vmem>>, vector<1x64xbf16>,
    %151 = vector.extract_strided_slice %140 {offsets = [5, 0], sizes = [1, 64], strides = [1, 1]} : vector<8x64xbf16> to vector<1x64xbf16>
    %c0_147 = arith.constant 0 : index
    %c320 = arith.constant 320 : index
    %152 = vector.load %arg14[%c0_147, %c320] : memref<4x512xbf16, #tpu.memory_space<vmem>>, vector<1x64xbf16>
    tpu.vector_store %arg14[%c0_147, %c320], %151 {strides = array<i32>} : memref<4x512xbf16, #tpu.memory_space<vmem>>, vector<1x64xbf16>,
    %153 = vector.extract_strided_slice %140 {offsets = [6, 0], sizes = [1, 64], strides = [1, 1]} : vector<8x64xbf16> to vector<1x64xbf16>
    %c0_148 = arith.constant 0 : index
    %c384 = arith.constant 384 : index
    %154 = vector.load %arg14[%c0_148, %c384] : memref<4x512xbf16, #tpu.memory_space<vmem>>, vector<1x64xbf16>
    tpu.vector_store %arg14[%c0_148, %c384], %153 {strides = array<i32>} : memref<4x512xbf16, #tpu.memory_space<vmem>>, vector<1x64xbf16>,
    %155 = vector.extract_strided_slice %140 {offsets = [7, 0], sizes = [1, 64], strides = [1, 1]} : vector<8x64xbf16> to vector<1x64xbf16>
    %c0_149 = arith.constant 0 : index
    %c448 = arith.constant 448 : index
    %156 = vector.load %arg14[%c0_149, %c448] : memref<4x512xbf16, #tpu.memory_space<vmem>>, vector<1x64xbf16>
    tpu.vector_store %arg14[%c0_149, %c448], %155 {strides = array<i32>} : memref<4x512xbf16, #tpu.memory_space<vmem>>, vector<1x64xbf16>,
    %c0_150 = arith.constant 0 : index
    %c676 = arith.constant 676 : index
    %157 = vector.load %arg13[%c0_150, %c676] : memref<8x2596xbf16, #tpu.memory_space<vmem>>, vector<8x568xbf16>
    %c0_151 = arith.constant 0 : index
    %c0_152 = arith.constant 0 : index
    %158 = vector.load %arg7[%c0_151, %c0_152] : memref<568x64xbf16, #tpu.memory_space<vmem>>, vector<568x64xbf16>
    %cst_153 = arith.constant dense<0.000000e+00> : vector<8x64xf32>
    %159 = tpu.matmul %157, %158, %cst_153 {dimension_numbers = #tpu.dot_dimension_numbers<[1], [0], [0], [1], [0, 0, 1, 1], [], []>} : vector<8x568xbf16>, vector<568x64xbf16>, vector<8x64xf32> -> vector<8x64xf32>
    %160 = arith.truncf %159 : vector<8x64xf32> to vector<8x64xbf16>
    %161 = vector.extract_strided_slice %160 {offsets = [0, 0], sizes = [1, 64], strides = [1, 1]} : vector<8x64xbf16> to vector<1x64xbf16>
    %c1_154 = arith.constant 1 : index
    %c0_155 = arith.constant 0 : index
    %162 = vector.load %arg14[%c1_154, %c0_155] : memref<4x512xbf16, #tpu.memory_space<vmem>>, vector<1x64xbf16>
    tpu.vector_store %arg14[%c1_154, %c0_155], %161 {strides = array<i32>} : memref<4x512xbf16, #tpu.memory_space<vmem>>, vector<1x64xbf16>,
    %163 = vector.extract_strided_slice %160 {offsets = [1, 0], sizes = [1, 64], strides = [1, 1]} : vector<8x64xbf16> to vector<1x64xbf16>
    %c1_156 = arith.constant 1 : index
    %c64_157 = arith.constant 64 : index
    %164 = vector.load %arg14[%c1_156, %c64_157] : memref<4x512xbf16, #tpu.memory_space<vmem>>, vector<1x64xbf16>
    tpu.vector_store %arg14[%c1_156, %c64_157], %163 {strides = array<i32>} : memref<4x512xbf16, #tpu.memory_space<vmem>>, vector<1x64xbf16>,
    %165 = vector.extract_strided_slice %160 {offsets = [2, 0], sizes = [1, 64], strides = [1, 1]} : vector<8x64xbf16> to vector<1x64xbf16>
    %c1_158 = arith.constant 1 : index
    %c128_159 = arith.constant 128 : index
    %166 = vector.load %arg14[%c1_158, %c128_159] : memref<4x512xbf16, #tpu.memory_space<vmem>>, vector<1x64xbf16>
    tpu.vector_store %arg14[%c1_158, %c128_159], %165 {strides = array<i32>} : memref<4x512xbf16, #tpu.memory_space<vmem>>, vector<1x64xbf16>,
    %167 = vector.extract_strided_slice %160 {offsets = [3, 0], sizes = [1, 64], strides = [1, 1]} : vector<8x64xbf16> to vector<1x64xbf16>
    %c1_160 = arith.constant 1 : index
    %c192_161 = arith.constant 192 : index
    %168 = vector.load %arg14[%c1_160, %c192_161] : memref<4x512xbf16, #tpu.memory_space<vmem>>, vector<1x64xbf16>
    tpu.vector_store %arg14[%c1_160, %c192_161], %167 {strides = array<i32>} : memref<4x512xbf16, #tpu.memory_space<vmem>>, vector<1x64xbf16>,
    %169 = vector.extract_strided_slice %160 {offsets = [4, 0], sizes = [1, 64], strides = [1, 1]} : vector<8x64xbf16> to vector<1x64xbf16>
    %c1_162 = arith.constant 1 : index
    %c256_163 = arith.constant 256 : index
    %170 = vector.load %arg14[%c1_162, %c256_163] : memref<4x512xbf16, #tpu.memory_space<vmem>>, vector<1x64xbf16>
    tpu.vector_store %arg14[%c1_162, %c256_163], %169 {strides = array<i32>} : memref<4x512xbf16, #tpu.memory_space<vmem>>, vector<1x64xbf16>,
    %171 = vector.extract_strided_slice %160 {offsets = [5, 0], sizes = [1, 64], strides = [1, 1]} : vector<8x64xbf16> to vector<1x64xbf16>
    %c1_164 = arith.constant 1 : index
    %c320_165 = arith.constant 320 : index
    %172 = vector.load %arg14[%c1_164, %c320_165] : memref<4x512xbf16, #tpu.memory_space<vmem>>, vector<1x64xbf16>
    tpu.vector_store %arg14[%c1_164, %c320_165], %171 {strides = array<i32>} : memref<4x512xbf16, #tpu.memory_space<vmem>>, vector<1x64xbf16>,
    %173 = vector.extract_strided_slice %160 {offsets = [6, 0], sizes = [1, 64], strides = [1, 1]} : vector<8x64xbf16> to vector<1x64xbf16>
    %c1_166 = arith.constant 1 : index
    %c384_167 = arith.constant 384 : index
    %174 = vector.load %arg14[%c1_166, %c384_167] : memref<4x512xbf16, #tpu.memory_space<vmem>>, vector<1x64xbf16>
    tpu.vector_store %arg14[%c1_166, %c384_167], %173 {strides = array<i32>} : memref<4x512xbf16, #tpu.memory_space<vmem>>, vector<1x64xbf16>,
    %175 = vector.extract_strided_slice %160 {offsets = [7, 0], sizes = [1, 64], strides = [1, 1]} : vector<8x64xbf16> to vector<1x64xbf16>
    %c1_168 = arith.constant 1 : index
    %c448_169 = arith.constant 448 : index
    %176 = vector.load %arg14[%c1_168, %c448_169] : memref<4x512xbf16, #tpu.memory_space<vmem>>, vector<1x64xbf16>
    tpu.vector_store %arg14[%c1_168, %c448_169], %175 {strides = array<i32>} : memref<4x512xbf16, #tpu.memory_space<vmem>>, vector<1x64xbf16>,
    %c0_170 = arith.constant 0 : index
    %c1352 = arith.constant 1352 : index
    %177 = vector.load %arg13[%c0_170, %c1352] : memref<8x2596xbf16, #tpu.memory_space<vmem>>, vector<8x568xbf16>
    %c0_171 = arith.constant 0 : index
    %c0_172 = arith.constant 0 : index
    %178 = vector.load %arg7[%c0_171, %c0_172] : memref<568x64xbf16, #tpu.memory_space<vmem>>, vector<568x64xbf16>
    %cst_173 = arith.constant dense<0.000000e+00> : vector<8x64xf32>
    %179 = tpu.matmul %177, %178, %cst_173 {dimension_numbers = #tpu.dot_dimension_numbers<[1], [0], [0], [1], [0, 0, 1, 1], [], []>} : vector<8x568xbf16>, vector<568x64xbf16>, vector<8x64xf32> -> vector<8x64xf32>
    %180 = arith.truncf %179 : vector<8x64xf32> to vector<8x64xbf16>
    %181 = vector.extract_strided_slice %180 {offsets = [0, 0], sizes = [1, 64], strides = [1, 1]} : vector<8x64xbf16> to vector<1x64xbf16>
    %c2_174 = arith.constant 2 : index
    %c0_175 = arith.constant 0 : index
    %182 = vector.load %arg14[%c2_174, %c0_175] : memref<4x512xbf16, #tpu.memory_space<vmem>>, vector<1x64xbf16>
    tpu.vector_store %arg14[%c2_174, %c0_175], %181 {strides = array<i32>} : memref<4x512xbf16, #tpu.memory_space<vmem>>, vector<1x64xbf16>,
    %183 = vector.extract_strided_slice %180 {offsets = [1, 0], sizes = [1, 64], strides = [1, 1]} : vector<8x64xbf16> to vector<1x64xbf16>
    %c2_176 = arith.constant 2 : index
    %c64_177 = arith.constant 64 : index
    %184 = vector.load %arg14[%c2_176, %c64_177] : memref<4x512xbf16, #tpu.memory_space<vmem>>, vector<1x64xbf16>
    tpu.vector_store %arg14[%c2_176, %c64_177], %183 {strides = array<i32>} : memref<4x512xbf16, #tpu.memory_space<vmem>>, vector<1x64xbf16>,
    %185 = vector.extract_strided_slice %180 {offsets = [2, 0], sizes = [1, 64], strides = [1, 1]} : vector<8x64xbf16> to vector<1x64xbf16>
    %c2_178 = arith.constant 2 : index
    %c128_179 = arith.constant 128 : index
    %186 = vector.load %arg14[%c2_178, %c128_179] : memref<4x512xbf16, #tpu.memory_space<vmem>>, vector<1x64xbf16>
    tpu.vector_store %arg14[%c2_178, %c128_179], %185 {strides = array<i32>} : memref<4x512xbf16, #tpu.memory_space<vmem>>, vector<1x64xbf16>,
    %187 = vector.extract_strided_slice %180 {offsets = [3, 0], sizes = [1, 64], strides = [1, 1]} : vector<8x64xbf16> to vector<1x64xbf16>
    %c2_180 = arith.constant 2 : index
    %c192_181 = arith.constant 192 : index
    %188 = vector.load %arg14[%c2_180, %c192_181] : memref<4x512xbf16, #tpu.memory_space<vmem>>, vector<1x64xbf16>
    tpu.vector_store %arg14[%c2_180, %c192_181], %187 {strides = array<i32>} : memref<4x512xbf16, #tpu.memory_space<vmem>>, vector<1x64xbf16>,
    %189 = vector.extract_strided_slice %180 {offsets = [4, 0], sizes = [1, 64], strides = [1, 1]} : vector<8x64xbf16> to vector<1x64xbf16>
    %c2_182 = arith.constant 2 : index
    %c256_183 = arith.constant 256 : index
    %190 = vector.load %arg14[%c2_182, %c256_183] : memref<4x512xbf16, #tpu.memory_space<vmem>>, vector<1x64xbf16>
    tpu.vector_store %arg14[%c2_182, %c256_183], %189 {strides = array<i32>} : memref<4x512xbf16, #tpu.memory_space<vmem>>, vector<1x64xbf16>,
    %191 = vector.extract_strided_slice %180 {offsets = [5, 0], sizes = [1, 64], strides = [1, 1]} : vector<8x64xbf16> to vector<1x64xbf16>
    %c2_184 = arith.constant 2 : index
    %c320_185 = arith.constant 320 : index
    %192 = vector.load %arg14[%c2_184, %c320_185] : memref<4x512xbf16, #tpu.memory_space<vmem>>, vector<1x64xbf16>
    tpu.vector_store %arg14[%c2_184, %c320_185], %191 {strides = array<i32>} : memref<4x512xbf16, #tpu.memory_space<vmem>>, vector<1x64xbf16>,
    %193 = vector.extract_strided_slice %180 {offsets = [6, 0], sizes = [1, 64], strides = [1, 1]} : vector<8x64xbf16> to vector<1x64xbf16>
    %c2_186 = arith.constant 2 : index
    %c384_187 = arith.constant 384 : index
    %194 = vector.load %arg14[%c2_186, %c384_187] : memref<4x512xbf16, #tpu.memory_space<vmem>>, vector<1x64xbf16>
    tpu.vector_store %arg14[%c2_186, %c384_187], %193 {strides = array<i32>} : memref<4x512xbf16, #tpu.memory_space<vmem>>, vector<1x64xbf16>,
    %195 = vector.extract_strided_slice %180 {offsets = [7, 0], sizes = [1, 64], strides = [1, 1]} : vector<8x64xbf16> to vector<1x64xbf16>
    %c2_188 = arith.constant 2 : index
    %c448_189 = arith.constant 448 : index
    %196 = vector.load %arg14[%c2_188, %c448_189] : memref<4x512xbf16, #tpu.memory_space<vmem>>, vector<1x64xbf16>
    tpu.vector_store %arg14[%c2_188, %c448_189], %195 {strides = array<i32>} : memref<4x512xbf16, #tpu.memory_space<vmem>>, vector<1x64xbf16>,
    %c0_190 = arith.constant 0 : index
    %c2028 = arith.constant 2028 : index
    %197 = vector.load %arg13[%c0_190, %c2028] : memref<8x2596xbf16, #tpu.memory_space<vmem>>, vector<8x568xbf16>
    %c0_191 = arith.constant 0 : index
    %c0_192 = arith.constant 0 : index
    %198 = vector.load %arg7[%c0_191, %c0_192] : memref<568x64xbf16, #tpu.memory_space<vmem>>, vector<568x64xbf16>
    %cst_193 = arith.constant dense<0.000000e+00> : vector<8x64xf32>
    %199 = tpu.matmul %197, %198, %cst_193 {dimension_numbers = #tpu.dot_dimension_numbers<[1], [0], [0], [1], [0, 0, 1, 1], [], []>} : vector<8x568xbf16>, vector<568x64xbf16>, vector<8x64xf32> -> vector<8x64xf32>
    %200 = arith.truncf %199 : vector<8x64xf32> to vector<8x64xbf16>
    %201 = vector.extract_strided_slice %200 {offsets = [0, 0], sizes = [1, 64], strides = [1, 1]} : vector<8x64xbf16> to vector<1x64xbf16>
    %c3_194 = arith.constant 3 : index
    %c0_195 = arith.constant 0 : index
    %202 = vector.load %arg14[%c3_194, %c0_195] : memref<4x512xbf16, #tpu.memory_space<vmem>>, vector<1x64xbf16>
    tpu.vector_store %arg14[%c3_194, %c0_195], %201 {strides = array<i32>} : memref<4x512xbf16, #tpu.memory_space<vmem>>, vector<1x64xbf16>,
    %203 = vector.extract_strided_slice %200 {offsets = [1, 0], sizes = [1, 64], strides = [1, 1]} : vector<8x64xbf16> to vector<1x64xbf16>
    %c3_196 = arith.constant 3 : index
    %c64_197 = arith.constant 64 : index
    %204 = vector.load %arg14[%c3_196, %c64_197] : memref<4x512xbf16, #tpu.memory_space<vmem>>, vector<1x64xbf16>
    tpu.vector_store %arg14[%c3_196, %c64_197], %203 {strides = array<i32>} : memref<4x512xbf16, #tpu.memory_space<vmem>>, vector<1x64xbf16>,
    %205 = vector.extract_strided_slice %200 {offsets = [2, 0], sizes = [1, 64], strides = [1, 1]} : vector<8x64xbf16> to vector<1x64xbf16>
    %c3_198 = arith.constant 3 : index
    %c128_199 = arith.constant 128 : index
    %206 = vector.load %arg14[%c3_198, %c128_199] : memref<4x512xbf16, #tpu.memory_space<vmem>>, vector<1x64xbf16>
    tpu.vector_store %arg14[%c3_198, %c128_199], %205 {strides = array<i32>} : memref<4x512xbf16, #tpu.memory_space<vmem>>, vector<1x64xbf16>,
    %207 = vector.extract_strided_slice %200 {offsets = [3, 0], sizes = [1, 64], strides = [1, 1]} : vector<8x64xbf16> to vector<1x64xbf16>
    %c3_200 = arith.constant 3 : index
    %c192_201 = arith.constant 192 : index
    %208 = vector.load %arg14[%c3_200, %c192_201] : memref<4x512xbf16, #tpu.memory_space<vmem>>, vector<1x64xbf16>
    tpu.vector_store %arg14[%c3_200, %c192_201], %207 {strides = array<i32>} : memref<4x512xbf16, #tpu.memory_space<vmem>>, vector<1x64xbf16>,
    %209 = vector.extract_strided_slice %200 {offsets = [4, 0], sizes = [1, 64], strides = [1, 1]} : vector<8x64xbf16> to vector<1x64xbf16>
    %c3_202 = arith.constant 3 : index
    %c256_203 = arith.constant 256 : index
    %210 = vector.load %arg14[%c3_202, %c256_203] : memref<4x512xbf16, #tpu.memory_space<vmem>>, vector<1x64xbf16>
    tpu.vector_store %arg14[%c3_202, %c256_203], %209 {strides = array<i32>} : memref<4x512xbf16, #tpu.memory_space<vmem>>, vector<1x64xbf16>,
    %211 = vector.extract_strided_slice %200 {offsets = [5, 0], sizes = [1, 64], strides = [1, 1]} : vector<8x64xbf16> to vector<1x64xbf16>
    %c3_204 = arith.constant 3 : index
    %c320_205 = arith.constant 320 : index
    %212 = vector.load %arg14[%c3_204, %c320_205] : memref<4x512xbf16, #tpu.memory_space<vmem>>, vector<1x64xbf16>
    tpu.vector_store %arg14[%c3_204, %c320_205], %211 {strides = array<i32>} : memref<4x512xbf16, #tpu.memory_space<vmem>>, vector<1x64xbf16>,
    %213 = vector.extract_strided_slice %200 {offsets = [6, 0], sizes = [1, 64], strides = [1, 1]} : vector<8x64xbf16> to vector<1x64xbf16>
    %c3_206 = arith.constant 3 : index
    %c384_207 = arith.constant 384 : index
    %214 = vector.load %arg14[%c3_206, %c384_207] : memref<4x512xbf16, #tpu.memory_space<vmem>>, vector<1x64xbf16>
    tpu.vector_store %arg14[%c3_206, %c384_207], %213 {strides = array<i32>} : memref<4x512xbf16, #tpu.memory_space<vmem>>, vector<1x64xbf16>,
    %215 = vector.extract_strided_slice %200 {offsets = [7, 0], sizes = [1, 64], strides = [1, 1]} : vector<8x64xbf16> to vector<1x64xbf16>
    %c3_208 = arith.constant 3 : index
    %c448_209 = arith.constant 448 : index
    %216 = vector.load %arg14[%c3_208, %c448_209] : memref<4x512xbf16, #tpu.memory_space<vmem>>, vector<1x64xbf16>
    tpu.vector_store %arg14[%c3_208, %c448_209], %215 {strides = array<i32>} : memref<4x512xbf16, #tpu.memory_space<vmem>>, vector<1x64xbf16>,
    %c0_210 = arith.constant 0 : index
    %c0_211 = arith.constant 0 : index
    %217 = vector.load %arg14[%c0_210, %c0_211] : memref<4x512xbf16, #tpu.memory_space<vmem>>, vector<4x512xbf16>
    %c0_212 = arith.constant 0 : index
    %c0_213 = arith.constant 0 : index
    %218 = vector.load %arg8[%c0_212, %c0_213] : memref<512x128xbf16, #tpu.memory_space<vmem>>, vector<512x128xbf16>
    %cst_214 = arith.constant dense<0.000000e+00> : vector<4x128xf32>
    %219 = tpu.matmul %217, %218, %cst_214 {dimension_numbers = #tpu.dot_dimension_numbers<[1], [0], [0], [1], [0, 0, 1, 1], [], []>} : vector<4x512xbf16>, vector<512x128xbf16>, vector<4x128xf32> -> vector<4x128xf32>
    %c0_215 = arith.constant 0 : index
    %c0_216 = arith.constant 0 : index
    %220 = vector.load %arg9[%c0_215, %c0_216] : memref<1x128xf32, #tpu.memory_space<vmem>>, vector<1x128xf32>
    %221 = vector.broadcast %220 : vector<1x128xf32> to vector<4x128xf32>
    %222 = arith.addf %219, %221 : vector<4x128xf32>
    %cst_217 = arith.constant dense<0xFF800000> : vector<4xf32>
    %223 = vector.multi_reduction <maximumf>, %222, %cst_217 [1] : vector<4x128xf32> to vector<4xf32>
    %224 = vector.shape_cast %223 : vector<4xf32> to vector<4x1xf32>
    %225 = vector.broadcast %224 : vector<4x1xf32> to vector<4x128xf32>
    %226 = arith.subf %222, %225 : vector<4x128xf32>
    %227 = math.exp %226 : vector<4x128xf32>
    %cst_218 = arith.constant dense<0.000000e+00> : vector<4xf32>
    %228 = vector.multi_reduction <add>, %227, %cst_218 [1] : vector<4x128xf32> to vector<4xf32>
    %229 = vector.shape_cast %228 : vector<4xf32> to vector<4x1xf32>
    %230 = tpu.reciprocal %229 {approx = true} : vector<4x1xf32> -> vector<4x1xf32>
    %231 = vector.broadcast %230 : vector<4x1xf32> to vector<4x128xf32>
    %232 = arith.mulf %227, %231 : vector<4x128xf32>
    %c0_219 = arith.constant 0 : index
    %c0_220 = arith.constant 0 : index
    %c0_221 = arith.constant 0 : index
    %233 = vector.load %arg10[%c0_219, %c0_220, %c0_221] : memref<1x4x128xf32, #tpu.memory_space<vmem>>, vector<1x4x128xf32>
    %234 = vector.shape_cast %233 : vector<1x4x128xf32> to vector<4x128xf32>
    %235 = vector.shape_cast %232 : vector<4x128xf32> to vector<1x4x128xf32>
    tpu.vector_store %arg10[%c0_219, %c0_220, %c0_221], %235 {strides = array<i32>} : memref<1x4x128xf32, #tpu.memory_space<vmem>>, vector<1x4x128xf32>,
    return
  }
  func.func @transform_0(%arg0: i32) -> (i32, i32, i32) {
    %c0_i32 = arith.constant 0 : i32
    %c0_i32_0 = arith.constant 0 : i32
    %c0_i32_1 = arith.constant 0 : i32
    return %arg0, %c0_i32, %c0_i32_0 : i32, i32, i32
  }
  func.func @transform_1(%arg0: i32) -> (i32, i32) {
    %c0_i32 = arith.constant 0 : i32
    %c0_i32_0 = arith.constant 0 : i32
    %c0_i32_1 = arith.constant 0 : i32
    return %c0_i32, %c0_i32_0 : i32, i32
  }
  func.func @transform_2(%arg0: i32) -> (i32, i32, i32) {
    %c0_i32 = arith.constant 0 : i32
    %c0_i32_0 = arith.constant 0 : i32
    %c0_i32_1 = arith.constant 0 : i32
    %c0_i32_2 = arith.constant 0 : i32
    return %c0_i32, %c0_i32_0, %c0_i32_1 : i32, i32, i32
  }
  func.func @transform_3(%arg0: i32) -> (i32, i32) {
    %c0_i32 = arith.constant 0 : i32
    %c0_i32_0 = arith.constant 0 : i32
    %c0_i32_1 = arith.constant 0 : i32
    return %c0_i32, %c0_i32_0 : i32, i32
  }
  func.func @transform_4(%arg0: i32) -> (i32, i32, i32) {
    %c0_i32 = arith.constant 0 : i32
    %c0_i32_0 = arith.constant 0 : i32
    %c0_i32_1 = arith.constant 0 : i32
    %c0_i32_2 = arith.constant 0 : i32
    return %c0_i32, %c0_i32_0, %c0_i32_1 : i32, i32, i32
  }
  func.func @transform_5(%arg0: i32) -> (i32, i32) {
    %c0_i32 = arith.constant 0 : i32
    %c0_i32_0 = arith.constant 0 : i32
    %c0_i32_1 = arith.constant 0 : i32
    return %c0_i32, %c0_i32_0 : i32, i32
  }
  func.func @transform_6(%arg0: i32) -> (i32, i32) {
    %c0_i32 = arith.constant 0 : i32
    %c0_i32_0 = arith.constant 0 : i32
    %c0_i32_1 = arith.constant 0 : i32
    return %c0_i32, %c0_i32_0 : i32, i32
  }
  func.func @transform_7(%arg0: i32) -> (i32, i32) {
    %c0_i32 = arith.constant 0 : i32
    %c0_i32_0 = arith.constant 0 : i32
    %c0_i32_1 = arith.constant 0 : i32
    return %c0_i32, %c0_i32_0 : i32, i32
  }
  func.func @transform_8(%arg0: i32) -> (i32, i32) {
    %c0_i32 = arith.constant 0 : i32
    %c0_i32_0 = arith.constant 0 : i32
    %c0_i32_1 = arith.constant 0 : i32
    return %c0_i32, %c0_i32_0 : i32, i32
  }
  func.func @transform_9(%arg0: i32) -> (i32, i32, i32) {
    %c0_i32 = arith.constant 0 : i32
    %c0_i32_0 = arith.constant 0 : i32
    %c0_i32_1 = arith.constant 0 : i32
    return %arg0, %c0_i32, %c0_i32_0 : i32, i32, i32
  }
}

</mosaic_0001>

<bundles_post_ra>
// kernel: maml_forward.1
= control target key start
LH: loop header
LB: loop body
LE: loop exit
PB: predicated region body
PF: predicated region fallthrough
CT: control target
= control target key end

     0   :  { %14 = vsyncpa [#allocation7], 0  ;;  %s23507_s0 = inlined_call_operand.vmem [shape: bf16[2,4,2704], index: 0, kind: input, shape index: {}]   ;;  %s23508_s1 = inlined_call_operand.vmem [shape: f32[1,2650], index: 1, kind: input, shape index: {}]   ;;  %s23509_s2 = inlined_call_operand.vmem [shape: bf16[9,8,4], index: 2, kind: input, shape index: {}]   ;;  %s23510_s3 = inlined_call_operand.vmem [shape: f32[8,1], index: 3, kind: input, shape index: {}]   ;;  %s23511_s4 = inlined_call_operand.vmem [shape: bf16[9,8,8], index: 4, kind: input, shape index: {}]   ;;  %s23512_s5 = inlined_call_operand.vmem [shape: f32[8,1], index: 5, kind: input, shape index: {}]   ;;  %s23513_s6 = inlined_call_operand.vmem [shape: bf16[568,64], index: 6, kind: input, shape index: {}]   ;;  %s23514_s7 = inlined_call_operand.vmem [shape: bf16[512,128], index: 7, kind: input, shape index: {}]   ;;  %s23515_s8 = inlined_call_operand.vmem [shape: f32[1,128], index: 8, kind: input, shape index: {}]   ;;  %s23516_s9 = inlined_call_operand.hbm [shape: f32[2,4,128], index: 9, kind: output, shape index: {}]  }
   0x1   :  { %16 = vsyncpa [#allocation7 + $0x1], 0  ;;  %s17306_s30 = smov 0   ;;  %s17308_s10 = smov 0  }
   0x2   :  { %s17310_s11 = smov 0   ;;  %s17312_s12 = smov 0  }
   0x3 LB: > { %s17327_s13 = sadd.s32 4294967295, %s17236_s12   ;;  %s15651_s14 = sadd.s32 4294967294, %s17236_s12   ;;  %s17236_s12 = sphi %s17312_s12, %s23553_s12   ;;  %s17232_s11 = sphi %s17310_s11, %s23552_s11   ;;  %s17228_s10 = sphi %s17308_s10, %s23551_s10   ;;  %s17224_s30 = sphi %s17306_s30, %s23550_s30  }
   0x4   : > { %s17331_s15 = sadd.s32 1, %s17236_s12   ;;  %s223_s16 = sadd.s32 1, %s17232_s11 }
   0x5   : > { %s220_s17 = ssub.s32 %s17236_s12, %s17331_s15  ;;  %p233_p0 = scmp.ne.s32.totalorder %s17232_s11, %s17228_s10 }
   0x6   : > { %p221_p1 = scmp.eq.s32.totalorder %s220_s17, 0  ;;  %p234_p2 = scmp.eq.s32.totalorder %s17327_s13, 1 }
   0x7   : > { %p239_p3 = scmp.ne.s32.totalorder %s17228_s10, %s17224_s30  ;;  %p240_p4 = scmp.eq.s32.totalorder %s15651_s14, 1 }
   0x8   : > { %s17342_s18 = scalar_select %p221_p1, %s17232_s11, %s223_s16  }
   0x9   : > { %p17344_p5 = por %p234_p2, %p233_p0  ;;  %p17348_p6 = por %p240_p4, %p239_p3 }
   0xa   : > { %p15654_p7 = scmp.ge.s32.totalorder %s17236_s12, 1  ;;  %p290_p8 = scmp.lt.s32.totalorder %s17236_s12, 3 }
   0xc   : > { %p291_p9 = pnand %p15654_p7, %p290_p8 }
   0xd   : > { %p326_p10 = scmp.lt.s32.totalorder (!%p291_p9), %s17327_s13, 1  ;;  %v351_v0 = vlaneseq (!%p291_p9)  ;;  %v17238_v1 = vmov (!%p291_p9), 1983009808   ;;  %v17239_v6 = vmov (!%p291_p9), 0   ;;  %s23521_s26 = smov (!%p291_p9), 127   ;;  %vm481_vm0 = vcmask (!%p291_p9), 1039360  }
   0xe   : > { %294 = sbr.rel (%p291_p9) target bundleno = 2989 (0xbad), region = 56  ;;  %v349_v2 = vunpack.c.l.s4 (!%p291_p9), %v17238_v1  ;;  %602 = vmatprep.mubr.bf16.mxu0 (!%p291_p9), %v17239_v6  ;;  %643 = vmatprep.mubr.bf16.mxu1 (!%p291_p9), %v17239_v6  ;;  %s17241_s27 = smov (!%p291_p9), 126   ;;  %vm506_vm1 = vcmask (!%p291_p9), 1041408   ;;  %v17577_v45 = vld [vmem:[%s23509_s2 + $0x4] sm:$0xf] (!%p291_p9)  ;;  %vm502_vm2 = vcmask (!%p291_p9), 31744  }
   0xf   : > { %v17356_v3 = vshrl.u32 (!%p291_p9), %v351_v0, 7  ;;  %16874 = vset.pattern.permute.xlu1 (!%p291_p9), %v17239_v6  ;;  %16875 = vset.pattern.permute.xlu0 (!%p291_p9), %v17239_v6  ;;  %s23519_s28 = smov (!%p291_p9), 102   ;;  %s23517_s16 = smov (!%p291_p9), 101   ;;  %vm17245_vm3 = vmmov (!%p291_p9), 0   ;;  %vm1684_vm4 = vcmask (!%p291_p9), 1031168   ;;  %vm2390_vm5 = vcmask (!%p291_p9), 834560  }
  0x10   : > { %v350_v4 = vunpack.c.0.s8 (!%p291_p9), %v349_v2  ;;  %s17247_s29 = smov (!%p291_p9), 76   ;;  %vm3096_vm6 = vcmask (!%p291_p9), 826368   ;;  %vm3802_vm7 = vcmask (!%p291_p9), 818176   ;;  %s23523_s17 = smov (!%p291_p9), 74   ;;  %vm4511_vm8 = vcmask (!%p291_p9), 621568  }
  0x11   : > { %vm5221_vm9 = vcmask (!%p291_p9), 613376   ;;  %vm5931_vm10 = vcmask (!%p291_p9), 605184   ;;  %vm6796_vm11 = vcmask (!%p291_p9), 216064   ;;  %vm6798_vm12 = vcmask (!%p291_p9), 1044392   ;;  %s23529_s23 = smov (!%p291_p9), 127   ;;  %s23530_s24 = smov (!%p291_p9), 102  }
  0x12   : > { %v17359_v5 = vsub.s32 (!%p291_p9), %v350_v4, %v17356_v3  ;;  %6797 = vst.msk [vmem:[#allocation2] sm:$0xf] (!%p291_p9), %vm6796_vm11, %v17239_v6  ;;  %vm6799_vm13 = vcmask (!%p291_p9), 130052   ;;  %vm6941_vm15 = vcmask (!%p291_p9), 1043672  }
  0x13   : > { %vm6800_vm14 = vmor (!%p291_p9), %vm6799_vm13, %vm6798_vm12  ;;  %vm6910_vm12 = vcmask (!%p291_p9), 1043456   ;;  %vm6954_vm13 = vcmask (!%p291_p9), 953344  }
  0x14   : > { %6801 = vst.msk [vmem:[#allocation2 + $0x50] sm:$0xff] (!%p291_p9), %vm6800_vm14, %v17239_v6  ;;  %vm7085_vm14 = vcmask (!%p291_p9), 64512  }
  0x15   : > { %s327_s21 = scalar_select %p326_p10, %s17327_s13, 1 }
  0x17   : > { %s16817_s22 = smul.u32 44, %s327_s21  ;;  %s17250_s21 = smov 27  }
  0x19   : > { %s17366_s25 = scalar_lea.vmem %s23507_s0, %s16817_s22  ;;  %s17246_s22 = smov 100  }
  0x1a   : > { %v333_v7 = vld [vmem:[%s17366_s25] sm:$0xff]  ;;  %v334_v8 = vld [vmem:[%s17366_s25 + $0x8] sm:$0xff]  ;;  %v335_v16 = vld [vmem:[%s17366_s25 + $0x10] sm:$0xff] }
  0x1b   : > { %v17373_v9 = vrot.slane %v333_v7, %v17359_v5  ;;  %v347_v10 = vcombine.high %v333_v7, %v333_v7  ;;  %v17376_v11 = vrot.slane %v334_v8, %v17359_v5  ;;  %v364_v15 = vcombine.high %v334_v8, %v334_v8  ;;  %v336_v22 = vld [vmem:[%s17366_s25 + $0x18] sm:$0xff]  ;;  %v337_v28 = vld [vmem:[%s17366_s25 + $0x20] sm:$0xff]  ;;  %v17482_v37 = vld.sshfl [vmem:[%s17366_s25 + $0x28] sm:$0x3 pattern:$0x76325410] }
  0x1c   : > { %v17414_v20 = vrot.slane %v335_v16, %v17359_v5  ;;  %v381_v21 = vcombine.high %v335_v16, %v335_v16  ;;  %v17437_v26 = vrot.slane %v336_v22, %v17359_v5  ;;  %v398_v27 = vcombine.high %v336_v22, %v336_v22 }
  0x1d   : > { %439 = vrot.lane.b32.xlu0 %v17373_v9, %s23521_s26  ;;  %v17381_v12 = vrot.slane %v347_v10, %v17359_v5  ;;  %v17385_v13 = vcombine.high %v17373_v9, %v17373_v9  ;;  %v17391_v14 = vcombine.high %v17376_v11, %v17376_v11  ;;  %v17403_v18 = vrot.slane %v364_v15, %v17359_v5 }
  0x1e   : > { %v17423_v23 = vcombine.high %v17414_v20, %v17414_v20  ;;  %v17426_v24 = vrot.slane %v381_v21, %v17359_v5  ;;  %v17446_v29 = vcombine.high %v17437_v26, %v17437_v26  ;;  %v17449_v30 = vrot.slane %v398_v27, %v17359_v5 }
  0x1f   : > { %443 = vrot.lane.b32.xlu1 %v17381_v12, %s23521_s26  ;;  %v17400_v17 = vcombine.high %v17381_v12, %v17381_v12  ;;  %v17411_v19 = vcombine.high %v17403_v18, %v17403_v18  ;;  %v17460_v32 = vrot.slane %v337_v28, %v17359_v5  ;;  %v415_v33 = vcombine.high %v337_v28, %v337_v28 }
  0x20   : > { %v17434_v25 = vcombine.high %v17426_v24, %v17426_v24  ;;  %v17457_v31 = vcombine.high %v17449_v30, %v17449_v30 }
  0x21   : > { %441 = vrot.lane.b32.xlu0 %v17385_v13, %s23521_s26  ;;  %v17468_v34 = vcombine.high %v17460_v32, %v17460_v32  ;;  %v17471_v35 = vrot.slane %v415_v33, %v17359_v5 }
  0x23   : > { %449 = vrot.lane.b32.xlu1 %v17391_v14, %s23521_s26  ;;  %v17479_v36 = vcombine.high %v17471_v35, %v17471_v35 }
  0x25   : > { %447 = vrot.lane.b32.xlu0 %v17376_v11, %s23521_s26 }
  0x27   : > { %445 = vrot.lane.b32.xlu1 %v17400_v17, %s23521_s26 }
  0x29   : > { %451 = vrot.lane.b32.xlu0 %v17403_v18, %s23521_s26 }
  0x2b   : > { %453 = vrot.lane.b32.xlu1 %v17411_v19, %s23521_s26 }
  0x2d   : > { %455 = vrot.lane.b32.xlu0 %v17414_v20, %s23521_s26 }
  0x2f   : > { %457 = vrot.lane.b32.xlu1 %v17423_v23, %s23521_s26 }
  0x31   : > { %459 = vrot.lane.b32.xlu0 %v17426_v24, %s23521_s26 }
  0x33   : > { %461 = vrot.lane.b32.xlu1 %v17434_v25, %s23521_s26 }
  0x35   : > { %463 = vrot.lane.b32.xlu0 %v17437_v26, %s23521_s26 }
  0x37   : > { %465 = vrot.lane.b32.xlu1 %v17446_v29, %s23521_s26 }
  0x39   : > { %467 = vrot.lane.b32.xlu0 %v17449_v30, %s23521_s26 }
  0x3b   : > { %469 = vrot.lane.b32.xlu1 %v17457_v31, %s23521_s26 }
  0x3d   : > { %471 = vrot.lane.b32.xlu0 %v17460_v32, %s23521_s26 }
  0x3f   : > { %473 = vrot.lane.b32.xlu1 %v17468_v34, %s23521_s26 }
  0x41   : > { %475 = vrot.lane.b32.xlu0 %v17471_v35, %s23521_s26 }
  0x43   : > { %477 = vrot.lane.b32.xlu1 %v17479_v36, %s23521_s26 }
  0x45   : > { %479 = vrot.lane.b32.xlu0 %v17482_v37, %s23521_s26 }
  0x47   : > { %1642 = vrot.lane.b32.xlu1 %v17373_v9, %s17241_s27 }
  0x49   : > { %1644 = vrot.lane.b32.xlu0 %v17385_v13, %s17241_s27 }
  0x4b   : > { %1646 = vrot.lane.b32.xlu1 %v17381_v12, %s17241_s27 }
  0x4d   : > { %1648 = vrot.lane.b32.xlu0 %v17400_v17, %s17241_s27 }
  0x4f   : > { %1650 = vrot.lane.b32.xlu1 %v17376_v11, %s17241_s27 }
  0x51   : > { %1652 = vrot.lane.b32.xlu0 %v17391_v14, %s17241_s27 }
  0x53   : > { %1654 = vrot.lane.b32.xlu1 %v17403_v18, %s17241_s27 }
  0x55   : > { %1656 = vrot.lane.b32.xlu0 %v17411_v19, %s17241_s27 }
  0x57   : > { %1658 = vrot.lane.b32.xlu1 %v17414_v20, %s17241_s27 }
  0x59   : > { %1660 = vrot.lane.b32.xlu0 %v17423_v23, %s17241_s27 }
  0x5b   : > { %1662 = vrot.lane.b32.xlu1 %v17426_v24, %s17241_s27 }
  0x5d   : > { %1664 = vrot.lane.b32.xlu0 %v17434_v25, %s17241_s27 }
  0x5f   : > { %1666 = vrot.lane.b32.xlu1 %v17437_v26, %s17241_s27 }
  0x61   : > { %1668 = vrot.lane.b32.xlu0 %v17446_v29, %s17241_s27 }
  0x63   : > { %1670 = vrot.lane.b32.xlu1 %v17449_v30, %s17241_s27 }
  0x65   : > { %1672 = vrot.lane.b32.xlu0 %v17457_v31, %s17241_s27 }
  0x67   : > { %1674 = vrot.lane.b32.xlu1 %v17460_v32, %s17241_s27 }
  0x69   : > { %1676 = vrot.lane.b32.xlu0 %v17468_v34, %s17241_s27 }
  0x6b   : > { %1678 = vrot.lane.b32.xlu1 %v17471_v35, %s17241_s27 }
  0x6d   : > { %1680 = vrot.lane.b32.xlu0 %v17479_v36, %s17241_s27 }
  0x6f   : > { %1682 = vrot.lane.b32.xlu1 %v17482_v37, %s17241_s27 }
  0x71   : > { %2348 = vrot.lane.b32.xlu0 %v17373_v9, %s23519_s28 }
  0x73   : > { %2350 = vrot.lane.b32.xlu1 %v17385_v13, %s23519_s28 }
  0x75   : > { %2352 = vrot.lane.b32.xlu0 %v17381_v12, %s23519_s28 }
  0x77   : > { %2354 = vrot.lane.b32.xlu1 %v17400_v17, %s23519_s28 }
  0x79   : > { %2356 = vrot.lane.b32.xlu0 %v17376_v11, %s23519_s28 }
  0x7b   : > { %2358 = vrot.lane.b32.xlu1 %v17391_v14, %s23519_s28 }
  0x7d   : > { %2360 = vrot.lane.b32.xlu0 %v17403_v18, %s23519_s28 }
  0x7f   : > { %2362 = vrot.lane.b32.xlu1 %v17411_v19, %s23519_s28 }
  0x81   : > { %2364 = vrot.lane.b32.xlu0 %v17414_v20, %s23519_s28 }
  0x83   : > { %2366 = vrot.lane.b32.xlu1 %v17423_v23, %s23519_s28 }
  0x85   : > { %2368 = vrot.lane.b32.xlu0 %v17426_v24, %s23519_s28 }
  0x87   : > { %2370 = vrot.lane.b32.xlu1 %v17434_v25, %s23519_s28 }
  0x89   : > { %2372 = vrot.lane.b32.xlu0 %v17437_v26, %s23519_s28 }
  0x8b   : > { %2374 = vrot.lane.b32.xlu1 %v17446_v29, %s23519_s28 }
  0x8d   : > { %2376 = vrot.lane.b32.xlu0 %v17449_v30, %s23519_s28 }
  0x8f   : > { %v440_v38 = vpop.permute.xlu0 %439  ;;  %2378 = vrot.lane.b32.xlu1 %v17457_v31, %s23519_s28 }
  0x91   : > { %v444_v39 = vpop.permute.xlu1 %443  ;;  %2380 = vrot.lane.b32.xlu0 %v17460_v32, %s23519_s28 }
  0x93   : > { %v442_v40 = vpop.permute.xlu0 %441  ;;  %2382 = vrot.lane.b32.xlu1 %v17468_v34, %s23519_s28 }
  0x94   : > { %v483_v41 = vsel %vm481_vm0, %v442_v40, %v444_v39  ;;  %v482_v42 = vsel %vm481_vm0, %v440_v38, %v442_v40 }
  0x95   : > { %15659 = vmatprep.subr.msk.bf16.mxu0 %vm506_vm1, %v483_v41  ;;  %v450_v43 = vpop.permute.xlu1 %449  ;;  %v508_v44 = vsel %vm506_vm1, %v482_v42, 0  ;;  %2384 = vrot.lane.b32.xlu0 %v17471_v35, %s23519_s28 }
  0x96   : > { %571 = vmatpush1.bf16.msra.mxu0 %v508_v44 }
  0x97   : > { %v448_v46 = vpop.permute.xlu0 %447  ;;  %2386 = vrot.lane.b32.xlu1 %v17479_v36, %s23519_s28 }
  0x98   : > { %v486_v48 = vsel %vm481_vm0, %v448_v46, %v450_v43 }
  0x99   : > { %15660 = vmatmul.mubr.msk.bf16.vlgmr.msra.gmra.mrb[0].mxu0 %vm502_vm2, %v17577_v45  ;;  %v446_v47 = vpop.permute.xlu1 %445  ;;  %2388 = vrot.lane.b32.xlu0 %v17482_v37, %s23519_s28  ;;  %v520_v55 = vsel %vm506_vm1, %v486_v48, 0 }
  0x9a   : > { %v485_v49 = vsel %vm481_vm0, %v446_v47, %v448_v46  ;;  %v484_v50 = vsel %vm481_vm0, %v444_v39, %v446_v47  ;;  %684 = vmatprep.mubr.bf16.mxu0 %v17239_v6 }
  0x9b   : > { %v452_v51 = vpop.permute.xlu0 %451  ;;  %15661 = vmatprep.subr.msk.bf16.mxu1 %vm506_vm1, %v485_v49  ;;  %v514_v52 = vsel %vm506_vm1, %v484_v50, 0  ;;  %3054 = vrot.lane.b32.xlu1 %v17373_v9, %s23517_s16  ;;  %v17244_v49 = vmov 0.0  }
  0x9c   : > { %612 = vmatpush1.bf16.msra.mxu1 %v514_v52  ;;  %v487_v53 = vsel %vm481_vm0, %v450_v43, %v452_v51 }
  0x9d   : > { %15663 = vmatprep.subr.msk.bf16.mxu0 %vm506_vm1, %v487_v53  ;;  %v454_v54 = vpop.permute.xlu1 %453  ;;  %3056 = vrot.lane.b32.xlu0 %v17385_v13, %s23517_s16 }
  0x9e   : > { %v488_v56 = vsel %vm481_vm0, %v452_v51, %v454_v54  ;;  %653 = vmatpush1.bf16.msra.mxu0 %v520_v55  ;;  %v1024_v55 = vsel %vm506_vm1, %v17373_v9, 0 }
  0x9f   : > { %v456_v57 = vpop.permute.xlu0 %455  ;;  %15662 = vmatmul.mubr.msk.bf16.vlgmr.msra.gmra.mrb[0].mxu1 %vm502_vm2, %v17577_v45  ;;  %3058 = vrot.lane.b32.xlu1 %v17381_v12, %s23517_s16  ;;  %v526_v60 = vsel %vm506_vm1, %v488_v56, 0 }
  0xa0   : > { %v489_v58 = vsel %vm481_vm0, %v454_v54, %v456_v57  ;;  %725 = vmatprep.mubr.bf16.mxu1 %v17239_v6 }
  0xa1   : > { %15664 = vmatmul.mubr.msk.bf16.vlgmr.msra.gmra.mrb[4].mxu0 %vm502_vm2, %v17577_v45  ;;  %15665 = vmatprep.subr.msk.bf16.mxu1 %vm506_vm1, %v489_v58  ;;  %v458_v59 = vpop.permute.xlu1 %457 }
  0xa2   : > { %v490_v61 = vsel %vm481_vm0, %v456_v57, %v458_v59  ;;  %694 = vmatpush1.bf16.msra.mxu1 %v526_v60  ;;  %766 = vmatprep.mubr.bf16.mxu0 %v17239_v6  ;;  %v1030_v57 = vsel %vm506_vm1, %v17381_v12, 0 }
  0xa3   : > { %v460_v62 = vpop.permute.xlu0 %459  ;;  %3060 = vrot.lane.b32.xlu0 %v17400_v17, %s23517_s16  ;;  %3062 = vrot.lane.b32.xlu1 %v17376_v11, %s23517_s16  ;;  %v532_v1 = vsel %vm506_vm1, %v490_v61, 0  ;;  %v1036_v61 = vsel %vm506_vm1, %v17376_v11, 0 }
  0xa4   : > { %v491_v63 = vsel %vm481_vm0, %v458_v59, %v460_v62 }
  0xa5   : > { %15667 = vmatprep.subr.msk.bf16.mxu0 %vm506_vm1, %v491_v63  ;;  %v462_v0 = vpop.permute.xlu1 %461  ;;  %v1042_v63 = vsel %vm506_vm1, %v17403_v18, 0 }
  0xa6   : > { %v492_v2 = vsel %vm481_vm0, %v460_v62, %v462_v0  ;;  %735 = vmatpush1.bf16.msra.mxu0 %v532_v1 }
  0xa7   : > { %v464_v4 = vpop.permute.xlu0 %463  ;;  %15666 = vmatmul.mubr.msk.bf16.vlgmr.msra.gmra.mrb[4].mxu1 %vm502_vm2, %v17577_v45  ;;  %3064 = vrot.lane.b32.xlu0 %v17391_v14, %s23517_s16  ;;  %v538_v10 = vsel %vm506_vm1, %v492_v2, 0 }
  0xa8   : > { %v493_v7 = vsel %vm481_vm0, %v462_v0, %v464_v4  ;;  %807 = vmatprep.mubr.bf16.mxu1 %v17239_v6  ;;  %3066 = vrot.lane.b32.xlu1 %v17403_v18, %s23517_s16 }
  0xa9   : > { %15668 = vmatmul.mubr.msk.bf16.vlgmr.msra.gmra.mrb[8].mxu0 %vm502_vm2, %v17577_v45  ;;  %15669 = vmatprep.subr.msk.bf16.mxu1 %vm506_vm1, %v493_v7  ;;  %v466_v8 = vpop.permute.xlu1 %465 }
  0xaa   : > { %v494_v15 = vsel %vm481_vm0, %v464_v4, %v466_v8  ;;  %776 = vmatpush1.bf16.msra.mxu1 %v538_v10  ;;  %848 = vmatprep.mubr.bf16.mxu0 %v17239_v6  ;;  %v1048_v4 = vsel %vm506_vm1, %v17414_v20, 0 }
  0xab   : > { %v468_v16 = vpop.permute.xlu0 %467  ;;  %3068 = vrot.lane.b32.xlu0 %v17411_v19, %s23517_s16  ;;  %v544_v27 = vsel %vm506_vm1, %v494_v15, 0 }
  0xac   : > { %v495_v21 = vsel %vm481_vm0, %v466_v8, %v468_v16  ;;  %3070 = vrot.lane.b32.xlu1 %v17414_v20, %s23517_s16  ;;  %v1054_v8 = vsel %vm506_vm1, %v17426_v24, 0 }
  0xad   : > { %15671 = vmatprep.subr.msk.bf16.mxu0 %vm506_vm1, %v495_v21  ;;  %v470_v22 = vpop.permute.xlu1 %469 }
  0xae   : > { %v496_v28 = vsel %vm481_vm0, %v468_v16, %v470_v22  ;;  %817 = vmatpush1.bf16.msra.mxu0 %v544_v27  ;;  %v1060_v16 = vsel %vm506_vm1, %v17437_v26, 0  ;;  %v1072_v27 = vsel %vm506_vm1, %v17460_v32, 0 }
  0xaf   : > { %v472_v33 = vpop.permute.xlu0 %471  ;;  %15670 = vmatmul.mubr.msk.bf16.vlgmr.msra.gmra.mrb[8].mxu1 %vm502_vm2, %v17577_v45  ;;  %3072 = vrot.lane.b32.xlu0 %v17423_v23, %s23517_s16  ;;  %v550_v40 = vsel %vm506_vm1, %v496_v28, 0 }
  0xb0   : > { %v497_v38 = vsel %vm481_vm0, %v470_v22, %v472_v33  ;;  %889 = vmatprep.mubr.bf16.mxu1 %v17239_v6  ;;  %3074 = vrot.lane.b32.xlu1 %v17426_v24, %s23517_s16  ;;  %v1066_v22 = vsel %vm506_vm1, %v17449_v30, 0 }
  0xb1   : > { %15672 = vmatmul.mubr.msk.bf16.vlgmr.msra.gmra.mrb[12].mxu0 %vm502_vm2, %v17577_v45  ;;  %15673 = vmatprep.subr.msk.bf16.mxu1 %vm506_vm1, %v497_v38  ;;  %v474_v39 = vpop.permute.xlu1 %473 }
  0xb2   : > { %v498_v41 = vsel %vm481_vm0, %v472_v33, %v474_v39  ;;  %858 = vmatpush1.bf16.msra.mxu1 %v550_v40  ;;  %930 = vmatprep.mubr.bf16.mxu0 %v17239_v6  ;;  %v1078_v33 = vsel %vm506_vm1, %v17471_v35, 0  ;;  %v1084_v40 = vsel %vm506_vm1, %v17482_v37, 0 }
  0xb3   : > { %v476_v42 = vpop.permute.xlu0 %475  ;;  %3076 = vrot.lane.b32.xlu0 %v17434_v25, %s23517_s16  ;;  %v556_v46 = vsel %vm506_vm1, %v498_v41, 0 }
  0xb4   : > { %v499_v43 = vsel %vm481_vm0, %v474_v39, %v476_v42  ;;  %3078 = vrot.lane.b32.xlu1 %v17437_v26, %s23517_s16 }
  0xb5   : > { %15675 = vmatprep.subr.msk.bf16.mxu0 %vm506_vm1, %v499_v43  ;;  %v478_v44 = vpop.permute.xlu1 %477 }
  0xb6   : > { %v500_v47 = vsel %vm481_vm0, %v476_v42, %v478_v44  ;;  %899 = vmatpush1.bf16.msra.mxu0 %v556_v46 }
  0xb7   : > { %v480_v48 = vpop.permute.xlu0 %479  ;;  %15674 = vmatmul.mubr.msk.bf16.vlgmr.msra.gmra.mrb[12].mxu1 %vm502_vm2, %v17577_v45  ;;  %16661 = vmatprep.subr.bf16.mxu0 %v17244_v49  ;;  %v562_v52 = vsel %vm506_vm1, %v500_v47, 0 }
  0xb8   : > { %v501_v50 = vsel %vm481_vm0, %v478_v44, %v480_v48  ;;  %v568_v51 = vsel %vm506_vm1, %v480_v48, 0  ;;  %971 = vmatprep.mubr.bf16.mxu1 %v17239_v6  ;;  %3080 = vrot.lane.b32.xlu0 %v17446_v29, %s23517_s16 }
  0xb9   : > { %15676 = vmatmul.mubr.msk.bf16.vlgmr.msra.gmra.mrb[16].mxu0 %vm502_vm2, %v17577_v45  ;;  %15677 = vmatprep.subr.msk.bf16.mxu1 %vm506_vm1, %v501_v50  ;;  %v17675_v53 = vpop.permute.xlu1 %1642  ;;  %v17880_v50 = vld [vmem:[%s23509_s2 + $0x8] sm:$0xf] }
  0xba   : > { %940 = vmatpush1.bf16.msra.mxu1 %v562_v52  ;;  %16662 = vmatpush3.bf16.msra.mxu0 %v568_v51 }
  0xbb   : > { %16663 = vmatprep.mubr.msk.bf16.mxu0 %vm17245_vm3, %v17244_v49  ;;  %15680 = vmatprep.subr.msk.bf16.mxu1 %vm506_vm1, %v17385_v13  ;;  %v17681_v54 = vpop.permute.xlu0 %1644 }
  0xbc   : > { %15682 = vmatprep.subr.msk.bf16.mxu0 %vm506_vm1, %v17400_v17  ;;  %3082 = vrot.lane.b32.xlu1 %v17449_v30, %s23517_s16  ;;  %v1685_v39 = vsel %vm1684_vm4, %v17675_v53, %v17681_v54 }
  0xbd   : > { %v17689_v56 = vpop.permute.xlu1 %1646  ;;  %3084 = vrot.lane.b32.xlu0 %v17457_v31, %s23517_s16 }
  0xbf   : > { %15678 = vmatmul.mubr.msk.bf16.vlgmr.msra.gmra.mrb[16].mxu1 %vm502_vm2, %v17577_v45  ;;  %v17697_v58 = vpop.permute.xlu0 %1648 }
  0xc0   : > { %1087 = vmatpush1.bf16.msra.mxu1 %v1024_v55  ;;  %1118 = vmatprep.mubr.bf16.mxu1 %v17239_v6 }
  0xc1   : > { %16664 = vmatmul.mubr.msk.bf16.vlgmr.msra.gmra.mrb[20].mxu0 %vm502_vm2, %v17577_v45  ;;  %15684 = vmatprep.subr.msk.bf16.mxu1 %vm506_vm1, %v17391_v14  ;;  %v17704_v59 = vpop.permute.xlu1 %1650  ;;  %v17716_v45 = vld [vmem:[%s23509_s2] sm:$0xf] }
  0xc2   : > { %1128 = vmatpush1.bf16.msra.mxu0 %v1030_v57  ;;  %1159 = vmatprep.mubr.bf16.mxu0 %v17239_v6  ;;  %v1688_v42 = vsel %vm1684_vm4, %v17697_v58, %v17704_v59 }
  0xc3   : > { %15686 = vmatprep.subr.msk.bf16.mxu0 %vm506_vm1, %v17411_v19  ;;  %3086 = vrot.lane.b32.xlu1 %v17460_v32, %s23517_s16  ;;  %v17711_v60 = vpop.permute.xlu0 %1652 }
  0xc4   : > { %3088 = vrot.lane.b32.xlu0 %v17468_v34, %s23517_s16  ;;  %v1689_v46 = vsel %vm1684_vm4, %v17704_v59, %v17711_v60 }
  0xc5   : > { %v17722_v62 = vpop.permute.xlu1 %1654  ;;  %v1721_v51 = vsel %vm506_vm1, %v1689_v46, 0 }
  0xc7   : > { %15681 = vmatmul.mubr.msk.bf16.vlgmr.msra.gmra.mrb[20].mxu1 %vm502_vm2, %v17716_v45  ;;  %3090 = vrot.lane.b32.xlu1 %v17471_v35, %s23517_s16  ;;  %v17730_v0 = vpop.permute.xlu0 %1656 }
  0xc8   : > { %1169 = vmatpush1.bf16.msra.mxu1 %v1036_v61  ;;  %1200 = vmatprep.mubr.bf16.mxu1 %v17239_v6 }
  0xc9   : > { %15683 = vmatmul.mubr.msk.bf16.vlgmr.msra.gmra.mrb[24].mxu0 %vm502_vm2, %v17716_v45  ;;  %15688 = vmatprep.subr.msk.bf16.mxu1 %vm506_vm1, %v17423_v23  ;;  %v17737_v1 = vpop.permute.xlu1 %1658 }
  0xca   : > { %1210 = vmatpush1.bf16.msra.mxu0 %v1042_v63  ;;  %1241 = vmatprep.mubr.bf16.mxu0 %v17239_v6 }
  0xcb   : > { %15690 = vmatprep.subr.msk.bf16.mxu0 %vm506_vm1, %v17434_v25  ;;  %3092 = vrot.lane.b32.xlu0 %v17479_v36, %s23517_s16  ;;  %v17744_v2 = vpop.permute.xlu0 %1660 }
  0xcc   : > { %3094 = vrot.lane.b32.xlu1 %v17482_v37, %s23517_s16  ;;  %v1693_v55 = vsel %vm1684_vm4, %v17737_v1, %v17744_v2 }
  0xcd   : > { %v17750_v7 = vpop.permute.xlu1 %1662 }
  0xce   : > { %v1694_v52 = vsel %vm1684_vm4, %v17744_v2, %v17750_v7 }
  0xcf   : > { %15685 = vmatmul.mubr.msk.bf16.vlgmr.msra.gmra.mrb[24].mxu1 %vm502_vm2, %v17716_v45  ;;  %3760 = vrot.lane.b32.xlu0 %v17373_v9, %s17246_s22  ;;  %v17758_v10 = vpop.permute.xlu0 %1664 }
  0xd0   : > { %1251 = vmatpush1.bf16.msra.mxu1 %v1048_v4  ;;  %1282 = vmatprep.mubr.bf16.mxu1 %v17239_v6 }
  0xd1   : > { %15687 = vmatmul.mubr.msk.bf16.vlgmr.msra.gmra.mrb[28].mxu0 %vm502_vm2, %v17716_v45  ;;  %15692 = vmatprep.subr.msk.bf16.mxu1 %vm506_vm1, %v17446_v29  ;;  %v17765_v15 = vpop.permute.xlu1 %1666 }
  0xd2   : > { %1292 = vmatpush1.bf16.msra.mxu0 %v1054_v8  ;;  %1323 = vmatprep.mubr.bf16.mxu0 %v17239_v6 }
  0xd3   : > { %15694 = vmatprep.subr.msk.bf16.mxu0 %vm506_vm1, %v17457_v31  ;;  %3764 = vrot.lane.b32.xlu0 %v17381_v12, %s17246_s22  ;;  %v17772_v9 = vpop.permute.xlu0 %1668 }
  0xd4   : > { %3762 = vrot.lane.b32.xlu1 %v17385_v13, %s17246_s22  ;;  %v1697_v61 = vsel %vm1684_vm4, %v17765_v15, %v17772_v9 }
  0xd5   : > { %v17778_v21 = vpop.permute.xlu1 %1670 }
  0xd7   : > { %15689 = vmatmul.mubr.msk.bf16.vlgmr.msra.gmra.mrb[28].mxu1 %vm502_vm2, %v17716_v45  ;;  %3768 = vrot.lane.b32.xlu0 %v17376_v11, %s17246_s22  ;;  %v17786_v12 = vpop.permute.xlu0 %1672 }
  0xd8   : > { %1333 = vmatpush1.bf16.msra.mxu1 %v1060_v16  ;;  %1364 = vmatprep.mubr.bf16.mxu1 %v17239_v6 }
  0xd9   : > { %15691 = vmatmul.mubr.msk.bf16.vlgmr.msra.gmra.mrb[32].mxu0 %vm502_vm2, %v17716_v45  ;;  %15696 = vmatprep.subr.msk.bf16.mxu1 %vm506_vm1, %v17468_v34  ;;  %v17793_v13 = vpop.permute.xlu1 %1674 }
  0xda   : > { %1374 = vmatpush1.bf16.msra.mxu0 %v1066_v22  ;;  %1405 = vmatprep.mubr.bf16.mxu0 %v17239_v6 }
  0xdb   : > { %15698 = vmatprep.subr.msk.bf16.mxu0 %vm506_vm1, %v17479_v36  ;;  %3766 = vrot.lane.b32.xlu1 %v17400_v17, %s17246_s22  ;;  %v17800_v11 = vpop.permute.xlu0 %1676 }
  0xdc   : > { %3772 = vrot.lane.b32.xlu0 %v17403_v18, %s17246_s22  ;;  %v1686_v18 = vsel %vm1684_vm4, %v17681_v54, %v17689_v56  ;;  %v1701_v16 = vsel %vm1684_vm4, %v17793_v13, %v17800_v11 }
  0xdd   : > { %v17806_v28 = vpop.permute.xlu1 %1678 }
  0xdf   : > { %15693 = vmatmul.mubr.msk.bf16.vlgmr.msra.gmra.mrb[32].mxu1 %vm502_vm2, %v17716_v45  ;;  %3770 = vrot.lane.b32.xlu1 %v17391_v14, %s17246_s22  ;;  %v17814_v17 = vpop.permute.xlu0 %1680 }
  0xe0   : > { %1415 = vmatpush1.bf16.msra.mxu1 %v1072_v27  ;;  %1446 = vmatprep.mubr.bf16.mxu1 %v17239_v6 }
  0xe1   : > { %15695 = vmatmul.mubr.msk.bf16.vlgmr.msra.gmra.mrb[36].mxu0 %vm502_vm2, %v17716_v45  ;;  %16667 = vmatprep.subr.bf16.mxu1 %v17244_v49  ;;  %v17823_v38 = vpop.permute.xlu1 %1682 }
  0xe2   : > { %1456 = vmatpush1.bf16.msra.mxu0 %v1078_v33  ;;  %1487 = vmatprep.mubr.bf16.mxu0 %v17239_v6  ;;  %v1757_v33 = vsel %vm506_vm1, %v1701_v16, 0  ;;  %v4365_v16 = vld [vmem:[%s17366_s25 + $0x18] sm:$0xff] }
  0xe3   : > { %15703 = vmatprep.subr.msk.bf16.mxu0 %vm506_vm1, %v1686_v18  ;;  %3776 = vrot.lane.b32.xlu0 %v17414_v20, %s17246_s22  ;;  %v17829_v14 = vpop.permute.xlu0 %2348  ;;  %v1709_v20 = vsel %vm506_vm1, %v1685_v39, 0  ;;  %v1703_v18 = vsel %vm1684_vm4, %v17806_v28, %v17814_v17  ;;  %v4363_v39 = vld [vmem:[%s17366_s25 + $0x8] sm:$0xff] }
  0xe4   : > { %3774 = vrot.lane.b32.xlu1 %v17411_v19, %s17246_s22  ;;  %v1690_v19 = vsel %vm1684_vm4, %v17711_v60, %v17722_v62 }
  0xe5   : > { %v17838_v41 = vpop.permute.xlu1 %2350 }
  0xe7   : > { %15697 = vmatmul.mubr.msk.bf16.vlgmr.msra.gmra.mrb[36].mxu1 %vm502_vm2, %v17716_v45  ;;  %3780 = vrot.lane.b32.xlu0 %v17426_v24, %s17246_s22  ;;  %v17848_v43 = vpop.permute.xlu0 %2352  ;;  %v1687_v24 = vsel %vm1684_vm4, %v17689_v56, %v17697_v58  ;;  %v1696_v58 = vsel %vm1684_vm4, %v17758_v10, %v17765_v15 }
  0xe8   : > { %16668 = vmatpush3.bf16.msra.mxu1 %v1084_v40  ;;  %16669 = vmatprep.mubr.msk.bf16.mxu1 %vm17245_vm3, %v17244_v49  ;;  %v1715_v47 = vsel %vm506_vm1, %v1687_v24, 0  ;;  %v4391_v24 = vcombine.high %v4363_v39, %v4363_v39 }
  0xe9   : > { %15699 = vmatmul.mubr.msk.bf16.vlgmr.msra.gmra.mrb[40].mxu0 %vm502_vm2, %v17716_v45  ;;  %15705 = vmatprep.subr.msk.bf16.mxu1 %vm506_vm1, %v1688_v42  ;;  %v17858_v37 = vpop.permute.xlu1 %2354  ;;  %v1763_v42 = vsel %vm506_vm1, %v1703_v18, 0 }
  0xea   : > { %1772 = vmatpush1.bf16.msra.mxu0 %v1709_v20  ;;  %1803 = vmatprep.mubr.bf16.mxu0 %v17239_v6 }
  0xeb   : > { %15707 = vmatprep.subr.msk.bf16.mxu0 %vm506_vm1, %v1690_v19  ;;  %3778 = vrot.lane.b32.xlu1 %v17423_v23, %s17246_s22  ;;  %v17867_v44 = vpop.permute.xlu0 %2356  ;;  %v1692_v23 = vsel %vm1684_vm4, %v17730_v0, %v17737_v1  ;;  %v4362_v1 = vld [vmem:[%s17366_s25] sm:$0xff]  ;;  %v1769_v19 = vsel %vm506_vm1, %v17823_v38, 0 }
  0xec   : > { %3784 = vrot.lane.b32.xlu0 %v17437_v26, %s17246_s22  ;;  %v17973_v4 = vrot.slane %v4362_v1, %v17359_v5  ;;  %v4374_v8 = vcombine.high %v4362_v1, %v4362_v1  ;;  %v18125_v1 = vld [vmem:[%s23509_s2 + $0xc] sm:$0xf] }
  0xed   : > { %v17875_v48 = vpop.permute.xlu1 %2358 }
  0xee   : > { %v17986_v15 = vcombine.high %v17973_v4, %v17973_v4  ;;  %v18002_v27 = vrot.slane %v4374_v8, %v17359_v5 }
  0xef   : > { %16670 = vmatmul.mubr.msk.bf16.vlgmr.msra.gmra.mrb[40].mxu1 %vm502_vm2, %v17716_v45  ;;  %3782 = vrot.lane.b32.xlu1 %v17434_v25, %s17246_s22  ;;  %v17890_v26 = vpop.permute.xlu0 %2360  ;;  %v1691_v25 = vsel %vm1684_vm4, %v17722_v62, %v17730_v0  ;;  %v1700_v0 = vsel %vm1684_vm4, %v17786_v12, %v17793_v13 }
  0xf0   : > { %1813 = vmatpush1.bf16.msra.mxu1 %v1715_v47  ;;  %1844 = vmatprep.mubr.bf16.mxu1 %v17239_v6  ;;  %v1727_v56 = vsel %vm506_vm1, %v1691_v25, 0  ;;  %v18014_v13 = vcombine.high %v18002_v27, %v18002_v27  ;;  %v2394_v47 = vsel %vm2390_vm5, %v17858_v37, %v17867_v44  ;;  %v2393_v25 = vsel %vm2390_vm5, %v17848_v43, %v17858_v37 }
  0xf1   : > { %15704 = vmatmul.mubr.msk.bf16.vlgmr.msra.gmra.mrb[44].mxu0 %vm502_vm2, %v17880_v50  ;;  %15709 = vmatprep.subr.msk.bf16.mxu1 %vm506_vm1, %v1692_v23  ;;  %v17899_v53 = vpop.permute.xlu1 %2362 }
  0xf2   : > { %1854 = vmatpush1.bf16.msra.mxu0 %v1721_v51  ;;  %1885 = vmatprep.mubr.bf16.mxu0 %v17239_v6  ;;  %v2391_v51 = vsel %vm2390_vm5, %v17829_v14, %v17838_v41 }
  0xf3   : > { %15711 = vmatprep.subr.msk.bf16.mxu0 %vm506_vm1, %v1694_v52  ;;  %3788 = vrot.lane.b32.xlu0 %v17449_v30, %s17246_s22  ;;  %v17908_v54 = vpop.permute.xlu0 %2364  ;;  %v1733_v30 = vsel %vm506_vm1, %v1693_v55, 0  ;;  %v18072_v52 = vrot.slane %v4391_v24, %v17359_v5  ;;  %v2415_v14 = vsel %vm506_vm1, %v2391_v51, 0 }
  0xf4   : > { %3786 = vrot.lane.b32.xlu1 %v17446_v29, %s17246_s22  ;;  %v1698_v29 = vsel %vm1684_vm4, %v17772_v9, %v17778_v21  ;;  %v2398_v37 = vsel %vm2390_vm5, %v17899_v53, %v17908_v54 }
  0xf5   : > { %v17916_v57 = vpop.permute.xlu1 %2366 }
  0xf7   : > { %15706 = vmatmul.mubr.msk.bf16.vlgmr.msra.gmra.mrb[44].mxu1 %vm502_vm2, %v17880_v50  ;;  %3792 = vrot.lane.b32.xlu0 %v17460_v32, %s17246_s22  ;;  %v17926_v59 = vpop.permute.xlu0 %2368  ;;  %v1695_v32 = vsel %vm1684_vm4, %v17750_v7, %v17758_v10  ;;  %v17169_v10 = vld.sshfl [vmem:[%s17366_s25 + $0x28] sm:$0x3 pattern:$0x76325410] }
  0xf8   : > { %1895 = vmatpush1.bf16.msra.mxu1 %v1727_v56  ;;  %1926 = vmatprep.mubr.bf16.mxu1 %v17239_v6  ;;  %v1739_v62 = vsel %vm506_vm1, %v1695_v32, 0 }
  0xf9   : > { %15708 = vmatmul.mubr.msk.bf16.vlgmr.msra.gmra.mrb[48].mxu0 %vm502_vm2, %v17880_v50  ;;  %15713 = vmatprep.subr.msk.bf16.mxu1 %vm506_vm1, %v1696_v58  ;;  %v17935_v60 = vpop.permute.xlu1 %2370  ;;  %v2396_v58 = vsel %vm2390_vm5, %v17875_v48, %v17890_v26 }
  0xfa   : > { %1936 = vmatpush1.bf16.msra.mxu0 %v1733_v30  ;;  %1967 = vmatprep.mubr.bf16.mxu0 %v17239_v6  ;;  %v2421_v30 = vsel %vm506_vm1, %v2393_v25, 0  ;;  %v2401_v18 = vsel %vm2390_vm5, %v17926_v59, %v17935_v60  ;;  %v4366_v25 = vld [vmem:[%s17366_s25 + $0x20] sm:$0xff] }
  0xfb   : > { %15715 = vmatprep.subr.msk.bf16.mxu0 %vm506_vm1, %v1698_v29  ;;  %3790 = vrot.lane.b32.xlu1 %v17457_v31, %s17246_s22  ;;  %v17944_v45 = vpop.permute.xlu0 %2372  ;;  %v1745_v31 = vsel %vm506_vm1, %v1697_v61, 0  ;;  %v2395_v61 = vsel %vm2390_vm5, %v17867_v44, %v17875_v48  ;;  %v2397_v44 = vsel %vm2390_vm5, %v17890_v26, %v17899_v53 }
  0xfc   : > { %3796 = vrot.lane.b32.xlu0 %v17471_v35, %s17246_s22  ;;  %v1702_v35 = vsel %vm1684_vm4, %v17800_v11, %v17806_v28  ;;  %v2392_v28 = vsel %vm2390_vm5, %v17838_v41, %v17848_v43  ;;  %v4364_v41 = vld [vmem:[%s17366_s25 + $0x10] sm:$0xff]  ;;  %v18095_v43 = vcombine.high %v18072_v52, %v18072_v52  ;;  %v2427_v48 = vsel %vm506_vm1, %v2395_v61, 0 }
  0xfd   : > { %v17952_v63 = vpop.permute.xlu1 %2374  ;;  %v18102_v29 = vrot.slane %v4364_v41, %v17359_v5  ;;  %v2433_v8 = vsel %vm506_vm1, %v2397_v44, 0  ;;  %v2402_v53 = vsel %vm2390_vm5, %v17935_v60, %v17944_v45 }
  0xff   : > { %15710 = vmatmul.mubr.msk.bf16.vlgmr.msra.gmra.mrb[48].mxu1 %vm502_vm2, %v17880_v50  ;;  %3794 = vrot.lane.b32.xlu1 %v17468_v34, %s17246_s22  ;;  %v17963_v2 = vpop.permute.xlu0 %2376  ;;  %v1699_v34 = vsel %vm1684_vm4, %v17778_v21, %v17786_v12  ;;  %v1704_v12 = vsel %vm1684_vm4, %v17814_v17, %v17823_v38  ;;  %v18040_v17 = vrot.slane %v4363_v39, %v17359_v5 }
 0x100   : > { %1977 = vmatpush1.bf16.msra.mxu1 %v1739_v62  ;;  %2008 = vmatprep.mubr.bf16.mxu1 %v17239_v6  ;;  %v1751_v21 = vsel %vm506_vm1, %v1699_v34, 0  ;;  %v4408_v62 = vcombine.high %v4364_v41, %v4364_v41  ;;  %v4425_v39 = vcombine.high %v4365_v16, %v4365_v16 }
 0x101   : > { %15712 = vmatmul.mubr.msk.bf16.vlgmr.msra.gmra.mrb[52].mxu0 %vm502_vm2, %v17880_v50  ;;  %15717 = vmatprep.subr.msk.bf16.mxu1 %vm506_vm1, %v1700_v0  ;;  %v17975_v7 = vpop.permute.xlu1 %2378  ;;  %v18056_v23 = vcombine.high %v18040_v17, %v18040_v17 }
 0x102   : > { %2018 = vmatpush1.bf16.msra.mxu0 %v1745_v31  ;;  %2049 = vmatprep.mubr.bf16.mxu0 %v17239_v6  ;;  %v18139_v34 = vrot.slane %v4408_v62, %v17359_v5  ;;  %v18199_v24 = vrot.slane %v4425_v39, %v17359_v5 }
 0x103   : > { %15719 = vmatprep.subr.msk.bf16.mxu0 %vm506_vm1, %v1702_v35  ;;  %3800 = vrot.lane.b32.xlu0 %v17169_v10, %s17246_s22  ;;  %v17988_v9 = vpop.permute.xlu0 %2380  ;;  %v2400_v35 = vsel %vm2390_vm5, %v17916_v57, %v17926_v59  ;;  %v2445_v59 = vsel %vm506_vm1, %v2401_v18, 0 }
 0x104   : > { %3798 = vrot.lane.b32.xlu1 %v17479_v36, %s17246_s22  ;;  %v18154_v10 = vcombine.high %v18139_v34, %v18139_v34  ;;  %v18213_v51 = vcombine.high %v18199_v24, %v18199_v24 }
 0x105   : > { %v17996_v22 = vpop.permute.xlu1 %2382 }
 0x107   : > { %15714 = vmatmul.mubr.msk.bf16.vlgmr.msra.gmra.mrb[52].mxu1 %vm502_vm2, %v17880_v50  ;;  %4469 = vrot.lane.b32.xlu0 %v17986_v15, %s17247_s29  ;;  %v18009_v36 = vpop.permute.xlu0 %2384 }
 0x108   : > { %2059 = vmatpush1.bf16.msra.mxu1 %v1751_v21  ;;  %2090 = vmatprep.mubr.bf16.mxu1 %v17239_v6 }
 0x109   : > { %15716 = vmatmul.mubr.msk.bf16.vlgmr.msra.gmra.mrb[56].mxu0 %vm502_vm2, %v17880_v50  ;;  %15721 = vmatprep.subr.msk.bf16.mxu1 %vm506_vm1, %v1704_v12  ;;  %v18019_v11 = vpop.permute.xlu1 %2386  ;;  %v2399_v12 = vsel %vm2390_vm5, %v17908_v54, %v17916_v57 }
 0x10a   : > { %2100 = vmatpush1.bf16.msra.mxu0 %v1757_v33  ;;  %2131 = vmatprep.mubr.bf16.mxu0 %v17239_v6  ;;  %v18170_v33 = vrot.slane %v4365_v16, %v17359_v5  ;;  %v2439_v54 = vsel %vm506_vm1, %v2399_v12, 0  ;;  %v18289_v12 = vld.sshfl [vmem:[%s17366_s25 + $0x28] sm:$0x33 pattern:$0x76325410]  ;;  %s23525_s25 = smov 75  }
 0x10b   : > { %16673 = vmatprep.subr.bf16.mxu0 %v17244_v49  ;;  %4467 = vrot.lane.b32.xlu1 %v17973_v4, %s17247_s29  ;;  %v18029_v40 = vpop.permute.xlu0 %2388  ;;  %v18297_v18 = vcombine.high %v18289_v12, %v18289_v12 }
 0x10c   : > { %4473 = vrot.lane.b32.xlu0 %v18014_v13, %s17247_s29  ;;  %v18192_v60 = vcombine.high %v18170_v33, %v18170_v33 }
 0x10d   : > { %v18034_v20 = vpop.permute.xlu1 %3054 }
 0x10f   : > { %15718 = vmatmul.mubr.msk.bf16.vlgmr.msra.gmra.mrb[56].mxu1 %vm502_vm2, %v17880_v50  ;;  %4471 = vrot.lane.b32.xlu1 %v18002_v27, %s17247_s29  ;;  %v18048_v46 = vpop.permute.xlu0 %3056 }
 0x110   : > { %2141 = vmatpush1.bf16.msra.mxu1 %v1763_v42  ;;  %2172 = vmatprep.mubr.bf16.mxu1 %v17239_v6  ;;  %v3097_v39 = vsel %vm3096_vm6, %v18034_v20, %v18048_v46 }
 0x111   : > { %15720 = vmatmul.mubr.msk.bf16.vlgmr.msra.gmra.mrb[60].mxu0 %vm502_vm2, %v17880_v50  ;;  %15726 = vmatprep.subr.msk.bf16.mxu1 %vm506_vm1, %v2392_v28  ;;  %v18061_v38 = vpop.permute.xlu1 %3058  ;;  %v2404_v28 = vsel %vm2390_vm5, %v17952_v63, %v17963_v2 }
 0x112   : > { %16674 = vmatpush3.bf16.msra.mxu0 %v1769_v19  ;;  %16675 = vmatprep.mubr.msk.bf16.mxu0 %vm17245_vm3, %v17244_v49  ;;  %v2406_v19 = vsel %vm2390_vm5, %v17975_v7, %v17988_v9 }
 0x113   : > { %15728 = vmatprep.subr.msk.bf16.mxu0 %vm506_vm1, %v2394_v47  ;;  %4475 = vrot.lane.b32.xlu1 %v18040_v17, %s17247_s29  ;;  %v2403_v47 = vsel %vm2390_vm5, %v17944_v45, %v17952_v63  ;;  %v2405_v45 = vsel %vm2390_vm5, %v17963_v2, %v17975_v7  ;;  %v4442_v2 = vcombine.high %v4366_v25, %v4366_v25 }
 0x114   : > { %4477 = vrot.lane.b32.xlu0 %v18056_v23, %s17247_s29  ;;  %v2451_v63 = vsel %vm506_vm1, %v2403_v47, 0  ;;  %v2410_v7 = vsel %vm2390_vm5, %v18019_v11, %v18029_v40  ;;  %v3121_v47 = vsel %vm506_vm1, %v3097_v39, 0 }
 0x115   : > { %v18081_v55 = vpop.permute.xlu0 %3060  ;;  %v18083_v56 = vpop.permute.xlu1 %3062 }
 0x117   : > { %15722 = vmatmul.mubr.msk.bf16.vlgmr.msra.gmra.mrb[60].mxu1 %vm502_vm2, %v17880_v50  ;;  %4479 = vrot.lane.b32.xlu1 %v18072_v52, %s17247_s29 }
 0x118   : > { %2478 = vmatpush1.bf16.msra.mxu1 %v2415_v14  ;;  %2509 = vmatprep.mubr.bf16.mxu1 %v17239_v6 }
 0x119   : > { %16676 = vmatmul.mubr.msk.bf16.vlgmr.msra.gmra.mrb[64].mxu0 %vm502_vm2, %v17880_v50  ;;  %15730 = vmatprep.subr.msk.bf16.mxu1 %vm506_vm1, %v2396_v58  ;;  %v18107_v32 = vpop.permute.xlu0 %3064  ;;  %v18120_v50 = vcombine.high %v18102_v29, %v18102_v29  ;;  %v2408_v58 = vsel %vm2390_vm5, %v17996_v22, %v18009_v36 }
 0x11a   : > { %2519 = vmatpush1.bf16.msra.mxu0 %v2421_v30  ;;  %2550 = vmatprep.mubr.bf16.mxu0 %v17239_v6  ;;  %v18113_v0 = vpop.permute.xlu1 %3066  ;;  %v18230_v30 = vrot.slane %v4366_v25, %v17359_v5 }
 0x11b   : > { %15732 = vmatprep.subr.msk.bf16.mxu0 %vm506_vm1, %v2398_v37  ;;  %4481 = vrot.lane.b32.xlu0 %v18095_v43, %s17247_s29  ;;  %v2457_v37 = vsel %vm506_vm1, %v2405_v45, 0  ;;  %v3102_v20 = vsel %vm3096_vm6, %v18107_v32, %v18113_v0  ;;  %v3101_v45 = vsel %vm3096_vm6, %v18083_v56, %v18107_v32 }
 0x11c   : > { %4483 = vrot.lane.b32.xlu1 %v18102_v29, %s17247_s29  ;;  %v18243_v61 = vcombine.high %v18230_v30, %v18230_v30 }
 0x11d   : > { %v18133_v31 = vpop.permute.xlu0 %3068 }
 0x11e   : > { %v18146_v26 = vpop.permute.xlu1 %3070 }
 0x11f   : > { %15727 = vmatmul.mubr.msk.bf16.vlgmr.msra.gmra.mrb[64].mxu1 %vm502_vm2, %v18125_v1  ;;  %4485 = vrot.lane.b32.xlu0 %v18120_v50, %s17247_s29 }
 0x120   : > { %2560 = vmatpush1.bf16.msra.mxu1 %v2427_v48  ;;  %2591 = vmatprep.mubr.bf16.mxu1 %v17239_v6  ;;  %v2407_v48 = vsel %vm2390_vm5, %v17988_v9, %v17996_v22 }
 0x121   : > { %15729 = vmatmul.mubr.msk.bf16.vlgmr.msra.gmra.mrb[68].mxu0 %vm502_vm2, %v18125_v1  ;;  %15734 = vmatprep.subr.msk.bf16.mxu1 %vm506_vm1, %v2400_v35  ;;  %v18160_v21 = vpop.permute.xlu0 %3072  ;;  %v18260_v35 = vrot.slane %v4442_v2, %v17359_v5  ;;  %v2463_v9 = vsel %vm506_vm1, %v2407_v48, 0  ;;  %v3103_v2 = vsel %vm3096_vm6, %v18113_v0, %v18133_v31 }
 0x122   : > { %2601 = vmatpush1.bf16.msra.mxu0 %v2433_v8  ;;  %2632 = vmatprep.mubr.bf16.mxu0 %v17239_v6  ;;  %v18178_v57 = vpop.permute.xlu1 %3074  ;;  %v2409_v8 = vsel %vm2390_vm5, %v18009_v36, %v18019_v11  ;;  %v3098_v11 = vsel %vm3096_vm6, %v18048_v46, %v18061_v38  ;;  %v3139_v48 = vsel %vm506_vm1, %v3103_v2, 0 }
 0x123   : > { %15736 = vmatprep.subr.msk.bf16.mxu0 %vm506_vm1, %v2402_v53  ;;  %4487 = vrot.lane.b32.xlu1 %v18139_v34, %s17247_s29  ;;  %v2469_v22 = vsel %vm506_vm1, %v2409_v8, 0  ;;  %v18275_v53 = vcombine.high %v18260_v35, %v18260_v35 }
 0x124   : > { %4489 = vrot.lane.b32.xlu0 %v18154_v10, %s17247_s29 }
 0x125   : > { %v18180_v42 = vpop.permute.xlu0 %3076 }
 0x126   : > { %v18216_v14 = vpop.permute.xlu1 %3078 }
 0x127   : > { %15731 = vmatmul.mubr.msk.bf16.vlgmr.msra.gmra.mrb[68].mxu1 %vm502_vm2, %v18125_v1  ;;  %4491 = vrot.lane.b32.xlu1 %v18170_v33, %s17247_s29  ;;  %v3108_v0 = vsel %vm3096_vm6, %v18180_v42, %v18216_v14 }
 0x128   : > { %2642 = vmatpush1.bf16.msra.mxu1 %v2439_v54  ;;  %2673 = vmatprep.mubr.bf16.mxu1 %v17239_v6 }
 0x129   : > { %15733 = vmatmul.mubr.msk.bf16.vlgmr.msra.gmra.mrb[72].mxu0 %vm502_vm2, %v18125_v1  ;;  %15738 = vmatprep.subr.msk.bf16.mxu1 %vm506_vm1, %v2404_v28 }
 0x12a   : > { %2683 = vmatpush1.bf16.msra.mxu0 %v2445_v59  ;;  %2714 = vmatprep.mubr.bf16.mxu0 %v17239_v6  ;;  %v18218_v41 = vpop.permute.xlu0 %3080  ;;  %v3100_v59 = vsel %vm3096_vm6, %v18081_v55, %v18083_v56  ;;  %v3133_v56 = vsel %vm506_vm1, %v3101_v45, 0 }
 0x12b   : > { %15740 = vmatprep.subr.msk.bf16.mxu0 %vm506_vm1, %v2406_v19  ;;  %4493 = vrot.lane.b32.xlu0 %v18192_v60, %s17247_s29  ;;  %v2475_v19 = vsel %vm506_vm1, %v18029_v40, 0  ;;  %v3099_v40 = vsel %vm3096_vm6, %v18061_v38, %v18081_v55  ;;  %v18348_v55 = vld [vmem:[%s23509_s2 + $0x10] sm:$0xf] }
 0x12c   : > { %4495 = vrot.lane.b32.xlu1 %v18199_v24, %s17247_s29 }
 0x12e   : > { %v18248_v62 = vpop.permute.xlu1 %3082 }
 0x12f   : > { %15735 = vmatmul.mubr.msk.bf16.vlgmr.msra.gmra.mrb[72].mxu1 %vm502_vm2, %v18125_v1  ;;  %4497 = vrot.lane.b32.xlu0 %v18213_v51, %s17247_s29  ;;  %v18250_v44 = vpop.permute.xlu0 %3084 }
 0x130   : > { %2724 = vmatpush1.bf16.msra.mxu1 %v2451_v63  ;;  %2755 = vmatprep.mubr.bf16.mxu1 %v17239_v6  ;;  %v3127_v63 = vsel %vm506_vm1, %v3099_v40, 0 }
 0x131   : > { %15737 = vmatmul.mubr.msk.bf16.vlgmr.msra.gmra.mrb[76].mxu0 %vm502_vm2, %v18125_v1  ;;  %15742 = vmatprep.subr.msk.bf16.mxu1 %vm506_vm1, %v2408_v58  ;;  %v3104_v58 = vsel %vm3096_vm6, %v18133_v31, %v18146_v26 }
 0x132   : > { %2765 = vmatpush1.bf16.msra.mxu0 %v2457_v37  ;;  %2796 = vmatprep.mubr.bf16.mxu0 %v17239_v6  ;;  %v3106_v37 = vsel %vm3096_vm6, %v18160_v21, %v18178_v57 }
 0x133   : > { %15744 = vmatprep.subr.msk.bf16.mxu0 %vm506_vm1, %v2410_v7  ;;  %4499 = vrot.lane.b32.xlu1 %v18230_v30, %s17247_s29  ;;  %v3105_v7 = vsel %vm3096_vm6, %v18146_v26, %v18160_v21  ;;  %v3110_v21 = vsel %vm3096_vm6, %v18218_v41, %v18248_v62 }
 0x134   : > { %4501 = vrot.lane.b32.xlu0 %v18243_v61, %s17247_s29  ;;  %v3145_v31 = vsel %vm506_vm1, %v3105_v7, 0 }
 0x135   : > { %v18277_v16 = vpop.permute.xlu1 %3086 }
 0x136   : > { %v18279_v36 = vpop.permute.xlu0 %3088 }
 0x137   : > { %15739 = vmatmul.mubr.msk.bf16.vlgmr.msra.gmra.mrb[76].mxu1 %vm502_vm2, %v18125_v1  ;;  %4503 = vrot.lane.b32.xlu1 %v18260_v35, %s17247_s29 }
 0x138   : > { %2806 = vmatpush1.bf16.msra.mxu1 %v2463_v9  ;;  %2837 = vmatprep.mubr.bf16.mxu1 %v17239_v6 }
 0x139   : > { %15741 = vmatmul.mubr.msk.bf16.vlgmr.msra.gmra.mrb[80].mxu0 %vm502_vm2, %v18125_v1  ;;  %16679 = vmatprep.subr.bf16.mxu1 %v17244_v49  ;;  %v18304_v54 = vpop.permute.xlu1 %3090 }
 0x13a   : > { %2847 = vmatpush1.bf16.msra.mxu0 %v2469_v22  ;;  %2878 = vmatprep.mubr.bf16.mxu0 %v17239_v6  ;;  %v3107_v22 = vsel %vm3096_vm6, %v18178_v57, %v18180_v42  ;;  %v3112_v57 = vsel %vm3096_vm6, %v18250_v44, %v18277_v16 }
 0x13b   : > { %15749 = vmatprep.subr.msk.bf16.mxu0 %vm506_vm1, %v3098_v11  ;;  %4505 = vrot.lane.b32.xlu0 %v18275_v53, %s17247_s29  ;;  %v3109_v11 = vsel %vm3096_vm6, %v18216_v14, %v18218_v41  ;;  %v3151_v39 = vsel %vm506_vm1, %v3107_v22, 0  ;;  %v3114_v41 = vsel %vm3096_vm6, %v18279_v36, %v18304_v54 }
 0x13c   : > { %4507 = vrot.lane.b32.xlu1 %v18289_v12, %s17247_s29  ;;  %v3157_v42 = vsel %vm506_vm1, %v3109_v11, 0 }
 0x13d   : > { %v18306_v28 = vpop.permute.xlu0 %3092 }
 0x13e   : > { %v18335_v25 = vpop.permute.xlu1 %3094 }
 0x13f   : > { %15743 = vmatmul.mubr.msk.bf16.vlgmr.msra.gmra.mrb[80].mxu1 %vm502_vm2, %v18125_v1  ;;  %4509 = vrot.lane.b32.xlu0 %v18297_v18, %s17247_s29 }
 0x140   : > { %16680 = vmatpush3.bf16.msra.mxu1 %v2475_v19  ;;  %16681 = vmatprep.mubr.msk.bf16.mxu1 %vm17245_vm3, %v17244_v49 }
 0x141   : > { %15745 = vmatmul.mubr.msk.bf16.vlgmr.msra.gmra.mrb[84].mxu0 %vm502_vm2, %v18125_v1  ;;  %15751 = vmatprep.subr.msk.bf16.mxu1 %vm506_vm1, %v3100_v59  ;;  %v18326_v46 = vpop.permute.xlu0 %3760 }
 0x142   : > { %3184 = vmatpush1.bf16.msra.mxu0 %v3121_v47  ;;  %3215 = vmatprep.mubr.bf16.mxu0 %v17239_v6  ;;  %v3111_v47 = vsel %vm3096_vm6, %v18248_v62, %v18250_v44  ;;  %v3116_v44 = vsel %vm3096_vm6, %v18306_v28, %v18335_v25 }
 0x143   : > { %15753 = vmatprep.subr.msk.bf16.mxu0 %vm506_vm1, %v3102_v20  ;;  %5177 = vrot.lane.b32.xlu1 %v17973_v4, %s23525_s25  ;;  %v3113_v20 = vsel %vm3096_vm6, %v18277_v16, %v18279_v36  ;;  %v3163_v40 = vsel %vm506_vm1, %v3111_v47, 0  ;;  %v3115_v36 = vsel %vm3096_vm6, %v18304_v54, %v18306_v28  ;;  %v3181_v54 = vsel %vm506_vm1, %v18335_v25, 0 }
 0x144   : > { %5179 = vrot.lane.b32.xlu0 %v17986_v15, %s23525_s25  ;;  %v3169_v62 = vsel %vm506_vm1, %v3113_v20, 0 }
 0x145   : > { %v18343_v38 = vpop.permute.xlu0 %3764 }
 0x146   : > { %v18358_v32 = vpop.permute.xlu1 %3762 }
 0x147   : > { %16682 = vmatmul.mubr.msk.bf16.vlgmr.msra.gmra.mrb[84].mxu1 %vm502_vm2, %v18125_v1  ;;  %5181 = vrot.lane.b32.xlu1 %v18002_v27, %s23525_s25  ;;  %v3803_v25 = vsel %vm3802_vm7, %v18326_v46, %v18358_v32 }
 0x148   : > { %3225 = vmatpush1.bf16.msra.mxu1 %v3127_v63  ;;  %3256 = vmatprep.mubr.bf16.mxu1 %v17239_v6  ;;  %v3827_v46 = vsel %vm506_vm1, %v3803_v25, 0 }
 0x149   : > { %15750 = vmatmul.mubr.msk.bf16.vlgmr.msra.gmra.mrb[88].mxu0 %vm502_vm2, %v18348_v55  ;;  %15755 = vmatprep.subr.msk.bf16.mxu1 %vm506_vm1, %v3104_v58  ;;  %v18367_v1 = vpop.permute.xlu0 %3768  ;;  %v3175_v58 = vsel %vm506_vm1, %v3115_v36, 0 }
 0x14a   : > { %3266 = vmatpush1.bf16.msra.mxu0 %v3133_v56  ;;  %3297 = vmatprep.mubr.bf16.mxu0 %v17239_v6 }
 0x14b   : > { %15757 = vmatprep.subr.msk.bf16.mxu0 %vm506_vm1, %v3106_v37  ;;  %5183 = vrot.lane.b32.xlu0 %v18014_v13, %s23525_s25  ;;  %v3804_v37 = vsel %vm3802_vm7, %v18358_v32, %v18343_v38 }
 0x14c   : > { %5185 = vrot.lane.b32.xlu1 %v18040_v17, %s23525_s25 }
 0x14d   : > { %v18382_v8 = vpop.permute.xlu1 %3766 }
 0x14e   : > { %v18392_v26 = vpop.permute.xlu0 %3772  ;;  %v3806_v2 = vsel %vm3802_vm7, %v18382_v8, %v18367_v1 }
 0x14f   : > { %15752 = vmatmul.mubr.msk.bf16.vlgmr.msra.gmra.mrb[88].mxu1 %vm502_vm2, %v18348_v55  ;;  %5187 = vrot.lane.b32.xlu0 %v18056_v23, %s23525_s25 }
 0x150   : > { %3307 = vmatpush1.bf16.msra.mxu1 %v3139_v48  ;;  %3338 = vmatprep.mubr.bf16.mxu1 %v17239_v6 }
 0x151   : > { %15754 = vmatmul.mubr.msk.bf16.vlgmr.msra.gmra.mrb[92].mxu0 %vm502_vm2, %v18348_v55  ;;  %15759 = vmatprep.subr.msk.bf16.mxu1 %vm506_vm1, %v3108_v0  ;;  %v18401_v9 = vpop.permute.xlu1 %3770  ;;  %v3805_v0 = vsel %vm3802_vm7, %v18343_v38, %v18382_v8 }
 0x152   : > { %3348 = vmatpush1.bf16.msra.mxu0 %v3145_v31  ;;  %3379 = vmatprep.mubr.bf16.mxu0 %v17239_v6  ;;  %v3833_v38 = vsel %vm506_vm1, %v3805_v0, 0  ;;  %v3808_v8 = vsel %vm3802_vm7, %v18401_v9, %v18392_v26 }
 0x153   : > { %5189 = vrot.lane.b32.xlu1 %v18072_v52, %s23525_s25  ;;  %15761 = vmatprep.subr.msk.bf16.mxu0 %vm506_vm1, %v3110_v21 }
 0x154   : > { %5191 = vrot.lane.b32.xlu0 %v18095_v43, %s23525_s25 }
 0x155   : > { %v18416_v59 = vpop.permute.xlu0 %3776 }
 0x156   : > { %v18426_v14 = vpop.permute.xlu1 %3774 }
 0x157   : > { %15756 = vmatmul.mubr.msk.bf16.vlgmr.msra.gmra.mrb[92].mxu1 %vm502_vm2, %v18348_v55  ;;  %5193 = vrot.lane.b32.xlu1 %v18102_v29, %s23525_s25  ;;  %v3810_v11 = vsel %vm3802_vm7, %v18426_v14, %v18416_v59 }
 0x158   : > { %3389 = vmatpush1.bf16.msra.mxu1 %v3151_v39  ;;  %3420 = vmatprep.mubr.bf16.mxu1 %v17239_v6 }
 0x159   : > { %15758 = vmatmul.mubr.msk.bf16.vlgmr.msra.gmra.mrb[96].mxu0 %vm502_vm2, %v18348_v55  ;;  %15763 = vmatprep.subr.msk.bf16.mxu1 %vm506_vm1, %v3112_v57  ;;  %v18435_v19 = vpop.permute.xlu0 %3780 }
 0x15a   : > { %3430 = vmatpush1.bf16.msra.mxu0 %v3157_v42  ;;  %3461 = vmatprep.mubr.bf16.mxu0 %v17239_v6  ;;  %v3807_v42 = vsel %vm3802_vm7, %v18367_v1, %v18401_v9  ;;  %v3809_v1 = vsel %vm3802_vm7, %v18392_v26, %v18426_v14 }
 0x15b   : > { %5195 = vrot.lane.b32.xlu0 %v18120_v50, %s23525_s25  ;;  %5197 = vrot.lane.b32.xlu1 %v18139_v34, %s23525_s25  ;;  %v3845_v26 = vsel %vm506_vm1, %v3809_v1, 0 }
 0x15c   : > { %15765 = vmatprep.subr.msk.bf16.mxu0 %vm506_vm1, %v3114_v41 }
 0x15d   : > { %v18450_v45 = vpop.permute.xlu1 %3778 }
 0x15e   : > { %v18460_v63 = vpop.permute.xlu0 %3784  ;;  %v3811_v25 = vsel %vm3802_vm7, %v18416_v59, %v18450_v45 }
 0x15f   : > { %15760 = vmatmul.mubr.msk.bf16.vlgmr.msra.gmra.mrb[96].mxu1 %vm502_vm2, %v18348_v55  ;;  %5199 = vrot.lane.b32.xlu0 %v18154_v10, %s23525_s25 }
 0x160   : > { %3471 = vmatpush1.bf16.msra.mxu1 %v3163_v40  ;;  %3502 = vmatprep.mubr.bf16.mxu1 %v17239_v6  ;;  %v18558_v40 = vld [vmem:[%s23509_s2 + $0x14] sm:$0xf] }
 0x161   : > { %15762 = vmatmul.mubr.msk.bf16.vlgmr.msra.gmra.mrb[100].mxu0 %vm502_vm2, %v18348_v55  ;;  %5201 = vrot.lane.b32.xlu1 %v18170_v33, %s23525_s25  ;;  %v18467_v16 = vpop.permute.xlu1 %3782 }
 0x162   : > { %3512 = vmatpush1.bf16.msra.mxu0 %v3169_v62  ;;  %15767 = vmatprep.subr.msk.bf16.mxu1 %vm506_vm1, %v3116_v44  ;;  %v3839_v44 = vsel %vm506_vm1, %v3807_v42, 0 }
 0x163   : > { %3543 = vmatprep.mubr.bf16.mxu0 %v17239_v6  ;;  %16685 = vmatprep.subr.bf16.mxu0 %v17244_v49 }
 0x164   : > { %5203 = vrot.lane.b32.xlu0 %v18192_v60, %s23525_s25 }
 0x165   : > { %5205 = vrot.lane.b32.xlu1 %v18199_v24, %s23525_s25  ;;  %v18480_v56 = vpop.permute.xlu0 %3788 }
 0x166   : > { %v18486_v28 = vpop.permute.xlu1 %3786 }
 0x167   : > { %15764 = vmatmul.mubr.msk.bf16.vlgmr.msra.gmra.mrb[100].mxu1 %vm502_vm2, %v18348_v55 }
 0x168   : > { %3553 = vmatpush1.bf16.msra.mxu1 %v3175_v58  ;;  %3584 = vmatprep.mubr.bf16.mxu1 %v17239_v6 }
 0x169   : > { %15766 = vmatmul.mubr.msk.bf16.vlgmr.msra.gmra.mrb[104].mxu0 %vm502_vm2, %v18348_v55  ;;  %5207 = vrot.lane.b32.xlu0 %v18213_v51, %s23525_s25  ;;  %v18507_v7 = vpop.permute.xlu0 %3792 }
 0x16a   : > { %16686 = vmatpush3.bf16.msra.mxu0 %v3181_v54  ;;  %5209 = vrot.lane.b32.xlu1 %v18230_v30, %s23525_s25  ;;  %v3812_v54 = vsel %vm3802_vm7, %v18450_v45, %v18435_v19 }
 0x16b   : > { %15772 = vmatprep.subr.msk.bf16.mxu1 %vm506_vm1, %v3804_v37  ;;  %16687 = vmatprep.mubr.msk.bf16.mxu0 %vm17245_vm3, %v17244_v49 }
 0x16c   : > { %v18509_v48 = vpop.f32.mrb[0].mxu0  ;;  %15774 = vmatprep.subr.msk.bf16.mxu0 %vm506_vm1, %v3806_v2 }
 0x16d   : > { %v18515_v31 = vpop.f32.mrb[1].mxu0  ;;  %5211 = vrot.lane.b32.xlu0 %v18243_v61, %s23525_s25  ;;  %v18520_v32 = vpop.permute.xlu1 %3790 }
 0x16e   : > { %v608_v21 = vpop.f32.mrb[2].mxu0  ;;  %5213 = vrot.lane.b32.xlu1 %v18260_v35, %s23525_s25  ;;  %v18538_v39 = vpop.permute.xlu0 %3796 }
 0x16f   : > { %v609_v22 = vpop.f32.mrb[3].mxu0  ;;  %15768 = vmatmul.mubr.msk.bf16.vlgmr.msra.gmra.mrb[104].mxu1 %vm502_vm2, %v18348_v55 }
 0x170   : > { %3890 = vmatpush1.bf16.msra.mxu1 %v3827_v46  ;;  %3921 = vmatprep.mubr.bf16.mxu1 %v17239_v6  ;;  %v3813_v22 = vsel %vm3802_vm7, %v18435_v19, %v18467_v16 }
 0x171   : > { %16688 = vmatmul.mubr.msk.bf16.vlgmr.msra.gmra.mrb[108].mxu0 %vm502_vm2, %v18348_v55  ;;  %5215 = vrot.lane.b32.xlu0 %v18275_v53, %s23525_s25  ;;  %v18547_v55 = vpop.permute.xlu1 %3794  ;;  %v3857_v19 = vsel %vm506_vm1, %v3813_v22, 0 }
 0x172   : > { %v18540_v57 = vpop.f32.mrb[0].mxu1  ;;  %3931 = vmatpush1.bf16.msra.mxu0 %v3833_v38  ;;  %5217 = vrot.lane.b32.xlu1 %v18289_v12, %s23525_s25 }
 0x173   : > { %v18549_v41 = vpop.f32.mrb[1].mxu1  ;;  %15776 = vmatprep.subr.msk.bf16.mxu1 %vm506_vm1, %v3808_v8  ;;  %3962 = vmatprep.mubr.bf16.mxu0 %v17239_v6 }
 0x174   : > { %v649_v47 = vpop.f32.mrb[2].mxu1  ;;  %v18553_v20 = vpop.f32.mrb[4].mxu0  ;;  %15778 = vmatprep.subr.msk.bf16.mxu0 %vm506_vm1, %v3810_v11 }
 0x175   : > { %v650_v9 = vpop.f32.mrb[3].mxu1  ;;  %v18564_v62 = vpop.f32.mrb[5].mxu0  ;;  %5219 = vrot.lane.b32.xlu0 %v18297_v18, %s23525_s25  ;;  %v3815_v47 = vsel %vm3802_vm7, %v18460_v63, %v18486_v28 }
 0x176   : > { %v690_v36 = vpop.f32.mrb[6].mxu0  ;;  %5887 = vrot.lane.b32.xlu1 %v17973_v4, %s23523_s17  ;;  %v18574_v14 = vpop.permute.xlu0 %3800  ;;  %v3814_v4 = vsel %vm3802_vm7, %v18467_v16, %v18460_v63  ;;  %v3816_v16 = vsel %vm3802_vm7, %v18486_v28, %v18480_v56 }
 0x177   : > { %v691_v58 = vpop.f32.mrb[7].mxu0  ;;  %15773 = vmatmul.mubr.msk.bf16.vlgmr.msra.gmra.mrb[108].mxu1 %vm502_vm2, %v18558_v40  ;;  %v18580_v37 = vpop.permute.xlu1 %3798  ;;  %v3817_v36 = vsel %vm3802_vm7, %v18480_v56, %v18520_v32 }
 0x178   : > { %3972 = vmatpush1.bf16.msra.mxu1 %v3839_v44  ;;  %4003 = vmatprep.mubr.bf16.mxu1 %v17239_v6  ;;  %v3869_v56 = vsel %vm506_vm1, %v3817_v36, 0 }
 0x179   : > { %15775 = vmatmul.mubr.msk.bf16.vlgmr.msra.gmra.mrb[112].mxu0 %vm502_vm2, %v18558_v40  ;;  %5889 = vrot.lane.b32.xlu0 %v17986_v15, %s23523_s17 }
 0x17a   : > { %v18589_v2 = vpop.f32.mrb[4].mxu1  ;;  %4013 = vmatpush1.bf16.msra.mxu0 %v3845_v26  ;;  %5891 = vrot.lane.b32.xlu1 %v18002_v27, %s23523_s17  ;;  %v18600_v15 = vpop.permute.xlu0 %4469  ;;  %v3851_v27 = vsel %vm506_vm1, %v3811_v25, 0  ;;  %v3819_v25 = vsel %vm3802_vm7, %v18507_v7, %v18547_v55 }
 0x17b   : > { %v18596_v0 = vpop.f32.mrb[5].mxu1  ;;  %15780 = vmatprep.subr.msk.bf16.mxu1 %vm506_vm1, %v3812_v54  ;;  %4044 = vmatprep.mubr.bf16.mxu0 %v17239_v6 }
 0x17c   : > { %v731_v46 = vpop.f32.mrb[6].mxu1  ;;  %v18602_v21 = vpop.f32.mrb[8].mxu0  ;;  %15782 = vmatprep.subr.msk.bf16.mxu0 %vm506_vm1, %v3814_v4 }
 0x17d   : > { %v732_v59 = vpop.f32.mrb[7].mxu1  ;;  %v18608_v45 = vpop.f32.mrb[9].mxu0  ;;  %5893 = vrot.lane.b32.xlu0 %v18014_v13, %s23523_s17  ;;  %v3818_v13 = vsel %vm3802_vm7, %v18520_v32, %v18507_v7  ;;  %v3820_v32 = vsel %vm3802_vm7, %v18547_v55, %v18538_v39 }
 0x17e   : > { %v772_v38 = vpop.f32.mrb[10].mxu0  ;;  %5895 = vrot.lane.b32.xlu1 %v18040_v17, %s23523_s17  ;;  %v18615_v8 = vpop.permute.xlu1 %4467 }
 0x17f   : > { %v773_v11 = vpop.f32.mrb[11].mxu0  ;;  %15777 = vmatmul.mubr.msk.bf16.vlgmr.msra.gmra.mrb[112].mxu1 %vm502_vm2, %v18558_v40  ;;  %v18631_v17 = vpop.permute.xlu0 %4473  ;;  %v4512_v36 = vsel %vm4511_vm8, %v18615_v8, %v18600_v15 }
 0x180   : > { %4054 = vmatpush1.bf16.msra.mxu1 %v3851_v27  ;;  %4085 = vmatprep.mubr.bf16.mxu1 %v17239_v6  ;;  %v3821_v27 = vsel %vm3802_vm7, %v18538_v39, %v18580_v37  ;;  %v4537_v8 = vsel %vm506_vm1, %v4512_v36, 0 }
 0x181   : > { %15779 = vmatmul.mubr.msk.bf16.vlgmr.msra.gmra.mrb[116].mxu0 %vm502_vm2, %v18558_v40  ;;  %5897 = vrot.lane.b32.xlu0 %v18056_v23, %s23523_s17  ;;  %v3881_v39 = vsel %vm506_vm1, %v3821_v27, 0 }
 0x182   : > { %v18633_v42 = vpop.f32.mrb[8].mxu1  ;;  %4095 = vmatpush1.bf16.msra.mxu0 %v3857_v19  ;;  %5899 = vrot.lane.b32.xlu1 %v18072_v52, %s23523_s17  ;;  %v18640_v1 = vpop.permute.xlu1 %4471  ;;  %v3863_v52 = vsel %vm506_vm1, %v3815_v47, 0 }
 0x183   : > { %v18642_v9 = vpop.f32.mrb[9].mxu1  ;;  %15784 = vmatprep.subr.msk.bf16.mxu1 %vm506_vm1, %v3816_v16  ;;  %4126 = vmatprep.mubr.bf16.mxu0 %v17239_v6 }
 0x184   : > { %v813_v23 = vpop.f32.mrb[10].mxu1  ;;  %v18646_v44 = vpop.f32.mrb[12].mxu0  ;;  %15786 = vmatprep.subr.msk.bf16.mxu0 %vm506_vm1, %v3818_v13 }
 0x185   : > { %v814_v63 = vpop.f32.mrb[11].mxu1  ;;  %v18652_v28 = vpop.f32.mrb[13].mxu0  ;;  %5901 = vrot.lane.b32.xlu0 %v18095_v43, %s23523_s17 }
 0x186   : > { %v854_v58 = vpop.f32.mrb[14].mxu0  ;;  %5903 = vrot.lane.b32.xlu1 %v18102_v29, %s23523_s17  ;;  %v18659_v26 = vpop.permute.xlu1 %4475  ;;  %v3822_v29 = vsel %vm3802_vm7, %v18580_v37, %v18574_v14 }
 0x187   : > { %v855_v54 = vpop.f32.mrb[15].mxu0  ;;  %15781 = vmatmul.mubr.msk.bf16.vlgmr.msra.gmra.mrb[116].mxu1 %vm502_vm2, %v18558_v40  ;;  %v18668_v43 = vpop.permute.xlu0 %4477 }
 0x188   : > { %4136 = vmatpush1.bf16.msra.mxu1 %v3863_v52  ;;  %4167 = vmatprep.mubr.bf16.mxu1 %v17239_v6 }
 0x189   : > { %15783 = vmatmul.mubr.msk.bf16.vlgmr.msra.gmra.mrb[120].mxu0 %vm502_vm2, %v18558_v40  ;;  %5905 = vrot.lane.b32.xlu0 %v18120_v50, %s23523_s17 }
 0x18a   : > { %v18677_v4 = vpop.f32.mrb[12].mxu1  ;;  %4177 = vmatpush1.bf16.msra.mxu0 %v3869_v56  ;;  %5907 = vrot.lane.b32.xlu1 %v18139_v34, %s23523_s17  ;;  %v18684_v46 = vpop.permute.xlu1 %4479  ;;  %v3875_v34 = vsel %vm506_vm1, %v3819_v25, 0 }
 0x18b   : > { %v18686_v22 = vpop.f32.mrb[13].mxu1  ;;  %15788 = vmatprep.subr.msk.bf16.mxu1 %vm506_vm1, %v3820_v32  ;;  %4208 = vmatprep.mubr.bf16.mxu0 %v17239_v6 }
 0x18c   : > { %v895_v50 = vpop.f32.mrb[14].mxu1  ;;  %v18690_v59 = vpop.f32.mrb[16].mxu0  ;;  %15790 = vmatprep.subr.msk.bf16.mxu0 %vm506_vm1, %v3822_v29 }
 0x18d   : > { %v896_v7 = vpop.f32.mrb[15].mxu1  ;;  %v18696_v55 = vpop.f32.mrb[17].mxu0  ;;  %5909 = vrot.lane.b32.xlu0 %v18154_v10, %s23523_s17  ;;  %v4513_v10 = vsel %vm4511_vm8, %v18600_v15, %v18640_v1  ;;  %v3887_v15 = vsel %vm506_vm1, %v18574_v14, 0  ;;  %v4517_v14 = vsel %vm4511_vm8, %v18668_v43, %v18684_v46 }
 0x18e   : > { %v936_v38 = vpop.f32.mrb[18].mxu0  ;;  %5911 = vrot.lane.b32.xlu1 %v18170_v33, %s23523_s17  ;;  %v18703_v11 = vpop.permute.xlu0 %4481 }
 0x18f   : > { %v937_v19 = vpop.f32.mrb[19].mxu0  ;;  %15785 = vmatmul.mubr.msk.bf16.vlgmr.msra.gmra.mrb[120].mxu1 %vm502_vm2, %v18558_v40  ;;  %v18709_v37 = vpop.permute.xlu1 %4483  ;;  %v18788_v38 = vld [vmem:[%s23509_s2 + $0x18] sm:$0xf] }
 0x190   : > { %4218 = vmatpush1.bf16.msra.mxu1 %v3875_v34  ;;  %4249 = vmatprep.mubr.bf16.mxu1 %v17239_v6 }
 0x191   : > { %15787 = vmatmul.mubr.msk.bf16.vlgmr.msra.gmra.mrb[124].mxu0 %vm502_vm2, %v18558_v40  ;;  %16691 = vmatprep.subr.bf16.mxu1 %v17244_v49 }
 0x192   : > { %v18717_v33 = vpop.f32.mrb[16].mxu1  ;;  %4259 = vmatpush1.bf16.msra.mxu0 %v3881_v39  ;;  %5913 = vrot.lane.b32.xlu0 %v18192_v60, %s23523_s17  ;;  %v18721_v16 = vpop.permute.xlu0 %4485 }
 0x193   : > { %v18723_v13 = vpop.f32.mrb[17].mxu1  ;;  %5915 = vrot.lane.b32.xlu1 %v18199_v24, %s23523_s17  ;;  %4290 = vmatprep.mubr.bf16.mxu0 %v17239_v6  ;;  %v4515_v24 = vsel %vm4511_vm8, %v18631_v17, %v18659_v26 }
 0x194   : > { %v977_v47 = vpop.f32.mrb[18].mxu1  ;;  %v18728_v23 = vpop.f32.mrb[20].mxu0  ;;  %15795 = vmatprep.subr.msk.bf16.mxu0 %vm506_vm1, %v4513_v10 }
 0x195   : > { %v978_v63 = vpop.f32.mrb[19].mxu1  ;;  %v16665_v60 = vpop.f32.mrb[21].mxu0 }
 0x196   : > { %v1017_v52 = vpop.f32.mrb[22].mxu0  ;;  %5917 = vrot.lane.b32.xlu0 %v18213_v51, %s23523_s17  ;;  %v18739_v58 = vpop.permute.xlu1 %4487 }
 0x197   : > { %v16666_v54 = vpop.f32.mrb[23].mxu0  ;;  %15789 = vmatmul.mubr.msk.bf16.vlgmr.msra.gmra.mrb[124].mxu1 %vm502_vm2, %v18558_v40  ;;  %5919 = vrot.lane.b32.xlu1 %v18230_v30, %s23523_s17  ;;  %v18750_v51 = vpop.permute.xlu0 %4489  ;;  %v4514_v30 = vsel %vm4511_vm8, %v18640_v1, %v18631_v17 }
 0x198   : > { %16692 = vmatpush3.bf16.msra.mxu1 %v3887_v15  ;;  %16693 = vmatprep.mubr.msk.bf16.mxu1 %vm17245_vm3, %v17244_v49 }
 0x199   : > { %15791 = vmatmul.mubr.msk.bf16.vlgmr.msra.gmra.mrb[128].mxu0 %vm502_vm2, %v18558_v40  ;;  %15797 = vmatprep.subr.msk.bf16.mxu1 %vm506_vm1, %v4515_v24 }
 0x19a   : > { %v1120_v56 = vpop.f32.mrb[20].mxu1  ;;  %4600 = vmatpush1.bf16.msra.mxu0 %v4537_v8  ;;  %5921 = vrot.lane.b32.xlu0 %v18243_v61, %s23523_s17  ;;  %v18763_v32 = vpop.permute.xlu1 %4491  ;;  %v4516_v61 = vsel %vm4511_vm8, %v18659_v26, %v18668_v43 }
 0x19b   : > { %v18766_v29 = vadd.f32 %v1120_v56, %v18509_v48  ;;  %v1122_v25 = vpop.f32.mrb[21].mxu1  ;;  %5923 = vrot.lane.b32.xlu1 %v18260_v35, %s23523_s17  ;;  %4631 = vmatprep.mubr.bf16.mxu0 %v17239_v6  ;;  %v4543_v35 = vsel %vm506_vm1, %v4514_v30, 0 }
 0x19c   : > { %v18772_v50 = vadd.f32 %v1122_v25, %v18515_v31  ;;  %v1124_v27 = vpop.f32.mrb[22].mxu1  ;;  %v1161_v7 = vpop.f32.mrb[24].mxu0  ;;  %15799 = vmatprep.subr.msk.bf16.mxu0 %vm506_vm1, %v4517_v14  ;;  %v4522_v14 = vsel %vm4511_vm8, %v18739_v58, %v18750_v51 }
 0x19d   : > { %v18779_v48 = vadd.f32 %v1161_v7, %v18540_v57  ;;  %v1125_v17 = vpop.f32.mrb[23].mxu1  ;;  %v1163_v1 = vpop.f32.mrb[25].mxu0  ;;  %v4519_v57 = vsel %vm4511_vm8, %v18703_v11, %v18709_v37 }
 0x19e   : > { %v18783_v34 = vadd.f32 %v1163_v1, %v18549_v41  ;;  %v1165_v31 = vpop.f32.mrb[26].mxu0  ;;  %5925 = vrot.lane.b32.xlu0 %v18275_v53, %s23523_s17  ;;  %v4494_v26 = vpop.permute.xlu0 %4493  ;;  %v4549_v41 = vsel %vm506_vm1, %v4516_v61, 0  ;;  %v4521_v53 = vsel %vm4511_vm8, %v18721_v16, %v18739_v58 }
 0x19f   : > { %v1166_v43 = vpop.f32.mrb[27].mxu0  ;;  %16694 = vmatmul.mubr.msk.bf16.vlgmr.msra.gmra.mrb[128].mxu1 %vm502_vm2, %v18558_v40  ;;  %5927 = vrot.lane.b32.xlu1 %v18289_v12, %s23523_s17  ;;  %v18804_v19 = vpop.permute.xlu1 %4495  ;;  %v4518_v12 = vsel %vm4511_vm8, %v18684_v46, %v18703_v11  ;;  %v4520_v46 = vsel %vm4511_vm8, %v18709_v37, %v18721_v16  ;;  %v4524_v17 = vsel %vm4511_vm8, %v18763_v32, %v4494_v26 }
 0x1a0   : > { %4641 = vmatpush1.bf16.msra.mxu1 %v4543_v35  ;;  %4672 = vmatprep.mubr.bf16.mxu1 %v17239_v6  ;;  %v4555_v52 = vsel %vm506_vm1, %v4518_v12, 0  ;;  %v4525_v37 = vsel %vm4511_vm8, %v4494_v26, %v18804_v19  ;;  %v4567_v35 = vsel %vm506_vm1, %v4522_v14, 0 }
 0x1a1   : > { %15796 = vmatmul.mubr.msk.bf16.vlgmr.msra.gmra.mrb[132].mxu0 %vm502_vm2, %v18788_v38  ;;  %15801 = vmatprep.subr.msk.bf16.mxu1 %vm506_vm1, %v4519_v57 }
 0x1a2   : > { %v1202_v40 = vpop.f32.mrb[24].mxu1  ;;  %4682 = vmatpush1.bf16.msra.mxu0 %v4549_v41  ;;  %5929 = vrot.lane.b32.xlu0 %v18297_v18, %s23523_s17  ;;  %v4498_v39 = vpop.permute.xlu0 %4497 }
 0x1a3   : > { %v18815_v10 = vadd.f32 %v1202_v40, %v18553_v20  ;;  %v1204_v47 = vpop.f32.mrb[25].mxu1  ;;  %4713 = vmatprep.mubr.bf16.mxu0 %v17239_v6  ;;  %15803 = vmatprep.subr.msk.bf16.mxu0 %vm506_vm1, %v4521_v53  ;;  %v4526_v41 = vsel %vm4511_vm8, %v18804_v19, %v4498_v39 }
 0x1a4   : > { %v18820_v36 = vadd.f32 %v1204_v47, %v18564_v62  ;;  %v1206_v63 = vpop.f32.mrb[26].mxu1  ;;  %v1243_v60 = vpop.f32.mrb[28].mxu0  ;;  %v4523_v62 = vsel %vm4511_vm8, %v18750_v51, %v18763_v32  ;;  %v4573_v32 = vsel %vm506_vm1, %v4524_v17, 0 }
 0x1a5   : > { %v18826_v18 = vadd.f32 %v1243_v60, %v18589_v2  ;;  %v1207_v11 = vpop.f32.mrb[27].mxu1  ;;  %v1245_v20 = vpop.f32.mrb[29].mxu0  ;;  %v4561_v2 = vsel %vm506_vm1, %v4520_v46, 0 }
 0x1a6   : > { %v18830_v24 = vadd.f32 %v1245_v20, %v18596_v0  ;;  %v1247_v54 = vpop.f32.mrb[30].mxu0  ;;  %v4500_v15 = vpop.permute.xlu1 %4499  ;;  %v4579_v20 = vsel %vm506_vm1, %v4526_v41, 0 }
 0x1a7   : > { %v1248_v8 = vpop.f32.mrb[31].mxu0  ;;  %15798 = vmatmul.mubr.msk.bf16.vlgmr.msra.gmra.mrb[132].mxu1 %vm502_vm2, %v18788_v38  ;;  %v4502_v0 = vpop.permute.xlu0 %4501  ;;  %v4527_v57 = vsel %vm4511_vm8, %v4498_v39, %v4500_v15 }
 0x1a8   : > { %4723 = vmatpush1.bf16.msra.mxu1 %v4555_v52  ;;  %4754 = vmatprep.mubr.bf16.mxu1 %v17239_v6  ;;  %v4528_v46 = vsel %vm4511_vm8, %v4500_v15, %v4502_v0 }
 0x1a9   : > { %15800 = vmatmul.mubr.msk.bf16.vlgmr.msra.gmra.mrb[136].mxu0 %vm502_vm2, %v18788_v38  ;;  %15805 = vmatprep.subr.msk.bf16.mxu1 %vm506_vm1, %v4523_v62  ;;  %v4585_v15 = vsel %vm506_vm1, %v4528_v46, 0 }
 0x1aa   : > { %v1284_v16 = vpop.f32.mrb[28].mxu1  ;;  %4764 = vmatpush1.bf16.msra.mxu0 %v4561_v2  ;;  %4795 = vmatprep.mubr.bf16.mxu0 %v17239_v6  ;;  %v4504_v56 = vpop.permute.xlu1 %4503 }
 0x1ab   : > { %v18849_v30 = vadd.f32 %v1284_v16, %v18602_v21  ;;  %v1286_v25 = vpop.f32.mrb[29].mxu1  ;;  %15807 = vmatprep.subr.msk.bf16.mxu0 %vm506_vm1, %v4525_v37 }
 0x1ac   : > { %v18853_v27 = vadd.f32 %v1286_v25, %v18608_v45  ;;  %v1288_v7 = vpop.f32.mrb[30].mxu1  ;;  %v1325_v61 = vpop.f32.mrb[32].mxu0 }
 0x1ad   : > { %v18858_v1 = vadd.f32 %v1325_v61, %v18633_v42  ;;  %v1289_v58 = vpop.f32.mrb[31].mxu1  ;;  %v1327_v51 = vpop.f32.mrb[33].mxu0  ;;  %v4529_v42 = vsel %vm4511_vm8, %v4502_v0, %v4504_v56 }
 0x1ae   : > { %v18862_v21 = vadd.f32 %v1327_v51, %v18642_v9  ;;  %v1329_v31 = vpop.f32.mrb[34].mxu0  ;;  %v4506_v45 = vpop.permute.xlu0 %4505 }
 0x1af   : > { %v1330_v43 = vpop.f32.mrb[35].mxu0  ;;  %15802 = vmatmul.mubr.msk.bf16.vlgmr.msra.gmra.mrb[136].mxu1 %vm502_vm2, %v18788_v38  ;;  %v4508_v26 = vpop.permute.xlu1 %4507  ;;  %v4530_v8 = vsel %vm4511_vm8, %v4504_v56, %v4506_v45 }
 0x1b0   : > { %4805 = vmatpush1.bf16.msra.mxu1 %v4567_v35  ;;  %4836 = vmatprep.mubr.bf16.mxu1 %v17239_v6  ;;  %v4531_v54 = vsel %vm4511_vm8, %v4506_v45, %v4508_v26  ;;  %v4591_v58 = vsel %vm506_vm1, %v4530_v8, 0 }
 0x1b1   : > { %15804 = vmatmul.mubr.msk.bf16.vlgmr.msra.gmra.mrb[140].mxu0 %vm502_vm2, %v18788_v38  ;;  %15809 = vmatprep.subr.msk.bf16.mxu1 %vm506_vm1, %v4527_v57 }
 0x1b2   : > { %v1366_v9 = vpop.f32.mrb[32].mxu1  ;;  %4846 = vmatpush1.bf16.msra.mxu0 %v4573_v32  ;;  %4877 = vmatprep.mubr.bf16.mxu0 %v17239_v6  ;;  %v4510_v53 = vpop.permute.xlu0 %4509 }
 0x1b3   : > { %v18877_v40 = vadd.f32 %v1366_v9, %v18646_v44  ;;  %v1368_v12 = vpop.f32.mrb[33].mxu1  ;;  %15811 = vmatprep.subr.msk.bf16.mxu0 %vm506_vm1, %v4529_v42  ;;  %v4532_v7 = vsel %vm4511_vm8, %v4508_v26, %v4510_v53 }
 0x1b4   : > { %v18881_v47 = vadd.f32 %v1368_v12, %v18652_v28  ;;  %v1370_v63 = vpop.f32.mrb[34].mxu1  ;;  %v1407_v60 = vpop.f32.mrb[36].mxu0  ;;  %v4597_v57 = vsel %vm506_vm1, %v4532_v7, 0 }
 0x1b5   : > { %v18885_v11 = vadd.f32 %v1407_v60, %v18677_v4  ;;  %v1371_v19 = vpop.f32.mrb[35].mxu1  ;;  %v1409_v39 = vpop.f32.mrb[37].mxu0 }
 0x1b6   : > { %v18889_v44 = vadd.f32 %v1409_v39, %v18686_v22  ;;  %v1411_v52 = vpop.f32.mrb[38].mxu0  ;;  %v5178_v62 = vpop.permute.xlu1 %5177 }
 0x1b7   : > { %v1412_v28 = vpop.f32.mrb[39].mxu0  ;;  %15806 = vmatmul.mubr.msk.bf16.vlgmr.msra.gmra.mrb[140].mxu1 %vm502_vm2, %v18788_v38  ;;  %v5180_v4 = vpop.permute.xlu0 %5179 }
 0x1b8   : > { %4887 = vmatpush1.bf16.msra.mxu1 %v4579_v20  ;;  %4918 = vmatprep.mubr.bf16.mxu1 %v17239_v6  ;;  %v5222_v43 = vsel %vm5221_vm9, %v5178_v62, %v5180_v4 }
 0x1b9   : > { %15808 = vmatmul.mubr.msk.bf16.vlgmr.msra.gmra.mrb[144].mxu0 %vm502_vm2, %v18788_v38  ;;  %15813 = vmatprep.subr.msk.bf16.mxu1 %vm506_vm1, %v4531_v54  ;;  %v5247_v46 = vsel %vm506_vm1, %v5222_v43, 0 }
 0x1ba   : > { %v1448_v22 = vpop.f32.mrb[36].mxu1  ;;  %4928 = vmatpush1.bf16.msra.mxu0 %v4585_v15  ;;  %4959 = vmatprep.mubr.bf16.mxu0 %v17239_v6  ;;  %v5182_v2 = vpop.permute.xlu1 %5181 }
 0x1bb   : > { %v18902_v37 = vadd.f32 %v1448_v22, %v18690_v59  ;;  %v1450_v0 = vpop.f32.mrb[37].mxu1  ;;  %16697 = vmatprep.subr.bf16.mxu0 %v17244_v49  ;;  %v5223_v35 = vsel %vm5221_vm9, %v5180_v4, %v5182_v2 }
 0x1bc   : > { %v18906_v16 = vadd.f32 %v1450_v0, %v18696_v55  ;;  %v1452_v14 = vpop.f32.mrb[38].mxu1  ;;  %v1489_v25 = vpop.f32.mrb[40].mxu0  ;;  %v18960_v0 = vld [vmem:[%s23509_s2 + $0x1c] sm:$0xf] }
 0x1bd   : > { %v18910_v61 = vadd.f32 %v1489_v25, %v18717_v33  ;;  %v1453_v56 = vpop.f32.mrb[39].mxu1  ;;  %v1491_v17 = vpop.f32.mrb[41].mxu0 }
 0x1be   : > { %v18914_v59 = vadd.f32 %v1491_v17, %v18723_v13  ;;  %v1493_v51 = vpop.f32.mrb[42].mxu0  ;;  %v5184_v31 = vpop.permute.xlu0 %5183 }
 0x1bf   : > { %v1494_v55 = vpop.f32.mrb[43].mxu0  ;;  %15810 = vmatmul.mubr.msk.bf16.vlgmr.msra.gmra.mrb[144].mxu1 %vm502_vm2, %v18788_v38  ;;  %v5186_v45 = vpop.permute.xlu1 %5185  ;;  %v5224_v53 = vsel %vm5221_vm9, %v5182_v2, %v5184_v31  ;;  %v6490_v51 = vld [vmem:[%s23510_s3] sm:$0xff] }
 0x1c0   : > { %4969 = vmatpush1.bf16.msra.mxu1 %v4591_v58  ;;  %5000 = vmatprep.mubr.bf16.mxu1 %v17239_v6  ;;  %v5225_v33 = vsel %vm5221_vm9, %v5184_v31, %v5186_v45  ;;  %v5253_v52 = vsel %vm506_vm1, %v5224_v53, 0 }
 0x1c1   : > { %15812 = vmatmul.mubr.msk.bf16.vlgmr.msra.gmra.mrb[148].mxu0 %vm502_vm2, %v18788_v38  ;;  %15818 = vmatprep.subr.msk.bf16.mxu1 %vm506_vm1, %v5223_v35 }
 0x1c2   : > { %v1530_v13 = vpop.f32.mrb[40].mxu1  ;;  %16698 = vmatpush3.bf16.msra.mxu0 %v4597_v57  ;;  %16699 = vmatprep.mubr.msk.bf16.mxu0 %vm17245_vm3, %v17244_v49  ;;  %v5188_v32 = vpop.permute.xlu0 %5187 }
 0x1c3   : > { %v18929_v42 = vadd.f32 %v1530_v13, %v18728_v23  ;;  %v16671_v26 = vpop.f32.mrb[41].mxu1  ;;  %15820 = vmatprep.subr.msk.bf16.mxu0 %vm506_vm1, %v5225_v33  ;;  %v5226_v62 = vsel %vm5221_vm9, %v5186_v45, %v5188_v32  ;;  %6493 = vperm.xlu1 %16874, %v6490_v51  }
 0x1c4   : > { %v1533_v9 = vpop.f32.mrb[42].mxu1  ;;  %v1805_v41 = vpop.f32.mrb[44].mxu0  ;;  %v5259_v56 = vsel %vm506_vm1, %v5226_v62, 0 }
 0x1c5   : > { %v18934_v12 = vadd.f32 %v1805_v41, %v18766_v29  ;;  %v16672_v63 = vpop.f32.mrb[43].mxu1  ;;  %v1807_v60 = vpop.f32.mrb[45].mxu0 }
 0x1c6   : > { %v18938_v19 = vadd.f32 %v1807_v60, %v18772_v50  ;;  %v1809_v39 = vpop.f32.mrb[46].mxu0  ;;  %v5190_v23 = vpop.permute.xlu1 %5189 }
 0x1c7   : > { %v1810_v20 = vpop.f32.mrb[47].mxu0  ;;  %15814 = vmatmul.mubr.msk.bf16.vlgmr.msra.gmra.mrb[148].mxu1 %vm502_vm2, %v18788_v38  ;;  %v5227_v54 = vsel %vm5221_vm9, %v5188_v32, %v5190_v23  ;;  %v5192_v29 = vpop.permute.xlu0 %5191 }
 0x1c8   : > { %5310 = vmatpush1.bf16.msra.mxu1 %v5247_v46  ;;  %5341 = vmatprep.mubr.bf16.mxu1 %v17239_v6  ;;  %v5228_v14 = vsel %vm5221_vm9, %v5190_v23, %v5192_v29 }
 0x1c9   : > { %16700 = vmatmul.mubr.msk.bf16.vlgmr.msra.gmra.mrb[152].mxu0 %vm502_vm2, %v18788_v38  ;;  %15822 = vmatprep.subr.msk.bf16.mxu1 %vm506_vm1, %v5227_v54 }
 0x1ca   : > { %v1846_v50 = vpop.f32.mrb[44].mxu1  ;;  %5351 = vmatpush1.bf16.msra.mxu0 %v5253_v52  ;;  %5382 = vmatprep.mubr.bf16.mxu0 %v17239_v6  ;;  %v5194_v28 = vpop.permute.xlu1 %5193 }
 0x1cb   : > { %v18951_v15 = vadd.f32 %v1846_v50, %v18779_v48  ;;  %v1848_v4 = vpop.f32.mrb[45].mxu1  ;;  %v5229_v22 = vsel %vm5221_vm9, %v5192_v29, %v5194_v28 }
 0x1cc   : > { %v18955_v8 = vadd.f32 %v1848_v4, %v18783_v34  ;;  %v1850_v2 = vpop.f32.mrb[46].mxu1  ;;  %v1887_v38 = vpop.f32.mrb[48].mxu0  ;;  %15824 = vmatprep.subr.msk.bf16.mxu0 %vm506_vm1, %v5229_v22 }
 0x1cd   : > { %v18965_v48 = vadd.f32 %v1887_v38, %v18815_v10  ;;  %v1851_v25 = vpop.f32.mrb[47].mxu1  ;;  %v1889_v7 = vpop.f32.mrb[49].mxu0  ;;  %v5265_v10 = vsel %vm506_vm1, %v5228_v14, 0 }
 0x1ce   : > { %v18969_v34 = vadd.f32 %v1889_v7, %v18820_v36  ;;  %v1891_v17 = vpop.f32.mrb[50].mxu0  ;;  %v5196_v58 = vpop.permute.xlu0 %5195 }
 0x1cf   : > { %v1892_v35 = vpop.f32.mrb[51].mxu0  ;;  %15819 = vmatmul.mubr.msk.bf16.vlgmr.msra.gmra.mrb[152].mxu1 %vm502_vm2, %v18960_v0  ;;  %v5198_v31 = vpop.permute.xlu1 %5197  ;;  %v5230_v57 = vsel %vm5221_vm9, %v5194_v28, %v5196_v58 }
 0x1d0   : > { %5392 = vmatpush1.bf16.msra.mxu1 %v5259_v56  ;;  %5423 = vmatprep.mubr.bf16.mxu1 %v17239_v6  ;;  %v5231_v36 = vsel %vm5221_vm9, %v5196_v58, %v5198_v31  ;;  %v5271_v39 = vsel %vm506_vm1, %v5230_v57, 0 }
 0x1d1   : > { %15821 = vmatmul.mubr.msk.bf16.vlgmr.msra.gmra.mrb[156].mxu0 %vm502_vm2, %v18960_v0  ;;  %15826 = vmatprep.subr.msk.bf16.mxu1 %vm506_vm1, %v5231_v36 }
 0x1d2   : > { %v1928_v55 = vpop.f32.mrb[48].mxu1  ;;  %5433 = vmatpush1.bf16.msra.mxu0 %v5265_v10  ;;  %5464 = vmatprep.mubr.bf16.mxu0 %v17239_v6  ;;  %v5200_v45 = vpop.permute.xlu0 %5199 }
 0x1d3   : > { %v18985_v33 = vadd.f32 %v1928_v55, %v18826_v18  ;;  %v1930_v13 = vpop.f32.mrb[49].mxu1  ;;  %v5202_v43 = vpop.permute.xlu1 %5201  ;;  %v5232_v41 = vsel %vm5221_vm9, %v5198_v31, %v5200_v45 }
 0x1d4   : > { %v18988_v32 = vadd.f32 %v1930_v13, %v18830_v24  ;;  %v1932_v26 = vpop.f32.mrb[50].mxu1  ;;  %v1969_v9 = vpop.f32.mrb[52].mxu0  ;;  %v5233_v53 = vsel %vm5221_vm9, %v5200_v45, %v5202_v43  ;;  %v5277_v52 = vsel %vm506_vm1, %v5232_v41, 0 }
 0x1d5   : > { %v18993_v63 = vadd.f32 %v1969_v9, %v18849_v30  ;;  %v1933_v60 = vpop.f32.mrb[51].mxu1  ;;  %v1971_v46 = vpop.f32.mrb[53].mxu0  ;;  %15828 = vmatprep.subr.msk.bf16.mxu0 %vm506_vm1, %v5233_v53 }
 0x1d6   : > { %v18998_v18 = vadd.f32 %v1971_v46, %v18853_v27  ;;  %v1973_v24 = vpop.f32.mrb[54].mxu0  ;;  %v5204_v23 = vpop.permute.xlu0 %5203 }
 0x1d7   : > { %v1974_v20 = vpop.f32.mrb[55].mxu0  ;;  %15823 = vmatmul.mubr.msk.bf16.vlgmr.msra.gmra.mrb[156].mxu1 %vm502_vm2, %v18960_v0  ;;  %v5206_v54 = vpop.permute.xlu1 %5205  ;;  %v5234_v29 = vsel %vm5221_vm9, %v5202_v43, %v5204_v23 }
 0x1d8   : > { %5474 = vmatpush1.bf16.msra.mxu1 %v5271_v39  ;;  %5505 = vmatprep.mubr.bf16.mxu1 %v17239_v6  ;;  %v5235_v30 = vsel %vm5221_vm9, %v5204_v23, %v5206_v54  ;;  %v5283_v56 = vsel %vm506_vm1, %v5234_v29, 0 }
 0x1d9   : > { %15825 = vmatmul.mubr.msk.bf16.vlgmr.msra.gmra.mrb[160].mxu0 %vm502_vm2, %v18960_v0  ;;  %15830 = vmatprep.subr.msk.bf16.mxu1 %vm506_vm1, %v5235_v30 }
 0x1da   : > { %v2010_v27 = vpop.f32.mrb[52].mxu1  ;;  %5515 = vmatpush1.bf16.msra.mxu0 %v5277_v52  ;;  %5546 = vmatprep.mubr.bf16.mxu0 %v17239_v6 }
 0x1db   : > { %v19011_v50 = vadd.f32 %v2010_v27, %v18858_v1  ;;  %v2012_v62 = vpop.f32.mrb[53].mxu1  ;;  %v5208_v28 = vpop.permute.xlu0 %5207 }
 0x1dc   : > { %v19014_v4 = vadd.f32 %v2012_v62, %v18862_v21  ;;  %v2014_v22 = vpop.f32.mrb[54].mxu1  ;;  %v2051_v2 = vpop.f32.mrb[56].mxu0  ;;  %v5236_v38 = vsel %vm5221_vm9, %v5206_v54, %v5208_v28 }
 0x1dd   : > { %v19018_v14 = vadd.f32 %v2051_v2, %v18877_v40  ;;  %v2015_v25 = vpop.f32.mrb[55].mxu1  ;;  %v2053_v7 = vpop.f32.mrb[57].mxu0  ;;  %v5289_v35 = vsel %vm506_vm1, %v5236_v38, 0 }
 0x1de   : > { %v19022_v17 = vadd.f32 %v2053_v7, %v18881_v47  ;;  %v2055_v1 = vpop.f32.mrb[58].mxu0  ;;  %v5210_v58 = vpop.permute.xlu1 %5209 }
 0x1df   : > { %v2056_v51 = vpop.f32.mrb[59].mxu0  ;;  %15827 = vmatmul.mubr.msk.bf16.vlgmr.msra.gmra.mrb[160].mxu1 %vm502_vm2, %v18960_v0  ;;  %v5237_v21 = vsel %vm5221_vm9, %v5208_v28, %v5210_v58  ;;  %v5212_v10 = vpop.permute.xlu0 %5211 }
 0x1e0   : > { %5556 = vmatpush1.bf16.msra.mxu1 %v5283_v56  ;;  %15832 = vmatprep.subr.msk.bf16.mxu0 %vm506_vm1, %v5237_v21  ;;  %v5238_v47 = vsel %vm5221_vm9, %v5210_v58, %v5212_v10 }
 0x1e1   : > { %15829 = vmatmul.mubr.msk.bf16.vlgmr.msra.gmra.mrb[164].mxu0 %vm502_vm2, %v18960_v0  ;;  %5587 = vmatprep.mubr.bf16.mxu1 %v17239_v6 }
 0x1e2   : > { %v2092_v40 = vpop.f32.mrb[56].mxu1  ;;  %5597 = vmatpush1.bf16.msra.mxu0 %v5289_v35  ;;  %v5214_v31 = vpop.permute.xlu1 %5213  ;;  %5628 = vmatprep.mubr.bf16.mxu0 %v17239_v6 }
 0x1e3   : > { %v19035_v36 = vadd.f32 %v2092_v40, %v18885_v11  ;;  %v2094_v55 = vpop.f32.mrb[57].mxu1  ;;  %v5239_v57 = vsel %vm5221_vm9, %v5212_v10, %v5214_v31  ;;  %v5216_v45 = vpop.permute.xlu0 %5215  ;;  %v5295_v11 = vsel %vm506_vm1, %v5238_v47, 0 }
 0x1e4   : > { %v19039_v13 = vadd.f32 %v2094_v55, %v18889_v44  ;;  %v2096_v43 = vpop.f32.mrb[58].mxu1  ;;  %v2133_v26 = vpop.f32.mrb[60].mxu0  ;;  %15834 = vmatprep.subr.msk.bf16.mxu1 %vm506_vm1, %v5239_v57  ;;  %v5240_v9 = vsel %vm5221_vm9, %v5214_v31, %v5216_v45 }
 0x1e5   : > { %v19044_v41 = vadd.f32 %v2133_v26, %v18902_v37  ;;  %v2097_v53 = vpop.f32.mrb[59].mxu1  ;;  %v2135_v60 = vpop.f32.mrb[61].mxu0  ;;  %v5301_v20 = vsel %vm506_vm1, %v5240_v9, 0 }
 0x1e6   : > { %v19048_v46 = vadd.f32 %v2135_v60, %v18906_v16  ;;  %v2137_v39 = vpop.f32.mrb[62].mxu0  ;;  %v5218_v24 = vpop.permute.xlu1 %5217 }
 0x1e7   : > { %v2138_v44 = vpop.f32.mrb[63].mxu0  ;;  %15831 = vmatmul.mubr.msk.bf16.vlgmr.msra.gmra.mrb[164].mxu1 %vm502_vm2, %v18960_v0  ;;  %v5241_v23 = vsel %vm5221_vm9, %v5216_v45, %v5218_v24  ;;  %v5220_v52 = vpop.permute.xlu0 %5219 }
 0x1e8   : > { %5638 = vmatpush1.bf16.msra.mxu1 %v5295_v11  ;;  %15836 = vmatprep.subr.msk.bf16.mxu0 %vm506_vm1, %v5241_v23  ;;  %v5242_v16 = vsel %vm5221_vm9, %v5218_v24, %v5220_v52 }
 0x1e9   : > { %15833 = vmatmul.mubr.msk.bf16.vlgmr.msra.gmra.mrb[168].mxu0 %vm502_vm2, %v18960_v0  ;;  %5669 = vmatprep.mubr.bf16.mxu1 %v17239_v6  ;;  %v5307_v25 = vsel %vm506_vm1, %v5242_v16, 0 }
 0x1ea   : > { %v2174_v37 = vpop.f32.mrb[60].mxu1  ;;  %5679 = vmatpush1.bf16.msra.mxu0 %v5301_v20  ;;  %v5888_v54 = vpop.permute.xlu1 %5887  ;;  %16703 = vmatprep.subr.bf16.mxu1 %v17244_v49 }
 0x1eb   : > { %v19061_v30 = vadd.f32 %v2174_v37, %v18910_v61  ;;  %v2176_v27 = vpop.f32.mrb[61].mxu1  ;;  %5710 = vmatprep.mubr.bf16.mxu0 %v17239_v6  ;;  %v5890_v29 = vpop.permute.xlu0 %5889 }
 0x1ec   : > { %v19065_v62 = vadd.f32 %v2176_v27, %v18914_v59  ;;  %v2178_v28 = vpop.f32.mrb[62].mxu1  ;;  %v2215_v22 = vpop.f32.mrb[64].mxu0  ;;  %v5932_v2 = vsel %vm5931_vm10, %v5888_v54, %v5890_v29 }
 0x1ed   : > { %v19069_v38 = vadd.f32 %v2215_v22, %v18929_v42  ;;  %v2179_v7 = vpop.f32.mrb[63].mxu1  ;;  %v16677_v56 = vpop.f32.mrb[65].mxu0  ;;  %v5957_v51 = vsel %vm506_vm1, %v5932_v2, 0 }
 0x1ee   : > { %v2218_v61 = vpop.f32.mrb[66].mxu0  ;;  %v5892_v1 = vpop.permute.xlu1 %5891 }
 0x1ef   : > { %v16678_v58 = vpop.f32.mrb[67].mxu0  ;;  %15835 = vmatmul.mubr.msk.bf16.vlgmr.msra.gmra.mrb[168].mxu1 %vm502_vm2, %v18960_v0  ;;  %v5933_v59 = vsel %vm5931_vm10, %v5890_v29, %v5892_v1  ;;  %v5894_v21 = vpop.permute.xlu0 %5893 }
 0x1f0   : > { %16704 = vmatpush3.bf16.msra.mxu1 %v5307_v25  ;;  %15841 = vmatprep.subr.msk.bf16.mxu0 %vm506_vm1, %v5933_v59  ;;  %v5934_v35 = vsel %vm5931_vm10, %v5892_v1, %v5894_v21 }
 0x1f1   : > { %15837 = vmatmul.mubr.msk.bf16.vlgmr.msra.gmra.mrb[172].mxu0 %vm502_vm2, %v18960_v0  ;;  %16705 = vmatprep.mubr.msk.bf16.mxu1 %vm17245_vm3, %v17244_v49 }
 0x1f2   : > { %v2511_v42 = vpop.f32.mrb[64].mxu1  ;;  %6020 = vmatpush1.bf16.msra.mxu0 %v5957_v51  ;;  %v5896_v10 = vpop.permute.xlu1 %5895  ;;  %6051 = vmatprep.mubr.bf16.mxu0 %v17239_v6 }
 0x1f3   : > { %v19084_v40 = vadd.f32 %v2511_v42, %v18934_v12  ;;  %v2513_v47 = vpop.f32.mrb[65].mxu1  ;;  %v5935_v31 = vsel %vm5931_vm10, %v5894_v21, %v5896_v10  ;;  %v5898_v55 = vpop.permute.xlu0 %5897  ;;  %v5963_v12 = vsel %vm506_vm1, %v5934_v35, 0 }
 0x1f4   : > { %v19088_v57 = vadd.f32 %v2513_v47, %v18938_v19  ;;  %v2515_v45 = vpop.f32.mrb[66].mxu1  ;;  %v2552_v43 = vpop.f32.mrb[68].mxu0  ;;  %15843 = vmatprep.subr.msk.bf16.mxu1 %vm506_vm1, %v5935_v31  ;;  %v5936_v26 = vsel %vm5931_vm10, %v5896_v10, %v5898_v55  ;;  %v19102_v19 = vld [vmem:[%s23509_s2 + $0x20] sm:$0xf] }
 0x1f5   : > { %v19093_v9 = vadd.f32 %v2552_v43, %v18951_v15  ;;  %v2516_v53 = vpop.f32.mrb[67].mxu1  ;;  %v2554_v60 = vpop.f32.mrb[69].mxu0  ;;  %v5969_v23 = vsel %vm506_vm1, %v5936_v26, 0 }
 0x1f6   : > { %v19097_v11 = vadd.f32 %v2554_v60, %v18955_v8  ;;  %v2556_v39 = vpop.f32.mrb[70].mxu0  ;;  %v5900_v24 = vpop.permute.xlu1 %5899 }
 0x1f7   : > { %v2557_v44 = vpop.f32.mrb[71].mxu0  ;;  %16706 = vmatmul.mubr.msk.bf16.vlgmr.msra.gmra.mrb[172].mxu1 %vm502_vm2, %v18960_v0  ;;  %v5937_v15 = vsel %vm5931_vm10, %v5898_v55, %v5900_v24  ;;  %v5902_v20 = vpop.permute.xlu0 %5901 }
 0x1f8   : > { %6061 = vmatpush1.bf16.msra.mxu1 %v5963_v12  ;;  %15845 = vmatprep.subr.msk.bf16.mxu0 %vm506_vm1, %v5937_v15  ;;  %v5938_v52 = vsel %vm5931_vm10, %v5900_v24, %v5902_v20 }
 0x1f9   : > { %15842 = vmatmul.mubr.msk.bf16.vlgmr.msra.gmra.mrb[176].mxu0 %vm502_vm2, %v19102_v19  ;;  %6092 = vmatprep.mubr.bf16.mxu1 %v17239_v6 }
 0x1fa   : > { %v2593_v8 = vpop.f32.mrb[68].mxu1  ;;  %6102 = vmatpush1.bf16.msra.mxu0 %v5969_v23  ;;  %v5904_v37 = vpop.permute.xlu1 %5903  ;;  %6133 = vmatprep.mubr.bf16.mxu0 %v17239_v6 }
 0x1fb   : > { %v19115_v0 = vadd.f32 %v2593_v8, %v18965_v48  ;;  %v2595_v16 = vpop.f32.mrb[69].mxu1  ;;  %v5939_v54 = vsel %vm5931_vm10, %v5902_v20, %v5904_v37  ;;  %v5906_v27 = vpop.permute.xlu0 %5905  ;;  %v5975_v48 = vsel %vm506_vm1, %v5938_v52, 0 }
 0x1fc   : > { %v19119_v29 = vadd.f32 %v2595_v16, %v18969_v34  ;;  %v2597_v28 = vpop.f32.mrb[70].mxu1  ;;  %v2634_v22 = vpop.f32.mrb[72].mxu0  ;;  %15847 = vmatprep.subr.msk.bf16.mxu1 %vm506_vm1, %v5939_v54  ;;  %v5940_v2 = vsel %vm5931_vm10, %v5904_v37, %v5906_v27 }
 0x1fd   : > { %v19124_v25 = vadd.f32 %v2634_v22, %v18985_v33  ;;  %v2598_v7 = vpop.f32.mrb[71].mxu1  ;;  %v2636_v56 = vpop.f32.mrb[73].mxu0  ;;  %v5981_v51 = vsel %vm506_vm1, %v5940_v2, 0 }
 0x1fe   : > { %v19128_v61 = vadd.f32 %v2636_v56, %v18988_v32  ;;  %v2638_v1 = vpop.f32.mrb[74].mxu0  ;;  %v5908_v58 = vpop.permute.xlu1 %5907 }
 0x1ff   : > { %v2639_v34 = vpop.f32.mrb[75].mxu0  ;;  %15844 = vmatmul.mubr.msk.bf16.vlgmr.msra.gmra.mrb[176].mxu1 %vm502_vm2, %v19102_v19  ;;  %v5941_v59 = vsel %vm5931_vm10, %v5906_v27, %v5908_v58  ;;  %v5910_v21 = vpop.permute.xlu0 %5909 }
 0x200   : > { %6143 = vmatpush1.bf16.msra.mxu1 %v5975_v48  ;;  %15849 = vmatprep.subr.msk.bf16.mxu0 %vm506_vm1, %v5941_v59  ;;  %v5942_v32 = vsel %vm5931_vm10, %v5908_v58, %v5910_v21 }
 0x201   : > { %15846 = vmatmul.mubr.msk.bf16.vlgmr.msra.gmra.mrb[180].mxu0 %vm502_vm2, %v19102_v19  ;;  %6174 = vmatprep.mubr.bf16.mxu1 %v17239_v6  ;;  %v5987_v60 = vsel %vm506_vm1, %v5942_v32, 0 }
 0x202   : > { %v2675_v33 = vpop.f32.mrb[72].mxu1  ;;  %6184 = vmatpush1.bf16.msra.mxu0 %v5981_v51  ;;  %v5912_v42 = vpop.permute.xlu1 %5911  ;;  %6215 = vmatprep.mubr.bf16.mxu0 %v17239_v6 }
 0x203   : > { %v19141_v35 = vadd.f32 %v2675_v33, %v18993_v63  ;;  %v2677_v10 = vpop.f32.mrb[73].mxu1  ;;  %v5943_v47 = vsel %vm5931_vm10, %v5910_v21, %v5912_v42 }
 0x204   : > { %v19145_v31 = vadd.f32 %v2677_v10, %v18998_v18  ;;  %v2679_v55 = vpop.f32.mrb[74].mxu1  ;;  %v2716_v45 = vpop.f32.mrb[76].mxu0  ;;  %15851 = vmatprep.subr.msk.bf16.mxu1 %vm506_vm1, %v5943_v47 }
 0x205   : > { %v19149_v43 = vadd.f32 %v2716_v45, %v19011_v50  ;;  %v2680_v26 = vpop.f32.mrb[75].mxu1  ;;  %v2718_v53 = vpop.f32.mrb[77].mxu0 }
 0x206   : > { %v19153_v63 = vadd.f32 %v2718_v53, %v19014_v4  ;;  %v2720_v12 = vpop.f32.mrb[78].mxu0  ;;  %v5914_v39 = vpop.permute.xlu0 %5913 }
 0x207   : > { %v2721_v24 = vpop.f32.mrb[79].mxu0  ;;  %15848 = vmatmul.mubr.msk.bf16.vlgmr.msra.gmra.mrb[180].mxu1 %vm502_vm2, %v19102_v19  ;;  %v5944_v18 = vsel %vm5931_vm10, %v5912_v42, %v5914_v39  ;;  %v5916_v44 = vpop.permute.xlu1 %5915 }
 0x208   : > { %6225 = vmatpush1.bf16.msra.mxu1 %v5987_v60  ;;  %v5945_v50 = vsel %vm5931_vm10, %v5914_v39, %v5916_v44  ;;  %v5993_v15 = vsel %vm506_vm1, %v5944_v18, 0  ;;  %6256 = vmatprep.mubr.bf16.mxu1 %v17239_v6 }
 0x209   : > { %15850 = vmatmul.mubr.msk.bf16.vlgmr.msra.gmra.mrb[184].mxu0 %vm502_vm2, %v19102_v19  ;;  %15853 = vmatprep.subr.msk.bf16.mxu0 %vm506_vm1, %v5945_v50 }
 0x20a   : > { %v2757_v4 = vpop.f32.mrb[76].mxu1  ;;  %6266 = vmatpush1.bf16.msra.mxu0 %v5993_v15  ;;  %v5918_v23 = vpop.permute.xlu0 %5917  ;;  %6297 = vmatprep.mubr.bf16.mxu0 %v17239_v6 }
 0x20b   : > { %v19166_v20 = vadd.f32 %v2757_v4, %v19018_v14  ;;  %v2759_v8 = vpop.f32.mrb[77].mxu1  ;;  %v5946_v52 = vsel %vm5931_vm10, %v5916_v44, %v5918_v23  ;;  %v5920_v37 = vpop.permute.xlu1 %5919 }
 0x20c   : > { %v19170_v16 = vadd.f32 %v2759_v8, %v19022_v17  ;;  %v2761_v54 = vpop.f32.mrb[78].mxu1  ;;  %v2798_v27 = vpop.f32.mrb[80].mxu0  ;;  %v5947_v28 = vsel %vm5931_vm10, %v5918_v23, %v5920_v37  ;;  %v5999_v14 = vsel %vm506_vm1, %v5946_v52, 0 }
 0x20d   : > { %v19174_v22 = vadd.f32 %v2798_v27, %v19035_v36  ;;  %v2762_v2 = vpop.f32.mrb[79].mxu1  ;;  %v2800_v7 = vpop.f32.mrb[81].mxu0  ;;  %15855 = vmatprep.subr.msk.bf16.mxu1 %vm506_vm1, %v5947_v28 }
 0x20e   : > { %v19179_v56 = vadd.f32 %v2800_v7, %v19039_v13  ;;  %v2802_v48 = vpop.f32.mrb[82].mxu0  ;;  %v5922_v1 = vpop.permute.xlu0 %5921 }
 0x20f   : > { %v2803_v17 = vpop.f32.mrb[83].mxu0  ;;  %15852 = vmatmul.mubr.msk.bf16.vlgmr.msra.gmra.mrb[184].mxu1 %vm502_vm2, %v19102_v19  ;;  %v5948_v58 = vsel %vm5931_vm10, %v5920_v37, %v5922_v1  ;;  %v5924_v34 = vpop.permute.xlu1 %5923 }
 0x210   : > { %6307 = vmatpush1.bf16.msra.mxu1 %v5999_v14  ;;  %v5949_v36 = vsel %vm5931_vm10, %v5922_v1, %v5924_v34  ;;  %v6005_v59 = vsel %vm506_vm1, %v5948_v58, 0  ;;  %6338 = vmatprep.mubr.bf16.mxu1 %v17239_v6 }
 0x211   : > { %15854 = vmatmul.mubr.msk.bf16.vlgmr.msra.gmra.mrb[188].mxu0 %vm502_vm2, %v19102_v19  ;;  %15857 = vmatprep.subr.msk.bf16.mxu0 %vm506_vm1, %v5949_v36 }
 0x212   : > { %v2839_v13 = vpop.f32.mrb[80].mxu1  ;;  %6348 = vmatpush1.bf16.msra.mxu0 %v6005_v59  ;;  %v5926_v51 = vpop.permute.xlu0 %5925  ;;  %6379 = vmatprep.mubr.bf16.mxu0 %v17239_v6 }
 0x213   : > { %v19192_v21 = vadd.f32 %v2839_v13, %v19044_v41  ;;  %v2841_v33 = vpop.f32.mrb[81].mxu1  ;;  %v5950_v32 = vsel %vm5931_vm10, %v5924_v34, %v5926_v51  ;;  %v5928_v42 = vpop.permute.xlu1 %5927  ;;  %16709 = vmatprep.subr.bf16.mxu0 %v17244_v49 }
 0x214   : > { %v19197_v10 = vadd.f32 %v2841_v33, %v19048_v46  ;;  %v2843_v47 = vpop.f32.mrb[82].mxu1  ;;  %v2880_v55 = vpop.f32.mrb[84].mxu0  ;;  %v5951_v45 = vsel %vm5931_vm10, %v5926_v51, %v5928_v42  ;;  %v6011_v41 = vsel %vm506_vm1, %v5950_v32, 0 }
 0x215   : > { %v19201_v26 = vadd.f32 %v2880_v55, %v19061_v30  ;;  %v2844_v53 = vpop.f32.mrb[83].mxu1  ;;  %v2882_v60 = vpop.f32.mrb[85].mxu0  ;;  %15859 = vmatprep.subr.msk.bf16.mxu1 %vm506_vm1, %v5951_v45 }
 0x216   : > { %v19206_v12 = vadd.f32 %v2882_v60, %v19065_v62  ;;  %v2884_v39 = vpop.f32.mrb[86].mxu0  ;;  %v5930_v24 = vpop.permute.xlu0 %5929 }
 0x217   : > { %v2885_v46 = vpop.f32.mrb[87].mxu0  ;;  %15856 = vmatmul.mubr.msk.bf16.vlgmr.msra.gmra.mrb[188].mxu1 %vm502_vm2, %v19102_v19  ;;  %v5952_v18 = vsel %vm5931_vm10, %v5928_v42, %v5930_v24 }
 0x218   : > { %6389 = vmatpush1.bf16.msra.mxu1 %v6011_v41  ;;  %v6017_v30 = vsel %vm506_vm1, %v5952_v18, 0  ;;  %6420 = vmatprep.mubr.bf16.mxu1 %v17239_v6  ;;  %vm6942_vm1 = vcmask 1047556  }
 0x219   : > { %15858 = vmatmul.mubr.msk.bf16.vlgmr.msra.gmra.mrb[192].mxu0 %vm502_vm2, %v19102_v19  ;;  %vm6943_vm11 = vmor %vm6942_vm1, %vm6941_vm15  ;;  %vm12523_vm15 = vcmask 732160   ;;  %vm13463_vm1 = vcmask 457728  }
 0x21a   : > { %v2921_v44 = vpop.f32.mrb[84].mxu1  ;;  %16710 = vmatpush3.bf16.msra.mxu0 %v6017_v30  ;;  %16711 = vmatprep.mubr.msk.bf16.mxu0 %vm17245_vm3, %v17244_v49 }
 0x21b   : > { %v19218_v62 = vadd.f32 %v2921_v44, %v19069_v38  ;;  %v16683_v50 = vpop.f32.mrb[85].mxu1 }
 0x21c   : > { %v2924_v15 = vpop.f32.mrb[86].mxu1  ;;  %v3217_v4 = vpop.f32.mrb[88].mxu0 }
 0x21d   : > { %v19221_v23 = vadd.f32 %v3217_v4, %v19084_v40  ;;  %v16684_v8 = vpop.f32.mrb[87].mxu1  ;;  %v3219_v52 = vpop.f32.mrb[89].mxu0 }
 0x21e   : > { %v19224_v37 = vadd.f32 %v3219_v52, %v19088_v57  ;;  %v3221_v54 = vpop.f32.mrb[90].mxu0 }
 0x21f   : > { %v3222_v27 = vpop.f32.mrb[91].mxu0  ;;  %15860 = vmatmul.mubr.msk.bf16.vlgmr.msra.gmra.mrb[192].mxu1 %vm502_vm2, %v19102_v19 }
 0x220   : > { %7185 = vmatprep.mubr.bf16.mxu1 %v17239_v6 }
 0x221   : > { %16712 = vmatmul.mubr.msk.bf16.vlgmr.msra.gmra.mrb[196].mxu0 %vm502_vm2, %v19102_v19  ;;  %vm6908_vm2 = vcmask 220160  }
 0x222   : > { %v3258_v38 = vpop.f32.mrb[88].mxu1  ;;  %7226 = vmatprep.mubr.bf16.mxu0 %v17239_v6 }
 0x223   : > { %v19233_v40 = vadd.f32 %v3258_v38, %v19093_v9  ;;  %v3260_v28 = vpop.f32.mrb[89].mxu1 }
 0x224   : > { %v19236_v57 = vadd.f32 %v3260_v28, %v19097_v11  ;;  %v3262_v2 = vpop.f32.mrb[90].mxu1  ;;  %v3299_v7 = vpop.f32.mrb[92].mxu0 }
 0x225   : > { %v19239_v14 = vadd.f32 %v3299_v7, %v19115_v0  ;;  %v3263_v48 = vpop.f32.mrb[91].mxu1  ;;  %v3301_v1 = vpop.f32.mrb[93].mxu0 }
 0x226   : > { %v19242_v17 = vadd.f32 %v3301_v1, %v19119_v29  ;;  %v3303_v19 = vpop.f32.mrb[94].mxu0 }
 0x227   : > { %v3304_v58 = vpop.f32.mrb[95].mxu0 }
 0x22a   : > { %v3340_v34 = vpop.f32.mrb[92].mxu1 }
 0x22b   : > { %v19245_v9 = vadd.f32 %v3340_v34, %v19124_v25  ;;  %v3342_v36 = vpop.f32.mrb[93].mxu1 }
 0x22c   : > { %v19248_v11 = vadd.f32 %v3342_v36, %v19128_v61  ;;  %v3344_v59 = vpop.f32.mrb[94].mxu1  ;;  %v3381_v13 = vpop.f32.mrb[96].mxu0 }
 0x22d   : > { %v19251_v0 = vadd.f32 %v3381_v13, %v19141_v35  ;;  %v3345_v51 = vpop.f32.mrb[95].mxu1  ;;  %v3383_v33 = vpop.f32.mrb[97].mxu0 }
 0x22e   : > { %v19254_v29 = vadd.f32 %v3383_v33, %v19145_v31  ;;  %v3385_v32 = vpop.f32.mrb[98].mxu0 }
 0x22f   : > { %v3386_v42 = vpop.f32.mrb[99].mxu0 }
 0x232   : > { %v3422_v47 = vpop.f32.mrb[96].mxu1 }
 0x233   : > { %v19257_v25 = vadd.f32 %v3422_v47, %v19149_v43  ;;  %v3424_v55 = vpop.f32.mrb[97].mxu1 }
 0x234   : > { %v19260_v61 = vadd.f32 %v3424_v55, %v19153_v63  ;;  %v3426_v45 = vpop.f32.mrb[98].mxu1  ;;  %v3463_v53 = vpop.f32.mrb[100].mxu0 }
 0x235   : > { %v19263_v35 = vadd.f32 %v3463_v53, %v19166_v20  ;;  %v3427_v60 = vpop.f32.mrb[99].mxu1  ;;  %v3465_v41 = vpop.f32.mrb[101].mxu0 }
 0x236   : > { %v19266_v31 = vadd.f32 %v3465_v41, %v19170_v16  ;;  %v3467_v39 = vpop.f32.mrb[102].mxu0 }
 0x237   : > { %v3468_v24 = vpop.f32.mrb[103].mxu0 }
 0x23a   : > { %v3504_v46 = vpop.f32.mrb[100].mxu1 }
 0x23b   : > { %v19269_v43 = vadd.f32 %v3504_v46, %v19174_v22  ;;  %v3506_v18 = vpop.f32.mrb[101].mxu1 }
 0x23c   : > { %v19272_v63 = vadd.f32 %v3506_v18, %v19179_v56  ;;  %v3508_v30 = vpop.f32.mrb[102].mxu1  ;;  %v3545_v44 = vpop.f32.mrb[104].mxu0 }
 0x23d   : > { %v19275_v20 = vadd.f32 %v3545_v44, %v19192_v21  ;;  %v3509_v50 = vpop.f32.mrb[103].mxu1  ;;  %v3547_v15 = vpop.f32.mrb[105].mxu0 }
 0x23e   : > { %v19278_v16 = vadd.f32 %v3547_v15, %v19197_v10  ;;  %v3549_v4 = vpop.f32.mrb[106].mxu0 }
 0x23f   : > { %v3550_v8 = vpop.f32.mrb[107].mxu0 }
 0x242   : > { %v3586_v52 = vpop.f32.mrb[104].mxu1 }
 0x243   : > { %v19281_v22 = vadd.f32 %v3586_v52, %v19201_v26  ;;  %v3588_v54 = vpop.f32.mrb[105].mxu1 }
 0x244   : > { %v19284_v56 = vadd.f32 %v3588_v54, %v19206_v12  ;;  %v3590_v27 = vpop.f32.mrb[106].mxu1  ;;  %v3627_v38 = vpop.f32.mrb[108].mxu0 }
 0x245   : > { %v19287_v21 = vadd.f32 %v3627_v38, %v19218_v62  ;;  %v3591_v28 = vpop.f32.mrb[107].mxu1  ;;  %v16689_v2 = vpop.f32.mrb[109].mxu0 }
 0x246   : > { %v3630_v7 = vpop.f32.mrb[110].mxu0 }
 0x247   : > { %v16690_v10 = vpop.f32.mrb[111].mxu0 }
 0x24a   : > { %v3923_v48 = vpop.f32.mrb[108].mxu1 }
 0x24b   : > { %v19290_v1 = vadd.f32 %v3923_v48, %v19221_v23  ;;  %v3925_v19 = vpop.f32.mrb[109].mxu1 }
 0x24c   : > { %v19293_v26 = vadd.f32 %v3925_v19, %v19224_v37  ;;  %v3927_v58 = vpop.f32.mrb[110].mxu1  ;;  %v3964_v12 = vpop.f32.mrb[112].mxu0 }
 0x24d   : > { %v19296_v34 = vadd.f32 %v3964_v12, %v19233_v40  ;;  %v3928_v36 = vpop.f32.mrb[111].mxu1  ;;  %v3966_v62 = vpop.f32.mrb[113].mxu0 }
 0x24e   : > { %v19299_v59 = vadd.f32 %v3966_v62, %v19236_v57  ;;  %v3968_v13 = vpop.f32.mrb[114].mxu0 }
 0x24f   : > { %v3969_v51 = vpop.f32.mrb[115].mxu0 }
 0x252   : > { %v4005_v33 = vpop.f32.mrb[112].mxu1 }
 0x253   : > { %v19302_v23 = vadd.f32 %v4005_v33, %v19239_v14  ;;  %v4007_v32 = vpop.f32.mrb[113].mxu1 }
 0x254   : > { %v19305_v37 = vadd.f32 %v4007_v32, %v19242_v17  ;;  %v4009_v42 = vpop.f32.mrb[114].mxu1  ;;  %v4046_v47 = vpop.f32.mrb[116].mxu0 }
 0x255   : > { %v19308_v40 = vadd.f32 %v4046_v47, %v19245_v9  ;;  %v4010_v55 = vpop.f32.mrb[115].mxu1  ;;  %v4048_v45 = vpop.f32.mrb[117].mxu0 }
 0x256   : > { %v19311_v57 = vadd.f32 %v4048_v45, %v19248_v11  ;;  %v4050_v53 = vpop.f32.mrb[118].mxu0 }
 0x257   : > { %v4051_v60 = vpop.f32.mrb[119].mxu0 }
 0x25a   : > { %v4087_v41 = vpop.f32.mrb[116].mxu1 }
 0x25b   : > { %v19314_v14 = vadd.f32 %v4087_v41, %v19251_v0  ;;  %v4089_v39 = vpop.f32.mrb[117].mxu1 }
 0x25c   : > { %v19317_v17 = vadd.f32 %v4089_v39, %v19254_v29  ;;  %v4091_v24 = vpop.f32.mrb[118].mxu1  ;;  %v4128_v46 = vpop.f32.mrb[120].mxu0 }
 0x25d   : > { %v19320_v9 = vadd.f32 %v4128_v46, %v19257_v25  ;;  %v4092_v18 = vpop.f32.mrb[119].mxu1  ;;  %v4130_v30 = vpop.f32.mrb[121].mxu0 }
 0x25e   : > { %v19323_v11 = vadd.f32 %v4130_v30, %v19260_v61  ;;  %v4132_v44 = vpop.f32.mrb[122].mxu0 }
 0x25f   : > { %v4133_v50 = vpop.f32.mrb[123].mxu0 }
 0x262   : > { %v4169_v15 = vpop.f32.mrb[120].mxu1 }
 0x263   : > { %v19326_v0 = vadd.f32 %v4169_v15, %v19263_v35  ;;  %v4171_v4 = vpop.f32.mrb[121].mxu1 }
 0x264   : > { %v19329_v29 = vadd.f32 %v4171_v4, %v19266_v31  ;;  %v4173_v8 = vpop.f32.mrb[122].mxu1  ;;  %v4210_v52 = vpop.f32.mrb[124].mxu0 }
 0x265   : > { %v19332_v25 = vadd.f32 %v4210_v52, %v19269_v43  ;;  %v4174_v54 = vpop.f32.mrb[123].mxu1  ;;  %v4212_v27 = vpop.f32.mrb[125].mxu0 }
 0x266   : > { %v19335_v61 = vadd.f32 %v4212_v27, %v19272_v63  ;;  %v4214_v38 = vpop.f32.mrb[126].mxu0 }
 0x267   : > { %v4215_v28 = vpop.f32.mrb[127].mxu0 }
 0x26a   : > { %v4251_v2 = vpop.f32.mrb[124].mxu1 }
 0x26b   : > { %v19338_v35 = vadd.f32 %v4251_v2, %v19275_v20  ;;  %v4253_v7 = vpop.f32.mrb[125].mxu1 }
 0x26c   : > { %v19341_v31 = vadd.f32 %v4253_v7, %v19278_v16  ;;  %v4255_v10 = vpop.f32.mrb[126].mxu1  ;;  %v4292_v48 = vpop.f32.mrb[128].mxu0 }
 0x26d   : > { %v19344_v43 = vadd.f32 %v4292_v48, %v19281_v22  ;;  %v4256_v19 = vpop.f32.mrb[127].mxu1  ;;  %v4294_v58 = vpop.f32.mrb[129].mxu0 }
 0x26e   : > { %v19347_v63 = vadd.f32 %v4294_v58, %v19284_v56  ;;  %v4296_v12 = vpop.f32.mrb[130].mxu0 }
 0x26f   : > { %v4297_v36 = vpop.f32.mrb[131].mxu0 }
 0x272   : > { %v4333_v62 = vpop.f32.mrb[128].mxu1 }
 0x273   : > { %v19350_v20 = vadd.f32 %v4333_v62, %v19287_v21  ;;  %v16695_v13 = vpop.f32.mrb[129].mxu1 }
 0x274   : > { %v4336_v51 = vpop.f32.mrb[130].mxu1  ;;  %v4633_v16 = vpop.f32.mrb[132].mxu0 }
 0x275   : > { %v19353_v33 = vadd.f32 %v4633_v16, %v19290_v1  ;;  %v16696_v32 = vpop.f32.mrb[131].mxu1  ;;  %v4635_v22 = vpop.f32.mrb[133].mxu0 }
 0x276   : > { %v19356_v42 = vadd.f32 %v4635_v22, %v19293_v26  ;;  %v4637_v47 = vpop.f32.mrb[134].mxu0 }
 0x277   : > { %v4638_v56 = vpop.f32.mrb[135].mxu0 }
 0x27a   : > { %v4674_v55 = vpop.f32.mrb[132].mxu1 }
 0x27b   : > { %v19359_v45 = vadd.f32 %v4674_v55, %v19296_v34  ;;  %v4676_v53 = vpop.f32.mrb[133].mxu1 }
 0x27c   : > { %v19362_v21 = vadd.f32 %v4676_v53, %v19299_v59  ;;  %v4678_v60 = vpop.f32.mrb[134].mxu1  ;;  %v4715_v41 = vpop.f32.mrb[136].mxu0 }
 0x27d   : > { %v19365_v1 = vadd.f32 %v4715_v41, %v19302_v23  ;;  %v4679_v39 = vpop.f32.mrb[135].mxu1  ;;  %v4717_v24 = vpop.f32.mrb[137].mxu0 }
 0x27e   : > { %v19368_v26 = vadd.f32 %v4717_v24, %v19305_v37  ;;  %v4719_v46 = vpop.f32.mrb[138].mxu0 }
 0x27f   : > { %v4720_v18 = vpop.f32.mrb[139].mxu0 }
 0x282   : > { %v4756_v30 = vpop.f32.mrb[136].mxu1 }
 0x283   : > { %v19371_v34 = vadd.f32 %v4756_v30, %v19308_v40  ;;  %v4758_v44 = vpop.f32.mrb[137].mxu1 }
 0x284   : > { %v19374_v59 = vadd.f32 %v4758_v44, %v19311_v57  ;;  %v4760_v50 = vpop.f32.mrb[138].mxu1  ;;  %v4797_v15 = vpop.f32.mrb[140].mxu0 }
 0x285   : > { %v19377_v23 = vadd.f32 %v4797_v15, %v19314_v14  ;;  %v4761_v4 = vpop.f32.mrb[139].mxu1  ;;  %v4799_v8 = vpop.f32.mrb[141].mxu0 }
 0x286   : > { %v19380_v37 = vadd.f32 %v4799_v8, %v19317_v17  ;;  %v4801_v52 = vpop.f32.mrb[142].mxu0 }
 0x287   : > { %v4802_v54 = vpop.f32.mrb[143].mxu0 }
 0x28a   : > { %v4838_v27 = vpop.f32.mrb[140].mxu1 }
 0x28b   : > { %v19383_v40 = vadd.f32 %v4838_v27, %v19320_v9  ;;  %v4840_v38 = vpop.f32.mrb[141].mxu1 }
 0x28c   : > { %v19386_v57 = vadd.f32 %v4840_v38, %v19323_v11  ;;  %v4842_v28 = vpop.f32.mrb[142].mxu1  ;;  %v4879_v2 = vpop.f32.mrb[144].mxu0 }
 0x28d   : > { %v19389_v14 = vadd.f32 %v4879_v2, %v19326_v0  ;;  %v4843_v7 = vpop.f32.mrb[143].mxu1  ;;  %v4881_v10 = vpop.f32.mrb[145].mxu0 }
 0x28e   : > { %v19392_v17 = vadd.f32 %v4881_v10, %v19329_v29  ;;  %v4883_v48 = vpop.f32.mrb[146].mxu0 }
 0x28f   : > { %v4884_v19 = vpop.f32.mrb[147].mxu0 }
 0x292   : > { %v4920_v58 = vpop.f32.mrb[144].mxu1 }
 0x293   : > { %v4922_v12 = vpop.f32.mrb[145].mxu1  ;;  %v19395_v9 = vadd.f32 %v4920_v58, %v19332_v25 }
 0x294   : > { %v4924_v36 = vpop.f32.mrb[146].mxu1  ;;  %v4961_v11 = vpop.f32.mrb[148].mxu0  ;;  %v19398_v62 = vadd.f32 %v4922_v12, %v19335_v61 }
 0x295   : > { %v4925_v13 = vpop.f32.mrb[147].mxu1  ;;  %v4963_v0 = vpop.f32.mrb[149].mxu0  ;;  %v19401_v51 = vadd.f32 %v4961_v11, %v19338_v35 }
 0x296   : > { %v4965_v16 = vpop.f32.mrb[150].mxu0  ;;  %v19404_v29 = vadd.f32 %v4963_v0, %v19341_v31 }
 0x297   : > { %v4966_v32 = vpop.f32.mrb[151].mxu0 }
 0x29a   : > { %v5002_v22 = vpop.f32.mrb[148].mxu1 }
 0x29b   : > { %v5004_v47 = vpop.f32.mrb[149].mxu1  ;;  %v19407_v25 = vadd.f32 %v5002_v22, %v19344_v43 }
 0x29c   : > { %v5006_v56 = vpop.f32.mrb[150].mxu1  ;;  %v5043_v55 = vpop.f32.mrb[152].mxu0  ;;  %v19410_v61 = vadd.f32 %v5004_v47, %v19347_v63 }
 0x29d   : > { %v5007_v35 = vpop.f32.mrb[151].mxu1  ;;  %v16701_v53 = vpop.f32.mrb[153].mxu0  ;;  %v19414_v60 = vadd.f32 %v5043_v55, %v19350_v20 }
 0x29e   : > { %v5046_v31 = vpop.f32.mrb[154].mxu0 }
 0x29f   : > { %v16702_v41 = vpop.f32.mrb[155].mxu0 }
 0x2a2   : > { %v5343_v39 = vpop.f32.mrb[152].mxu1 }
 0x2a3   : > { %v5345_v24 = vpop.f32.mrb[153].mxu1  ;;  %v19417_v43 = vadd.f32 %v5343_v39, %v19353_v33 }
 0x2a4   : > { %v5347_v46 = vpop.f32.mrb[154].mxu1  ;;  %v5384_v18 = vpop.f32.mrb[156].mxu0  ;;  %v19420_v30 = vadd.f32 %v5345_v24, %v19356_v42 }
 0x2a5   : > { %v5348_v63 = vpop.f32.mrb[155].mxu1  ;;  %v5386_v44 = vpop.f32.mrb[157].mxu0  ;;  %v19423_v50 = vadd.f32 %v5384_v18, %v19359_v45 }
 0x2a6   : > { %v5388_v15 = vpop.f32.mrb[158].mxu0  ;;  %v19426_v20 = vadd.f32 %v5386_v44, %v19362_v21 }
 0x2a7   : > { %v5389_v4 = vpop.f32.mrb[159].mxu0 }
 0x2a8   : > { %v19479_v4 = vpop.permute.xlu1 %6493 }
 0x2aa   : > { %v5425_v8 = vpop.f32.mrb[156].mxu1 }
 0x2ab   : > { %v5427_v52 = vpop.f32.mrb[157].mxu1  ;;  %v19429_v33 = vadd.f32 %v5425_v8, %v19365_v1 }
 0x2ac   : > { %v5429_v54 = vpop.f32.mrb[158].mxu1  ;;  %v5466_v27 = vpop.f32.mrb[160].mxu0  ;;  %v19432_v42 = vadd.f32 %v5427_v52, %v19368_v26 }
 0x2ad   : > { %v5430_v38 = vpop.f32.mrb[159].mxu1  ;;  %v5468_v28 = vpop.f32.mrb[161].mxu0  ;;  %v19435_v45 = vadd.f32 %v5466_v27, %v19371_v34 }
 0x2ae   : > { %v5470_v2 = vpop.f32.mrb[162].mxu0  ;;  %v19438_v21 = vadd.f32 %v5468_v28, %v19374_v59 }
 0x2af   : > { %v5471_v7 = vpop.f32.mrb[163].mxu0 }
 0x2b2   : > { %v5507_v10 = vpop.f32.mrb[160].mxu1 }
 0x2b3   : > { %v5509_v48 = vpop.f32.mrb[161].mxu1  ;;  %v19441_v1 = vadd.f32 %v5507_v10, %v19377_v23 }
 0x2b4   : > { %v5511_v19 = vpop.f32.mrb[162].mxu1  ;;  %v5548_v58 = vpop.f32.mrb[164].mxu0  ;;  %v19444_v26 = vadd.f32 %v5509_v48, %v19380_v37 }
 0x2b5   : > { %v5512_v12 = vpop.f32.mrb[163].mxu1  ;;  %v5550_v36 = vpop.f32.mrb[165].mxu0  ;;  %v19447_v34 = vadd.f32 %v5548_v58, %v19383_v40 }
 0x2b6   : > { %v5552_v11 = vpop.f32.mrb[166].mxu0  ;;  %v19450_v59 = vadd.f32 %v5550_v36, %v19386_v57 }
 0x2b7   : > { %v5553_v13 = vpop.f32.mrb[167].mxu0 }
 0x2ba   : > { %v5589_v0 = vpop.f32.mrb[164].mxu1 }
 0x2bb   : > { %v5591_v16 = vpop.f32.mrb[165].mxu1  ;;  %v19453_v23 = vadd.f32 %v5589_v0, %v19389_v14 }
 0x2bc   : > { %v5593_v32 = vpop.f32.mrb[166].mxu1  ;;  %v5630_v22 = vpop.f32.mrb[168].mxu0  ;;  %v19456_v37 = vadd.f32 %v5591_v16, %v19392_v17 }
 0x2bd   : > { %v19459_v47 = vadd.f32 %v5630_v22, %v19395_v9  ;;  %v5594_v40 = vpop.f32.mrb[167].mxu1  ;;  %v5632_v56 = vpop.f32.mrb[169].mxu0 }
 0x2be   : > { %v19462_v55 = vadd.f32 %v5632_v56, %v19398_v62  ;;  %v5634_v57 = vpop.f32.mrb[170].mxu0 }
 0x2bf   : > { %v5635_v35 = vpop.f32.mrb[171].mxu0 }
 0x2c2   : > { %v5671_v53 = vpop.f32.mrb[168].mxu1 }
 0x2c3   : > { %v19465_v31 = vadd.f32 %v5671_v53, %v19401_v51  ;;  %v5673_v14 = vpop.f32.mrb[169].mxu1 }
 0x2c4   : > { %v19468_v41 = vadd.f32 %v5673_v14, %v19404_v29  ;;  %v5675_v17 = vpop.f32.mrb[170].mxu1  ;;  %v5712_v39 = vpop.f32.mrb[172].mxu0  ;;  %v19513_v14 = vsub.s32 0, %v17356_v3 }
 0x2c5   : > { %v19471_v9 = vadd.f32 %v5712_v39, %v19407_v25  ;;  %v5676_v24 = vpop.f32.mrb[171].mxu1  ;;  %v5714_v46 = vpop.f32.mrb[173].mxu0  ;;  %v19518_v17 = vld [vmem:[%s23508_s1] sm:$0xff] }
 0x2c6   : > { %v19474_v62 = vadd.f32 %v5714_v46, %v19410_v61  ;;  %v5716_v18 = vpop.f32.mrb[174].mxu0 }
 0x2c7   : > { %v5717_v63 = vpop.f32.mrb[175].mxu0 }
 0x2ca   : > { %v5753_v44 = vpop.f32.mrb[172].mxu1 }
 0x2cb   : > { %v19477_v51 = vadd.f32 %v5753_v44, %v19414_v60  ;;  %v16707_v15 = vpop.f32.mrb[173].mxu1 }
 0x2cc   : > { %v5756_v29 = vpop.f32.mrb[174].mxu1  ;;  %v6053_v8 = vpop.f32.mrb[176].mxu0 }
 0x2cd   : > { %v6469_v52 = vadd.f32 %v6053_v8, %v19417_v43  ;;  %v16708_v25 = vpop.f32.mrb[175].mxu1  ;;  %v6055_v54 = vpop.f32.mrb[177].mxu0  ;;  %v19526_v29 = vsub.s32 1, %v17356_v3 }
 0x2ce   : > { %v6470_v27 = vadd.f32 %v6055_v54, %v19420_v30  ;;  %v6057_v38 = vpop.f32.mrb[178].mxu0 }
 0x2cf   : > { %v6058_v61 = vpop.f32.mrb[179].mxu0  ;;  %v19484_v28 = vadd.f32 %v19479_v4, %v6469_v52 }
 0x2d0   : > { %v19487_v2 = vadd.f32 %v19479_v4, %v6470_v27 }
 0x2d1   : > { %v15862_v60 = vmul.f32 -1.442695, %v19484_v28 }
 0x2d2   : > { %v6094_v7 = vpop.f32.mrb[176].mxu1  ;;  %v15863_v10 = vmul.f32 -1.442695, %v19487_v2 }
 0x2d3   : > { %v6471_v48 = vadd.f32 %v6094_v7, %v19423_v50  ;;  %v6096_v43 = vpop.f32.mrb[177].mxu1  ;;  %17081 = vpow2.f32 %v15862_v60  ;;  %v19539_v60 = vsub.s32 2, %v17356_v3 }
 0x2d4   : > { %v6472_v19 = vadd.f32 %v6096_v43, %v19426_v20  ;;  %v6098_v30 = vpop.f32.mrb[178].mxu1  ;;  %v6135_v58 = vpop.f32.mrb[180].mxu0  ;;  %17083 = vpow2.f32 %v15863_v10  ;;  %v6677_v43 = vrot.slane %v19518_v17, %v19526_v29 }
 0x2d5   : > { %v19494_v12 = vadd.f32 %v19479_v4, %v6471_v48  ;;  %v6473_v36 = vadd.f32 %v6135_v58, %v19429_v33  ;;  %v6099_v11 = vpop.f32.mrb[179].mxu1  ;;  %v6137_v13 = vpop.f32.mrb[181].mxu0  ;;  %v19552_v30 = vsub.s32 4, %v17356_v3 }
 0x2d6   : > { %v19498_v0 = vadd.f32 %v19479_v4, %v6472_v19  ;;  %v6474_v16 = vadd.f32 %v6137_v13, %v19432_v42  ;;  %v6139_v50 = vpop.f32.mrb[182].mxu0  ;;  %v19549_v19 = vsub.s32 3, %v17356_v3  ;;  %v6692_v13 = vsub.s32 5, %v17356_v3 }
 0x2d7   : > { %v15864_v32 = vmul.f32 -1.442695, %v19494_v12  ;;  %v19503_v20 = vadd.f32 %v19479_v4, %v6473_v36  ;;  %v6140_v22 = vpop.f32.mrb[183].mxu0 }
 0x2d8   : > { %v15865_v40 = vmul.f32 -1.442695, %v19498_v0  ;;  %v19507_v56 = vadd.f32 %v19479_v4, %v6474_v16  ;;  %v6696_v16 = vsub.s32 6, %v17356_v3 }
 0x2d9   : > { %17085 = vpow2.f32 %v15864_v32  ;;  %v15866_v33 = vmul.f32 -1.442695, %v19503_v20 }
 0x2da   : > { %17087 = vpow2.f32 %v15865_v40  ;;  %v15867_v57 = vmul.f32 -1.442695, %v19507_v56  ;;  %v6176_v35 = vpop.f32.mrb[180].mxu1 }
 0x2db   : > { %17089 = vpow2.f32 %v15866_v33  ;;  %v6475_v42 = vadd.f32 %v6176_v35, %v19435_v45  ;;  %v6178_v53 = vpop.f32.mrb[181].mxu1  ;;  %v6700_v33 = vsub.s32 7, %v17356_v3 }
 0x2dc   : > { %17091 = vpow2.f32 %v15867_v57  ;;  %v6476_v39 = vadd.f32 %v6178_v53, %v19438_v21  ;;  %v6180_v24 = vpop.f32.mrb[182].mxu1  ;;  %v6217_v46 = vpop.f32.mrb[184].mxu0 }
 0x2dd   : > { %v17082_v18 = vpop.eup %17081  ;;  %v19522_v63 = vadd.f32 %v19479_v4, %v6475_v42  ;;  %v6477_v45 = vadd.f32 %v6217_v46, %v19441_v1  ;;  %v6181_v44 = vpop.f32.mrb[183].mxu1  ;;  %v6673_v1 = vrot.slane %v19518_v17, %v19513_v14 }
 0x2de   : > { %v6219_v15 = vpop.f32.mrb[185].mxu0  ;;  %v17084_v8 = vpop.eup %17083  ;;  %v19529_v52 = vadd.f32 %v19479_v4, %v6476_v39  ;;  %v6580_v54 = vadd.f32 1.0, %v17082_v18 }
 0x2df   : > { %v6478_v25 = vadd.f32 %v6219_v15, %v19444_v26  ;;  %v6221_v21 = vpop.f32.mrb[186].mxu0  ;;  %v15868_v27 = vmul.f32 -1.442695, %v19522_v63  ;;  %v19534_v38 = vadd.f32 %v19479_v4, %v6477_v45  ;;  %v6581_v48 = vadd.f32 1.0, %v17084_v8 }
 0x2e0   : > { %v6222_v61 = vpop.f32.mrb[187].mxu0  ;;  %v15869_v7 = vmul.f32 -1.442695, %v19529_v52  ;;  %17093 = vrcp.f32 %v6580_v54 }
 0x2e1   : > { %v19543_v10 = vadd.f32 %v19479_v4, %v6478_v25  ;;  %17095 = vpow2.f32 %v15868_v27  ;;  %v15870_v26 = vmul.f32 -1.442695, %v19534_v38  ;;  %v6681_v27 = vrot.slane %v19518_v17, %v19539_v60  ;;  %v19577_v61 = vld [vmem:[%s23508_s1 + $0x8] sm:$0xff] }
 0x2e2   : > { %17097 = vpow2.f32 %v15869_v7  ;;  %v6258_v36 = vpop.f32.mrb[184].mxu1 }
 0x2e3   : > { %v15871_v58 = vmul.f32 -1.442695, %v19543_v10  ;;  %v17086_v11 = vpop.eup %17085  ;;  %17099 = vpow2.f32 %v15870_v26  ;;  %v6479_v50 = vadd.f32 %v6258_v36, %v19447_v34  ;;  %v6260_v32 = vpop.f32.mrb[185].mxu1  ;;  %v6685_v26 = vrot.slane %v19518_v17, %v19549_v19 }
 0x2e4   : > { %v17088_v22 = vpop.eup %17087  ;;  %v6582_v40 = vadd.f32 1.0, %v17086_v11  ;;  %v6480_v57 = vadd.f32 %v6260_v32, %v19450_v59  ;;  %v6262_v35 = vpop.f32.mrb[186].mxu1  ;;  %v19591_v11 = vrot.slane %v19518_v17, %v6692_v13 }
 0x2e5   : > { %17101 = vpow2.f32 %v15871_v58  ;;  %v6299_v42 = vpop.f32.mrb[188].mxu0  ;;  %v17090_v53 = vpop.eup %17089  ;;  %v6583_v39 = vadd.f32 1.0, %v17088_v22  ;;  %v19561_v24 = vadd.f32 %v19479_v4, %v6479_v50  ;;  %v19596_v50 = vrot.slane %v19518_v17, %v6696_v16 }
 0x2e6   : > { %v6481_v46 = vadd.f32 %v6299_v42, %v19453_v23  ;;  %v6263_v18 = vpop.f32.mrb[187].mxu1  ;;  %v6301_v45 = vpop.f32.mrb[189].mxu0  ;;  %17103 = vrcp.f32 %v6581_v48  ;;  %v6584_v44 = vadd.f32 1.0, %v17090_v53  ;;  %v19565_v15 = vadd.f32 %v19479_v4, %v6480_v57 }
 0x2e7   : > { %v17092_v34 = vpop.eup %17091  ;;  %17105 = vrcp.f32 %v6582_v40  ;;  %v6482_v59 = vadd.f32 %v6301_v45, %v19456_v37  ;;  %v6303_v8 = vpop.f32.mrb[190].mxu0  ;;  %v15872_v21 = vmul.f32 -1.442695, %v19561_v24  ;;  %v6689_v48 = vrot.slane %v19518_v17, %v19552_v30 }
 0x2e8   : > { %17107 = vrcp.f32 %v6583_v39  ;;  %v6585_v25 = vadd.f32 1.0, %v17092_v34  ;;  %v19570_v54 = vadd.f32 %v19479_v4, %v6481_v46  ;;  %v6304_v23 = vpop.f32.mrb[191].mxu0  ;;  %v15873_v37 = vmul.f32 -1.442695, %v19565_v15 }
 0x2e9   : > { %17109 = vrcp.f32 %v6584_v44  ;;  %v19581_v7 = vadd.f32 %v19479_v4, %v6482_v59  ;;  %v19602_v57 = vrot.slane %v19518_v17, %v6700_v33  ;;  %v6705_v35 = vrot.slane %v19577_v61, %v19513_v14 }
 0x2ea   : > { %17111 = vrcp.f32 %v6585_v25  ;;  %v15874_v58 = vmul.f32 -1.442695, %v19570_v54  ;;  %v17094_v36 = vpop.eup %17093  ;;  %v6340_v22 = vpop.f32.mrb[188].mxu1 }
 0x2eb   : > { %17113 = vpow2.f32 %v15872_v21  ;;  %v15875_v32 = vmul.f32 -1.442695, %v19581_v7  ;;  %v17096_v40 = vpop.eup %17095  ;;  %v6483_v42 = vadd.f32 %v6340_v22, %v19459_v47  ;;  %v6342_v53 = vpop.f32.mrb[189].mxu1  ;;  %v6643_v44 = vmul.f32 %v17094_v36, %v19484_v28 }
 0x2ec   : > { %17115 = vpow2.f32 %v15873_v37  ;;  %v17098_v39 = vpop.eup %17097  ;;  %v6586_v46 = vadd.f32 1.0, %v17096_v40  ;;  %v6484_v18 = vadd.f32 %v6342_v53, %v19462_v55  ;;  %v6344_v45 = vpop.f32.mrb[190].mxu1 }
 0x2ed   : > { %17117 = vpow2.f32 %v15874_v58  ;;  %v6381_v34 = vpop.f32.mrb[192].mxu0  ;;  %v17100_v59 = vpop.eup %17099  ;;  %v6587_v8 = vadd.f32 1.0, %v17098_v39  ;;  %v19610_v25 = vadd.f32 %v19479_v4, %v6483_v42 }
 0x2ee   : > { %17119 = vpow2.f32 %v15875_v32  ;;  %v6485_v21 = vadd.f32 %v6381_v34, %v19465_v31  ;;  %v6345_v23 = vpop.f32.mrb[191].mxu1  ;;  %v6383_v47 = vpop.f32.mrb[193].mxu0  ;;  %v6588_v22 = vadd.f32 1.0, %v17100_v59  ;;  %v19614_v58 = vadd.f32 %v19479_v4, %v6484_v18 }
 0x2ef   : > { %v17102_v37 = vpop.eup %17101  ;;  %17121 = vrcp.f32 %v6586_v46  ;;  %v6486_v55 = vadd.f32 %v6383_v47, %v19468_v41  ;;  %v6385_v40 = vpop.f32.mrb[194].mxu0  ;;  %v15876_v32 = vmul.f32 -1.442695, %v19610_v25  ;;  %v6775_v59 = vmul.f32 %v6673_v1, %v6643_v44 }
 0x2f0   : > { %v17104_v28 = vpop.eup %17103  ;;  %17123 = vrcp.f32 %v6587_v8  ;;  %v6589_v36 = vadd.f32 1.0, %v17102_v37  ;;  %v19619_v42 = vadd.f32 %v19479_v4, %v6485_v21  ;;  %v6386_v31 = vpop.f32.mrb[195].mxu0  ;;  %v15877_v39 = vmul.f32 -1.442695, %v19614_v58 }
 0x2f1   : > { %v17106_v53 = vpop.eup %17105  ;;  %17125 = vrcp.f32 %v6588_v22  ;;  %v19623_v46 = vadd.f32 %v19479_v4, %v6486_v55  ;;  %v6644_v18 = vmul.f32 %v17104_v28, %v19487_v2 }
 0x2f2   : > { %v17108_v41 = vpop.eup %17107  ;;  %v6645_v45 = vmul.f32 %v17106_v53, %v19494_v12  ;;  %17127 = vrcp.f32 %v6589_v36  ;;  %v15878_v34 = vmul.f32 -1.442695, %v19619_v42  ;;  %v6422_v47 = vpop.f32.mrb[192].mxu1 }
 0x2f3   : > { %v17110_v8 = vpop.eup %17109  ;;  %v6646_v21 = vmul.f32 %v17108_v41, %v19498_v0  ;;  %17129 = vpow2.f32 %v15876_v32  ;;  %v15879_v23 = vmul.f32 -1.442695, %v19623_v46  ;;  %v6776_v2 = vmul.f32 %v6677_v43, %v6644_v18  ;;  %v6424_v44 = vpop.f32.mrb[193].mxu1 }
 0x2f4   : > { %v17112_v37 = vpop.eup %17111  ;;  %v6777_v12 = vmul.f32 %v6681_v27, %v6645_v45  ;;  %v6647_v22 = vmul.f32 %v17110_v8, %v19503_v20  ;;  %17131 = vpow2.f32 %v15877_v39  ;;  %v6487_v1 = vadd.f32 %v6422_v47, %v19471_v9  ;;  %v6426_v28 = vpop.f32.mrb[194].mxu1 }
 0x2f5   : > { %v17114_v0 = vpop.eup %17113  ;;  %v6778_v55 = vmul.f32 %v6685_v26, %v6646_v21  ;;  %v6648_v40 = vmul.f32 %v17112_v37, %v19507_v56  ;;  %17133 = vpow2.f32 %v15878_v34  ;;  %v16363_v43 = vpack.c.bf16 %v6776_v2, %v6775_v59  ;;  %v6463_v36 = vpop.f32.mrb[196].mxu0 }
 0x2f6   : > { %v17116_v32 = vpop.eup %17115  ;;  %v6779_v20 = vmul.f32 %v6689_v48, %v6647_v22  ;;  %v6590_v27 = vadd.f32 1.0, %v17114_v0  ;;  %17135 = vpow2.f32 %v15879_v23  ;;  %v19649_v9 = vadd.f32 %v19479_v4, %v6487_v1  ;;  %v6427_v31 = vpop.f32.mrb[195].mxu1 }
 0x2f7   : > { %v16713_v53 = vpop.f32.mrb[197].mxu0  ;;  %v17118_v39 = vpop.eup %17117  ;;  %v6780_v26 = vmul.f32 %v19591_v11, %v6648_v40  ;;  %v6591_v56 = vadd.f32 1.0, %v17116_v32  ;;  %6876 = vrot.lane.b32.xlu0 %v16363_v43, %s17250_s21  ;;  %v6488_v18 = vadd.f32 %v6424_v44, %v19474_v62  ;;  %v6489_v41 = vadd.f32 %v6463_v36, %v19477_v51 }
 0x2f8   : > { %v6466_v17 = vpop.f32.mrb[198].mxu0  ;;  %v17120_v48 = vpop.eup %17119  ;;  %17137 = vrcp.f32 %v6590_v27  ;;  %v6592_v45 = vadd.f32 1.0, %v17118_v39  ;;  %v15880_v34 = vmul.f32 -1.442695, %v19649_v9  ;;  %v16364_v59 = vpack.c.bf16 %v6778_v55, %v6777_v12 }
 0x2f9   : > { %v16714_v8 = vpop.f32.mrb[199].mxu0  ;;  %v17122_v21 = vpop.eup %17121  ;;  %17139 = vrcp.f32 %v6591_v56  ;;  %v6593_v23 = vadd.f32 1.0, %v17120_v48  ;;  %v19657_v11 = vadd.f32 %v19479_v4, %v6488_v18  ;;  %v19660_v47 = vadd.f32 %v19479_v4, %v6489_v41 }
 0x2fa   : > { %v17124_v62 = vpop.eup %17123  ;;  %v6649_v51 = vmul.f32 %v17122_v21, %v19522_v63  ;;  %v6709_v2 = vrot.slane %v19577_v61, %v19526_v29  ;;  %17141 = vrcp.f32 %v6592_v45  ;;  %6878 = vrot.lane.b32.xlu1 %v16364_v59, %s17250_s21  ;;  %v16365_v37 = vpack.c.bf16 %v6780_v26, %v6779_v20 }
 0x2fb   : > { %v17126_v12 = vpop.eup %17125  ;;  %v6650_v22 = vmul.f32 %v17124_v62, %v19529_v52  ;;  %17143 = vrcp.f32 %v6593_v23  ;;  %v15881_v1 = vmul.f32 -1.442695, %v19657_v11  ;;  %v15882_v44 = vmul.f32 -1.442695, %v19660_v47 }
 0x2fc   : > { %v17128_v4 = vpop.eup %17127  ;;  %v6781_v0 = vmul.f32 %v19596_v50, %v6649_v51  ;;  %v6651_v63 = vmul.f32 %v17126_v12, %v19534_v38  ;;  %17145 = vpow2.f32 %v15880_v34  ;;  %6880 = vrot.lane.b32.xlu0 %v16365_v37, %s17250_s21  ;;  %v6721_v18 = vrot.slane %v19577_v61, %v19552_v30 }
 0x2fd   : > { %v17130_v55 = vpop.eup %17129  ;;  %v6782_v40 = vmul.f32 %v19602_v57, %v6650_v22  ;;  %v6652_v43 = vmul.f32 %v17128_v4, %v19543_v10  ;;  %17147 = vpow2.f32 %v15881_v1  ;;  %v6713_v57 = vrot.slane %v19577_v61, %v19539_v60 }
 0x2fe   : > { %v17132_v52 = vpop.eup %17131  ;;  %v6783_v28 = vmul.f32 %v6705_v35, %v6651_v63  ;;  %v6594_v36 = vadd.f32 1.0, %v17130_v55  ;;  %17149 = vpow2.f32 %v15882_v44  ;;  %v6717_v35 = vrot.slane %v19577_v61, %v19549_v19 }
 0x2ff   : > { %v17134_v32 = vpop.eup %17133  ;;  %v6784_v50 = vmul.f32 %v6709_v2, %v6652_v43  ;;  %v6595_v20 = vadd.f32 1.0, %v17132_v52  ;;  %v16366_v38 = vpack.c.bf16 %v6782_v40, %v6781_v0  ;;  %v6725_v48 = vrot.slane %v19577_v61, %v6692_v13 }
 0x300   : > { %v17136_v27 = vpop.eup %17135  ;;  %17151 = vrcp.f32 %v6594_v36  ;;  %v6596_v31 = vadd.f32 1.0, %v17134_v32  ;;  %v6729_v13 = vrot.slane %v19577_v61, %v6696_v16 }
 0x301   : > { %17153 = vrcp.f32 %v6595_v20  ;;  %v6597_v10 = vadd.f32 1.0, %v17136_v27  ;;  %6882 = vrot.lane.b32.xlu1 %v16366_v38, %s17250_s21  ;;  %v16367_v53 = vpack.c.bf16 %v6784_v50, %v6783_v28 }
 0x302   : > { %v17138_v39 = vpop.eup %17137  ;;  %17155 = vrcp.f32 %v6596_v31 }
 0x303   : > { %v17140_v26 = vpop.eup %17139  ;;  %v6653_v56 = vmul.f32 %v17138_v39, %v19561_v24  ;;  %17157 = vrcp.f32 %v6597_v10  ;;  %6884 = vrot.lane.b32.xlu0 %v16367_v53, %s17250_s21 }
 0x304   : > { %v17142_v41 = vpop.eup %17141  ;;  %v6654_v17 = vmul.f32 %v17140_v26, %v19565_v15  ;;  %v6666_v15 = vld [vmem:[%s23508_s1 + $0x10] sm:$0x1f] }
 0x305   : > { %v17144_v45 = vpop.eup %17143  ;;  %v6785_v34 = vmul.f32 %v6713_v57, %v6653_v56  ;;  %v6655_v59 = vmul.f32 %v17142_v41, %v19570_v54  ;;  %v6737_v63 = vrot.slane %v6666_v15, %v19513_v14  ;;  %v6741_v40 = vrot.slane %v6666_v15, %v19526_v29 }
 0x306   : > { %v17146_v8 = vpop.eup %17145  ;;  %v6786_v21 = vmul.f32 %v6717_v35, %v6654_v17  ;;  %v6656_v24 = vmul.f32 %v17144_v45, %v19581_v7  ;;  %v6733_v7 = vrot.slane %v19577_v61, %v6700_v33  ;;  %v6745_v14 = vrot.slane %v6666_v15, %v19539_v60 }
 0x307   : > { %v17148_v23 = vpop.eup %17147  ;;  %v6787_v62 = vmul.f32 %v6721_v18, %v6655_v59  ;;  %v6598_v51 = vadd.f32 1.0, %v17146_v8  ;;  %v6749_v32 = vrot.slane %v6666_v15, %v19549_v19 }
 0x308   : > { %v17150_v2 = vpop.eup %17149  ;;  %v6788_v37 = vmul.f32 %v6725_v48, %v6656_v24  ;;  %v6599_v12 = vadd.f32 1.0, %v17148_v23  ;;  %v16368_v22 = vpack.c.bf16 %v6786_v21, %v6785_v34 }
 0x309   : > { %17159 = vrcp.f32 %v6598_v51  ;;  %v6600_v54 = vadd.f32 1.0, %v17150_v2 }
 0x30a   : > { %v17152_v1 = vpop.eup %17151  ;;  %17161 = vrcp.f32 %v6599_v12  ;;  %6886 = vrot.lane.b32.xlu1 %v16368_v22, %s17250_s21  ;;  %v16369_v44 = vpack.c.bf16 %v6788_v37, %v6787_v62 }
 0x30b   : > { %v17154_v4 = vpop.eup %17153  ;;  %v6657_v0 = vmul.f32 %v17152_v1, %v19610_v25  ;;  %17163 = vrcp.f32 %v6600_v54 }
 0x30c   : > { %v17156_v55 = vpop.eup %17155  ;;  %v6658_v16 = vmul.f32 %v17154_v4, %v19614_v58  ;;  %6888 = vrot.lane.b32.xlu0 %v16369_v44, %s17250_s21 }
 0x30d   : > { %v17158_v3 = vpop.eup %17157  ;;  %v6789_v43 = vmul.f32 %v6729_v13, %v6657_v0  ;;  %v6659_v33 = vmul.f32 %v17156_v55, %v19619_v42 }
 0x30e   : > { %v6790_v61 = vmul.f32 %v6733_v7, %v6658_v16  ;;  %v6660_v52 = vmul.f32 %v17158_v3, %v19623_v46  ;;  %v6753_v46 = vrot.slane %v6666_v15, %v19552_v30 }
 0x30f   : > { %v6791_v28 = vmul.f32 %v6737_v63, %v6659_v33 }
 0x310   : > { %v6792_v36 = vmul.f32 %v6741_v40, %v6660_v52  ;;  %v16370_v25 = vpack.c.bf16 %v6790_v61, %v6789_v43 }
 0x312   : > { %6890 = vrot.lane.b32.xlu1 %v16370_v25, %s17250_s21  ;;  %v16371_v29 = vpack.c.bf16 %v6792_v36, %v6791_v28 }
 0x313   : > { %v17160_v58 = vpop.eup %17159 }
 0x314   : > { %v17162_v42 = vpop.eup %17161  ;;  %v6661_v50 = vmul.f32 %v17160_v58, %v19649_v9  ;;  %6892 = vrot.lane.b32.xlu0 %v16371_v29, %s17250_s21 }
 0x315   : > { %v17164_v20 = vpop.eup %17163  ;;  %v6662_v38 = vmul.f32 %v17162_v42, %v19657_v11 }
 0x316   : > { %v6793_v27 = vmul.f32 %v6745_v14, %v6661_v50  ;;  %v6663_v60 = vmul.f32 %v17164_v20, %v19660_v47 }
 0x317   : > { %v6794_v31 = vmul.f32 %v6749_v32, %v6662_v38 }
 0x318   : > { %v6795_v57 = vmul.f32 %v6753_v46, %v6663_v60 }
 0x319   : > { %v16372_v10 = vpack.c.bf16 %v6794_v31, %v6793_v27 }
 0x31a   : > { %v16373_v53 = vpack.c.bf16 %v6795_v57, %v6795_v57 }
 0x31b   : > { %6894 = vrot.lane.b32.xlu1 %v16372_v10, %s17250_s21 }
 0x31c   : > { %6896 = vrot.lane.b32.xlu0 %v16373_v53, %s17250_s21  ;;  %s23531_s21 = smov 101  }
 0x369   : > { %v6877_v19 = vpop.permute.xlu0 %6876 }
 0x36a   : > { %v6898_v30 = vrot.slane %v6877_v19, 4 }
 0x36c   : > { %v6909_v9 = vsel %vm6908_vm2, %v6898_v30, %v6877_v19  ;;  %v6879_v11 = vpop.permute.xlu1 %6878 }
 0x36d   : > { %6944 = vst.msk [vmem:[#allocation2] sm:$0xff] %vm6943_vm11, %v6909_v9  ;;  %v6899_v47 = vrot.slane %v6879_v11, 4  ;;  %vm14630_vm11 = vcmask 517121  }
 0x36e   : > { %v6881_v39 = vpop.permute.xlu0 %6880 }
 0x36f   : > { %v6911_v35 = vsel %vm6910_vm12, %v6898_v30, %v6899_v47  ;;  %v6900_v26 = vrot.slane %v6881_v39, 4 }
 0x370   : > { %v6912_v56 = vsel %vm6908_vm2, %v6911_v35, %v6879_v11 }
 0x371   : > { %v6913_v18 = vsel %vm6910_vm12, %v6899_v47, %v6900_v26  ;;  %v19737_v2 = vcombine.high %v6912_v56, %v6912_v56  ;;  %v19739_v37 = vcombine.low %v6912_v56, %v6912_v56 }
 0x372   : > { %v6914_v41 = vsel %vm6908_vm2, %v6913_v18, %v6881_v39 }
 0x373   : > { %v6883_v17 = vpop.permute.xlu1 %6882  ;;  %v19745_v22 = vcombine.high %v6914_v41, %v6914_v41  ;;  %v19747_v13 = vcombine.low %v6914_v41, %v6914_v41 }
 0x374   : > { %v6901_v48 = vrot.slane %v6883_v17, 4  ;;  %v6957_v45 = vld [vmem:[#allocation2] sm:$0xff] }
 0x375   : > { %v19725_v34 = vcombine.high %v6957_v45, %v6957_v45  ;;  %v19727_v59 = vcombine.low %v6957_v45, %v6957_v45  ;;  %v6885_v8 = vpop.permute.xlu0 %6884 }
 0x376   : > { %v6915_v21 = vsel %vm6910_vm12, %v6900_v26, %v6901_v48  ;;  %v6902_v24 = vrot.slane %v6885_v8, 4 }
 0x377   : > { %v6916_v23 = vsel %vm6908_vm2, %v6915_v21, %v6883_v17  ;;  %7025 = vrot.lane.b32.xlu0 %v19725_v34, %s23521_s26  ;;  %7023 = vrot.lane.b32.xlu1 %v19727_v59, %s23521_s26 }
 0x378   : > { %v6917_v62 = vsel %vm6910_vm12, %v6901_v48, %v6902_v24  ;;  %v19756_v0 = vcombine.high %v6916_v23, %v6916_v23  ;;  %v19758_v63 = vcombine.low %v6916_v23, %v6916_v23  ;;  %v19914_v48 = vld [vmem:[%s23511_s4 + $0x4] sm:$0xf] }
 0x379   : > { %v6918_v51 = vsel %vm6908_vm2, %v6917_v62, %v6885_v8 }
 0x37a   : > { %v19765_v3 = vcombine.high %v6918_v51, %v6918_v51  ;;  %v19767_v43 = vcombine.low %v6918_v51, %v6918_v51 }
 0x37b   : > { %7029 = vrot.lane.b32.xlu0 %v19737_v2, %s23521_s26  ;;  %7027 = vrot.lane.b32.xlu1 %v19739_v37, %s23521_s26 }
 0x37c   : > { %v6887_v15 = vpop.permute.xlu1 %6886 }
 0x37d   : > { %v6903_v12 = vrot.slane %v6887_v15, 4 }
 0x37e   : > { %v6889_v54 = vpop.permute.xlu0 %6888 }
 0x37f   : > { %v6919_v1 = vsel %vm6910_vm12, %v6902_v24, %v6903_v12  ;;  %v6904_v7 = vrot.slane %v6889_v54, 4  ;;  %7033 = vrot.lane.b32.xlu0 %v19745_v22, %s23521_s26  ;;  %7031 = vrot.lane.b32.xlu1 %v19747_v13, %s23521_s26 }
 0x380   : > { %v6920_v44 = vsel %vm6908_vm2, %v6919_v1, %v6887_v15 }
 0x381   : > { %v6921_v4 = vsel %vm6910_vm12, %v6903_v12, %v6904_v7  ;;  %v19776_v25 = vcombine.high %v6920_v44, %v6920_v44  ;;  %v19778_v14 = vcombine.low %v6920_v44, %v6920_v44 }
 0x382   : > { %v6922_v55 = vsel %vm6908_vm2, %v6921_v4, %v6889_v54 }
 0x383   : > { %7037 = vrot.lane.b32.xlu0 %v19756_v0, %s23521_s26  ;;  %7035 = vrot.lane.b32.xlu1 %v19758_v63, %s23521_s26  ;;  %v19785_v32 = vcombine.high %v6922_v55, %v6922_v55  ;;  %v19787_v42 = vcombine.low %v6922_v55, %v6922_v55 }
 0x384   : > { %v6891_v16 = vpop.permute.xlu1 %6890 }
 0x385   : > { %v6905_v40 = vrot.slane %v6891_v16, 4 }
 0x386   : > { %v6893_v33 = vpop.permute.xlu0 %6892 }
 0x387   : > { %v6923_v61 = vsel %vm6910_vm12, %v6904_v7, %v6905_v40  ;;  %v6906_v52 = vrot.slane %v6893_v33, 4  ;;  %7041 = vrot.lane.b32.xlu0 %v19765_v3, %s23521_s26  ;;  %7039 = vrot.lane.b32.xlu1 %v19767_v43, %s23521_s26 }
 0x388   : > { %v6924_v28 = vsel %vm6908_vm2, %v6923_v61, %v6891_v16 }
 0x389   : > { %v6925_v36 = vsel %vm6910_vm12, %v6905_v40, %v6906_v52  ;;  %v19796_v60 = vcombine.high %v6924_v28, %v6924_v28  ;;  %v19798_v31 = vcombine.low %v6924_v28, %v6924_v28 }
 0x38a   : > { %v6926_v29 = vsel %vm6908_vm2, %v6925_v36, %v6893_v33 }
 0x38b   : > { %7045 = vrot.lane.b32.xlu0 %v19776_v25, %s23521_s26  ;;  %7043 = vrot.lane.b32.xlu1 %v19778_v14, %s23521_s26  ;;  %v19804_v57 = vcombine.high %v6926_v29, %v6926_v29  ;;  %v19806_v10 = vcombine.low %v6926_v29, %v6926_v29 }
 0x38d   : > { %v6895_v58 = vpop.permute.xlu1 %6894 }
 0x38e   : > { %v6907_v50 = vrot.slane %v6895_v58, 4  ;;  %v6897_v46 = vpop.permute.xlu0 %6896 }
 0x38f   : > { %7049 = vrot.lane.b32.xlu0 %v19785_v32, %s23521_s26  ;;  %7047 = vrot.lane.b32.xlu1 %v19787_v42, %s23521_s26 }
 0x390   : > { %v6927_v20 = vsel %vm6910_vm12, %v6906_v52, %v6907_v50  ;;  %v6929_v38 = vsel %vm6908_vm2, %v6907_v50, %v6897_v46 }
 0x391   : > { %v6928_v27 = vsel %vm6908_vm2, %v6927_v20, %v6895_v58  ;;  %6955 = vst.msk [vmem:[#allocation2 + $0x50] sm:$0xf] %vm6954_vm13, %v6929_v38  ;;  %vm13759_vm2 = vcmask 752640   ;;  %vm14631_vm13 = vsmask.f32 1280 }
 0x392   : > { %v19812_v53 = vcombine.high %v6928_v27, %v6928_v27  ;;  %v19814_v19 = vcombine.low %v6928_v27, %v6928_v27 }
 0x393   : > { %7053 = vrot.lane.b32.xlu0 %v19796_v60, %s23521_s26  ;;  %7051 = vrot.lane.b32.xlu1 %v19798_v31, %s23521_s26 }
 0x397   : > { %7057 = vrot.lane.b32.xlu0 %v19804_v57, %s23521_s26  ;;  %7055 = vrot.lane.b32.xlu1 %v19806_v10, %s23521_s26 }
 0x398   : > { %v19820_v30 = vld [vmem:[#allocation2 + $0x50] ss:$0 sps:$4 sm:$0xff]  }
 0x39b   : > { %7061 = vrot.lane.b32.xlu0 %v19812_v53, %s23521_s26  ;;  %7059 = vrot.lane.b32.xlu1 %v19814_v19, %s23521_s26 }
 0x39f   : > { %8121 = vrot.lane.b32.xlu0 %v19727_v59, %s17241_s27  ;;  %7063 = vrot.lane.b32.xlu1 %v19820_v30, %s23521_s26 }
 0x3a3   : > { %8125 = vrot.lane.b32.xlu0 %v19739_v37, %s17241_s27  ;;  %8123 = vrot.lane.b32.xlu1 %v19725_v34, %s17241_s27 }
 0x3a7   : > { %8129 = vrot.lane.b32.xlu0 %v19747_v13, %s17241_s27  ;;  %8127 = vrot.lane.b32.xlu1 %v19737_v2, %s17241_s27 }
 0x3ab   : > { %8133 = vrot.lane.b32.xlu0 %v19758_v63, %s17241_s27  ;;  %8131 = vrot.lane.b32.xlu1 %v19745_v22, %s17241_s27 }
 0x3af   : > { %8137 = vrot.lane.b32.xlu0 %v19767_v43, %s17241_s27  ;;  %8135 = vrot.lane.b32.xlu1 %v19756_v0, %s17241_s27 }
 0x3b3   : > { %8141 = vrot.lane.b32.xlu0 %v19778_v14, %s17241_s27  ;;  %8139 = vrot.lane.b32.xlu1 %v19765_v3, %s17241_s27 }
 0x3b7   : > { %8145 = vrot.lane.b32.xlu0 %v19787_v42, %s17241_s27  ;;  %8143 = vrot.lane.b32.xlu1 %v19776_v25, %s17241_s27 }
 0x3bb   : > { %8149 = vrot.lane.b32.xlu0 %v19798_v31, %s17241_s27  ;;  %8147 = vrot.lane.b32.xlu1 %v19785_v32, %s17241_s27 }
 0x3bf   : > { %8153 = vrot.lane.b32.xlu0 %v19806_v10, %s17241_s27  ;;  %8151 = vrot.lane.b32.xlu1 %v19796_v60, %s17241_s27 }
 0x3c3   : > { %8157 = vrot.lane.b32.xlu0 %v19814_v19, %s17241_s27  ;;  %8155 = vrot.lane.b32.xlu1 %v19804_v57, %s17241_s27 }
 0x3c7   : > { %8161 = vrot.lane.b32.xlu0 %v19820_v30, %s17241_s27  ;;  %8159 = vrot.lane.b32.xlu1 %v19812_v53, %s17241_s27 }
 0x3cb   : > { %8724 = vrot.lane.b32.xlu0 %v19725_v34, %s23519_s28  ;;  %8722 = vrot.lane.b32.xlu1 %v19727_v59, %s23519_s28 }
 0x3cf   : > { %8728 = vrot.lane.b32.xlu0 %v19737_v2, %s23519_s28  ;;  %8726 = vrot.lane.b32.xlu1 %v19739_v37, %s23519_s28 }
 0x3d3   : > { %8732 = vrot.lane.b32.xlu0 %v19745_v22, %s23519_s28  ;;  %8730 = vrot.lane.b32.xlu1 %v19747_v13, %s23519_s28 }
 0x3d7   : > { %8736 = vrot.lane.b32.xlu0 %v19756_v0, %s23519_s28  ;;  %8734 = vrot.lane.b32.xlu1 %v19758_v63, %s23519_s28 }
 0x3db   : > { %8740 = vrot.lane.b32.xlu0 %v19765_v3, %s23519_s28  ;;  %8738 = vrot.lane.b32.xlu1 %v19767_v43, %s23519_s28 }
 0x3df   : > { %8744 = vrot.lane.b32.xlu0 %v19776_v25, %s23519_s28  ;;  %8742 = vrot.lane.b32.xlu1 %v19778_v14, %s23519_s28 }
 0x3e3   : > { %8748 = vrot.lane.b32.xlu0 %v19785_v32, %s23519_s28  ;;  %8746 = vrot.lane.b32.xlu1 %v19787_v42, %s23519_s28 }
 0x3e7   : > { %8752 = vrot.lane.b32.xlu0 %v19796_v60, %s23519_s28  ;;  %8750 = vrot.lane.b32.xlu1 %v19798_v31, %s23519_s28 }
 0x3e9   : > { %v7024_v9 = vpop.permute.xlu1 %7023  ;;  %v7026_v11 = vpop.permute.xlu0 %7025 }
 0x3ea   : > { %v7065_v47 = vsel %vm481_vm0, %v7024_v9, %v7026_v11 }
 0x3eb   : > { %8756 = vrot.lane.b32.xlu0 %v19804_v57, %s23519_s28  ;;  %8754 = vrot.lane.b32.xlu1 %v19806_v10, %s23519_s28  ;;  %v7091_v56 = vsel %vm6910_vm12, %v7065_v47, 0 }
 0x3ed   : > { %v7028_v39 = vpop.permute.xlu1 %7027  ;;  %v7030_v35 = vpop.permute.xlu0 %7029 }
 0x3ee   : > { %v7066_v26 = vsel %vm481_vm0, %v7026_v11, %v7028_v39  ;;  %v7067_v18 = vsel %vm481_vm0, %v7028_v39, %v7030_v35 }
 0x3ef   : > { %8760 = vrot.lane.b32.xlu0 %v19812_v53, %s23519_s28  ;;  %8758 = vrot.lane.b32.xlu1 %v19814_v19, %s23519_s28  ;;  %v7097_v8 = vsel %vm6910_vm12, %v7067_v18, 0 }
 0x3f0   : > { %15916 = vmatprep.subr.msk.bf16.mxu1 %vm6910_vm12, %v7066_v26 }
 0x3f1   : > { %7154 = vmatpush1.bf16.msra.mxu1 %v7091_v56  ;;  %v7032_v41 = vpop.permute.xlu1 %7031  ;;  %v7034_v17 = vpop.permute.xlu0 %7033 }
 0x3f2   : > { %v7068_v45 = vsel %vm481_vm0, %v7030_v35, %v7032_v41  ;;  %v7069_v21 = vsel %vm481_vm0, %v7032_v41, %v7034_v17 }
 0x3f3   : > { %9323 = vrot.lane.b32.xlu0 %v19727_v59, %s23517_s16  ;;  %8762 = vrot.lane.b32.xlu1 %v19820_v30, %s23519_s28  ;;  %v7103_v51 = vsel %vm6910_vm12, %v7069_v21, 0 }
 0x3f4   : > { %15917 = vmatmul.mubr.msk.bf16.vlgmr.msra.gmra.mrb[196].mxu1 %vm7085_vm14, %v19914_v48  ;;  %15918 = vmatprep.subr.msk.bf16.mxu0 %vm6910_vm12, %v7068_v45 }
 0x3f5   : > { %7195 = vmatpush1.bf16.msra.mxu0 %v7097_v8  ;;  %v7036_v24 = vpop.permute.xlu1 %7035  ;;  %v7038_v23 = vpop.permute.xlu0 %7037  ;;  %7267 = vmatprep.mubr.bf16.mxu1 %v17239_v6 }
 0x3f6   : > { %v7070_v62 = vsel %vm481_vm0, %v7034_v17, %v7036_v24  ;;  %v7071_v15 = vsel %vm481_vm0, %v7036_v24, %v7038_v23 }
 0x3f7   : > { %9327 = vrot.lane.b32.xlu0 %v19739_v37, %s23517_s16  ;;  %9325 = vrot.lane.b32.xlu1 %v19725_v34, %s23517_s16  ;;  %v7109_v7 = vsel %vm6910_vm12, %v7071_v15, 0 }
 0x3f8   : > { %15919 = vmatmul.mubr.msk.bf16.vlgmr.msra.gmra.mrb[200].mxu0 %vm7085_vm14, %v19914_v48  ;;  %15920 = vmatprep.subr.msk.bf16.mxu1 %vm6910_vm12, %v7070_v62 }
 0x3f9   : > { %7236 = vmatpush1.bf16.msra.mxu1 %v7103_v51  ;;  %v7040_v12 = vpop.permute.xlu1 %7039  ;;  %v7042_v54 = vpop.permute.xlu0 %7041  ;;  %7308 = vmatprep.mubr.bf16.mxu0 %v17239_v6  ;;  %v7607_v51 = vsel %vm6910_vm12, %v19727_v59, 0 }
 0x3fa   : > { %v7072_v1 = vsel %vm481_vm0, %v7038_v23, %v7040_v12  ;;  %v7073_v44 = vsel %vm481_vm0, %v7040_v12, %v7042_v54 }
 0x3fb   : > { %9331 = vrot.lane.b32.xlu0 %v19747_v13, %s23517_s16  ;;  %9329 = vrot.lane.b32.xlu1 %v19737_v2, %s23517_s16  ;;  %v7115_v40 = vsel %vm6910_vm12, %v7073_v44, 0  ;;  %v20057_v44 = vld [vmem:[%s23511_s4] sm:$0xf] }
 0x3fc   : > { %15921 = vmatmul.mubr.msk.bf16.vlgmr.msra.gmra.mrb[200].mxu1 %vm7085_vm14, %v19914_v48  ;;  %15922 = vmatprep.subr.msk.bf16.mxu0 %vm6910_vm12, %v7072_v1 }
 0x3fd   : > { %7277 = vmatpush1.bf16.msra.mxu0 %v7109_v7  ;;  %v7044_v4 = vpop.permute.xlu1 %7043  ;;  %v7046_v55 = vpop.permute.xlu0 %7045  ;;  %7349 = vmatprep.mubr.bf16.mxu1 %v17239_v6 }
 0x3fe   : > { %v7074_v16 = vsel %vm481_vm0, %v7042_v54, %v7044_v4  ;;  %v7075_v33 = vsel %vm481_vm0, %v7044_v4, %v7046_v55  ;;  %v7613_v54 = vsel %vm6910_vm12, %v19739_v37, 0 }
 0x3ff   : > { %9335 = vrot.lane.b32.xlu0 %v19758_v63, %s23517_s16  ;;  %9333 = vrot.lane.b32.xlu1 %v19745_v22, %s23517_s16  ;;  %v7121_v36 = vsel %vm6910_vm12, %v7075_v33, 0 }
 0x400   : > { %15923 = vmatmul.mubr.msk.bf16.vlgmr.msra.gmra.mrb[204].mxu0 %vm7085_vm14, %v19914_v48  ;;  %15924 = vmatprep.subr.msk.bf16.mxu1 %vm6910_vm12, %v7074_v16  ;;  %v7625_v16 = vsel %vm6910_vm12, %v19758_v63, 0 }
 0x401   : > { %7318 = vmatpush1.bf16.msra.mxu1 %v7115_v40  ;;  %v7048_v61 = vpop.permute.xlu1 %7047  ;;  %v7050_v52 = vpop.permute.xlu0 %7049  ;;  %7390 = vmatprep.mubr.bf16.mxu0 %v17239_v6 }
 0x402   : > { %v7076_v28 = vsel %vm481_vm0, %v7046_v55, %v7048_v61  ;;  %v7077_v29 = vsel %vm481_vm0, %v7048_v61, %v7050_v52  ;;  %v7631_v61 = vsel %vm6910_vm12, %v19767_v43, 0 }
 0x403   : > { %9339 = vrot.lane.b32.xlu0 %v19767_v43, %s23517_s16  ;;  %9337 = vrot.lane.b32.xlu1 %v19756_v0, %s23517_s16  ;;  %v7127_v20 = vsel %vm6910_vm12, %v7077_v29, 0 }
 0x404   : > { %15925 = vmatmul.mubr.msk.bf16.vlgmr.msra.gmra.mrb[204].mxu1 %vm7085_vm14, %v19914_v48  ;;  %15926 = vmatprep.subr.msk.bf16.mxu0 %vm6910_vm12, %v7076_v28 }
 0x405   : > { %7359 = vmatpush1.bf16.msra.mxu0 %v7121_v36  ;;  %v7052_v58 = vpop.permute.xlu1 %7051  ;;  %v7054_v50 = vpop.permute.xlu0 %7053  ;;  %7431 = vmatprep.mubr.bf16.mxu1 %v17239_v6  ;;  %v7637_v36 = vsel %vm6910_vm12, %v19778_v14, 0 }
 0x406   : > { %v7078_v46 = vsel %vm481_vm0, %v7050_v52, %v7052_v58  ;;  %v7079_v38 = vsel %vm481_vm0, %v7052_v58, %v7054_v50 }
 0x407   : > { %9343 = vrot.lane.b32.xlu0 %v19778_v14, %s23517_s16  ;;  %9341 = vrot.lane.b32.xlu1 %v19765_v3, %s23517_s16  ;;  %v7133_v47 = vsel %vm6910_vm12, %v7079_v38, 0  ;;  %v7649_v38 = vsel %vm6910_vm12, %v19798_v31, 0 }
 0x408   : > { %15927 = vmatmul.mubr.msk.bf16.vlgmr.msra.gmra.mrb[208].mxu0 %vm7085_vm14, %v19914_v48  ;;  %15928 = vmatprep.subr.msk.bf16.mxu1 %vm6910_vm12, %v7078_v46 }
 0x409   : > { %7400 = vmatpush1.bf16.msra.mxu1 %v7127_v20  ;;  %v7056_v27 = vpop.permute.xlu1 %7055  ;;  %v7058_v9 = vpop.permute.xlu0 %7057  ;;  %7472 = vmatprep.mubr.bf16.mxu0 %v17239_v6 }
 0x40a   : > { %v7080_v11 = vsel %vm481_vm0, %v7054_v50, %v7056_v27  ;;  %v7081_v39 = vsel %vm481_vm0, %v7056_v27, %v7058_v9  ;;  %v7643_v50 = vsel %vm6910_vm12, %v19787_v42, 0 }
 0x40b   : > { %9347 = vrot.lane.b32.xlu0 %v19787_v42, %s23517_s16  ;;  %9345 = vrot.lane.b32.xlu1 %v19776_v25, %s23517_s16  ;;  %v7139_v18 = vsel %vm6910_vm12, %v7081_v39, 0 }
 0x40c   : > { %15929 = vmatmul.mubr.msk.bf16.vlgmr.msra.gmra.mrb[208].mxu1 %vm7085_vm14, %v19914_v48  ;;  %15930 = vmatprep.subr.msk.bf16.mxu0 %vm6910_vm12, %v7080_v11  ;;  %v7655_v11 = vsel %vm6910_vm12, %v19806_v10, 0 }
 0x40d   : > { %7441 = vmatpush1.bf16.msra.mxu0 %v7133_v47  ;;  %v7060_v35 = vpop.permute.xlu1 %7059  ;;  %v7062_v26 = vpop.permute.xlu0 %7061  ;;  %7513 = vmatprep.mubr.bf16.mxu1 %v17239_v6 }
 0x40e   : > { %v7082_v56 = vsel %vm481_vm0, %v7058_v9, %v7060_v35  ;;  %v7083_v41 = vsel %vm481_vm0, %v7060_v35, %v7062_v26  ;;  %v7661_v35 = vsel %vm6910_vm12, %v19814_v19, 0 }
 0x40f   : > { %9351 = vrot.lane.b32.xlu0 %v19798_v31, %s23517_s16  ;;  %9349 = vrot.lane.b32.xlu1 %v19785_v32, %s23517_s16  ;;  %v7145_v24 = vsel %vm6910_vm12, %v7083_v41, 0  ;;  %v7667_v41 = vsel %vm6910_vm12, %v19820_v30, 0 }
 0x410   : > { %15931 = vmatmul.mubr.msk.bf16.vlgmr.msra.gmra.mrb[212].mxu0 %vm7085_vm14, %v19914_v48  ;;  %15932 = vmatprep.subr.msk.bf16.mxu1 %vm6910_vm12, %v7082_v56 }
 0x411   : > { %7482 = vmatpush1.bf16.msra.mxu1 %v7139_v18  ;;  %v7064_v17 = vpop.permute.xlu1 %7063  ;;  %v20003_v45 = vpop.permute.xlu0 %8121  ;;  %7554 = vmatprep.mubr.bf16.mxu0 %v17239_v6 }
 0x412   : > { %v7084_v8 = vsel %vm481_vm0, %v7062_v26, %v7064_v17  ;;  %16715 = vmatprep.subr.bf16.mxu1 %v17244_v49  ;;  %v7151_v21 = vsel %vm6910_vm12, %v7064_v17, 0 }
 0x413   : > { %9355 = vrot.lane.b32.xlu0 %v19806_v10, %s23517_s16  ;;  %9353 = vrot.lane.b32.xlu1 %v19796_v60, %s23517_s16 }
 0x414   : > { %15933 = vmatmul.mubr.msk.bf16.vlgmr.msra.gmra.mrb[212].mxu1 %vm7085_vm14, %v19914_v48  ;;  %15934 = vmatprep.subr.msk.bf16.mxu0 %vm6910_vm12, %v7084_v8 }
 0x415   : > { %7523 = vmatpush1.bf16.msra.mxu0 %v7145_v24  ;;  %16716 = vmatpush3.bf16.msra.mxu1 %v7151_v21  ;;  %v20017_v23 = vpop.permute.xlu1 %8123  ;;  %v20019_v62 = vpop.permute.xlu0 %8125 }
 0x416   : > { %15937 = vmatprep.subr.msk.bf16.mxu0 %vm6910_vm12, %v19725_v34  ;;  %15939 = vmatprep.subr.msk.bf16.mxu1 %vm6910_vm12, %v19737_v2  ;;  %v8164_v26 = vsel %vm1684_vm4, %v20017_v23, %v20019_v62  ;;  %v8163_v17 = vsel %vm1684_vm4, %v20003_v45, %v20017_v23 }
 0x417   : > { %9359 = vrot.lane.b32.xlu0 %v19814_v19, %s23517_s16  ;;  %9357 = vrot.lane.b32.xlu1 %v19804_v57, %s23517_s16  ;;  %v8187_v45 = vsel %vm6910_vm12, %v8163_v17, 0 }
 0x418   : > { %15935 = vmatmul.mubr.msk.bf16.vlgmr.msra.gmra.mrb[216].mxu0 %vm7085_vm14, %v19914_v48  ;;  %16717 = vmatprep.mubr.msk.bf16.mxu1 %vm17245_vm3, %v17244_v49 }
 0x419   : > { %7670 = vmatpush1.bf16.msra.mxu0 %v7607_v51  ;;  %v20035_v15 = vpop.permute.xlu1 %8127  ;;  %v20037_v12 = vpop.permute.xlu0 %8129  ;;  %7701 = vmatprep.mubr.bf16.mxu0 %v17239_v6 }
 0x41a   : > { %15941 = vmatprep.subr.msk.bf16.mxu0 %vm6910_vm12, %v19745_v22  ;;  %v8166_v8 = vsel %vm1684_vm4, %v20035_v15, %v20037_v12  ;;  %v8165_v23 = vsel %vm1684_vm4, %v20019_v62, %v20035_v15 }
 0x41b   : > { %9363 = vrot.lane.b32.xlu0 %v19820_v30, %s23517_s16  ;;  %9361 = vrot.lane.b32.xlu1 %v19812_v53, %s23517_s16  ;;  %v8193_v62 = vsel %vm6910_vm12, %v8165_v23, 0 }
 0x41c   : > { %16718 = vmatmul.mubr.msk.bf16.vlgmr.msra.gmra.mrb[216].mxu1 %vm7085_vm14, %v19914_v48  ;;  %v7619_v48 = vsel %vm6910_vm12, %v19747_v13, 0 }
 0x41d   : > { %7711 = vmatpush1.bf16.msra.mxu1 %v7613_v54  ;;  %v20050_v1 = vpop.permute.xlu1 %8131  ;;  %v20052_v7 = vpop.permute.xlu0 %8133  ;;  %7742 = vmatprep.mubr.bf16.mxu1 %v17239_v6 }
 0x41e   : > { %15943 = vmatprep.subr.msk.bf16.mxu1 %vm6910_vm12, %v19756_v0  ;;  %v8168_v51 = vsel %vm1684_vm4, %v20050_v1, %v20052_v7  ;;  %v8167_v15 = vsel %vm1684_vm4, %v20037_v12, %v20050_v1 }
 0x41f   : > { %9926 = vrot.lane.b32.xlu0 %v19725_v34, %s17246_s22  ;;  %9924 = vrot.lane.b32.xlu1 %v19727_v59, %s17246_s22  ;;  %v8199_v12 = vsel %vm6910_vm12, %v8167_v15, 0 }
 0x420   : > { %15938 = vmatmul.mubr.msk.bf16.vlgmr.msra.gmra.mrb[220].mxu0 %vm7085_vm14, %v20057_v44 }
 0x421   : > { %7752 = vmatpush1.bf16.msra.mxu0 %v7619_v48  ;;  %v20070_v4 = vpop.permute.xlu1 %8135  ;;  %v20072_v55 = vpop.permute.xlu0 %8137  ;;  %7783 = vmatprep.mubr.bf16.mxu0 %v17239_v6 }
 0x422   : > { %15945 = vmatprep.subr.msk.bf16.mxu0 %vm6910_vm12, %v19765_v3  ;;  %v8169_v1 = vsel %vm1684_vm4, %v20052_v7, %v20070_v4 }
 0x423   : > { %9930 = vrot.lane.b32.xlu0 %v19737_v2, %s17246_s22  ;;  %9928 = vrot.lane.b32.xlu1 %v19739_v37, %s17246_s22  ;;  %v8205_v7 = vsel %vm6910_vm12, %v8169_v1, 0 }
 0x424   : > { %15940 = vmatmul.mubr.msk.bf16.vlgmr.msra.gmra.mrb[220].mxu1 %vm7085_vm14, %v20057_v44 }
 0x425   : > { %7793 = vmatpush1.bf16.msra.mxu1 %v7625_v16  ;;  %v20085_v40 = vpop.permute.xlu1 %8139  ;;  %v20087_v33 = vpop.permute.xlu0 %8141  ;;  %7824 = vmatprep.mubr.bf16.mxu1 %v17239_v6  ;;  %v8170_v16 = vsel %vm1684_vm4, %v20070_v4, %v20072_v55 }
 0x426   : > { %15947 = vmatprep.subr.msk.bf16.mxu1 %vm6910_vm12, %v19776_v25  ;;  %v8171_v4 = vsel %vm1684_vm4, %v20072_v55, %v20085_v40 }
 0x427   : > { %9934 = vrot.lane.b32.xlu0 %v19745_v22, %s17246_s22  ;;  %9932 = vrot.lane.b32.xlu1 %v19747_v13, %s17246_s22  ;;  %v8211_v55 = vsel %vm6910_vm12, %v8171_v4, 0 }
 0x428   : > { %15942 = vmatmul.mubr.msk.bf16.vlgmr.msra.gmra.mrb[224].mxu0 %vm7085_vm14, %v20057_v44 }
 0x429   : > { %7834 = vmatpush1.bf16.msra.mxu0 %v7631_v61  ;;  %v20100_v52 = vpop.permute.xlu1 %8143  ;;  %v20102_v28 = vpop.permute.xlu0 %8145  ;;  %7865 = vmatprep.mubr.bf16.mxu0 %v17239_v6 }
 0x42a   : > { %15949 = vmatprep.subr.msk.bf16.mxu0 %vm6910_vm12, %v19785_v32 }
 0x42b   : > { %9938 = vrot.lane.b32.xlu0 %v19756_v0, %s17246_s22  ;;  %9936 = vrot.lane.b32.xlu1 %v19758_v63, %s17246_s22 }
 0x42c   : > { %15944 = vmatmul.mubr.msk.bf16.vlgmr.msra.gmra.mrb[224].mxu1 %vm7085_vm14, %v20057_v44 }
 0x42d   : > { %7875 = vmatpush1.bf16.msra.mxu1 %v7637_v36  ;;  %v20115_v29 = vpop.permute.xlu1 %8147  ;;  %v20117_v58 = vpop.permute.xlu0 %8149  ;;  %7906 = vmatprep.mubr.bf16.mxu1 %v17239_v6  ;;  %v20243_v36 = vld [vmem:[%s23511_s4 + $0x8] sm:$0xf] }
 0x42e   : > { %15951 = vmatprep.subr.msk.bf16.mxu1 %vm6910_vm12, %v19796_v60 }
 0x42f   : > { %9942 = vrot.lane.b32.xlu0 %v19765_v3, %s17246_s22  ;;  %9940 = vrot.lane.b32.xlu1 %v19767_v43, %s17246_s22 }
 0x430   : > { %15946 = vmatmul.mubr.msk.bf16.vlgmr.msra.gmra.mrb[228].mxu0 %vm7085_vm14, %v20057_v44 }
 0x431   : > { %7916 = vmatpush1.bf16.msra.mxu0 %v7643_v50  ;;  %v20130_v46 = vpop.permute.xlu1 %8151  ;;  %v20132_v20 = vpop.permute.xlu0 %8153  ;;  %7947 = vmatprep.mubr.bf16.mxu0 %v17239_v6 }
 0x432   : > { %15953 = vmatprep.subr.msk.bf16.mxu0 %vm6910_vm12, %v19804_v57 }
 0x433   : > { %9946 = vrot.lane.b32.xlu0 %v19776_v25, %s17246_s22  ;;  %9944 = vrot.lane.b32.xlu1 %v19778_v14, %s17246_s22 }
 0x434   : > { %15948 = vmatmul.mubr.msk.bf16.vlgmr.msra.gmra.mrb[228].mxu1 %vm7085_vm14, %v20057_v44 }
 0x435   : > { %7957 = vmatpush1.bf16.msra.mxu1 %v7649_v38  ;;  %v20145_v27 = vpop.permute.xlu1 %8155  ;;  %v20147_v9 = vpop.permute.xlu0 %8157  ;;  %7988 = vmatprep.mubr.bf16.mxu1 %v17239_v6 }
 0x436   : > { %15955 = vmatprep.subr.msk.bf16.mxu1 %vm6910_vm12, %v19812_v53 }
 0x437   : > { %9950 = vrot.lane.b32.xlu0 %v19785_v32, %s17246_s22  ;;  %9948 = vrot.lane.b32.xlu1 %v19787_v42, %s17246_s22 }
 0x438   : > { %15950 = vmatmul.mubr.msk.bf16.vlgmr.msra.gmra.mrb[232].mxu0 %vm7085_vm14, %v20057_v44 }
 0x439   : > { %7998 = vmatpush1.bf16.msra.mxu0 %v7655_v11  ;;  %v20160_v47 = vpop.permute.xlu1 %8159  ;;  %v20162_v39 = vpop.permute.xlu0 %8161  ;;  %8029 = vmatprep.mubr.bf16.mxu0 %v17239_v6  ;;  %v8174_v11 = vsel %vm1684_vm4, %v20100_v52, %v20102_v28 }
 0x43a   : > { %16721 = vmatprep.subr.bf16.mxu0 %v17244_v49 }
 0x43b   : > { %9952 = vrot.lane.b32.xlu1 %v19798_v31, %s17246_s22  ;;  %9954 = vrot.lane.b32.xlu0 %v19796_v60, %s17246_s22 }
 0x43c   : > { %15952 = vmatmul.mubr.msk.bf16.vlgmr.msra.gmra.mrb[232].mxu1 %vm7085_vm14, %v20057_v44 }
 0x43d   : > { %8039 = vmatpush1.bf16.msra.mxu1 %v7661_v35  ;;  %v20177_v56 = vpop.permute.xlu1 %8722  ;;  %v20179_v18 = vpop.permute.xlu0 %8724  ;;  %8070 = vmatprep.mubr.bf16.mxu1 %v17239_v6 }
 0x43e   : > { %15959 = vmatprep.subr.msk.bf16.mxu1 %vm6910_vm12, %v8164_v26 }
 0x43f   : > { %9956 = vrot.lane.b32.xlu1 %v19806_v10, %s17246_s22  ;;  %9958 = vrot.lane.b32.xlu0 %v19804_v57, %s17246_s22 }
 0x440   : > { %15954 = vmatmul.mubr.msk.bf16.vlgmr.msra.gmra.mrb[236].mxu0 %vm7085_vm14, %v20057_v44 }
 0x441   : > { %16722 = vmatpush3.bf16.msra.mxu0 %v7667_v41  ;;  %v20197_v21 = vpop.permute.xlu1 %8726  ;;  %v20199_v24 = vpop.permute.xlu0 %8728  ;;  %16723 = vmatprep.mubr.msk.bf16.mxu0 %vm17245_vm3, %v17244_v49  ;;  %v8176_v41 = vsel %vm1684_vm4, %v20115_v29, %v20117_v58 }
 0x442   : > { %15961 = vmatprep.subr.msk.bf16.mxu0 %vm6910_vm12, %v8166_v8 }
 0x443   : > { %9960 = vrot.lane.b32.xlu1 %v19814_v19, %s17246_s22  ;;  %9962 = vrot.lane.b32.xlu0 %v19812_v53, %s17246_s22 }
 0x444   : > { %15956 = vmatmul.mubr.msk.bf16.vlgmr.msra.gmra.mrb[236].mxu1 %vm7085_vm14, %v20057_v44 }
 0x445   : > { %8250 = vmatpush1.bf16.msra.mxu1 %v8187_v45  ;;  %v20217_v54 = vpop.permute.xlu1 %8730  ;;  %v20219_v48 = vpop.permute.xlu0 %8732  ;;  %8281 = vmatprep.mubr.bf16.mxu1 %v17239_v6  ;;  %v8178_v45 = vsel %vm1684_vm4, %v20130_v46, %v20132_v20 }
 0x446   : > { %15963 = vmatprep.subr.msk.bf16.mxu1 %vm6910_vm12, %v8168_v51 }
 0x447   : > { %9964 = vrot.lane.b32.xlu1 %v19820_v30, %s17246_s22  ;;  %10591 = vrot.lane.b32.xlu0 %v19727_v59, %s17247_s29 }
 0x448   : > { %16724 = vmatmul.mubr.msk.bf16.vlgmr.msra.gmra.mrb[240].mxu0 %vm7085_vm14, %v20057_v44  ;;  %v8172_v44 = vsel %vm1684_vm4, %v20085_v40, %v20087_v33  ;;  %v8173_v40 = vsel %vm1684_vm4, %v20087_v33, %v20100_v52  ;;  %v8175_v52 = vsel %vm1684_vm4, %v20102_v28, %v20115_v29  ;;  %v8177_v29 = vsel %vm1684_vm4, %v20117_v58, %v20130_v46 }
 0x449   : > { %8291 = vmatpush1.bf16.msra.mxu0 %v8193_v62  ;;  %v20236_v61 = vpop.permute.xlu1 %8734  ;;  %v20238_v30 = vpop.permute.xlu0 %8736  ;;  %8322 = vmatprep.mubr.bf16.mxu0 %v17239_v6  ;;  %v8217_v33 = vsel %vm6910_vm12, %v8173_v40, 0  ;;  %v8223_v28 = vsel %vm6910_vm12, %v8175_v52, 0  ;;  %v8180_v62 = vsel %vm1684_vm4, %v20145_v27, %v20147_v9  ;;  %v8229_v58 = vsel %vm6910_vm12, %v8177_v29, 0  ;;  %v10535_v40 = vld [vmem:[#allocation2 + $0x50] sm:$0xff] }
 0x44a   : > { %15965 = vmatprep.subr.msk.bf16.mxu0 %vm6910_vm12, %v8170_v16  ;;  %v8179_v46 = vsel %vm1684_vm4, %v20132_v20, %v20145_v27  ;;  %v8181_v27 = vsel %vm1684_vm4, %v20147_v9, %v20160_v47  ;;  %v8767_v52 = vsel %vm2390_vm5, %v20199_v24, %v20217_v54  ;;  %v20411_v29 = vcombine.low %v10535_v40, %v10535_v40 }
 0x44b   : > { %10593 = vrot.lane.b32.xlu1 %v19725_v34, %s17247_s29  ;;  %10595 = vrot.lane.b32.xlu0 %v19739_v37, %s17247_s29  ;;  %v8235_v20 = vsel %vm6910_vm12, %v8179_v46, 0  ;;  %v8241_v9 = vsel %vm6910_vm12, %v8181_v27, 0  ;;  %v20452_v27 = vcombine.high %v10535_v40, %v10535_v40 }
 0x44c   : > { %15960 = vmatmul.mubr.msk.bf16.vlgmr.msra.gmra.mrb[240].mxu1 %vm7085_vm14, %v20243_v36 }
 0x44d   : > { %8332 = vmatpush1.bf16.msra.mxu1 %v8199_v12  ;;  %v20260_v50 = vpop.permute.xlu1 %8738  ;;  %v20262_v38 = vpop.permute.xlu0 %8740  ;;  %8363 = vmatprep.mubr.bf16.mxu1 %v17239_v6  ;;  %v8182_v12 = vsel %vm1684_vm4, %v20160_v47, %v20162_v39  ;;  %v8765_v47 = vsel %vm2390_vm5, %v20179_v18, %v20197_v21 }
 0x44e   : > { %15967 = vmatprep.subr.msk.bf16.mxu1 %vm6910_vm12, %v8172_v44  ;;  %v8771_v46 = vsel %vm2390_vm5, %v20238_v30, %v20260_v50 }
 0x44f   : > { %10597 = vrot.lane.b32.xlu1 %v19737_v2, %s17247_s29  ;;  %10599 = vrot.lane.b32.xlu0 %v19747_v13, %s17247_s29 }
 0x450   : > { %15962 = vmatmul.mubr.msk.bf16.vlgmr.msra.gmra.mrb[244].mxu0 %vm7085_vm14, %v20243_v36 }
 0x451   : > { %8373 = vmatpush1.bf16.msra.mxu0 %v8205_v7  ;;  %v20279_v35 = vpop.permute.xlu1 %8742  ;;  %v20281_v26 = vpop.permute.xlu0 %8744  ;;  %8404 = vmatprep.mubr.bf16.mxu0 %v17239_v6 }
 0x452   : > { %15969 = vmatprep.subr.msk.bf16.mxu0 %vm6910_vm12, %v8174_v11 }
 0x453   : > { %10601 = vrot.lane.b32.xlu1 %v19745_v22, %s17247_s29  ;;  %10603 = vrot.lane.b32.xlu0 %v19758_v63, %s17247_s29 }
 0x454   : > { %15964 = vmatmul.mubr.msk.bf16.vlgmr.msra.gmra.mrb[244].mxu1 %vm7085_vm14, %v20243_v36 }
 0x455   : > { %8414 = vmatpush1.bf16.msra.mxu1 %v8211_v55  ;;  %v20298_v17 = vpop.permute.xlu1 %8746  ;;  %v20300_v8 = vpop.permute.xlu0 %8748  ;;  %8445 = vmatprep.mubr.bf16.mxu1 %v17239_v6 }
 0x456   : > { %15971 = vmatprep.subr.msk.bf16.mxu1 %vm6910_vm12, %v8176_v41  ;;  %v8247_v41 = vsel %vm6910_vm12, %v20162_v39, 0 }
 0x457   : > { %10605 = vrot.lane.b32.xlu1 %v19756_v0, %s17247_s29  ;;  %10607 = vrot.lane.b32.xlu0 %v19767_v43, %s17247_s29 }
 0x458   : > { %15966 = vmatmul.mubr.msk.bf16.vlgmr.msra.gmra.mrb[248].mxu0 %vm7085_vm14, %v20243_v36 }
 0x459   : > { %8455 = vmatpush1.bf16.msra.mxu0 %v8217_v33  ;;  %v20317_v23 = vpop.permute.xlu1 %8750  ;;  %v20319_v51 = vpop.permute.xlu0 %8752  ;;  %8486 = vmatprep.mubr.bf16.mxu0 %v17239_v6  ;;  %v8764_v33 = vsel %vm2390_vm5, %v20177_v56, %v20179_v18  ;;  %v8766_v56 = vsel %vm2390_vm5, %v20197_v21, %v20199_v24  ;;  %v8769_v18 = vsel %vm2390_vm5, %v20219_v48, %v20236_v61 }
 0x45a   : > { %15973 = vmatprep.subr.msk.bf16.mxu0 %vm6910_vm12, %v8178_v45  ;;  %v8788_v39 = vsel %vm6910_vm12, %v8764_v33, 0  ;;  %v8794_v21 = vsel %vm6910_vm12, %v8766_v56, 0  ;;  %v8768_v24 = vsel %vm2390_vm5, %v20217_v54, %v20219_v48  ;;  %v8770_v48 = vsel %vm2390_vm5, %v20236_v61, %v20238_v30 }
 0x45b   : > { %10609 = vrot.lane.b32.xlu1 %v19765_v3, %s17247_s29  ;;  %10611 = vrot.lane.b32.xlu0 %v19778_v14, %s17247_s29  ;;  %v8800_v54 = vsel %vm6910_vm12, %v8768_v24, 0  ;;  %v8806_v61 = vsel %vm6910_vm12, %v8770_v48, 0  ;;  %v8772_v30 = vsel %vm2390_vm5, %v20260_v50, %v20262_v38 }
 0x45c   : > { %15968 = vmatmul.mubr.msk.bf16.vlgmr.msra.gmra.mrb[248].mxu1 %vm7085_vm14, %v20243_v36  ;;  %v8812_v50 = vsel %vm6910_vm12, %v8772_v30, 0 }
 0x45d   : > { %8496 = vmatpush1.bf16.msra.mxu1 %v8223_v28  ;;  %v20336_v15 = vpop.permute.xlu1 %8754  ;;  %v20338_v16 = vpop.permute.xlu0 %8756  ;;  %8527 = vmatprep.mubr.bf16.mxu1 %v17239_v6 }
 0x45e   : > { %15975 = vmatprep.subr.msk.bf16.mxu1 %vm6910_vm12, %v8180_v62 }
 0x45f   : > { %10613 = vrot.lane.b32.xlu1 %v19776_v25, %s17247_s29  ;;  %10615 = vrot.lane.b32.xlu0 %v19787_v42, %s17247_s29 }
 0x460   : > { %15970 = vmatmul.mubr.msk.bf16.vlgmr.msra.gmra.mrb[252].mxu0 %vm7085_vm14, %v20243_v36 }
 0x461   : > { %8537 = vmatpush1.bf16.msra.mxu0 %v8229_v58  ;;  %v20355_v1 = vpop.permute.xlu1 %8758  ;;  %v20357_v44 = vpop.permute.xlu0 %8760  ;;  %8568 = vmatprep.mubr.bf16.mxu0 %v17239_v6 }
 0x462   : > { %15977 = vmatprep.subr.msk.bf16.mxu0 %vm6910_vm12, %v8182_v12 }
 0x463   : > { %10617 = vrot.lane.b32.xlu1 %v19785_v32, %s17247_s29  ;;  %10619 = vrot.lane.b32.xlu0 %v19798_v31, %s17247_s29 }
 0x464   : > { %15972 = vmatmul.mubr.msk.bf16.vlgmr.msra.gmra.mrb[252].mxu1 %vm7085_vm14, %v20243_v36 }
 0x465   : > { %8578 = vmatpush1.bf16.msra.mxu1 %v8235_v20  ;;  %v20371_v7 = vpop.permute.xlu1 %8762  ;;  %v20373_v4 = vpop.permute.xlu0 %9323  ;;  %8609 = vmatprep.mubr.bf16.mxu1 %v17239_v6 }
 0x466   : > { %16727 = vmatprep.subr.bf16.mxu1 %v17244_v49 }
 0x467   : > { %10621 = vrot.lane.b32.xlu1 %v19796_v60, %s17247_s29  ;;  %10623 = vrot.lane.b32.xlu0 %v19806_v10, %s17247_s29 }
 0x468   : > { %15974 = vmatmul.mubr.msk.bf16.vlgmr.msra.gmra.mrb[0].mxu0 %vm7085_vm14, %v20243_v36 }
 0x469   : > { %8619 = vmatpush1.bf16.msra.mxu0 %v8241_v9  ;;  %v20387_v11 = vpop.permute.xlu1 %9325  ;;  %v20389_v55 = vpop.permute.xlu0 %9327  ;;  %8650 = vmatprep.mubr.bf16.mxu0 %v17239_v6  ;;  %v8773_v9 = vsel %vm2390_vm5, %v20262_v38, %v20279_v35  ;;  %v8774_v38 = vsel %vm2390_vm5, %v20279_v35, %v20281_v26 }
 0x46a   : > { %15981 = vmatprep.subr.msk.bf16.mxu0 %vm6910_vm12, %v8765_v47  ;;  %v8818_v35 = vsel %vm6910_vm12, %v8774_v38, 0 }
 0x46b   : > { %10625 = vrot.lane.b32.xlu1 %v19804_v57, %s17247_s29  ;;  %10627 = vrot.lane.b32.xlu0 %v19814_v19, %s17247_s29 }
 0x46c   : > { %15976 = vmatmul.mubr.msk.bf16.vlgmr.msra.gmra.mrb[0].mxu1 %vm7085_vm14, %v20243_v36 }
 0x46d   : > { %16728 = vmatpush3.bf16.msra.mxu1 %v8247_v41  ;;  %v20407_v45 = vpop.permute.xlu1 %9329  ;;  %v20409_v28 = vpop.permute.xlu0 %9331  ;;  %16729 = vmatprep.mubr.msk.bf16.mxu1 %vm17245_vm3, %v17244_v49  ;;  %v8775_v41 = vsel %vm2390_vm5, %v20281_v26, %v20298_v17  ;;  %v8776_v26 = vsel %vm2390_vm5, %v20298_v17, %v20300_v8 }
 0x46e   : > { %15983 = vmatprep.subr.msk.bf16.mxu1 %vm6910_vm12, %v8767_v52  ;;  %v8824_v17 = vsel %vm6910_vm12, %v8776_v26, 0  ;;  %v8848_v26 = vsel %vm6910_vm12, %v20371_v7, 0 }
 0x46f   : > { %10629 = vrot.lane.b32.xlu1 %v19812_v53, %s17247_s29  ;;  %10631 = vrot.lane.b32.xlu0 %v20411_v29, %s17247_s29 }
 0x470   : > { %15978 = vmatmul.mubr.msk.bf16.vlgmr.msra.gmra.mrb[4].mxu0 %vm7085_vm14, %v20243_v36 }
 0x471   : > { %8851 = vmatpush1.bf16.msra.mxu0 %v8788_v39  ;;  %v20429_v62 = vpop.permute.xlu1 %9333  ;;  %v20431_v58 = vpop.permute.xlu0 %9335  ;;  %8882 = vmatprep.mubr.bf16.mxu0 %v17239_v6  ;;  %v8777_v39 = vsel %vm2390_vm5, %v20300_v8, %v20317_v23  ;;  %v8778_v8 = vsel %vm2390_vm5, %v20317_v23, %v20319_v51 }
 0x472   : > { %15985 = vmatprep.subr.msk.bf16.mxu0 %vm6910_vm12, %v8769_v18  ;;  %v8830_v23 = vsel %vm6910_vm12, %v8778_v8, 0 }
 0x473   : > { %11197 = vrot.lane.b32.xlu1 %v19725_v34, %s23525_s25  ;;  %11195 = vrot.lane.b32.xlu0 %v19727_v59, %s23525_s25 }
 0x474   : > { %16730 = vmatmul.mubr.msk.bf16.vlgmr.msra.gmra.mrb[4].mxu1 %vm7085_vm14, %v20243_v36  ;;  %v20457_v36 = vld [vmem:[%s23511_s4 + $0xc] sm:$0xf] }
 0x475   : > { %8892 = vmatpush1.bf16.msra.mxu1 %v8794_v21  ;;  %v20448_v12 = vpop.permute.xlu1 %9337  ;;  %v20450_v20 = vpop.permute.xlu0 %9339  ;;  %8923 = vmatprep.mubr.bf16.mxu1 %v17239_v6  ;;  %v8779_v21 = vsel %vm2390_vm5, %v20319_v51, %v20336_v15  ;;  %v8780_v51 = vsel %vm2390_vm5, %v20336_v15, %v20338_v16 }
 0x476   : > { %15987 = vmatprep.subr.msk.bf16.mxu1 %vm6910_vm12, %v8771_v46  ;;  %v8836_v15 = vsel %vm6910_vm12, %v8780_v51, 0 }
 0x477   : > { %10633 = vrot.lane.b32.xlu1 %v20452_v27, %s17247_s29  ;;  %11199 = vrot.lane.b32.xlu0 %v19739_v37, %s23525_s25 }
 0x478   : > { %15982 = vmatmul.mubr.msk.bf16.vlgmr.msra.gmra.mrb[8].mxu0 %vm7085_vm14, %v20457_v36 }
 0x479   : > { %8933 = vmatpush1.bf16.msra.mxu0 %v8800_v54  ;;  %v20474_v47 = vpop.permute.xlu1 %9341  ;;  %v20476_v40 = vpop.permute.xlu0 %9343  ;;  %8964 = vmatprep.mubr.bf16.mxu0 %v17239_v6  ;;  %v8781_v54 = vsel %vm2390_vm5, %v20338_v16, %v20355_v1  ;;  %v8782_v16 = vsel %vm2390_vm5, %v20355_v1, %v20357_v44 }
 0x47a   : > { %15989 = vmatprep.subr.msk.bf16.mxu0 %vm6910_vm12, %v8773_v9  ;;  %v8842_v1 = vsel %vm6910_vm12, %v8782_v16, 0  ;;  %v20667_v16 = vld [vmem:[%s23511_s4 + $0x10] sm:$0xf] }
 0x47b   : > { %11201 = vrot.lane.b32.xlu1 %v19737_v2, %s23525_s25  ;;  %11203 = vrot.lane.b32.xlu0 %v19747_v13, %s23525_s25 }
 0x47c   : > { %15984 = vmatmul.mubr.msk.bf16.vlgmr.msra.gmra.mrb[8].mxu1 %vm7085_vm14, %v20457_v36 }
 0x47d   : > { %8974 = vmatpush1.bf16.msra.mxu1 %v8806_v61  ;;  %v20493_v33 = vpop.permute.xlu1 %9345  ;;  %v20495_v52 = vpop.permute.xlu0 %9347  ;;  %9005 = vmatprep.mubr.bf16.mxu1 %v17239_v6  ;;  %v8783_v61 = vsel %vm2390_vm5, %v20357_v44, %v20371_v7  ;;  %v9366_v44 = vsel %vm3096_vm6, %v20387_v11, %v20389_v55 }
 0x47e   : > { %15991 = vmatprep.subr.msk.bf16.mxu1 %vm6910_vm12, %v8775_v41 }
 0x47f   : > { %11205 = vrot.lane.b32.xlu1 %v19745_v22, %s23525_s25  ;;  %11207 = vrot.lane.b32.xlu0 %v19758_v63, %s23525_s25 }
 0x480   : > { %15986 = vmatmul.mubr.msk.bf16.vlgmr.msra.gmra.mrb[12].mxu0 %vm7085_vm14, %v20457_v36 }
 0x481   : > { %9015 = vmatpush1.bf16.msra.mxu0 %v8812_v50  ;;  %v20512_v56 = vpop.permute.xlu1 %9349  ;;  %v20514_v18 = vpop.permute.xlu0 %9351  ;;  %9046 = vmatprep.mubr.bf16.mxu0 %v17239_v6 }
 0x482   : > { %15993 = vmatprep.subr.msk.bf16.mxu0 %vm6910_vm12, %v8777_v39 }
 0x483   : > { %11209 = vrot.lane.b32.xlu1 %v19756_v0, %s23525_s25  ;;  %11211 = vrot.lane.b32.xlu0 %v19767_v43, %s23525_s25 }
 0x484   : > { %15988 = vmatmul.mubr.msk.bf16.vlgmr.msra.gmra.mrb[12].mxu1 %vm7085_vm14, %v20457_v36 }
 0x485   : > { %9056 = vmatpush1.bf16.msra.mxu1 %v8818_v35  ;;  %v20531_v24 = vpop.permute.xlu1 %9353  ;;  %v20533_v46 = vpop.permute.xlu0 %9355  ;;  %9087 = vmatprep.mubr.bf16.mxu1 %v17239_v6 }
 0x486   : > { %15995 = vmatprep.subr.msk.bf16.mxu1 %vm6910_vm12, %v8779_v21  ;;  %v9365_v21 = vsel %vm3096_vm6, %v20373_v4, %v20387_v11  ;;  %v9367_v4 = vsel %vm3096_vm6, %v20389_v55, %v20407_v45  ;;  %v9370_v11 = vsel %vm3096_vm6, %v20429_v62, %v20431_v58  ;;  %v9369_v55 = vsel %vm3096_vm6, %v20409_v28, %v20429_v62 }
 0x487   : > { %11213 = vrot.lane.b32.xlu1 %v19765_v3, %s23525_s25  ;;  %11215 = vrot.lane.b32.xlu0 %v19778_v14, %s23525_s25  ;;  %v9389_v7 = vsel %vm6910_vm12, %v9365_v21, 0  ;;  %v9371_v62 = vsel %vm3096_vm6, %v20431_v58, %v20448_v12  ;;  %v9373_v58 = vsel %vm3096_vm6, %v20450_v20, %v20474_v47 }
 0x488   : > { %15990 = vmatmul.mubr.msk.bf16.vlgmr.msra.gmra.mrb[16].mxu0 %vm7085_vm14, %v20457_v36 }
 0x489   : > { %9097 = vmatpush1.bf16.msra.mxu0 %v8824_v17  ;;  %v20550_v48 = vpop.permute.xlu1 %9357  ;;  %v20552_v9 = vpop.permute.xlu0 %9359  ;;  %9128 = vmatprep.mubr.bf16.mxu0 %v17239_v6  ;;  %v9368_v17 = vsel %vm3096_vm6, %v20407_v45, %v20409_v28  ;;  %v9372_v45 = vsel %vm3096_vm6, %v20448_v12, %v20450_v20  ;;  %v9401_v28 = vsel %vm6910_vm12, %v9369_v55, 0  ;;  %v9376_v12 = vsel %vm3096_vm6, %v20493_v33, %v20495_v52 }
 0x48a   : > { %15997 = vmatprep.subr.msk.bf16.mxu0 %vm6910_vm12, %v8781_v54  ;;  %v9375_v20 = vsel %vm3096_vm6, %v20476_v40, %v20493_v33  ;;  %v9380_v33 = vsel %vm3096_vm6, %v20531_v24, %v20533_v46 }
 0x48b   : > { %11217 = vrot.lane.b32.xlu1 %v19776_v25, %s23525_s25  ;;  %11219 = vrot.lane.b32.xlu0 %v19787_v42, %s23525_s25 }
 0x48c   : > { %15992 = vmatmul.mubr.msk.bf16.vlgmr.msra.gmra.mrb[16].mxu1 %vm7085_vm14, %v20457_v36 }
 0x48d   : > { %9138 = vmatpush1.bf16.msra.mxu1 %v8830_v23  ;;  %v20569_v30 = vpop.permute.xlu1 %9361  ;;  %v20571_v41 = vpop.permute.xlu0 %9363  ;;  %9169 = vmatprep.mubr.bf16.mxu1 %v17239_v6 }
 0x48e   : > { %15999 = vmatprep.subr.msk.bf16.mxu1 %vm6910_vm12, %v8783_v61 }
 0x48f   : > { %11221 = vrot.lane.b32.xlu1 %v19785_v32, %s23525_s25  ;;  %11223 = vrot.lane.b32.xlu0 %v19798_v31, %s23525_s25 }
 0x490   : > { %15994 = vmatmul.mubr.msk.bf16.vlgmr.msra.gmra.mrb[20].mxu0 %vm7085_vm14, %v20457_v36 }
 0x491   : > { %9179 = vmatpush1.bf16.msra.mxu0 %v8836_v15  ;;  %v20585_v50 = vpop.permute.xlu1 %9924  ;;  %v20587_v38 = vpop.permute.xlu0 %9926  ;;  %9210 = vmatprep.mubr.bf16.mxu0 %v17239_v6 }
 0x492   : > { %16733 = vmatprep.subr.bf16.mxu0 %v17244_v49 }
 0x493   : > { %11225 = vrot.lane.b32.xlu1 %v19796_v60, %s23525_s25  ;;  %11227 = vrot.lane.b32.xlu0 %v19806_v10, %s23525_s25 }
 0x494   : > { %15996 = vmatmul.mubr.msk.bf16.vlgmr.msra.gmra.mrb[20].mxu1 %vm7085_vm14, %v20457_v36 }
 0x495   : > { %9220 = vmatpush1.bf16.msra.mxu1 %v8842_v1  ;;  %v20601_v39 = vpop.permute.xlu1 %9928  ;;  %v20603_v35 = vpop.permute.xlu0 %9930  ;;  %9251 = vmatprep.mubr.bf16.mxu1 %v17239_v6 }
 0x496   : > { %16003 = vmatprep.subr.msk.bf16.mxu1 %vm6910_vm12, %v9366_v44 }
 0x497   : > { %11229 = vrot.lane.b32.xlu1 %v19804_v57, %s23525_s25  ;;  %11231 = vrot.lane.b32.xlu0 %v19814_v19, %s23525_s25 }
 0x498   : > { %15998 = vmatmul.mubr.msk.bf16.vlgmr.msra.gmra.mrb[24].mxu0 %vm7085_vm14, %v20457_v36 }
 0x499   : > { %16734 = vmatpush3.bf16.msra.mxu0 %v8848_v26  ;;  %v20621_v8 = vpop.permute.xlu1 %9932  ;;  %v20623_v54 = vpop.permute.xlu0 %9934  ;;  %16735 = vmatprep.mubr.msk.bf16.mxu0 %vm17245_vm3, %v17244_v49 }
 0x49a   : > { %16005 = vmatprep.subr.msk.bf16.mxu0 %vm6910_vm12, %v9368_v17 }
 0x49b   : > { %11233 = vrot.lane.b32.xlu1 %v19812_v53, %s23525_s25  ;;  %11799 = vrot.lane.b32.xlu0 %v19727_v59, %s23523_s17  ;;  %v9395_v59 = vsel %vm6910_vm12, %v9367_v4, 0 }
 0x49c   : > { %16000 = vmatmul.mubr.msk.bf16.vlgmr.msra.gmra.mrb[24].mxu1 %vm7085_vm14, %v20457_v36 }
 0x49d   : > { %9452 = vmatpush1.bf16.msra.mxu1 %v9389_v7  ;;  %v20641_v23 = vpop.permute.xlu1 %9936  ;;  %v20643_v51 = vpop.permute.xlu0 %9938  ;;  %9483 = vmatprep.mubr.bf16.mxu1 %v17239_v6 }
 0x49e   : > { %16007 = vmatprep.subr.msk.bf16.mxu1 %vm6910_vm12, %v9370_v11  ;;  %v9969_v11 = vsel %vm3802_vm7, %v20603_v35, %v20621_v8 }
 0x49f   : > { %11237 = vrot.lane.b32.xlu1 %v20452_v27, %s23525_s25  ;;  %11235 = vrot.lane.b32.xlu0 %v20411_v29, %s23525_s25 }
 0x4a0   : > { %16736 = vmatmul.mubr.msk.bf16.vlgmr.msra.gmra.mrb[28].mxu0 %vm7085_vm14, %v20457_v36  ;;  %v9374_v36 = vsel %vm3096_vm6, %v20474_v47, %v20476_v40  ;;  %v9378_v47 = vsel %vm3096_vm6, %v20512_v56, %v20514_v18  ;;  %v9377_v40 = vsel %vm3096_vm6, %v20495_v52, %v20512_v56  ;;  %v9379_v52 = vsel %vm3096_vm6, %v20514_v18, %v20531_v24 }
 0x4a1   : > { %9493 = vmatpush1.bf16.msra.mxu0 %v9395_v59  ;;  %v20660_v61 = vpop.permute.xlu1 %9940  ;;  %v20662_v15 = vpop.permute.xlu0 %9942  ;;  %9524 = vmatprep.mubr.bf16.mxu0 %v17239_v6  ;;  %v9382_v56 = vsel %vm3096_vm6, %v20550_v48, %v20552_v9  ;;  %v9381_v18 = vsel %vm3096_vm6, %v20533_v46, %v20550_v48  ;;  %v9384_v24 = vsel %vm3096_vm6, %v20569_v30, %v20571_v41 }
 0x4a2   : > { %16009 = vmatprep.subr.msk.bf16.mxu0 %vm6910_vm12, %v9372_v45  ;;  %v9383_v46 = vsel %vm3096_vm6, %v20552_v9, %v20569_v30 }
 0x4a3   : > { %11801 = vrot.lane.b32.xlu1 %v19725_v34, %s23523_s17  ;;  %11803 = vrot.lane.b32.xlu0 %v19739_v37, %s23523_s17  ;;  %v9407_v37 = vsel %vm6910_vm12, %v9371_v62, 0 }
 0x4a4   : > { %16004 = vmatmul.mubr.msk.bf16.vlgmr.msra.gmra.mrb[28].mxu1 %vm7085_vm14, %v20667_v16 }
 0x4a5   : > { %9534 = vmatpush1.bf16.msra.mxu1 %v9401_v28  ;;  %v20684_v1 = vpop.permute.xlu1 %9944  ;;  %v20686_v34 = vpop.permute.xlu0 %9946  ;;  %9565 = vmatprep.mubr.bf16.mxu1 %v17239_v6 }
 0x4a6   : > { %16011 = vmatprep.subr.msk.bf16.mxu1 %vm6910_vm12, %v9374_v36  ;;  %v9970_v36 = vsel %vm3802_vm7, %v20621_v8, %v20623_v54 }
 0x4a7   : > { %11805 = vrot.lane.b32.xlu1 %v19737_v2, %s23523_s17  ;;  %11807 = vrot.lane.b32.xlu0 %v19747_v13, %s23523_s17  ;;  %v9413_v13 = vsel %vm6910_vm12, %v9373_v58, 0 }
 0x4a8   : > { %16006 = vmatmul.mubr.msk.bf16.vlgmr.msra.gmra.mrb[32].mxu0 %vm7085_vm14, %v20667_v16 }
 0x4a9   : > { %9575 = vmatpush1.bf16.msra.mxu0 %v9407_v37  ;;  %v20703_v44 = vpop.permute.xlu1 %9948  ;;  %v20705_v2 = vpop.permute.xlu0 %9950  ;;  %9606 = vmatprep.mubr.bf16.mxu0 %v17239_v6  ;;  %v9973_v37 = vsel %vm3802_vm7, %v20643_v51, %v20660_v61 }
 0x4aa   : > { %16013 = vmatprep.subr.msk.bf16.mxu0 %vm6910_vm12, %v9376_v12 }
 0x4ab   : > { %11809 = vrot.lane.b32.xlu1 %v19745_v22, %s23523_s17  ;;  %11811 = vrot.lane.b32.xlu0 %v19758_v63, %s23523_s17  ;;  %v9419_v63 = vsel %vm6910_vm12, %v9375_v20, 0 }
 0x4ac   : > { %16008 = vmatmul.mubr.msk.bf16.vlgmr.msra.gmra.mrb[32].mxu1 %vm7085_vm14, %v20667_v16 }
 0x4ad   : > { %9616 = vmatpush1.bf16.msra.mxu1 %v9413_v13  ;;  %v20722_v26 = vpop.permute.xlu1 %9952  ;;  %v20724_v22 = vpop.permute.xlu0 %9954  ;;  %9647 = vmatprep.mubr.bf16.mxu1 %v17239_v6  ;;  %v10002_v13 = vsel %vm6910_vm12, %v9970_v36, 0 }
 0x4ae   : > { %16015 = vmatprep.subr.msk.bf16.mxu1 %vm6910_vm12, %v9378_v47  ;;  %v9972_v47 = vsel %vm3802_vm7, %v20641_v23, %v20643_v51 }
 0x4af   : > { %11813 = vrot.lane.b32.xlu1 %v19756_v0, %s23523_s17  ;;  %11815 = vrot.lane.b32.xlu0 %v19767_v43, %s23523_s17  ;;  %v9425_v43 = vsel %vm6910_vm12, %v9377_v40, 0 }
 0x4b0   : > { %16010 = vmatmul.mubr.msk.bf16.vlgmr.msra.gmra.mrb[36].mxu0 %vm7085_vm14, %v20667_v16 }
 0x4b1   : > { %9657 = vmatpush1.bf16.msra.mxu0 %v9419_v63  ;;  %v20741_v21 = vpop.permute.xlu1 %9956  ;;  %v20743_v0 = vpop.permute.xlu0 %9958  ;;  %9688 = vmatprep.mubr.bf16.mxu0 %v17239_v6  ;;  %v9975_v63 = vsel %vm3802_vm7, %v20662_v15, %v20684_v1 }
 0x4b2   : > { %16017 = vmatprep.subr.msk.bf16.mxu0 %vm6910_vm12, %v9380_v33 }
 0x4b3   : > { %11817 = vrot.lane.b32.xlu1 %v19765_v3, %s23523_s17  ;;  %11819 = vrot.lane.b32.xlu0 %v19778_v14, %s23523_s17  ;;  %v9431_v14 = vsel %vm6910_vm12, %v9379_v52, 0 }
 0x4b4   : > { %16012 = vmatmul.mubr.msk.bf16.vlgmr.msra.gmra.mrb[36].mxu1 %vm7085_vm14, %v20667_v16 }
 0x4b5   : > { %9698 = vmatpush1.bf16.msra.mxu1 %v9425_v43  ;;  %v20760_v17 = vpop.permute.xlu1 %9960  ;;  %v20762_v3 = vpop.permute.xlu0 %9962  ;;  %9729 = vmatprep.mubr.bf16.mxu1 %v17239_v6 }
 0x4b6   : > { %16019 = vmatprep.subr.msk.bf16.mxu1 %vm6910_vm12, %v9382_v56 }
 0x4b7   : > { %11821 = vrot.lane.b32.xlu1 %v19776_v25, %s23523_s17  ;;  %11823 = vrot.lane.b32.xlu0 %v19787_v42, %s23523_s17  ;;  %v9437_v42 = vsel %vm6910_vm12, %v9381_v18, 0  ;;  %v9977_v18 = vsel %vm3802_vm7, %v20686_v34, %v20703_v44 }
 0x4b8   : > { %16014 = vmatmul.mubr.msk.bf16.vlgmr.msra.gmra.mrb[40].mxu0 %vm7085_vm14, %v20667_v16 }
 0x4b9   : > { %9739 = vmatpush1.bf16.msra.mxu0 %v9431_v14  ;;  %v20779_v7 = vpop.permute.xlu1 %9964  ;;  %v20781_v25 = vpop.permute.xlu0 %10591  ;;  %9770 = vmatprep.mubr.bf16.mxu0 %v17239_v6  ;;  %v9974_v14 = vsel %vm3802_vm7, %v20660_v61, %v20662_v15 }
 0x4ba   : > { %16021 = vmatprep.subr.msk.bf16.mxu0 %vm6910_vm12, %v9384_v24  ;;  %v10014_v61 = vsel %vm6910_vm12, %v9974_v14, 0 }
 0x4bb   : > { %11825 = vrot.lane.b32.xlu1 %v19785_v32, %s23523_s17  ;;  %11827 = vrot.lane.b32.xlu0 %v19798_v31, %s23523_s17  ;;  %v9443_v32 = vsel %vm6910_vm12, %v9383_v46, 0  ;;  %v9967_v31 = vsel %vm3802_vm7, %v20587_v38, %v20601_v39 }
 0x4bc   : > { %16016 = vmatmul.mubr.msk.bf16.vlgmr.msra.gmra.mrb[40].mxu1 %vm7085_vm14, %v20667_v16 }
 0x4bd   : > { %9780 = vmatpush1.bf16.msra.mxu1 %v9437_v42  ;;  %v20795_v48 = vpop.permute.xlu1 %10593  ;;  %v20797_v4 = vpop.permute.xlu0 %10595  ;;  %9811 = vmatprep.mubr.bf16.mxu1 %v17239_v6 }
 0x4be   : > { %16739 = vmatprep.subr.bf16.mxu1 %v17244_v49 }
 0x4bf   : > { %11829 = vrot.lane.b32.xlu1 %v19796_v60, %s23523_s17  ;;  %11831 = vrot.lane.b32.xlu0 %v19806_v10, %s23523_s17  ;;  %v9449_v60 = vsel %vm6910_vm12, %v20571_v41, 0  ;;  %v9966_v10 = vsel %vm3802_vm7, %v20585_v50, %v20587_v38  ;;  %v9968_v38 = vsel %vm3802_vm7, %v20601_v39, %v20603_v35 }
 0x4c0   : > { %16018 = vmatmul.mubr.msk.bf16.vlgmr.msra.gmra.mrb[44].mxu0 %vm7085_vm14, %v20667_v16  ;;  %v9990_v41 = vsel %vm6910_vm12, %v9966_v10, 0  ;;  %v9996_v35 = vsel %vm6910_vm12, %v9968_v38, 0  ;;  %v9979_v10 = vsel %vm3802_vm7, %v20705_v2, %v20722_v26 }
 0x4c1   : > { %9821 = vmatpush1.bf16.msra.mxu0 %v9443_v32  ;;  %v20811_v9 = vpop.permute.xlu1 %10597  ;;  %v20813_v30 = vpop.permute.xlu0 %10599  ;;  %9852 = vmatprep.mubr.bf16.mxu0 %v17239_v6 }
 0x4c2   : > { %16025 = vmatprep.subr.msk.bf16.mxu0 %vm6910_vm12, %v9967_v31 }
 0x4c3   : > { %11833 = vrot.lane.b32.xlu1 %v19804_v57, %s23523_s17  ;;  %11835 = vrot.lane.b32.xlu0 %v19814_v19, %s23523_s17 }
 0x4c4   : > { %16020 = vmatmul.mubr.msk.bf16.vlgmr.msra.gmra.mrb[44].mxu1 %vm7085_vm14, %v20667_v16 }
 0x4c5   : > { %16740 = vmatpush3.bf16.msra.mxu1 %v9449_v60  ;;  %v20831_v59 = vpop.permute.xlu1 %10601  ;;  %v20833_v57 = vpop.permute.xlu0 %10603  ;;  %16741 = vmatprep.mubr.msk.bf16.mxu1 %vm17245_vm3, %v17244_v49  ;;  %v9976_v60 = vsel %vm3802_vm7, %v20684_v1, %v20686_v34 }
 0x4c6   : > { %16027 = vmatprep.subr.msk.bf16.mxu1 %vm6910_vm12, %v9969_v11  ;;  %v10020_v1 = vsel %vm6910_vm12, %v9976_v60, 0 }
 0x4c7   : > { %11837 = vrot.lane.b32.xlu1 %v19812_v53, %s23523_s17  ;;  %11839 = vrot.lane.b32.xlu0 %v20411_v29, %s23523_s17  ;;  %v20842_v19 = vpop.f32.mrb[196].mxu1  ;;  %v9971_v53 = vsel %vm3802_vm7, %v20623_v54, %v20641_v23  ;;  %v10008_v23 = vsel %vm6910_vm12, %v9972_v47, 0  ;;  %v9980_v47 = vsel %vm3802_vm7, %v20722_v26, %v20724_v22 }
 0x4c8   : > { %16022 = vmatmul.mubr.msk.bf16.vlgmr.msra.gmra.mrb[48].mxu0 %vm7085_vm14, %v20667_v16  ;;  %v20847_v50 = vpop.f32.mrb[197].mxu1  ;;  %v10032_v26 = vsel %vm6910_vm12, %v9980_v47, 0 }
 0x4c9   : > { %10053 = vmatpush1.bf16.msra.mxu0 %v9990_v41  ;;  %v20855_v55 = vpop.permute.xlu1 %10605  ;;  %v20857_v29 = vpop.permute.xlu0 %10607  ;;  %10084 = vmatprep.mubr.bf16.mxu0 %v17239_v6 }
 0x4ca   : > { %16029 = vmatprep.subr.msk.bf16.mxu0 %vm6910_vm12, %v9971_v53  ;;  %v7191_v45 = vpop.f32.mrb[198].mxu1 }
 0x4cb   : > { %11841 = vrot.lane.b32.xlu1 %v20452_v27, %s23523_s17  ;;  %v20863_v28 = vpop.f32.mrb[200].mxu0  ;;  %v7192_v39 = vpop.f32.mrb[199].mxu1 }
 0x4cc   : > { %16742 = vmatmul.mubr.msk.bf16.vlgmr.msra.gmra.mrb[48].mxu1 %vm7085_vm14, %v20667_v16  ;;  %v20868_v62 = vpop.f32.mrb[201].mxu0  ;;  %v20883_v16 = vld [vmem:[%s23511_s4 + $0x14] sm:$0xf]  ;;  %v9978_v39 = vsel %vm3802_vm7, %v20703_v44, %v20705_v2 }
 0x4cd   : > { %10094 = vmatpush1.bf16.msra.mxu1 %v9996_v35  ;;  %v20876_v27 = vpop.permute.xlu1 %10609  ;;  %v20878_v58 = vpop.permute.xlu0 %10611  ;;  %10125 = vmatprep.mubr.bf16.mxu1 %v17239_v6  ;;  %v9981_v35 = vsel %vm3802_vm7, %v20724_v22, %v20741_v21  ;;  %v10026_v44 = vsel %vm6910_vm12, %v9978_v39, 0 }
 0x4ce   : > { %16031 = vmatprep.subr.msk.bf16.mxu1 %vm6910_vm12, %v9973_v37  ;;  %v7232_v12 = vpop.f32.mrb[202].mxu0 }
 0x4cf   : > { %v7233_v8 = vpop.f32.mrb[203].mxu0  ;;  %v20887_v54 = vpop.f32.mrb[200].mxu1 }
 0x4d0   : > { %16026 = vmatmul.mubr.msk.bf16.vlgmr.msra.gmra.mrb[52].mxu0 %vm7085_vm14, %v20883_v16  ;;  %v20892_v20 = vpop.f32.mrb[201].mxu1 }
 0x4d1   : > { %10135 = vmatpush1.bf16.msra.mxu0 %v10002_v13  ;;  %v20900_v40 = vpop.permute.xlu1 %10613  ;;  %v20902_v33 = vpop.permute.xlu0 %10615  ;;  %10166 = vmatprep.mubr.bf16.mxu0 %v17239_v6 }
 0x4d2   : > { %16033 = vmatprep.subr.msk.bf16.mxu0 %vm6910_vm12, %v9975_v63  ;;  %v7273_v43 = vpop.f32.mrb[202].mxu1  ;;  %v9983_v63 = vsel %vm3802_vm7, %v20743_v0, %v20760_v17 }
 0x4d3   : > { %v20906_v52 = vpop.f32.mrb[204].mxu0  ;;  %v7274_v56 = vpop.f32.mrb[203].mxu1 }
 0x4d4   : > { %16028 = vmatmul.mubr.msk.bf16.vlgmr.msra.gmra.mrb[52].mxu1 %vm7085_vm14, %v20883_v16  ;;  %v20911_v51 = vpop.f32.mrb[205].mxu0 }
 0x4d5   : > { %10176 = vmatpush1.bf16.msra.mxu1 %v10008_v23  ;;  %v20919_v24 = vpop.permute.xlu1 %10617  ;;  %v20921_v42 = vpop.permute.xlu0 %10619  ;;  %10207 = vmatprep.mubr.bf16.mxu1 %v17239_v6 }
 0x4d6   : > { %16035 = vmatprep.subr.msk.bf16.mxu1 %vm6910_vm12, %v9977_v18  ;;  %v7314_v46 = vpop.f32.mrb[206].mxu0 }
 0x4d7   : > { %v7315_v32 = vpop.f32.mrb[207].mxu0  ;;  %v20925_v31 = vpop.f32.mrb[204].mxu1  ;;  %v9982_v46 = vsel %vm3802_vm7, %v20741_v21, %v20743_v0 }
 0x4d8   : > { %16030 = vmatmul.mubr.msk.bf16.vlgmr.msra.gmra.mrb[56].mxu0 %vm7085_vm14, %v20883_v16  ;;  %v20930_v15 = vpop.f32.mrb[205].mxu1  ;;  %v9985_v32 = vsel %vm3802_vm7, %v20762_v3, %v20779_v7  ;;  %v10038_v21 = vsel %vm6910_vm12, %v9982_v46, 0 }
 0x4d9   : > { %10217 = vmatpush1.bf16.msra.mxu0 %v10014_v61  ;;  %v20938_v11 = vpop.permute.xlu1 %10621  ;;  %v20940_v41 = vpop.permute.xlu0 %10623  ;;  %10248 = vmatprep.mubr.bf16.mxu0 %v17239_v6 }
 0x4da   : > { %16037 = vmatprep.subr.msk.bf16.mxu0 %vm6910_vm12, %v9979_v10  ;;  %v7355_v38 = vpop.f32.mrb[206].mxu1 }
 0x4db   : > { %v20944_v53 = vpop.f32.mrb[208].mxu0  ;;  %v7356_v45 = vpop.f32.mrb[207].mxu1 }
 0x4dc   : > { %16032 = vmatmul.mubr.msk.bf16.vlgmr.msra.gmra.mrb[56].mxu1 %vm7085_vm14, %v20883_v16  ;;  %v20949_v34 = vpop.f32.mrb[209].mxu0 }
 0x4dd   : > { %10258 = vmatpush1.bf16.msra.mxu1 %v10020_v1  ;;  %v20957_v36 = vpop.permute.xlu1 %10625  ;;  %v20959_v37 = vpop.permute.xlu0 %10627  ;;  %10289 = vmatprep.mubr.bf16.mxu1 %v17239_v6  ;;  %v9984_v1 = vsel %vm3802_vm7, %v20760_v17, %v20762_v3  ;;  %v10636_v17 = vsel %vm4511_vm8, %v20795_v48, %v20797_v4 }
 0x4de   : > { %16039 = vmatprep.subr.msk.bf16.mxu1 %vm6910_vm12, %v9981_v35  ;;  %v7396_v12 = vpop.f32.mrb[210].mxu0 }
 0x4df   : > { %v7397_v8 = vpop.f32.mrb[211].mxu0  ;;  %v20963_v13 = vpop.f32.mrb[208].mxu1 }
 0x4e0   : > { %16034 = vmatmul.mubr.msk.bf16.vlgmr.msra.gmra.mrb[60].mxu0 %vm7085_vm14, %v20883_v16  ;;  %v20968_v2 = vpop.f32.mrb[209].mxu1 }
 0x4e1   : > { %10299 = vmatpush1.bf16.msra.mxu0 %v10026_v44  ;;  %v20976_v43 = vpop.permute.xlu1 %10629  ;;  %10330 = vmatprep.mubr.bf16.mxu0 %v17239_v6  ;;  %v20980_v56 = vpop.permute.xlu0 %10631  ;;  %v10044_v44 = vsel %vm6910_vm12, %v9984_v1, 0 }
 0x4e2   : > { %16041 = vmatprep.subr.msk.bf16.mxu0 %vm6910_vm12, %v9983_v63  ;;  %v7437_v23 = vpop.f32.mrb[210].mxu1 }
 0x4e3   : > { %v20982_v14 = vpop.f32.mrb[212].mxu0  ;;  %v7438_v18 = vpop.f32.mrb[211].mxu1 }
 0x4e4   : > { %16036 = vmatmul.mubr.msk.bf16.vlgmr.msra.gmra.mrb[60].mxu1 %vm7085_vm14, %v20883_v16  ;;  %v20987_v22 = vpop.f32.mrb[213].mxu0 }
 0x4e5   : > { %10340 = vmatpush1.bf16.msra.mxu1 %v10032_v26  ;;  %10371 = vmatprep.mubr.bf16.mxu1 %v17239_v6  ;;  %v20997_v61 = vpop.permute.xlu1 %11197  ;;  %v7478_v60 = vpop.f32.mrb[214].mxu0  ;;  %v10050_v26 = vsel %vm6910_vm12, %v20779_v7, 0 }
 0x4e6   : > { %16043 = vmatprep.subr.msk.bf16.mxu1 %vm6910_vm12, %v9985_v32  ;;  %v7479_v10 = vpop.f32.mrb[215].mxu0  ;;  %v21001_v45 = vpop.permute.xlu0 %11195  ;;  %v10635_v32 = vsel %vm4511_vm8, %v20781_v25, %v20795_v48  ;;  %v10638_v60 = vsel %vm4511_vm8, %v20811_v9, %v20813_v30 }
 0x4e7   : > { %v20999_v38 = vpop.f32.mrb[212].mxu1  ;;  %v10660_v48 = vsel %vm6910_vm12, %v10635_v32, 0 }
 0x4e8   : > { %16038 = vmatmul.mubr.msk.bf16.vlgmr.msra.gmra.mrb[64].mxu0 %vm7085_vm14, %v20883_v16  ;;  %v21006_v0 = vpop.f32.mrb[213].mxu1 }
 0x4e9   : > { %10381 = vmatpush1.bf16.msra.mxu0 %v10038_v21  ;;  %10412 = vmatprep.mubr.bf16.mxu0 %v17239_v6  ;;  %v7519_v39 = vpop.f32.mrb[214].mxu1  ;;  %v21015_v8 = vpop.permute.xlu1 %10633 }
 0x4ea   : > { %16745 = vmatprep.subr.bf16.mxu0 %v17244_v49  ;;  %v7520_v12 = vpop.f32.mrb[215].mxu1  ;;  %v21026_v3 = vpop.permute.xlu0 %11199 }
 0x4eb   : > { %v21013_v35 = vpop.f32.mrb[216].mxu0 }
 0x4ec   : > { %16040 = vmatmul.mubr.msk.bf16.vlgmr.msra.gmra.mrb[64].mxu1 %vm7085_vm14, %v20883_v16  ;;  %v21020_v47 = vpop.f32.mrb[217].mxu0 }
 0x4ed   : > { %10422 = vmatpush1.bf16.msra.mxu1 %v10044_v44  ;;  %10453 = vmatprep.mubr.bf16.mxu1 %v17239_v6  ;;  %v7560_v63 = vpop.f32.mrb[218].mxu0  ;;  %v21043_v10 = vpop.permute.xlu1 %11201  ;;  %v10637_v44 = vsel %vm4511_vm8, %v20797_v4, %v20811_v9 }
 0x4ee   : > { %16069 = vmatprep.subr.msk.bf16.mxu1 %vm6910_vm12, %v10636_v17  ;;  %v7561_v23 = vpop.f32.mrb[219].mxu0  ;;  %v21046_v39 = vpop.permute.xlu0 %11203  ;;  %v10640_v63 = vsel %vm4511_vm8, %v20831_v59, %v20833_v57  ;;  %v10666_v9 = vsel %vm6910_vm12, %v10637_v44, 0 }
 0x4ef   : > { %v21029_v18 = vpop.f32.mrb[216].mxu1 }
 0x4f0   : > { %16042 = vmatmul.mubr.msk.bf16.vlgmr.msra.gmra.mrb[68].mxu0 %vm7085_vm14, %v20883_v16  ;;  %v16719_v46 = vpop.f32.mrb[217].mxu1 }
 0x4f1   : > { %16746 = vmatpush3.bf16.msra.mxu0 %v10050_v26  ;;  %16747 = vmatprep.mubr.msk.bf16.mxu0 %vm17245_vm3, %v17244_v49  ;;  %v7600_v21 = vpop.f32.mrb[218].mxu1  ;;  %v21065_v46 = vpop.permute.xlu1 %11205 }
 0x4f2   : > { %16071 = vmatprep.subr.msk.bf16.mxu0 %vm6910_vm12, %v10638_v60  ;;  %v16720_v7 = vpop.f32.mrb[219].mxu1  ;;  %v10642_v21 = vsel %vm4511_vm8, %v20855_v55, %v20857_v29 }
 0x4f3   : > { %v7703_v1 = vpop.f32.mrb[220].mxu0 }
 0x4f4   : > { %v21049_v12 = vadd.f32 %v7703_v1, %v20842_v19  ;;  %v7705_v25 = vpop.f32.mrb[221].mxu0  ;;  %16044 = vmatmul.mubr.msk.bf16.vlgmr.msra.gmra.mrb[68].mxu1 %vm7085_vm14, %v20883_v16 }
 0x4f5   : > { %v21058_v17 = vadd.f32 %v7705_v25, %v20847_v50  ;;  %10723 = vmatpush1.bf16.msra.mxu1 %v10660_v48  ;;  %10754 = vmatprep.mubr.bf16.mxu1 %v17239_v6  ;;  %v7707_v19 = vpop.f32.mrb[222].mxu0  ;;  %v10639_v50 = vsel %vm4511_vm8, %v20813_v30, %v20831_v59  ;;  %v10641_v48 = vsel %vm4511_vm8, %v20833_v57, %v20855_v55 }
 0x4f6   : > { %16073 = vmatprep.subr.msk.bf16.mxu1 %vm6910_vm12, %v10640_v63  ;;  %v7708_v26 = vpop.f32.mrb[223].mxu0  ;;  %v10672_v25 = vsel %vm6910_vm12, %v10639_v50, 0  ;;  %v10644_v63 = vsel %vm4511_vm8, %v20876_v27, %v20878_v58 }
 0x4f7   : > { %v7744_v23 = vpop.f32.mrb[220].mxu1 }
 0x4f8   : > { %v21068_v32 = vadd.f32 %v7744_v23, %v20863_v28  ;;  %v7746_v4 = vpop.f32.mrb[221].mxu1  ;;  %16748 = vmatmul.mubr.msk.bf16.vlgmr.msra.gmra.mrb[72].mxu0 %vm7085_vm14, %v20883_v16  ;;  %v21085_v28 = vld [vmem:[%s23511_s4 + $0x18] sm:$0xf]  ;;  %v21088_v16 = vpop.permute.xlu0 %11207 }
 0x4f9   : > { %v21077_v60 = vadd.f32 %v7746_v4, %v20868_v62  ;;  %10764 = vmatpush1.bf16.msra.mxu0 %v10666_v9  ;;  %10795 = vmatprep.mubr.bf16.mxu0 %v17239_v6  ;;  %v7748_v30 = vpop.f32.mrb[222].mxu1  ;;  %v10643_v9 = vsel %vm4511_vm8, %v20857_v29, %v20876_v27 }
 0x4fa   : > { %16075 = vmatprep.subr.msk.bf16.mxu0 %vm6910_vm12, %v10642_v21  ;;  %v7749_v62 = vpop.f32.mrb[223].mxu1  ;;  %v10646_v21 = vsel %vm4511_vm8, %v20900_v40, %v20902_v33  ;;  %v10684_v27 = vsel %vm6910_vm12, %v10643_v9, 0 }
 0x4fb   : > { %v7785_v59 = vpop.f32.mrb[224].mxu0 }
 0x4fc   : > { %v21092_v1 = vadd.f32 %v7785_v59, %v20887_v54  ;;  %v7787_v7 = vpop.f32.mrb[225].mxu0  ;;  %16070 = vmatmul.mubr.msk.bf16.vlgmr.msra.gmra.mrb[72].mxu1 %vm7085_vm14, %v21085_v28  ;;  %v21107_v54 = vpop.permute.xlu1 %11209 }
 0x4fd   : > { %v21101_v44 = vadd.f32 %v7787_v7, %v20892_v20  ;;  %10805 = vmatpush1.bf16.msra.mxu1 %v10672_v25  ;;  %10836 = vmatprep.mubr.bf16.mxu1 %v17239_v6  ;;  %v7789_v19 = vpop.f32.mrb[226].mxu0  ;;  %v21110_v4 = vpop.permute.xlu0 %11211  ;;  %v10678_v20 = vsel %vm6910_vm12, %v10641_v48, 0  ;;  %v10648_v48 = vsel %vm4511_vm8, %v20919_v24, %v20921_v42 }
 0x4fe   : > { %16077 = vmatprep.subr.msk.bf16.mxu1 %vm6910_vm12, %v10644_v63  ;;  %v7790_v26 = vpop.f32.mrb[227].mxu0 }
 0x4ff   : > { %v7826_v23 = vpop.f32.mrb[224].mxu1 }
 0x500   : > { %v21113_v57 = vadd.f32 %v7826_v23, %v20906_v52  ;;  %v7828_v55 = vpop.f32.mrb[225].mxu1  ;;  %16072 = vmatmul.mubr.msk.bf16.vlgmr.msra.gmra.mrb[76].mxu0 %vm7085_vm14, %v21085_v28  ;;  %v21129_v62 = vpop.permute.xlu1 %11213 }
 0x501   : > { %v21122_v50 = vadd.f32 %v7828_v55, %v20911_v51  ;;  %10846 = vmatpush1.bf16.msra.mxu0 %v10678_v20  ;;  %10877 = vmatprep.mubr.bf16.mxu0 %v17239_v6  ;;  %v7830_v52 = vpop.f32.mrb[226].mxu1  ;;  %v10645_v51 = vsel %vm4511_vm8, %v20878_v58, %v20900_v40  ;;  %v10650_v20 = vsel %vm4511_vm8, %v20938_v11, %v20940_v41 }
 0x502   : > { %16079 = vmatprep.subr.msk.bf16.mxu0 %vm6910_vm12, %v10646_v21  ;;  %v7831_v59 = vpop.f32.mrb[227].mxu1  ;;  %v10690_v40 = vsel %vm6910_vm12, %v10645_v51, 0 }
 0x503   : > { %v7867_v30 = vpop.f32.mrb[228].mxu0  ;;  %v10649_v59 = vsel %vm4511_vm8, %v20921_v42, %v20938_v11 }
 0x504   : > { %v21132_v7 = vadd.f32 %v7867_v30, %v20925_v31  ;;  %v7869_v29 = vpop.f32.mrb[229].mxu0  ;;  %16074 = vmatmul.mubr.msk.bf16.vlgmr.msra.gmra.mrb[76].mxu1 %vm7085_vm14, %v21085_v28  ;;  %v21147_v31 = vpop.permute.xlu0 %11215  ;;  %v10702_v11 = vsel %vm6910_vm12, %v10649_v59, 0 }
 0x505   : > { %v21141_v25 = vadd.f32 %v7869_v29, %v20930_v15  ;;  %10887 = vmatpush1.bf16.msra.mxu1 %v10684_v27  ;;  %10918 = vmatprep.mubr.bf16.mxu1 %v17239_v6  ;;  %v7871_v63 = vpop.f32.mrb[230].mxu0  ;;  %v10647_v15 = vsel %vm4511_vm8, %v20902_v33, %v20919_v24  ;;  %v10652_v27 = vsel %vm4511_vm8, %v20957_v36, %v20959_v37 }
 0x506   : > { %16081 = vmatprep.subr.msk.bf16.mxu1 %vm6910_vm12, %v10648_v48  ;;  %v7872_v23 = vpop.f32.mrb[231].mxu0 }
 0x507   : > { %v7908_v19 = vpop.f32.mrb[228].mxu1 }
 0x508   : > { %v21151_v26 = vadd.f32 %v7908_v19, %v20944_v53  ;;  %v7910_v58 = vpop.f32.mrb[229].mxu1  ;;  %16076 = vmatmul.mubr.msk.bf16.vlgmr.msra.gmra.mrb[80].mxu0 %vm7085_vm14, %v21085_v28  ;;  %v21166_v53 = vpop.permute.xlu1 %11217 }
 0x509   : > { %v21160_v55 = vadd.f32 %v7910_v58, %v20949_v34  ;;  %10928 = vmatpush1.bf16.msra.mxu0 %v10690_v40  ;;  %10959 = vmatprep.mubr.bf16.mxu0 %v17239_v6  ;;  %v7912_v9 = vpop.f32.mrb[230].mxu1  ;;  %v21169_v30 = vpop.permute.xlu0 %11219  ;;  %v10696_v34 = vsel %vm6910_vm12, %v10647_v15, 0  ;;  %v10654_v58 = vsel %vm4511_vm8, %v20976_v43, %v20980_v56 }
 0x50a   : > { %16083 = vmatprep.subr.msk.bf16.mxu0 %vm6910_vm12, %v10650_v20  ;;  %v7913_v52 = vpop.f32.mrb[231].mxu1 }
 0x50b   : > { %v7949_v21 = vpop.f32.mrb[232].mxu0 }
 0x50c   : > { %v21172_v33 = vadd.f32 %v7949_v21, %v20963_v13  ;;  %v7951_v24 = vpop.f32.mrb[233].mxu0  ;;  %16078 = vmatmul.mubr.msk.bf16.vlgmr.msra.gmra.mrb[80].mxu1 %vm7085_vm14, %v21085_v28  ;;  %v21188_v63 = vpop.permute.xlu1 %11221 }
 0x50d   : > { %v21181_v29 = vadd.f32 %v7951_v24, %v20968_v2  ;;  %10969 = vmatpush1.bf16.msra.mxu1 %v10696_v34  ;;  %11000 = vmatprep.mubr.bf16.mxu1 %v17239_v6  ;;  %v7953_v13 = vpop.f32.mrb[234].mxu0  ;;  %v10651_v2 = vsel %vm4511_vm8, %v20940_v41, %v20957_v36 }
 0x50e   : > { %16085 = vmatprep.subr.msk.bf16.mxu1 %vm6910_vm12, %v10652_v27  ;;  %v7954_v48 = vpop.f32.mrb[235].mxu0  ;;  %v10708_v36 = vsel %vm6910_vm12, %v10651_v2, 0 }
 0x50f   : > { %v7990_v51 = vpop.f32.mrb[232].mxu1 }
 0x510   : > { %v21191_v19 = vadd.f32 %v7990_v51, %v20982_v14  ;;  %v7992_v42 = vpop.f32.mrb[233].mxu1  ;;  %16080 = vmatmul.mubr.msk.bf16.vlgmr.msra.gmra.mrb[84].mxu0 %vm7085_vm14, %v21085_v28  ;;  %v21206_v14 = vpop.permute.xlu0 %11223  ;;  %v11240_v51 = vsel %vm5221_vm9, %v20997_v61, %v21026_v3 }
 0x511   : > { %v21200_v23 = vadd.f32 %v7992_v42, %v20987_v22  ;;  %11010 = vmatpush1.bf16.msra.mxu0 %v10702_v11  ;;  %11041 = vmatprep.mubr.bf16.mxu0 %v17239_v6  ;;  %v7994_v40 = vpop.f32.mrb[234].mxu1  ;;  %v10653_v22 = vsel %vm4511_vm8, %v20959_v37, %v20976_v43  ;;  %v21222_v52 = vpop.permute.xlu1 %11225  ;;  %v10655_v43 = vsel %vm4511_vm8, %v20980_v56, %v21015_v8 }
 0x512   : > { %16087 = vmatprep.subr.msk.bf16.mxu0 %vm6910_vm12, %v10654_v58  ;;  %v7995_v20 = vpop.f32.mrb[235].mxu1  ;;  %v10714_v37 = vsel %vm6910_vm12, %v10653_v22, 0  ;;  %v10720_v11 = vsel %vm6910_vm12, %v10655_v43, 0  ;;  %v11242_v58 = vsel %vm5221_vm9, %v21043_v10, %v21046_v39  ;;  %v11243_v43 = vsel %vm5221_vm9, %v21046_v39, %v21065_v46 }
 0x513   : > { %v8031_v15 = vpop.f32.mrb[236].mxu0 }
 0x514   : > { %v21210_v9 = vadd.f32 %v8031_v15, %v20999_v38  ;;  %v8033_v41 = vpop.f32.mrb[237].mxu0  ;;  %16082 = vmatmul.mubr.msk.bf16.vlgmr.msra.gmra.mrb[84].mxu1 %vm7085_vm14, %v21085_v28  ;;  %v21225_v59 = vpop.permute.xlu0 %11227 }
 0x515   : > { %v21219_v21 = vadd.f32 %v8033_v41, %v21006_v0  ;;  %11051 = vmatpush1.bf16.msra.mxu1 %v10708_v36  ;;  %11082 = vmatprep.mubr.bf16.mxu1 %v17239_v6  ;;  %v8035_v38 = vpop.f32.mrb[238].mxu0  ;;  %v21245_v2 = vpop.permute.xlu1 %11229 }
 0x516   : > { %16751 = vmatprep.subr.bf16.mxu1 %v17244_v49  ;;  %v8036_v34 = vpop.f32.mrb[239].mxu0  ;;  %v11244_v38 = vsel %vm5221_vm9, %v21065_v46, %v21088_v16 }
 0x517   : > { %v8072_v24 = vpop.f32.mrb[236].mxu1 }
 0x518   : > { %v21228_v27 = vadd.f32 %v8072_v24, %v21013_v35  ;;  %v8074_v13 = vpop.f32.mrb[237].mxu1  ;;  %16084 = vmatmul.mubr.msk.bf16.vlgmr.msra.gmra.mrb[88].mxu0 %vm7085_vm14, %v21085_v28  ;;  %v21260_v40 = vpop.permute.xlu0 %11231 }
 0x519   : > { %v21237_v0 = vadd.f32 %v8074_v13, %v21020_v47  ;;  %11092 = vmatpush1.bf16.msra.mxu0 %v10714_v37  ;;  %11123 = vmatprep.mubr.bf16.mxu0 %v17239_v6  ;;  %v8076_v35 = vpop.f32.mrb[238].mxu1  ;;  %v11239_v47 = vsel %vm5221_vm9, %v21001_v45, %v20997_v61  ;;  %v11241_v45 = vsel %vm5221_vm9, %v21026_v3, %v21043_v10 }
 0x51a   : > { %16091 = vmatprep.subr.msk.bf16.mxu0 %vm6910_vm12, %v11240_v51  ;;  %v8077_v42 = vpop.f32.mrb[239].mxu1  ;;  %v11264_v41 = vsel %vm6910_vm12, %v11239_v47, 0  ;;  %v11246_v35 = vsel %vm5221_vm9, %v21107_v54, %v21110_v4 }
 0x51b   : > { %v8113_v48 = vpop.f32.mrb[240].mxu0 }
 0x51c   : > { %v21248_v56 = vadd.f32 %v8113_v48, %v21029_v18  ;;  %16086 = vmatmul.mubr.msk.bf16.vlgmr.msra.gmra.mrb[88].mxu1 %vm7085_vm14, %v21085_v28  ;;  %v16725_v8 = vpop.f32.mrb[241].mxu0  ;;  %v21282_v37 = vpop.permute.xlu0 %11799 }
 0x51d   : > { %16752 = vmatpush3.bf16.msra.mxu1 %v10720_v11  ;;  %16753 = vmatprep.mubr.msk.bf16.mxu1 %vm17245_vm3, %v17244_v49  ;;  %v8116_v18 = vpop.f32.mrb[242].mxu0  ;;  %v11276_v11 = vsel %vm6910_vm12, %v11243_v43, 0  ;;  %v11245_v8 = vsel %vm5221_vm9, %v21088_v16, %v21107_v54 }
 0x51e   : > { %16093 = vmatprep.subr.msk.bf16.mxu1 %vm6910_vm12, %v11242_v58  ;;  %v16726_v20 = vpop.f32.mrb[243].mxu0  ;;  %v11248_v58 = vsel %vm5221_vm9, %v21129_v62, %v21147_v31 }
 0x51f   : > { %v8283_v15 = vpop.f32.mrb[240].mxu1 }
 0x520   : > { %v21265_v36 = vadd.f32 %v8283_v15, %v21049_v12  ;;  %v8285_v61 = vpop.f32.mrb[241].mxu1  ;;  %16088 = vmatmul.mubr.msk.bf16.vlgmr.msra.gmra.mrb[92].mxu0 %vm7085_vm14, %v21085_v28  ;;  %v21279_v12 = vpop.permute.xlu1 %11233 }
 0x521   : > { %v21273_v22 = vadd.f32 %v8285_v61, %v21058_v17  ;;  %11327 = vmatpush1.bf16.msra.mxu0 %v11264_v41  ;;  %11358 = vmatprep.mubr.bf16.mxu0 %v17239_v6  ;;  %v8287_v24 = vpop.f32.mrb[242].mxu1  ;;  %v11270_v17 = vsel %vm6910_vm12, %v11241_v45, 0  ;;  %v21327_v18 = vpop.permute.xlu0 %11235  ;;  %v11282_v41 = vsel %vm6910_vm12, %v11245_v8, 0  ;;  %v11247_v61 = vsel %vm5221_vm9, %v21110_v4, %v21129_v62 }
 0x522   : > { %16095 = vmatprep.subr.msk.bf16.mxu0 %vm6910_vm12, %v11244_v38  ;;  %v8288_v13 = vpop.f32.mrb[243].mxu1  ;;  %v11250_v38 = vsel %vm5221_vm9, %v21166_v53, %v21169_v30  ;;  %v11288_v62 = vsel %vm6910_vm12, %v11247_v61, 0  ;;  %v11254_v8 = vsel %vm5221_vm9, %v21222_v52, %v21225_v59 }
 0x523   : > { %v8324_v34 = vpop.f32.mrb[244].mxu0 }
 0x524   : > { %v21285_v3 = vadd.f32 %v8324_v34, %v21068_v32  ;;  %v8326_v10 = vpop.f32.mrb[245].mxu0  ;;  %16754 = vmatmul.mubr.msk.bf16.vlgmr.msra.gmra.mrb[92].mxu1 %vm7085_vm14, %v21085_v28  ;;  %v21302_v32 = vld [vmem:[%s23511_s4 + $0x1c] sm:$0xf]  ;;  %v21306_v46 = vpop.permute.xlu1 %11237 }
 0x525   : > { %v21294_v51 = vadd.f32 %v8326_v10, %v21077_v60  ;;  %11368 = vmatpush1.bf16.msra.mxu1 %v11270_v17  ;;  %11399 = vmatprep.mubr.bf16.mxu1 %v17239_v6  ;;  %v8328_v28 = vpop.f32.mrb[246].mxu0  ;;  %v21349_v10 = vpop.permute.xlu0 %11803  ;;  %v11249_v17 = vsel %vm5221_vm9, %v21147_v31, %v21166_v53  ;;  %v11251_v53 = vsel %vm5221_vm9, %v21169_v30, %v21188_v63 }
 0x526   : > { %16097 = vmatprep.subr.msk.bf16.mxu1 %vm6910_vm12, %v11246_v35  ;;  %v8329_v39 = vpop.f32.mrb[247].mxu0  ;;  %v11252_v35 = vsel %vm5221_vm9, %v21188_v63, %v21206_v14  ;;  %v11253_v63 = vsel %vm5221_vm9, %v21206_v14, %v21222_v52 }
 0x527   : > { %v8365_v48 = vpop.f32.mrb[244].mxu1  ;;  %v11306_v52 = vsel %vm6910_vm12, %v11253_v63, 0 }
 0x528   : > { %v21309_v60 = vadd.f32 %v8365_v48, %v21092_v1  ;;  %v8367_v42 = vpop.f32.mrb[245].mxu1  ;;  %16092 = vmatmul.mubr.msk.bf16.vlgmr.msra.gmra.mrb[96].mxu0 %vm7085_vm14, %v21302_v32  ;;  %v12401_v1 = vld [vmem:[%s23512_s5] sm:$0xff] }
 0x529   : > { %v21318_v47 = vadd.f32 %v8367_v42, %v21101_v44  ;;  %11409 = vmatpush1.bf16.msra.mxu0 %v11276_v11  ;;  %11440 = vmatprep.mubr.bf16.mxu0 %v17239_v6  ;;  %v8369_v15 = vpop.f32.mrb[246].mxu1 }
 0x52a   : > { %16099 = vmatprep.subr.msk.bf16.mxu0 %vm6910_vm12, %v11248_v58  ;;  %12404 = vperm.xlu0 %16875, %v12401_v1   ;;  %v8370_v44 = vpop.f32.mrb[247].mxu1 }
 0x52b   : > { %v8406_v16 = vpop.f32.mrb[248].mxu0 }
 0x52c   : > { %v21331_v54 = vadd.f32 %v8406_v16, %v21113_v57  ;;  %v8408_v20 = vpop.f32.mrb[249].mxu0  ;;  %16094 = vmatmul.mubr.msk.bf16.vlgmr.msra.gmra.mrb[96].mxu1 %vm7085_vm14, %v21302_v32  ;;  %v21346_v57 = vpop.permute.xlu1 %11801 }
 0x52d   : > { %v21340_v45 = vadd.f32 %v8408_v20, %v21122_v50  ;;  %11450 = vmatpush1.bf16.msra.mxu1 %v11282_v41  ;;  %11481 = vmatprep.mubr.bf16.mxu1 %v17239_v6  ;;  %v8410_v24 = vpop.f32.mrb[250].mxu0  ;;  %v11256_v20 = vsel %vm5221_vm9, %v21245_v2, %v21260_v40  ;;  %v11843_v63 = vsel %vm5931_vm10, %v21282_v37, %v21346_v57 }
 0x52e   : > { %16101 = vmatprep.subr.msk.bf16.mxu1 %vm6910_vm12, %v11250_v38  ;;  %v8411_v13 = vpop.f32.mrb[251].mxu0  ;;  %v11868_v37 = vsel %vm6910_vm12, %v11843_v63, 0 }
 0x52f   : > { %v8447_v34 = vpop.f32.mrb[248].mxu1 }
 0x530   : > { %v21352_v4 = vadd.f32 %v8447_v34, %v21132_v7  ;;  %v8449_v50 = vpop.f32.mrb[249].mxu1  ;;  %16096 = vmatmul.mubr.msk.bf16.vlgmr.msra.gmra.mrb[100].mxu0 %vm7085_vm14, %v21302_v32  ;;  %v21368_v39 = vpop.permute.xlu1 %11805  ;;  %v11255_v34 = vsel %vm5221_vm9, %v21225_v59, %v21245_v2  ;;  %v11257_v59 = vsel %vm5221_vm9, %v21260_v40, %v21279_v12  ;;  %v11259_v40 = vsel %vm5221_vm9, %v21327_v18, %v21306_v46 }
 0x531   : > { %v21361_v43 = vadd.f32 %v8449_v50, %v21141_v25  ;;  %11491 = vmatpush1.bf16.msra.mxu0 %v11288_v62  ;;  %11522 = vmatprep.mubr.bf16.mxu0 %v17239_v6  ;;  %v8451_v7 = vpop.f32.mrb[250].mxu1  ;;  %v11294_v25 = vsel %vm6910_vm12, %v11249_v17, 0  ;;  %v11258_v50 = vsel %vm5221_vm9, %v21279_v12, %v21327_v18 }
 0x532   : > { %16103 = vmatprep.subr.msk.bf16.mxu0 %vm6910_vm12, %v11252_v35  ;;  %v8452_v48 = vpop.f32.mrb[251].mxu1 }
 0x533   : > { %v8488_v28 = vpop.f32.mrb[252].mxu0 }
 0x534   : > { %v21371_v42 = vadd.f32 %v8488_v28, %v21151_v26  ;;  %v8490_v31 = vpop.f32.mrb[253].mxu0  ;;  %16098 = vmatmul.mubr.msk.bf16.vlgmr.msra.gmra.mrb[100].mxu1 %vm7085_vm14, %v21302_v32  ;;  %v21386_v26 = vpop.permute.xlu0 %11807 }
 0x535   : > { %v21380_v11 = vadd.f32 %v8490_v31, %v21160_v55  ;;  %11532 = vmatpush1.bf16.msra.mxu1 %v11294_v25  ;;  %11563 = vmatprep.mubr.bf16.mxu1 %v17239_v6  ;;  %v8492_v58 = vpop.f32.mrb[254].mxu0  ;;  %v11300_v55 = vsel %vm6910_vm12, %v11251_v53, 0 }
 0x536   : > { %16105 = vmatprep.subr.msk.bf16.mxu1 %vm6910_vm12, %v11254_v8  ;;  %v8493_v15 = vpop.f32.mrb[255].mxu0  ;;  %v11844_v58 = vsel %vm5931_vm10, %v21346_v57, %v21349_v10  ;;  %v11845_v57 = vsel %vm5931_vm10, %v21349_v10, %v21368_v39 }
 0x537   : > { %v8529_v1 = vpop.f32.mrb[252].mxu1 }
 0x538   : > { %v21390_v16 = vadd.f32 %v8529_v1, %v21172_v33  ;;  %v8531_v30 = vpop.f32.mrb[253].mxu1  ;;  %16100 = vmatmul.mubr.msk.bf16.vlgmr.msra.gmra.mrb[104].mxu0 %vm7085_vm14, %v21302_v32  ;;  %v21405_v33 = vpop.permute.xlu1 %11809 }
 0x539   : > { %v21399_v44 = vadd.f32 %v8531_v30, %v21181_v29  ;;  %11573 = vmatpush1.bf16.msra.mxu0 %v11300_v55  ;;  %11604 = vmatprep.mubr.bf16.mxu0 %v17239_v6  ;;  %v8533_v41 = vpop.f32.mrb[254].mxu1  ;;  %v21408_v24 = vpop.permute.xlu0 %11811 }
 0x53a   : > { %16107 = vmatprep.subr.msk.bf16.mxu0 %vm6910_vm12, %v11256_v20  ;;  %v8534_v38 = vpop.f32.mrb[255].mxu1  ;;  %v11846_v20 = vsel %vm5931_vm10, %v21368_v39, %v21386_v26 }
 0x53b   : > { %v8570_v61 = vpop.f32.mrb[0].mxu0 }
 0x53c   : > { %v21411_v14 = vadd.f32 %v8570_v61, %v21191_v19  ;;  %v8572_v29 = vpop.f32.mrb[1].mxu0  ;;  %16102 = vmatmul.mubr.msk.bf16.vlgmr.msra.gmra.mrb[104].mxu1 %vm7085_vm14, %v21302_v32  ;;  %v21436_v2 = vpop.permute.xlu1 %11813 }
 0x53d   : > { %v21420_v13 = vadd.f32 %v8572_v29, %v21200_v23  ;;  %11614 = vmatpush1.bf16.msra.mxu1 %v11306_v52  ;;  %v8574_v19 = vpop.f32.mrb[2].mxu0  ;;  %11645 = vmatprep.mubr.bf16.mxu1 %v17239_v6  ;;  %v11312_v23 = vsel %vm6910_vm12, %v11255_v34, 0 }
 0x53e   : > { %16109 = vmatprep.subr.msk.bf16.mxu1 %vm6910_vm12, %v11258_v50  ;;  %v8575_v62 = vpop.f32.mrb[3].mxu0 }
 0x53f   : > { %v8611_v17 = vpop.f32.mrb[0].mxu1 }
 0x540   : > { %v21428_v35 = vadd.f32 %v8611_v17, %v21210_v9  ;;  %v8613_v7 = vpop.f32.mrb[1].mxu1  ;;  %16104 = vmatmul.mubr.msk.bf16.vlgmr.msra.gmra.mrb[108].mxu0 %vm7085_vm14, %v21302_v32  ;;  %v21442_v9 = vpop.permute.xlu0 %11815 }
 0x541   : > { %v21439_v28 = vadd.f32 %v8613_v7, %v21219_v21  ;;  %11655 = vmatpush1.bf16.msra.mxu0 %v11312_v23  ;;  %v8615_v48 = vpop.f32.mrb[2].mxu1  ;;  %11686 = vmatprep.mubr.bf16.mxu0 %v17239_v6  ;;  %v11318_v21 = vsel %vm6910_vm12, %v11257_v59, 0  ;;  %v21462_v15 = vpop.permute.xlu1 %11817  ;;  %v11847_v7 = vsel %vm5931_vm10, %v21386_v26, %v21405_v33  ;;  %v11850_v59 = vsel %vm5931_vm10, %v21436_v2, %v21442_v9 }
 0x542   : > { %v8616_v31 = vpop.f32.mrb[3].mxu1  ;;  %16757 = vmatprep.subr.bf16.mxu0 %v17244_v49 }
 0x543   : > { %v8652_v25 = vpop.f32.mrb[4].mxu0 }
 0x544   : > { %v21446_v53 = vadd.f32 %v8652_v25, %v21228_v27  ;;  %v8654_v8 = vpop.f32.mrb[5].mxu0  ;;  %16106 = vmatmul.mubr.msk.bf16.vlgmr.msra.gmra.mrb[108].mxu1 %vm7085_vm14, %v21302_v32  ;;  %v21464_v55 = vpop.permute.xlu0 %11819 }
 0x545   : > { %v21455_v12 = vadd.f32 %v8654_v8, %v21237_v0  ;;  %11696 = vmatpush1.bf16.msra.mxu1 %v11318_v21  ;;  %v8656_v27 = vpop.f32.mrb[6].mxu0  ;;  %11727 = vmatprep.mubr.bf16.mxu1 %v17239_v6  ;;  %v11324_v0 = vsel %vm6910_vm12, %v11259_v40, 0  ;;  %v11822_v52 = vpop.permute.xlu1 %11821  ;;  %v11880_v8 = vsel %vm6910_vm12, %v11847_v7, 0  ;;  %v11849_v21 = vsel %vm5931_vm10, %v21408_v24, %v21436_v2 }
 0x546   : > { %16113 = vmatprep.subr.msk.bf16.mxu1 %vm6910_vm12, %v11844_v58  ;;  %v8657_v1 = vpop.f32.mrb[7].mxu0  ;;  %v11852_v58 = vsel %vm5931_vm10, %v21462_v15, %v21464_v55 }
 0x547   : > { %v8693_v30 = vpop.f32.mrb[4].mxu1 }
 0x548   : > { %v21467_v46 = vadd.f32 %v8693_v30, %v21248_v56  ;;  %16108 = vmatmul.mubr.msk.bf16.vlgmr.msra.gmra.mrb[112].mxu0 %vm7085_vm14, %v21302_v32  ;;  %v16731_v18 = vpop.f32.mrb[5].mxu1  ;;  %v21497_v19 = vpop.permute.xlu0 %11823 }
 0x549   : > { %16758 = vmatpush3.bf16.msra.mxu0 %v11324_v0  ;;  %v8696_v41 = vpop.f32.mrb[6].mxu1  ;;  %16759 = vmatprep.mubr.msk.bf16.mxu0 %vm17245_vm3, %v17244_v49  ;;  %v11826_v26 = vpop.permute.xlu1 %11825  ;;  %v11854_v63 = vsel %vm5931_vm10, %v11822_v52, %v21497_v19 }
 0x54a   : > { %16115 = vmatprep.subr.msk.bf16.mxu0 %vm6910_vm12, %v11846_v20  ;;  %v16732_v56 = vpop.f32.mrb[7].mxu1 }
 0x54b   : > { %v8884_v61 = vpop.f32.mrb[8].mxu0 }
 0x54c   : > { %v21482_v38 = vadd.f32 %v8884_v61, %v21265_v36  ;;  %v8886_v29 = vpop.f32.mrb[9].mxu0  ;;  %16110 = vmatmul.mubr.msk.bf16.vlgmr.msra.gmra.mrb[112].mxu1 %vm7085_vm14, %v21302_v32  ;;  %v11848_v36 = vsel %vm5931_vm10, %v21405_v33, %v21408_v24  ;;  %v11851_v24 = vsel %vm5931_vm10, %v21442_v9, %v21462_v15  ;;  %v11853_v15 = vsel %vm5931_vm10, %v21464_v55, %v11822_v52 }
 0x54d   : > { %v21491_v34 = vadd.f32 %v8886_v29, %v21273_v22  ;;  %11931 = vmatpush1.bf16.msra.mxu1 %v11868_v37  ;;  %v8888_v50 = vpop.f32.mrb[10].mxu0  ;;  %11962 = vmatprep.mubr.bf16.mxu1 %v17239_v6  ;;  %v11874_v22 = vsel %vm6910_vm12, %v11845_v57, 0  ;;  %v11830_v2 = vpop.permute.xlu1 %11829  ;;  %v11855_v55 = vsel %vm5931_vm10, %v21497_v19, %v11826_v26 }
 0x54e   : > { %16117 = vmatprep.subr.msk.bf16.mxu1 %vm6910_vm12, %v11848_v36  ;;  %v8889_v62 = vpop.f32.mrb[11].mxu0 }
 0x54f   : > { %v8925_v17 = vpop.f32.mrb[8].mxu1 }
 0x550   : > { %v21501_v10 = vadd.f32 %v8925_v17, %v21285_v3  ;;  %v8927_v39 = vpop.f32.mrb[9].mxu1  ;;  %16760 = vmatmul.mubr.msk.bf16.vlgmr.msra.gmra.mrb[116].mxu0 %vm7085_vm14, %v21302_v32  ;;  %v21518_v3 = vld [vmem:[%s23511_s4 + $0x20] sm:$0xf] }
 0x551   : > { %v21510_v23 = vadd.f32 %v8927_v39, %v21294_v51  ;;  %11972 = vmatpush1.bf16.msra.mxu0 %v11874_v22  ;;  %v8929_v32 = vpop.f32.mrb[10].mxu1  ;;  %12003 = vmatprep.mubr.bf16.mxu0 %v17239_v6  ;;  %v11828_v51 = vpop.permute.xlu0 %11827 }
 0x552   : > { %16119 = vmatprep.subr.msk.bf16.mxu0 %vm6910_vm12, %v11850_v59  ;;  %v8930_v48 = vpop.f32.mrb[11].mxu1  ;;  %v11856_v37 = vsel %vm5931_vm10, %v11826_v26, %v11828_v51  ;;  %v11834_v36 = vpop.permute.xlu1 %11833  ;;  %v11857_v19 = vsel %vm5931_vm10, %v11828_v51, %v11830_v2 }
 0x553   : > { %v8966_v33 = vpop.f32.mrb[12].mxu0 }
 0x554   : > { %v21523_v31 = vadd.f32 %v8966_v33, %v21309_v60  ;;  %v8968_v25 = vpop.f32.mrb[13].mxu0  ;;  %16114 = vmatmul.mubr.msk.bf16.vlgmr.msra.gmra.mrb[116].mxu1 %vm7085_vm14, %v21518_v3 }
 0x555   : > { %v21532_v40 = vadd.f32 %v8968_v25, %v21318_v47  ;;  %12013 = vmatpush1.bf16.msra.mxu1 %v11880_v8  ;;  %v8970_v60 = vpop.f32.mrb[14].mxu0  ;;  %12044 = vmatprep.mubr.bf16.mxu1 %v17239_v6  ;;  %v11886_v47 = vsel %vm6910_vm12, %v11849_v21, 0  ;;  %v11832_v20 = vpop.permute.xlu0 %11831 }
 0x556   : > { %16121 = vmatprep.subr.msk.bf16.mxu1 %vm6910_vm12, %v11852_v58  ;;  %v8971_v27 = vpop.f32.mrb[15].mxu0  ;;  %v11858_v22 = vsel %vm5931_vm10, %v11830_v2, %v11832_v20  ;;  %v11838_v26 = vpop.permute.xlu1 %11837  ;;  %v11859_v51 = vsel %vm5931_vm10, %v11832_v20, %v11834_v36 }
 0x557   : > { %v9007_v1 = vpop.f32.mrb[12].mxu1 }
 0x558   : > { %v21540_v30 = vadd.f32 %v9007_v1, %v21331_v54  ;;  %v9009_v0 = vpop.f32.mrb[13].mxu1  ;;  %16116 = vmatmul.mubr.msk.bf16.vlgmr.msra.gmra.mrb[120].mxu0 %vm7085_vm14, %v21518_v3 }
 0x559   : > { %v21549_v18 = vadd.f32 %v9009_v0, %v21340_v45  ;;  %12054 = vmatpush1.bf16.msra.mxu0 %v11886_v47  ;;  %v9011_v54 = vpop.f32.mrb[14].mxu1  ;;  %12085 = vmatprep.mubr.bf16.mxu0 %v17239_v6  ;;  %v11892_v45 = vsel %vm6910_vm12, %v11851_v24, 0  ;;  %v11836_v62 = vpop.permute.xlu0 %11835 }
 0x55a   : > { %16123 = vmatprep.subr.msk.bf16.mxu0 %vm6910_vm12, %v11854_v63  ;;  %v9012_v41 = vpop.f32.mrb[15].mxu1  ;;  %v11860_v25 = vsel %vm5931_vm10, %v11834_v36, %v11836_v62  ;;  %v11861_v54 = vsel %vm5931_vm10, %v11836_v62, %v11838_v26 }
 0x55b   : > { %v9048_v56 = vpop.f32.mrb[16].mxu0 }
 0x55c   : > { %v21556_v61 = vadd.f32 %v9048_v56, %v21352_v4  ;;  %v9050_v9 = vpop.f32.mrb[17].mxu0  ;;  %16118 = vmatmul.mubr.msk.bf16.vlgmr.msra.gmra.mrb[120].mxu1 %vm7085_vm14, %v21518_v3  ;;  %v11842_v56 = vpop.permute.xlu1 %11841 }
 0x55d   : > { %v21564_v29 = vadd.f32 %v9050_v9, %v21361_v43  ;;  %12095 = vmatpush1.bf16.msra.mxu1 %v11892_v45  ;;  %v9052_v57 = vpop.f32.mrb[18].mxu0  ;;  %12126 = vmatprep.mubr.bf16.mxu1 %v17239_v6  ;;  %v11898_v43 = vsel %vm6910_vm12, %v11853_v15, 0 }
 0x55e   : > { %16125 = vmatprep.subr.msk.bf16.mxu1 %vm6910_vm12, %v11856_v37  ;;  %v9053_v4 = vpop.f32.mrb[19].mxu0  ;;  %v11922_v37 = vsel %vm6910_vm12, %v11861_v54, 0 }
 0x55f   : > { %v9089_v50 = vpop.f32.mrb[16].mxu1 }
 0x560   : > { %v21570_v17 = vadd.f32 %v9089_v50, %v21371_v42  ;;  %v9091_v39 = vpop.f32.mrb[17].mxu1  ;;  %16120 = vmatmul.mubr.msk.bf16.vlgmr.msra.gmra.mrb[124].mxu0 %vm7085_vm14, %v21518_v3 }
 0x561   : > { %v21578_v52 = vadd.f32 %v9091_v39, %v21380_v11  ;;  %12136 = vmatpush1.bf16.msra.mxu0 %v11898_v43  ;;  %v9093_v7 = vpop.f32.mrb[18].mxu1  ;;  %12167 = vmatprep.mubr.bf16.mxu0 %v17239_v6  ;;  %v11904_v11 = vsel %vm6910_vm12, %v11855_v55, 0 }
 0x562   : > { %16127 = vmatprep.subr.msk.bf16.mxu0 %vm6910_vm12, %v11858_v22  ;;  %v9094_v42 = vpop.f32.mrb[19].mxu1 }
 0x563   : > { %v9130_v59 = vpop.f32.mrb[20].mxu0 }
 0x564   : > { %v21584_v32 = vadd.f32 %v9130_v59, %v21390_v16  ;;  %v9132_v48 = vpop.f32.mrb[21].mxu0  ;;  %16122 = vmatmul.mubr.msk.bf16.vlgmr.msra.gmra.mrb[124].mxu1 %vm7085_vm14, %v21518_v3  ;;  %v11840_v16 = vpop.permute.xlu0 %11839 }
 0x565   : > { %v21591_v33 = vadd.f32 %v9132_v48, %v21399_v44  ;;  %12177 = vmatpush1.bf16.msra.mxu1 %v11904_v11  ;;  %v9134_v8 = vpop.f32.mrb[22].mxu0  ;;  %12208 = vmatprep.mubr.bf16.mxu1 %v17239_v6  ;;  %v11910_v44 = vsel %vm6910_vm12, %v11857_v19, 0  ;;  %v11862_v0 = vsel %vm5931_vm10, %v11838_v26, %v11840_v16 }
 0x566   : > { %16129 = vmatprep.subr.msk.bf16.mxu1 %vm6910_vm12, %v11860_v25  ;;  %v9135_v21 = vpop.f32.mrb[23].mxu0 }
 0x567   : > { %v9171_v58 = vpop.f32.mrb[20].mxu1 }
 0x568   : > { %v21597_v60 = vadd.f32 %v9171_v58, %v21411_v14  ;;  %v9173_v27 = vpop.f32.mrb[21].mxu1  ;;  %16124 = vmatmul.mubr.msk.bf16.vlgmr.msra.gmra.mrb[128].mxu0 %vm7085_vm14, %v21518_v3 }
 0x569   : > { %v21604_v1 = vadd.f32 %v9173_v27, %v21420_v13  ;;  %12218 = vmatpush1.bf16.msra.mxu0 %v11910_v44  ;;  %v9175_v47 = vpop.f32.mrb[22].mxu1  ;;  %12249 = vmatprep.mubr.bf16.mxu0 %v17239_v6  ;;  %v11916_v13 = vsel %vm6910_vm12, %v11859_v51, 0 }
 0x56a   : > { %16131 = vmatprep.subr.msk.bf16.mxu0 %vm6910_vm12, %v11862_v0  ;;  %v9176_v14 = vpop.f32.mrb[23].mxu1 }
 0x56b   : > { %v9212_v24 = vpop.f32.mrb[24].mxu0 }
 0x56c   : > { %v21610_v2 = vadd.f32 %v9212_v24, %v21428_v35  ;;  %v9214_v63 = vpop.f32.mrb[25].mxu0  ;;  %16126 = vmatmul.mubr.msk.bf16.vlgmr.msra.gmra.mrb[128].mxu1 %vm7085_vm14, %v21518_v3 }
 0x56d   : > { %v21617_v20 = vadd.f32 %v9214_v63, %v21439_v28  ;;  %12259 = vmatpush1.bf16.msra.mxu1 %v11916_v13  ;;  %v9216_v41 = vpop.f32.mrb[26].mxu0  ;;  %12290 = vmatprep.mubr.bf16.mxu1 %v17239_v6  ;;  %v11863_v28 = vsel %vm5931_vm10, %v11840_v16, %v11842_v56 }
 0x56e   : > { %v9217_v9 = vpop.f32.mrb[27].mxu0  ;;  %16763 = vmatprep.subr.bf16.mxu1 %v17244_v49 }
 0x56f   : > { %v9253_v35 = vpop.f32.mrb[24].mxu1 }
 0x570   : > { %v21622_v45 = vadd.f32 %v9253_v35, %v21446_v53  ;;  %v9255_v15 = vpop.f32.mrb[25].mxu1  ;;  %16128 = vmatmul.mubr.msk.bf16.vlgmr.msra.gmra.mrb[132].mxu0 %vm7085_vm14, %v21518_v3  ;;  %v11928_v53 = vsel %vm6910_vm12, %v11863_v28, 0 }
 0x571   : > { %v21629_v57 = vadd.f32 %v9255_v15, %v21455_v12  ;;  %12300 = vmatpush1.bf16.msra.mxu0 %v11922_v37  ;;  %v9257_v4 = vpop.f32.mrb[26].mxu1  ;;  %12331 = vmatprep.mubr.bf16.mxu0 %v17239_v6 }
 0x572   : > { %v9258_v36 = vpop.f32.mrb[27].mxu1 }
 0x573   : > { %v9294_v50 = vpop.f32.mrb[28].mxu0 }
 0x574   : > { %v21634_v62 = vadd.f32 %v9294_v50, %v21467_v46  ;;  %16130 = vmatmul.mubr.msk.bf16.vlgmr.msra.gmra.mrb[132].mxu1 %vm7085_vm14, %v21518_v3  ;;  %v16737_v39 = vpop.f32.mrb[29].mxu0 }
 0x575   : > { %16764 = vmatpush3.bf16.msra.mxu1 %v11928_v53  ;;  %v9297_v43 = vpop.f32.mrb[30].mxu0  ;;  %16765 = vmatprep.mubr.msk.bf16.mxu1 %vm17245_vm3, %v17244_v49 }
 0x576   : > { %v16738_v12 = vpop.f32.mrb[31].mxu0 }
 0x577   : > { %v9485_v55 = vpop.f32.mrb[28].mxu1 }
 0x578   : > { %v21641_v6 = vadd.f32 %v9485_v55, %v21482_v38  ;;  %v9487_v22 = vpop.f32.mrb[29].mxu1  ;;  %16132 = vmatmul.mubr.msk.bf16.vlgmr.msra.gmra.mrb[136].mxu0 %vm7085_vm14, %v21518_v3 }
 0x579   : > { %v21646_v46 = vadd.f32 %v9487_v22, %v21491_v34  ;;  %v9489_v7 = vpop.f32.mrb[30].mxu1 }
 0x57a   : > { %v9490_v42 = vpop.f32.mrb[31].mxu1 }
 0x57b   : > { %v9526_v59 = vpop.f32.mrb[32].mxu0 }
 0x57c   : > { %v21649_v48 = vadd.f32 %v9526_v59, %v21501_v10  ;;  %v9528_v11 = vpop.f32.mrb[33].mxu0  ;;  %16766 = vmatmul.mubr.msk.bf16.vlgmr.msra.gmra.mrb[136].mxu1 %vm7085_vm14, %v21518_v3  ;;  %vm23266_vm14 = vmand %vm14630_vm11, %vm14631_vm13 }
 0x57d   : > { %v21654_v38 = vadd.f32 %v9528_v11, %v21510_v23  ;;  %v9530_v19 = vpop.f32.mrb[34].mxu0 }
 0x57e   : > { %v9531_v26 = vpop.f32.mrb[35].mxu0 }
 0x57f   : > { %v9567_v25 = vpop.f32.mrb[32].mxu1 }
 0x580   : > { %v21657_v8 = vadd.f32 %v9567_v25, %v21523_v31  ;;  %v9569_v34 = vpop.f32.mrb[33].mxu1 }
 0x581   : > { %v21660_v16 = vadd.f32 %v9569_v34, %v21532_v40  ;;  %v9571_v21 = vpop.f32.mrb[34].mxu1 }
 0x582   : > { %v9572_v10 = vpop.f32.mrb[35].mxu1 }
 0x583   : > { %v9608_v58 = vpop.f32.mrb[36].mxu0 }
 0x584   : > { %v21663_v27 = vadd.f32 %v9608_v58, %v21540_v30  ;;  %v9610_v3 = vpop.f32.mrb[37].mxu0 }
 0x585   : > { %v21666_v23 = vadd.f32 %v9610_v3, %v21549_v18  ;;  %v9612_v44 = vpop.f32.mrb[38].mxu0 }
 0x586   : > { %v9613_v51 = vpop.f32.mrb[39].mxu0 }
 0x587   : > { %v9649_v0 = vpop.f32.mrb[36].mxu1 }
 0x588   : > { %v21669_v31 = vadd.f32 %v9649_v0, %v21556_v61  ;;  %v9651_v47 = vpop.f32.mrb[37].mxu1 }
 0x589   : > { %v21672_v40 = vadd.f32 %v9651_v47, %v21564_v29  ;;  %v9653_v14 = vpop.f32.mrb[38].mxu1 }
 0x58a   : > { %v9654_v24 = vpop.f32.mrb[39].mxu1 }
 0x58b   : > { %v9690_v63 = vpop.f32.mrb[40].mxu0 }
 0x58c   : > { %v21675_v30 = vadd.f32 %v9690_v63, %v21570_v17  ;;  %v9692_v13 = vpop.f32.mrb[41].mxu0 }
 0x58d   : > { %v21678_v18 = vadd.f32 %v9692_v13, %v21578_v52  ;;  %v9694_v54 = vpop.f32.mrb[42].mxu0 }
 0x58e   : > { %v9695_v41 = vpop.f32.mrb[43].mxu0 }
 0x58f   : > { %v9731_v56 = vpop.f32.mrb[40].mxu1 }
 0x590   : > { %v21681_v61 = vadd.f32 %v9731_v56, %v21584_v32  ;;  %v9733_v9 = vpop.f32.mrb[41].mxu1 }
 0x591   : > { %v21684_v29 = vadd.f32 %v9733_v9, %v21591_v33  ;;  %v9735_v35 = vpop.f32.mrb[42].mxu1 }
 0x592   : > { %v9736_v15 = vpop.f32.mrb[43].mxu1 }
 0x593   : > { %v9772_v37 = vpop.f32.mrb[44].mxu0 }
 0x594   : > { %v21687_v17 = vadd.f32 %v9772_v37, %v21597_v60  ;;  %v9774_v28 = vpop.f32.mrb[45].mxu0 }
 0x595   : > { %v21690_v52 = vadd.f32 %v9774_v28, %v21604_v1  ;;  %v9776_v4 = vpop.f32.mrb[46].mxu0 }
 0x596   : > { %v9777_v36 = vpop.f32.mrb[47].mxu0 }
 0x597   : > { %v9813_v50 = vpop.f32.mrb[44].mxu1 }
 0x598   : > { %v21693_v32 = vadd.f32 %v9813_v50, %v21610_v2  ;;  %v9815_v53 = vpop.f32.mrb[45].mxu1 }
 0x599   : > { %v21696_v33 = vadd.f32 %v9815_v53, %v21617_v20  ;;  %v9817_v39 = vpop.f32.mrb[46].mxu1 }
 0x59a   : > { %v9818_v43 = vpop.f32.mrb[47].mxu1 }
 0x59b   : > { %v9854_v12 = vpop.f32.mrb[48].mxu0 }
 0x59c   : > { %v21699_v60 = vadd.f32 %v9854_v12, %v21622_v45  ;;  %v9856_v55 = vpop.f32.mrb[49].mxu0 }
 0x59d   : > { %v21702_v1 = vadd.f32 %v9856_v55, %v21629_v57  ;;  %v9858_v22 = vpop.f32.mrb[50].mxu0 }
 0x59e   : > { %v9859_v7 = vpop.f32.mrb[51].mxu0 }
 0x59f   : > { %v9895_v42 = vpop.f32.mrb[48].mxu1 }
 0x5a0   : > { %v21705_v2 = vadd.f32 %v9895_v42, %v21634_v62  ;;  %v16743_v59 = vpop.f32.mrb[49].mxu1 }
 0x5a1   : > { %v9898_v11 = vpop.f32.mrb[50].mxu1 }
 0x5a2   : > { %v16744_v20 = vpop.f32.mrb[51].mxu1 }
 0x5a3   : > { %v10086_v19 = vpop.f32.mrb[52].mxu0 }
 0x5a4   : > { %v21708_v26 = vadd.f32 %v10086_v19, %v21641_v6  ;;  %v10088_v25 = vpop.f32.mrb[53].mxu0 }
 0x5a5   : > { %v21711_v45 = vadd.f32 %v10088_v25, %v21646_v46  ;;  %v10090_v34 = vpop.f32.mrb[54].mxu0 }
 0x5a6   : > { %v10091_v57 = vpop.f32.mrb[55].mxu0 }
 0x5a7   : > { %v10127_v21 = vpop.f32.mrb[52].mxu1 }
 0x5a8   : > { %v21714_v10 = vadd.f32 %v10127_v21, %v21649_v48  ;;  %v10129_v58 = vpop.f32.mrb[53].mxu1 }
 0x5a9   : > { %v21717_v62 = vadd.f32 %v10129_v58, %v21654_v38  ;;  %v10131_v3 = vpop.f32.mrb[54].mxu1 }
 0x5aa   : > { %v10132_v44 = vpop.f32.mrb[55].mxu1 }
 0x5ab   : > { %v10168_v51 = vpop.f32.mrb[56].mxu0 }
 0x5ac   : > { %v21720_v6 = vadd.f32 %v10168_v51, %v21657_v8  ;;  %v10170_v0 = vpop.f32.mrb[57].mxu0 }
 0x5ad   : > { %v21723_v46 = vadd.f32 %v10170_v0, %v21660_v16  ;;  %v10172_v47 = vpop.f32.mrb[58].mxu0 }
 0x5ae   : > { %v10173_v14 = vpop.f32.mrb[59].mxu0 }
 0x5af   : > { %v10209_v24 = vpop.f32.mrb[56].mxu1 }
 0x5b0   : > { %v21726_v48 = vadd.f32 %v10209_v24, %v21663_v27  ;;  %v10211_v63 = vpop.f32.mrb[57].mxu1 }
 0x5b1   : > { %v21729_v38 = vadd.f32 %v10211_v63, %v21666_v23  ;;  %v10213_v13 = vpop.f32.mrb[58].mxu1 }
 0x5b2   : > { %v10214_v54 = vpop.f32.mrb[59].mxu1 }
 0x5b3   : > { %v10250_v41 = vpop.f32.mrb[60].mxu0 }
 0x5b4   : > { %v21732_v8 = vadd.f32 %v10250_v41, %v21669_v31  ;;  %v10252_v56 = vpop.f32.mrb[61].mxu0 }
 0x5b5   : > { %v21735_v16 = vadd.f32 %v10252_v56, %v21672_v40  ;;  %v10254_v9 = vpop.f32.mrb[62].mxu0 }
 0x5b6   : > { %v10255_v35 = vpop.f32.mrb[63].mxu0 }
 0x5b7   : > { %v10291_v15 = vpop.f32.mrb[60].mxu1 }
 0x5b8   : > { %v21738_v27 = vadd.f32 %v10291_v15, %v21675_v30  ;;  %v10293_v37 = vpop.f32.mrb[61].mxu1 }
 0x5b9   : > { %v21741_v23 = vadd.f32 %v10293_v37, %v21678_v18  ;;  %v10295_v28 = vpop.f32.mrb[62].mxu1 }
 0x5ba   : > { %v10296_v4 = vpop.f32.mrb[63].mxu1 }
 0x5bb   : > { %v10332_v36 = vpop.f32.mrb[64].mxu0 }
 0x5bc   : > { %v21744_v31 = vadd.f32 %v10332_v36, %v21681_v61  ;;  %v10334_v50 = vpop.f32.mrb[65].mxu0 }
 0x5bd   : > { %v21747_v40 = vadd.f32 %v10334_v50, %v21684_v29  ;;  %v10336_v53 = vpop.f32.mrb[66].mxu0 }
 0x5be   : > { %v10337_v39 = vpop.f32.mrb[67].mxu0 }
 0x5bf   : > { %v10373_v43 = vpop.f32.mrb[64].mxu1 }
 0x5c0   : > { %v21750_v30 = vadd.f32 %v10373_v43, %v21687_v17  ;;  %v10375_v12 = vpop.f32.mrb[65].mxu1 }
 0x5c1   : > { %v21753_v18 = vadd.f32 %v10375_v12, %v21690_v52  ;;  %v10377_v55 = vpop.f32.mrb[66].mxu1 }
 0x5c2   : > { %v10378_v22 = vpop.f32.mrb[67].mxu1 }
 0x5c3   : > { %v10414_v7 = vpop.f32.mrb[68].mxu0 }
 0x5c4   : > { %v21756_v61 = vadd.f32 %v10414_v7, %v21693_v32  ;;  %v10416_v42 = vpop.f32.mrb[69].mxu0 }
 0x5c5   : > { %v21759_v29 = vadd.f32 %v10416_v42, %v21696_v33  ;;  %v10418_v59 = vpop.f32.mrb[70].mxu0 }
 0x5c6   : > { %v10419_v11 = vpop.f32.mrb[71].mxu0 }
 0x5c7   : > { %v10455_v20 = vpop.f32.mrb[68].mxu1 }
 0x5c8   : > { %v21762_v17 = vadd.f32 %v10455_v20, %v21699_v60  ;;  %v10457_v19 = vpop.f32.mrb[69].mxu1 }
 0x5c9   : > { %v21765_v52 = vadd.f32 %v10457_v19, %v21702_v1  ;;  %v10459_v25 = vpop.f32.mrb[70].mxu1 }
 0x5ca   : > { %v10460_v34 = vpop.f32.mrb[71].mxu1 }
 0x5cb   : > { %v10496_v57 = vpop.f32.mrb[72].mxu0 }
 0x5cc   : > { %v21768_v32 = vadd.f32 %v10496_v57, %v21705_v2  ;;  %v16749_v21 = vpop.f32.mrb[73].mxu0 }
 0x5cd   : > { %v10499_v58 = vpop.f32.mrb[74].mxu0 }
 0x5ce   : > { %v16750_v33 = vpop.f32.mrb[75].mxu0 }
 0x5cf   : > { %v10756_v3 = vpop.f32.mrb[72].mxu1 }
 0x5d0   : > { %v21771_v44 = vadd.f32 %v10756_v3, %v21708_v26  ;;  %v10758_v51 = vpop.f32.mrb[73].mxu1 }
 0x5d1   : > { %v21774_v60 = vadd.f32 %v10758_v51, %v21711_v45  ;;  %v10760_v0 = vpop.f32.mrb[74].mxu1 }
 0x5d2   : > { %v10761_v1 = vpop.f32.mrb[75].mxu1 }
 0x5d3   : > { %v10797_v47 = vpop.f32.mrb[76].mxu0 }
 0x5d4   : > { %v21777_v14 = vadd.f32 %v10797_v47, %v21714_v10  ;;  %v10799_v24 = vpop.f32.mrb[77].mxu0 }
 0x5d5   : > { %v21780_v2 = vadd.f32 %v10799_v24, %v21717_v62  ;;  %v10801_v63 = vpop.f32.mrb[78].mxu0 }
 0x5d6   : > { %v10802_v13 = vpop.f32.mrb[79].mxu0 }
 0x5d7   : > { %v10838_v54 = vpop.f32.mrb[76].mxu1 }
 0x5d8   : > { %v21783_v26 = vadd.f32 %v10838_v54, %v21720_v6  ;;  %v10840_v41 = vpop.f32.mrb[77].mxu1 }
 0x5d9   : > { %v21786_v45 = vadd.f32 %v10840_v41, %v21723_v46  ;;  %v10842_v56 = vpop.f32.mrb[78].mxu1 }
 0x5da   : > { %v10843_v9 = vpop.f32.mrb[79].mxu1 }
 0x5db   : > { %v10879_v35 = vpop.f32.mrb[80].mxu0 }
 0x5dc   : > { %v21789_v10 = vadd.f32 %v10879_v35, %v21726_v48  ;;  %v10881_v15 = vpop.f32.mrb[81].mxu0 }
 0x5dd   : > { %v21792_v62 = vadd.f32 %v10881_v15, %v21729_v38  ;;  %v10883_v37 = vpop.f32.mrb[82].mxu0 }
 0x5de   : > { %v10884_v28 = vpop.f32.mrb[83].mxu0 }
 0x5df   : > { %v10920_v4 = vpop.f32.mrb[80].mxu1 }
 0x5e0   : > { %v21795_v6 = vadd.f32 %v10920_v4, %v21732_v8  ;;  %v10922_v36 = vpop.f32.mrb[81].mxu1 }
 0x5e1   : > { %v21798_v46 = vadd.f32 %v10922_v36, %v21735_v16  ;;  %v10924_v50 = vpop.f32.mrb[82].mxu1 }
 0x5e2   : > { %v10925_v53 = vpop.f32.mrb[83].mxu1 }
 0x5e3   : > { %v10961_v39 = vpop.f32.mrb[84].mxu0 }
 0x5e4   : > { %v21801_v48 = vadd.f32 %v10961_v39, %v21738_v27  ;;  %v10963_v43 = vpop.f32.mrb[85].mxu0 }
 0x5e5   : > { %v21804_v38 = vadd.f32 %v10963_v43, %v21741_v23  ;;  %v10965_v12 = vpop.f32.mrb[86].mxu0 }
 0x5e6   : > { %v10966_v55 = vpop.f32.mrb[87].mxu0 }
 0x5e7   : > { %v11002_v22 = vpop.f32.mrb[84].mxu1 }
 0x5e8   : > { %v21807_v8 = vadd.f32 %v11002_v22, %v21744_v31  ;;  %v11004_v7 = vpop.f32.mrb[85].mxu1 }
 0x5e9   : > { %v21810_v16 = vadd.f32 %v11004_v7, %v21747_v40  ;;  %v11006_v42 = vpop.f32.mrb[86].mxu1 }
 0x5ea   : > { %v11007_v59 = vpop.f32.mrb[87].mxu1 }
 0x5eb   : > { %v11043_v11 = vpop.f32.mrb[88].mxu0 }
 0x5ec   : > { %v21813_v27 = vadd.f32 %v11043_v11, %v21750_v30  ;;  %v11045_v20 = vpop.f32.mrb[89].mxu0 }
 0x5ed   : > { %v21816_v23 = vadd.f32 %v11045_v20, %v21753_v18  ;;  %v11047_v19 = vpop.f32.mrb[90].mxu0 }
 0x5ee   : > { %v11048_v25 = vpop.f32.mrb[91].mxu0 }
 0x5ef   : > { %v11084_v34 = vpop.f32.mrb[88].mxu1 }
 0x5f0   : > { %v21819_v31 = vadd.f32 %v11084_v34, %v21756_v61  ;;  %v11086_v57 = vpop.f32.mrb[89].mxu1 }
 0x5f1   : > { %v21822_v40 = vadd.f32 %v11086_v57, %v21759_v29  ;;  %v11088_v21 = vpop.f32.mrb[90].mxu1 }
 0x5f2   : > { %v11089_v58 = vpop.f32.mrb[91].mxu1 }
 0x5f3   : > { %v11125_v33 = vpop.f32.mrb[92].mxu0 }
 0x5f4   : > { %v21825_v30 = vadd.f32 %v11125_v33, %v21762_v17  ;;  %v11127_v3 = vpop.f32.mrb[93].mxu0 }
 0x5f5   : > { %v21828_v18 = vadd.f32 %v11127_v3, %v21765_v52  ;;  %v11129_v51 = vpop.f32.mrb[94].mxu0 }
 0x5f6   : > { %v11130_v0 = vpop.f32.mrb[95].mxu0 }
 0x5f7   : > { %v11166_v1 = vpop.f32.mrb[92].mxu1 }
 0x5f8   : > { %v21831_v61 = vadd.f32 %v11166_v1, %v21768_v32  ;;  %v16755_v47 = vpop.f32.mrb[93].mxu1 }
 0x5f9   : > { %v11169_v24 = vpop.f32.mrb[94].mxu1 }
 0x5fa   : > { %v16756_v29 = vpop.f32.mrb[95].mxu1 }
 0x5fb   : > { %v11360_v63 = vpop.f32.mrb[96].mxu0 }
 0x5fc   : > { %v21834_v13 = vadd.f32 %v11360_v63, %v21771_v44  ;;  %v11362_v54 = vpop.f32.mrb[97].mxu0 }
 0x5fd   : > { %v21837_v17 = vadd.f32 %v11362_v54, %v21774_v60  ;;  %v11364_v41 = vpop.f32.mrb[98].mxu0 }
 0x5fe   : > { %v11365_v52 = vpop.f32.mrb[99].mxu0 }
 0x5ff   : > { %v11401_v56 = vpop.f32.mrb[96].mxu1 }
 0x600   : > { %v21840_v9 = vadd.f32 %v11401_v56, %v21777_v14  ;;  %v11403_v35 = vpop.f32.mrb[97].mxu1 }
 0x601   : > { %v21843_v32 = vadd.f32 %v11403_v35, %v21780_v2  ;;  %v11405_v15 = vpop.f32.mrb[98].mxu1 }
 0x602   : > { %v11406_v37 = vpop.f32.mrb[99].mxu1 }
 0x603   : > { %v11442_v28 = vpop.f32.mrb[100].mxu0  ;;  %v21896_v37 = vpop.permute.xlu0 %12404 }
 0x604   : > { %v21846_v44 = vadd.f32 %v11442_v28, %v21783_v26  ;;  %v11444_v4 = vpop.f32.mrb[101].mxu0 }
 0x605   : > { %v21849_v60 = vadd.f32 %v11444_v4, %v21786_v45  ;;  %v11446_v36 = vpop.f32.mrb[102].mxu0 }
 0x606   : > { %v11447_v50 = vpop.f32.mrb[103].mxu0 }
 0x607   : > { %v11483_v53 = vpop.f32.mrb[100].mxu1 }
 0x608   : > { %v21852_v14 = vadd.f32 %v11483_v53, %v21789_v10  ;;  %v11485_v39 = vpop.f32.mrb[101].mxu1 }
 0x609   : > { %v21855_v2 = vadd.f32 %v11485_v39, %v21792_v62  ;;  %v11487_v43 = vpop.f32.mrb[102].mxu1 }
 0x60a   : > { %v11488_v12 = vpop.f32.mrb[103].mxu1  ;;  %v16892_v43 = vld [vmem:[%s23513_s6] sm:$0xff]  }
 0x60b   : > { %v11524_v55 = vpop.f32.mrb[104].mxu0 }
 0x60c   : > { %v21858_v26 = vadd.f32 %v11524_v55, %v21795_v6  ;;  %v11526_v22 = vpop.f32.mrb[105].mxu0 }
 0x60d   : > { %v21861_v45 = vadd.f32 %v11526_v22, %v21798_v46  ;;  %v11528_v7 = vpop.f32.mrb[106].mxu0 }
 0x60e   : > { %v11529_v42 = vpop.f32.mrb[107].mxu0 }
 0x60f   : > { %v11565_v59 = vpop.f32.mrb[104].mxu1 }
 0x610   : > { %v21864_v10 = vadd.f32 %v11565_v59, %v21801_v48  ;;  %v11567_v11 = vpop.f32.mrb[105].mxu1  ;;  %v16893_v59 = vld [vmem:[%s23513_s6 + $0x48] sm:$0xff]  }
 0x611   : > { %v21867_v62 = vadd.f32 %v11567_v11, %v21804_v38  ;;  %v11569_v20 = vpop.f32.mrb[106].mxu1 }
 0x612   : > { %v11570_v19 = vpop.f32.mrb[107].mxu1 }
 0x613   : > { %v11606_v25 = vpop.f32.mrb[108].mxu0 }
 0x614   : > { %v21870_v6 = vadd.f32 %v11606_v25, %v21807_v8  ;;  %v11608_v34 = vpop.f32.mrb[109].mxu0 }
 0x615   : > { %v21873_v46 = vadd.f32 %v11608_v34, %v21810_v16  ;;  %v11610_v57 = vpop.f32.mrb[110].mxu0 }
 0x616   : > { %v11611_v21 = vpop.f32.mrb[111].mxu0 }
 0x617   : > { %v11647_v58 = vpop.f32.mrb[108].mxu1 }
 0x618   : > { %v21876_v48 = vadd.f32 %v11647_v58, %v21813_v27  ;;  %v11649_v33 = vpop.f32.mrb[109].mxu1 }
 0x619   : > { %v21879_v38 = vadd.f32 %v11649_v33, %v21816_v23  ;;  %v11651_v3 = vpop.f32.mrb[110].mxu1  ;;  %v16895_v33 = vld [vmem:[%s23513_s6 + $0x50] sm:$0xff]  }
 0x61a   : > { %v11652_v51 = vpop.f32.mrb[111].mxu1 }
 0x61b   : > { %v11688_v0 = vpop.f32.mrb[112].mxu0 }
 0x61c   : > { %v21882_v8 = vadd.f32 %v11688_v0, %v21819_v31  ;;  %v11690_v1 = vpop.f32.mrb[113].mxu0 }
 0x61d   : > { %v21885_v16 = vadd.f32 %v11690_v1, %v21822_v40  ;;  %v11692_v47 = vpop.f32.mrb[114].mxu0 }
 0x61e   : > { %v11693_v24 = vpop.f32.mrb[115].mxu0 }
 0x61f   : > { %v11729_v29 = vpop.f32.mrb[112].mxu1 }
 0x620   : > { %v21888_v27 = vadd.f32 %v11729_v29, %v21825_v30  ;;  %v11731_v63 = vpop.f32.mrb[113].mxu1 }
 0x621   : > { %v21891_v23 = vadd.f32 %v11731_v63, %v21828_v18  ;;  %v11733_v54 = vpop.f32.mrb[114].mxu1 }
 0x622   : > { %v11734_v41 = vpop.f32.mrb[115].mxu1  ;;  %v16897_v54 = vld [vmem:[%s23513_s6 + $0x58] sm:$0xff]  }
 0x623   : > { %v11770_v52 = vpop.f32.mrb[116].mxu0 }
 0x624   : > { %v21894_v31 = vadd.f32 %v11770_v52, %v21831_v61  ;;  %v16761_v56 = vpop.f32.mrb[117].mxu0  ;;  %v16891_v61 = vld [vmem:[%s23513_s6 + $0x40] sm:$0xff]  }
 0x625   : > { %v11773_v35 = vpop.f32.mrb[118].mxu0  ;;  %16421 = vmatprep.subr.bf16.mxu0 %v16891_v61 }
 0x626   : > { %v16762_v40 = vpop.f32.mrb[119].mxu0  ;;  %16422 = vmatpush3.bf16.msra.mxu0 %v16892_v43 }
 0x627   : > { %v11964_v15 = vpop.f32.mrb[116].mxu1  ;;  %16423 = vmatprep.subr.bf16.mxu0 %v16893_v59 }
 0x628   : > { %v12380_v28 = vadd.f32 %v11964_v15, %v21834_v13  ;;  %v11966_v30 = vpop.f32.mrb[117].mxu1 }
 0x629   : > { %v12381_v4 = vadd.f32 %v11966_v30, %v21837_v17  ;;  %v11968_v36 = vpop.f32.mrb[118].mxu1 }
 0x62a   : > { %v11969_v18 = vpop.f32.mrb[119].mxu1  ;;  %v12407_v50 = vadd.f32 %v21896_v37, %v12380_v28 }
 0x62b   : > { %v12005_v53 = vpop.f32.mrb[120].mxu0  ;;  %v12408_v39 = vadd.f32 %v21896_v37, %v12381_v4  ;;  %v16899_v4 = vld [vmem:[%s23513_s6 + $0x60] sm:$0xff]  }
 0x62c   : > { %v12382_v13 = vadd.f32 %v12005_v53, %v21840_v9  ;;  %v12007_v12 = vpop.f32.mrb[121].mxu0  ;;  %v16894_v9 = vld [vmem:[%s23513_s6 + $0x8] sm:$0xff]  }
 0x62d   : > { %v12383_v17 = vadd.f32 %v12007_v12, %v21843_v32  ;;  %v12009_v55 = vpop.f32.mrb[122].mxu0  ;;  %v21910_v22 = vpack.c.bf16 %v12408_v39, %v12407_v50  ;;  %16424 = vmatpush3.bf16.msra.mxu0 %v16894_v9  ;;  %v16901_v12 = vld [vmem:[%s23513_s6 + $0x68] sm:$0xff]  }
 0x62e   : > { %v12409_v7 = vadd.f32 %v21896_v37, %v12382_v13  ;;  %v12010_v42 = vpop.f32.mrb[123].mxu0  ;;  %16425 = vmatprep.subr.bf16.mxu0 %v16895_v33 }
 0x62f   : > { %v12410_v11 = vadd.f32 %v21896_v37, %v12383_v17  ;;  %v12046_v20 = vpop.f32.mrb[120].mxu1  ;;  %12547 = vrot.lane.b32.xlu0 %v21910_v22, %s23521_s26 }
 0x630   : > { %v12384_v32 = vadd.f32 %v12046_v20, %v21846_v44  ;;  %v12048_v19 = vpop.f32.mrb[121].mxu1  ;;  %v16896_v44 = vld [vmem:[%s23513_s6 + $0x10] sm:$0xff]  }
 0x631   : > { %v21923_v25 = vpack.c.bf16 %v12410_v11, %v12409_v7  ;;  %v12385_v34 = vadd.f32 %v12048_v19, %v21849_v60  ;;  %v12050_v57 = vpop.f32.mrb[122].mxu1  ;;  %16426 = vmatpush3.bf16.msra.mxu0 %v16896_v44  ;;  %v16904_v19 = vld [vmem:[%s23513_s6 + $0xc0] sm:$0xff]  }
 0x632   : > { %v12411_v21 = vadd.f32 %v21896_v37, %v12384_v32  ;;  %v12051_v58 = vpop.f32.mrb[123].mxu1  ;;  %16427 = vmatprep.subr.bf16.mxu0 %v16897_v54  ;;  %v16903_v32 = vld [vmem:[%s23513_s6 + $0x70] sm:$0xff]   ;;  %v16906_v57 = vld [vmem:[%s23513_s6 + $0x80] sm:$0xff]   ;;  %16443 = vmatprep.subr.bf16.mxu1 %v16904_v19 }
 0x633   : > { %v12412_v3 = vadd.f32 %v21896_v37, %v12385_v34  ;;  %v12087_v51 = vpop.f32.mrb[124].mxu0  ;;  %12549 = vrot.lane.b32.xlu1 %v21923_v25, %s23521_s26  ;;  %12622 = vrot.lane.b32.xlu0 %v21910_v22, %s17241_s27  ;;  %s23533_s26 = smov 74  }
 0x634   : > { %v12386_v60 = vadd.f32 %v12087_v51, %v21852_v14  ;;  %v12089_v0 = vpop.f32.mrb[125].mxu0  ;;  %v16898_v14 = vld [vmem:[%s23513_s6 + $0x18] sm:$0xff]   ;;  %16444 = vmatpush3.bf16.msra.mxu1 %v16906_v57 }
 0x635   : > { %v21939_v1 = vpack.c.bf16 %v12412_v3, %v12411_v21  ;;  %v12387_v47 = vadd.f32 %v12089_v0, %v21855_v2  ;;  %v12091_v24 = vpop.f32.mrb[126].mxu0  ;;  %16428 = vmatpush3.bf16.msra.mxu0 %v16898_v14  ;;  %v16907_v0 = vld [vmem:[%s23513_s6 + $0x78] sm:$0xff]  }
 0x636   : > { %v12413_v29 = vadd.f32 %v21896_v37, %v12386_v60  ;;  %v12092_v63 = vpop.f32.mrb[127].mxu0  ;;  %16429 = vmatprep.subr.bf16.mxu0 %v16899_v4 }
 0x637   : > { %v12414_v41 = vadd.f32 %v21896_v37, %v12387_v47  ;;  %v12128_v52 = vpop.f32.mrb[124].mxu1  ;;  %12624 = vrot.lane.b32.xlu1 %v21923_v25, %s17241_s27  ;;  %12697 = vrot.lane.b32.xlu0 %v21910_v22, %s23519_s28 }
 0x638   : > { %v12388_v2 = vadd.f32 %v12128_v52, %v21858_v26  ;;  %v12130_v56 = vpop.f32.mrb[125].mxu1  ;;  %v16900_v26 = vld [vmem:[%s23513_s6 + $0x20] sm:$0xff]  }
 0x639   : > { %v21955_v35 = vpack.c.bf16 %v12414_v41, %v12413_v29  ;;  %v12389_v40 = vadd.f32 %v12130_v56, %v21861_v45  ;;  %v12132_v15 = vpop.f32.mrb[126].mxu1  ;;  %16430 = vmatpush3.bf16.msra.mxu0 %v16900_v26  ;;  %v16910_v29 = vld [vmem:[%s23513_s6 + $0x88] sm:$0xff]  }
 0x63a   : > { %v12415_v28 = vadd.f32 %v21896_v37, %v12388_v2  ;;  %v12133_v30 = vpop.f32.mrb[127].mxu1  ;;  %16431 = vmatprep.subr.bf16.mxu0 %v16901_v12 }
 0x63b   : > { %v12416_v36 = vadd.f32 %v21896_v37, %v12389_v40  ;;  %v12169_v18 = vpop.f32.mrb[128].mxu0  ;;  %12699 = vrot.lane.b32.xlu1 %v21923_v25, %s23519_s28  ;;  %12772 = vrot.lane.b32.xlu0 %v21910_v22, %s23517_s16  ;;  %v16911_v40 = vld [vmem:[%s23513_s6 + $0xd0] sm:$0xff]  }
 0x63c   : > { %v12390_v45 = vadd.f32 %v12169_v18, %v21864_v10  ;;  %v12171_v50 = vpop.f32.mrb[129].mxu0  ;;  %v16902_v10 = vld [vmem:[%s23513_s6 + $0x28] sm:$0xff]  }
 0x63d   : > { %v21971_v61 = vpack.c.bf16 %v12416_v36, %v12415_v28  ;;  %v12391_v53 = vadd.f32 %v12171_v50, %v21867_v62  ;;  %v12173_v39 = vpop.f32.mrb[130].mxu0  ;;  %16432 = vmatpush3.bf16.msra.mxu0 %v16902_v10 }
 0x63e   : > { %v12417_v43 = vadd.f32 %v21896_v37, %v12390_v45  ;;  %v12174_v13 = vpop.f32.mrb[131].mxu0  ;;  %16433 = vmatprep.subr.bf16.mxu0 %v16903_v32  ;;  %v16913_v45 = vld [vmem:[%s23513_s6 + $0xd8] sm:$0xff]  }
 0x63f   : > { %v12418_v17 = vadd.f32 %v21896_v37, %v12391_v53  ;;  %v12210_v55 = vpop.f32.mrb[128].mxu1  ;;  %12774 = vrot.lane.b32.xlu1 %v21923_v25, %s23517_s16  ;;  %12847 = vrot.lane.b32.xlu0 %v21910_v22, %s17246_s22  ;;  %s23532_s16 = smov 75  }
 0x640   : > { %v12392_v62 = vadd.f32 %v12210_v55, %v21870_v6  ;;  %v12212_v7 = vpop.f32.mrb[129].mxu1  ;;  %v16915_v55 = vld [vmem:[%s23513_s6 + $0xe0] sm:$0xff]  }
 0x641   : > { %v21987_v42 = vpack.c.bf16 %v12418_v17, %v12417_v43  ;;  %v12393_v59 = vadd.f32 %v12212_v7, %v21873_v46  ;;  %v12214_v11 = vpop.f32.mrb[130].mxu1  ;;  %v16905_v46 = vld [vmem:[%s23513_s6 + $0x30] sm:$0xff]   ;;  %v16918_v7 = vld [vmem:[%s23513_s6 + $0xa8] sm:$0xff]  }
 0x642   : > { %v12419_v20 = vadd.f32 %v21896_v37, %v12392_v62  ;;  %v12215_v9 = vpop.f32.mrb[131].mxu1  ;;  %16434 = vmatpush3.bf16.msra.mxu0 %v16905_v46  ;;  %v16920_v11 = vld [vmem:[%s23513_s6 + $0xb0] sm:$0xff]  }
 0x643   : > { %v12420_v6 = vadd.f32 %v21896_v37, %v12393_v59  ;;  %v12251_v34 = vpop.f32.mrb[132].mxu0  ;;  %12849 = vrot.lane.b32.xlu1 %v21923_v25, %s17246_s22  ;;  %12922 = vrot.lane.b32.xlu0 %v21910_v22, %s17247_s29  ;;  %v16919_v59 = vld [vmem:[%s23513_s6 + $0xf0] sm:$0xff]   ;;  %v16923_v9 = vld [vmem:[%s23513_s6 + $0xb8] sm:$0xff]  }
 0x644   : > { %v12394_v21 = vadd.f32 %v12251_v34, %v21876_v48  ;;  %v12253_v58 = vpop.f32.mrb[133].mxu0  ;;  %v16908_v48 = vld [vmem:[%s23513_s6 + $0xc8] sm:$0xff]   ;;  %16435 = vmatprep.subr.bf16.mxu0 %v16907_v0 }
 0x645   : > { %v22009_v33 = vpack.c.bf16 %v12420_v6, %v12419_v20  ;;  %v12395_v3 = vadd.f32 %v12253_v58, %v21879_v38  ;;  %v12255_v51 = vpop.f32.mrb[134].mxu0  ;;  %v16909_v38 = vld [vmem:[%s23513_s6 + $0x38] sm:$0xff]   ;;  %16445 = vmatprep.subr.bf16.mxu1 %v16908_v48 }
 0x646   : > { %v12421_v44 = vadd.f32 %v21896_v37, %v12394_v21  ;;  %v12256_v60 = vpop.f32.mrb[135].mxu0  ;;  %16436 = vmatpush3.bf16.msra.mxu0 %v16909_v38  ;;  %16446 = vmatpush3.bf16.msra.mxu1 %v16910_v29  ;;  %v16921_v20 = vld [vmem:[%s23513_s6 + $0xf8] sm:$0xff]  }
 0x647   : > { %12519 = vst [vmem:[#allocation3 + $0x30] sm:$0xff] %v22009_v33  ;;  %v12422_v47 = vadd.f32 %v21896_v37, %v12395_v3  ;;  %v12292_v24 = vpop.f32.mrb[132].mxu1  ;;  %12924 = vrot.lane.b32.xlu1 %v21923_v25, %s17247_s29  ;;  %12997 = vrot.lane.b32.xlu0 %v21910_v22, %s23525_s25 }
 0x648   : > { %v12396_v63 = vadd.f32 %v12292_v24, %v21882_v8  ;;  %v12294_v54 = vpop.f32.mrb[133].mxu1  ;;  %16769 = vmatprep.subr.bf16.mxu0 %v17244_v49  ;;  %16447 = vmatprep.subr.bf16.mxu1 %v16911_v40 }
 0x649   : > { %v22032_v41 = vpack.c.bf16 %v12422_v47, %v12421_v44  ;;  %v12397_v52 = vadd.f32 %v12294_v54, %v21885_v16  ;;  %v12296_v14 = vpop.f32.mrb[134].mxu1  ;;  %v16912_v16 = vld [vmem:[%s23513_s6 + $0x90] sm:$0xff]  }
 0x64a   : > { %v12423_v2 = vadd.f32 %v21896_v37, %v12396_v63  ;;  %v12297_v56 = vpop.f32.mrb[135].mxu1  ;;  %16448 = vmatpush3.bf16.msra.mxu1 %v16912_v16 }
 0x64b   : > { %12520 = vst [vmem:[#allocation3 + $0x38] sm:$0xff] %v22032_v41  ;;  %v12424_v8 = vadd.f32 %v21896_v37, %v12397_v52  ;;  %v12333_v15 = vpop.f32.mrb[136].mxu0  ;;  %12999 = vrot.lane.b32.xlu1 %v21923_v25, %s23525_s25  ;;  %13072 = vrot.lane.b32.xlu0 %v21910_v22, %s23523_s17  ;;  %s17253_s25 = smov 20  }
 0x64c   : > { %v12398_v28 = vadd.f32 %v12333_v15, %v21888_v27  ;;  %v12335_v30 = vpop.f32.mrb[137].mxu0  ;;  %16449 = vmatprep.subr.bf16.mxu1 %v16913_v45 }
 0x64d   : > { %v22050_v4 = vpack.c.bf16 %v12424_v8, %v12423_v2  ;;  %v12399_v36 = vadd.f32 %v12335_v30, %v21891_v23  ;;  %v12337_v18 = vpop.f32.mrb[138].mxu0  ;;  %v16914_v23 = vld [vmem:[%s23513_s6 + $0x98] sm:$0xff]  }
 0x64e   : > { %v12425_v26 = vadd.f32 %v21896_v37, %v12398_v28  ;;  %v12338_v50 = vpop.f32.mrb[139].mxu0  ;;  %16450 = vmatpush3.bf16.msra.mxu1 %v16914_v23 }
 0x64f   : > { %12521 = vst [vmem:[#allocation3 + $0x40] sm:$0xff] %v22050_v4  ;;  %v12426_v53 = vadd.f32 %v21896_v37, %v12399_v36  ;;  %v12374_v27 = vpop.f32.mrb[136].mxu1  ;;  %13074 = vrot.lane.b32.xlu1 %v21923_v25, %s23523_s17  ;;  %12626 = vrot.lane.b32.xlu0 %v21939_v1, %s17241_s27 }
 0x650   : > { %v12400_v39 = vadd.f32 %v12374_v27, %v21894_v31  ;;  %v16767_v43 = vpop.f32.mrb[137].mxu1  ;;  %v16916_v31 = vld [vmem:[%s23513_s6 + $0xa0] sm:$0xff]   ;;  %16451 = vmatprep.subr.bf16.mxu1 %v16915_v55 }
 0x651   : > { %v22067_v13 = vpack.c.bf16 %v12426_v53, %v12425_v26  ;;  %v12377_v12 = vpop.f32.mrb[138].mxu1 }
 0x652   : > { %v12427_v17 = vadd.f32 %v21896_v37, %v12400_v39  ;;  %v16768_v10 = vpop.f32.mrb[139].mxu1  ;;  %16452 = vmatpush3.bf16.msra.mxu1 %v16916_v31  ;;  %v16917_v37 = vld [vmem:[%s23513_s6 + $0xe8] sm:$0xff]  }
 0x653   : > { %12522 = vst [vmem:[#allocation3 + $0x48] sm:$0xff] %v22067_v13  ;;  %12551 = vrot.lane.b32.xlu1 %v21939_v1, %s23529_s23  ;;  %12701 = vrot.lane.b32.xlu0 %v21939_v1, %s23530_s24 }
 0x654   : > { %v16384_v62 = vpack.c.bf16 %v12427_v17, %v12427_v17  ;;  %16453 = vmatprep.subr.bf16.mxu1 %v16917_v37 }
 0x656   : > { %12524 = vst.msk [vmem:[#allocation3 + $0x50] sm:$0xf] %vm12523_vm15, %v16384_v62  ;;  %16454 = vmatpush3.bf16.msra.mxu1 %v16918_v7  ;;  %vm14643_vm15 = vcmask 1041921  }
 0x657   : > { %12553 = vrot.lane.b32.xlu1 %v21955_v35, %s23529_s23  ;;  %12776 = vrot.lane.b32.xlu0 %v21939_v1, %s23531_s21 }
 0x658   : > { %16455 = vmatprep.subr.bf16.mxu1 %v16919_v59 }
 0x65a   : > { %16456 = vmatpush3.bf16.msra.mxu1 %v16920_v11 }
 0x65b   : > { %12628 = vrot.lane.b32.xlu1 %v21955_v35, %s17241_s27  ;;  %12851 = vrot.lane.b32.xlu0 %v21939_v1, %s17246_s22 }
 0x65c   : > { %16457 = vmatprep.subr.bf16.mxu1 %v16921_v20 }
 0x65e   : > { %16458 = vmatpush3.bf16.msra.mxu1 %v16923_v9 }
 0x65f   : > { %12703 = vrot.lane.b32.xlu1 %v21955_v35, %s23530_s24  ;;  %12926 = vrot.lane.b32.xlu0 %v21939_v1, %s17247_s29 }
 0x663   : > { %12778 = vrot.lane.b32.xlu1 %v21955_v35, %s23531_s21  ;;  %13001 = vrot.lane.b32.xlu0 %v21939_v1, %s23532_s16 }
 0x667   : > { %12853 = vrot.lane.b32.xlu1 %v21955_v35, %s17246_s22  ;;  %13076 = vrot.lane.b32.xlu0 %v21939_v1, %s23533_s26 }
 0x66b   : > { %12928 = vrot.lane.b32.xlu1 %v21955_v35, %s17247_s29  ;;  %12555 = vrot.lane.b32.xlu0 %v21971_v61, %s23529_s23 }
 0x66f   : > { %13003 = vrot.lane.b32.xlu1 %v21955_v35, %s23532_s16  ;;  %12630 = vrot.lane.b32.xlu0 %v21971_v61, %s17241_s27 }
 0x673   : > { %13078 = vrot.lane.b32.xlu1 %v21955_v35, %s23533_s26  ;;  %12705 = vrot.lane.b32.xlu0 %v21971_v61, %s23530_s24 }
 0x677   : > { %12557 = vrot.lane.b32.xlu1 %v21987_v42, %s23529_s23  ;;  %12780 = vrot.lane.b32.xlu0 %v21971_v61, %s23531_s21 }
 0x67b   : > { %12632 = vrot.lane.b32.xlu1 %v21987_v42, %s17241_s27  ;;  %12855 = vrot.lane.b32.xlu0 %v21971_v61, %s17246_s22 }
 0x67f   : > { %12707 = vrot.lane.b32.xlu1 %v21987_v42, %s23530_s24  ;;  %12930 = vrot.lane.b32.xlu0 %v21971_v61, %s17247_s29 }
 0x683   : > { %12782 = vrot.lane.b32.xlu1 %v21987_v42, %s23531_s21  ;;  %13005 = vrot.lane.b32.xlu0 %v21971_v61, %s23532_s16 }
 0x687   : > { %12857 = vrot.lane.b32.xlu1 %v21987_v42, %s17246_s22  ;;  %13080 = vrot.lane.b32.xlu0 %v21971_v61, %s23533_s26 }
 0x68b   : > { %12932 = vrot.lane.b32.xlu1 %v21987_v42, %s17247_s29  ;;  %12559 = vrot.lane.b32.xlu0 %v22009_v33, %s23529_s23 }
 0x68f   : > { %13007 = vrot.lane.b32.xlu1 %v21987_v42, %s23532_s16  ;;  %12634 = vrot.lane.b32.xlu0 %v22009_v33, %s17241_s27 }
 0x693   : > { %13082 = vrot.lane.b32.xlu1 %v21987_v42, %s23533_s26  ;;  %12709 = vrot.lane.b32.xlu0 %v22009_v33, %s23530_s24 }
 0x697   : > { %12784 = vrot.lane.b32.xlu1 %v22009_v33, %s23531_s21  ;;  %12859 = vrot.lane.b32.xlu0 %v22009_v33, %s17246_s22 }
 0x69b   : > { %12934 = vrot.lane.b32.xlu1 %v22009_v33, %s17247_s29  ;;  %13009 = vrot.lane.b32.xlu0 %v22009_v33, %s23532_s16 }
 0x69f   : > { %13084 = vrot.lane.b32.xlu1 %v22009_v33, %s23533_s26  ;;  %12786 = vrot.lane.b32.xlu0 %v22032_v41, %s23531_s21 }
 0x6a1   : > { %v12548_v32 = vpop.permute.xlu0 %12547 }
 0x6a2   : > { %v12569_v33 = vrot.slane %v12548_v32, 4 }
 0x6a3   : > { %12561 = vrot.lane.b32.xlu1 %v22032_v41, %s23529_s23  ;;  %12936 = vrot.lane.b32.xlu0 %v22032_v41, %s17247_s29 }
 0x6a5   : > { %v22179_v19 = vpop.permute.xlu1 %12549  ;;  %v12623_v6 = vpop.permute.xlu0 %12622 }
 0x6a6   : > { %v12570_v58 = vrot.slane %v22179_v19, 4  ;;  %v12644_v0 = vrot.slane %v12623_v6, 4 }
 0x6a7   : > { %12636 = vrot.lane.b32.xlu1 %v22032_v41, %s17241_s27  ;;  %13086 = vrot.lane.b32.xlu0 %v22032_v41, %s23533_s26 }
 0x6a8   : > { %v12580_v60 = vsel %vm6910_vm12, %v12569_v33, %v12570_v58 }
 0x6a9   : > { %v22185_v34 = vpop.permute.xlu1 %12624  ;;  %v12698_v46 = vpop.permute.xlu0 %12697  ;;  %v12581_v29 = vsel %vm481_vm0, %v12548_v32, %v12580_v60 }
 0x6aa   : > { %v12645_v3 = vrot.slane %v22185_v34, 4  ;;  %v12719_v24 = vrot.slane %v12698_v46, 4  ;;  %v12611_v56 = vmax.bf16 %v21910_v22, %v12581_v29 }
 0x6ab   : > { %12711 = vrot.lane.b32.xlu1 %v22032_v41, %s23530_s24  ;;  %12563 = vrot.lane.b32.xlu0 %v22050_v4, %s23529_s23 }
 0x6ac   : > { %v12655_v47 = vsel %vm6910_vm12, %v12644_v0, %v12645_v3 }
 0x6ad   : > { %v22191_v57 = vpop.permute.xlu1 %12699  ;;  %v12773_v21 = vpop.permute.xlu0 %12772  ;;  %v12656_v2 = vsel %vm1684_vm4, %v12623_v6, %v12655_v47 }
 0x6ae   : > { %v12720_v48 = vrot.slane %v22191_v57, 4  ;;  %v12686_v30 = vmax.bf16 %v12656_v2, %v12611_v56  ;;  %v22299_v2 = vld [vmem:[#allocation3 + $0x50] sm:$0xf] }
 0x6af   : > { %12861 = vrot.lane.b32.xlu1 %v22032_v41, %s17246_s22  ;;  %12713 = vrot.lane.b32.xlu0 %v22050_v4, %s23530_s24 }
 0x6b0   : > { %v12730_v52 = vsel %vm6910_vm12, %v12719_v24, %v12720_v48 }
 0x6b1   : > { %v22199_v51 = vpop.permute.xlu1 %12774  ;;  %v12848_v44 = vpop.permute.xlu0 %12847  ;;  %v12731_v15 = vsel %vm2390_vm5, %v12698_v46, %v12730_v52  ;;  %v16922_v52 = vld [vmem:[%s23513_s6 + $0x100] sm:$0xff]  }
 0x6b2   : > { %v12795_v38 = vrot.slane %v22199_v51, 4  ;;  %v12869_v8 = vrot.slane %v12848_v44, 4  ;;  %v12761_v45 = vmax.bf16 %v12731_v15, %v12686_v30 }
 0x6b3   : > { %13011 = vrot.lane.b32.xlu1 %v22032_v41, %s23532_s16  ;;  %12863 = vrot.lane.b32.xlu0 %v22050_v4, %s17246_s22  ;;  %v12794_v41 = vrot.slane %v12773_v21, 4 }
 0x6b5   : > { %v22214_v63 = vpop.permute.xlu1 %12849  ;;  %v12923_v54 = vpop.permute.xlu0 %12922  ;;  %v12805_v40 = vsel %vm6910_vm12, %v12794_v41, %v12795_v38 }
 0x6b6   : > { %v12870_v14 = vrot.slane %v22214_v63, 4  ;;  %v12944_v18 = vrot.slane %v12923_v54, 4  ;;  %v12806_v22 = vsel %vm3096_vm6, %v12773_v21, %v12805_v40 }
 0x6b7   : > { %12638 = vrot.lane.b32.xlu1 %v22050_v4, %s17241_s27  ;;  %13013 = vrot.lane.b32.xlu0 %v22050_v4, %s23532_s16  ;;  %v12836_v39 = vmax.bf16 %v12806_v22, %v12761_v45 }
 0x6b8   : > { %v12880_v36 = vsel %vm6910_vm12, %v12869_v8, %v12870_v14 }
 0x6b9   : > { %v22230_v16 = vpop.permute.xlu1 %12924  ;;  %v12998_v28 = vpop.permute.xlu0 %12997  ;;  %v12881_v53 = vsel %vm3802_vm7, %v12848_v44, %v12880_v36  ;;  %v16934_v36 = vld [vmem:[%s23513_s6 + $0x40] sm:$0xff]  }
 0x6ba   : > { %v12945_v26 = vrot.slane %v22230_v16, 4  ;;  %v13019_v43 = vrot.slane %v12998_v28, 4  ;;  %v12911_v55 = vmax.bf16 %v12881_v53, %v12836_v39  ;;  %v16926_v53 = vld [vmem:[%s23513_s6 + $0x118] ss:$0 sps:$4 sm:$0xff]   ;;  %16470 = vmatprep.subr.bf16.mxu1 %v16934_v36 }
 0x6bb   : > { %12788 = vrot.lane.b32.xlu1 %v22050_v4, %s23531_s21  ;;  %12565 = vrot.lane.b32.xlu0 %v22067_v13, %s23529_s23 }
 0x6bc   : > { %v12955_v50 = vsel %vm6910_vm12, %v12944_v18, %v12945_v26 }
 0x6bd   : > { %v22245_v27 = vpop.permute.xlu1 %12999  ;;  %v13073_v23 = vpop.permute.xlu0 %13072  ;;  %v12956_v17 = vsel %vm4511_vm8, %v12923_v54, %v12955_v50 }
 0x6be   : > { %v13020_v12 = vrot.slane %v22245_v27, 4  ;;  %v12986_v7 = vmax.bf16 %v12956_v17, %v12911_v55  ;;  %v13094_v59 = vrot.slane %v13073_v23, 4 }
 0x6bf   : > { %12938 = vrot.lane.b32.xlu1 %v22050_v4, %s17247_s29  ;;  %12640 = vrot.lane.b32.xlu0 %v22067_v13, %s17241_s27 }
 0x6c0   : > { %v13030_v10 = vsel %vm6910_vm12, %v13019_v43, %v13020_v12 }
 0x6c1   : > { %v13031_v31 = vsel %vm5221_vm9, %v12998_v28, %v13030_v10  ;;  %v22257_v62 = vpop.permute.xlu1 %13074  ;;  %v22259_v37 = vpop.permute.xlu0 %12626 }
 0x6c2   : > { %v13095_v11 = vrot.slane %v22257_v62, 4  ;;  %v12646_v20 = vrot.slane %v22259_v37, 4  ;;  %v13061_v9 = vmax.bf16 %v13031_v31, %v12986_v7 }
 0x6c3   : > { %13088 = vrot.lane.b32.xlu1 %v22050_v4, %s23533_s26  ;;  %12715 = vrot.lane.b32.xlu0 %v22067_v13, %s23530_s24 }
 0x6c4   : > { %v13105_v32 = vsel %vm6910_vm12, %v13094_v59, %v13095_v11  ;;  %v12657_v4 = vsel %vm6910_vm12, %v12645_v3, %v12646_v20  ;;  %v13468_v59 = vsel %vm6910_vm12, %v16926_v53, 0 }
 0x6c5   : > { %v13106_v6 = vsel %vm5931_vm10, %v13073_v23, %v13105_v32  ;;  %v22271_v46 = vpop.permute.xlu1 %12551  ;;  %v22273_v21 = vpop.permute.xlu0 %12701 }
 0x6c6   : > { %v13136_v33 = vmax.bf16 %v13106_v6, %v13061_v9  ;;  %v12571_v44 = vrot.slane %v22271_v46, 4  ;;  %v12721_v0 = vrot.slane %v22273_v21, 4 }
 0x6c7   : > { %12940 = vrot.lane.b32.xlu1 %v22067_v13, %s17247_s29  ;;  %12790 = vrot.lane.b32.xlu0 %v22067_v13, %s23531_s21 }
 0x6c8   : > { %v12582_v60 = vsel %vm6910_vm12, %v12570_v58, %v12571_v44  ;;  %v16145_v47 = vcombine.low %v13136_v33, %v13136_v33  ;;  %v16146_v24 = vcombine.high %v13136_v33, %v13136_v33  ;;  %v12658_v58 = vsel %vm1684_vm4, %v22185_v34, %v12657_v4  ;;  %v16924_v34 = vld [vmem:[%s23513_s6 + $0x108] sm:$0xff]  }
 0x6c9   : > { %v12583_v29 = vsel %vm481_vm0, %v22179_v19, %v12582_v60  ;;  %v22291_v54 = vpop.permute.xlu1 %12553  ;;  %v22293_v3 = vpop.permute.xlu0 %12776  ;;  %v12732_v56 = vsel %vm6910_vm12, %v12720_v48, %v12721_v0 }
 0x6ca   : > { %v12612_v41 = vmax.bf16 %v21923_v25, %v12583_v29  ;;  %13502 = vmatprep.mubr.bf16.mxu0 %v16146_v24  ;;  %v12796_v25 = vrot.slane %v22293_v3, 4  ;;  %v12733_v48 = vsel %vm2390_vm5, %v22191_v57, %v12732_v56  ;;  %v16925_v57 = vld [vmem:[%s23513_s6 + $0x110] sm:$0xff]   ;;  %v12572_v45 = vrot.slane %v22291_v54, 4 }
 0x6cb   : > { %12567 = vrot.lane.b32.xlu1 %v22299_v2, %s23529_s23  ;;  %12865 = vrot.lane.b32.xlu0 %v22067_v13, %s17246_s22 }
 0x6cc   : > { %v12687_v19 = vmax.bf16 %v12658_v58, %v12612_v41  ;;  %13503 = vmatmul.mubr.bf16.vlgmr.msra.gmra.mrb[140].mxu0 %v16145_v47  ;;  %v12807_v30 = vsel %vm6910_vm12, %v12795_v38, %v12796_v25 }
 0x6cd   : > { %v22313_v40 = vpop.permute.xlu1 %12628  ;;  %v22315_v8 = vpop.permute.xlu0 %12851  ;;  %16770 = vmatpush3.bf16.msra.mxu0 %v16922_v52  ;;  %16777 = vmatprep.mubr.msk.bf16.mxu0 %vm17245_vm3, %v17244_v49  ;;  %v12808_v23 = vsel %vm3096_vm6, %v22199_v51, %v12807_v30  ;;  %v12584_v51 = vsel %vm6910_vm12, %v12571_v44, %v12572_v45  ;;  %v16935_v30 = vld [vmem:[%s23513_s6] sm:$0xff]  }
 0x6ce   : > { %v12871_v15 = vrot.slane %v22315_v8, 4  ;;  %16771 = vmatprep.subr.bf16.mxu0 %v17244_v49  ;;  %v12762_v28 = vmax.bf16 %v12733_v48, %v12687_v19  ;;  %v12647_v43 = vrot.slane %v22313_v40, 4  ;;  %v12585_v44 = vsel %vm481_vm0, %v22271_v46, %v12584_v51 }
 0x6cf   : > { %12642 = vrot.lane.b32.xlu1 %v22299_v2, %s17241_s27  ;;  %12942 = vrot.lane.b32.xlu0 %v22299_v2, %s17247_s29  ;;  %s17254_s27 = smov 64  }
 0x6d0   : > { %v12882_v50 = vsel %vm6910_vm12, %v12870_v14, %v12871_v15  ;;  %v12837_v39 = vmax.bf16 %v12808_v23, %v12762_v28  ;;  %v12659_v9 = vsel %vm6910_vm12, %v12646_v20, %v12647_v43 }
 0x6d1   : > { %v22336_v18 = vpop.permute.xlu1 %12703  ;;  %v22338_v22 = vpop.permute.xlu0 %12926  ;;  %16772 = vmatpush3.bf16.msra.mxu0 %v16924_v34  ;;  %v12883_v17 = vsel %vm3802_vm7, %v22214_v63, %v12882_v50  ;;  %v12660_v46 = vsel %vm1684_vm4, %v22259_v37, %v12659_v9 }
 0x6d2   : > { %v12946_v38 = vrot.slane %v22338_v22, 4  ;;  %16773 = vmatprep.subr.bf16.mxu0 %v17244_v49  ;;  %v12722_v31 = vrot.slane %v22336_v18, 4  ;;  %v12912_v32 = vmax.bf16 %v12883_v17, %v12837_v39  ;;  %v16937_v39 = vld [vmem:[%s23513_s6 + $0x8] sm:$0xff]  }
 0x6d3   : > { %12717 = vrot.lane.b32.xlu1 %v22299_v2, %s23530_s24 }
 0x6d4   : > { %v12957_v14 = vsel %vm6910_vm12, %v12945_v26, %v12946_v38  ;;  %v16941_v26 = vld [vmem:[%s23513_s6 + $0xc0] sm:$0xff]   ;;  %v12734_v20 = vsel %vm6910_vm12, %v12721_v0, %v12722_v31 }
 0x6d5   : > { %v22362_v55 = vpop.permute.xlu1 %12778  ;;  %v13002_v10 = vpop.permute.xlu0 %13001  ;;  %16774 = vmatpush3.bf16.msra.mxu0 %v16925_v57  ;;  %v12958_v63 = vsel %vm4511_vm8, %v22230_v16, %v12957_v14  ;;  %v12735_v41 = vsel %vm2390_vm5, %v22273_v21, %v12734_v20  ;;  %v16940_v20 = vld [vmem:[%s23513_s6 + $0x58] sm:$0xff]  }
 0x6d6   : > { %v13021_v7 = vrot.slane %v13002_v10, 4  ;;  %16775 = vmatprep.subr.bf16.mxu0 %v17244_v49  ;;  %v12797_v6 = vrot.slane %v22362_v55, 4  ;;  %v12987_v47 = vmax.bf16 %v12958_v63, %v12912_v32  ;;  %v16939_v32 = vld [vmem:[%s23513_s6 + $0x10] sm:$0xff]  }
 0x6d7   : > { %12792 = vrot.lane.b32.xlu1 %v22299_v2, %s23531_s21 }
 0x6d8   : > { %v13032_v33 = vsel %vm6910_vm12, %v13020_v12, %v13021_v7  ;;  %v12809_v29 = vsel %vm6910_vm12, %v12796_v25, %v12797_v6 }
 0x6d9   : > { %v13033_v16 = vsel %vm5221_vm9, %v22245_v27, %v13032_v33  ;;  %v22390_v4 = vpop.permute.xlu1 %12853  ;;  %v13077_v60 = vpop.permute.xlu0 %13076  ;;  %16776 = vmatpush3.bf16.msra.mxu0 %v13468_v59  ;;  %v12613_v27 = vmax.bf16 %v21939_v1, %v12585_v44 }
 0x6da   : > { %v12872_v24 = vrot.slane %v22390_v4, 4  ;;  %v13096_v12 = vrot.slane %v13077_v60, 4  ;;  %16492 = vmatprep.subr.bf16.mxu0 %v16941_v26  ;;  %v13062_v52 = vmax.bf16 %v13033_v16, %v12987_v47 }
 0x6db   : > { %12867 = vrot.lane.b32.xlu1 %v22299_v2, %s17246_s22  ;;  %v12688_v1 = vmax.bf16 %v12660_v46, %v12613_v27  ;;  %s17251_s22 = smov 92  }
 0x6dc   : > { %v13107_v0 = vsel %vm6910_vm12, %v13095_v11, %v13096_v12  ;;  %v12884_v56 = vsel %vm6910_vm12, %v12871_v15, %v12872_v24  ;;  %v12810_v11 = vsel %vm3096_vm6, %v22293_v3, %v12809_v29  ;;  %v16936_v3 = vld [vmem:[%s23513_s6 + $0x48] sm:$0xff]   ;;  %v16942_v29 = vld [vmem:[%s23513_s6 + $0x18] sm:$0xff]  }
 0x6dd   : > { %v13108_v37 = vsel %vm5931_vm10, %v22257_v62, %v13107_v0  ;;  %v22413_v58 = vpop.permute.xlu1 %12928  ;;  %v22415_v19 = vpop.permute.xlu0 %12555  ;;  %v12763_v48 = vmax.bf16 %v12735_v41, %v12688_v1  ;;  %v12885_v15 = vsel %vm3802_vm7, %v22315_v8, %v12884_v56 }
 0x6de   : > { %v13137_v25 = vmax.bf16 %v13108_v37, %v13062_v52  ;;  %v12947_v34 = vrot.slane %v22413_v58, 4  ;;  %v12573_v26 = vrot.slane %v22415_v19, 4 }
 0x6df   : > { %v12838_v50 = vmax.bf16 %v12810_v11, %v12763_v48 }
 0x6e0   : > { %v12959_v62 = vsel %vm6910_vm12, %v12946_v38, %v12947_v34  ;;  %v16147_v21 = vcombine.low %v13137_v25, %v13137_v25  ;;  %v16148_v28 = vcombine.high %v13137_v25, %v13137_v25  ;;  %v12586_v47 = vsel %vm6910_vm12, %v12572_v45, %v12573_v26  ;;  %v16946_v25 = vld [vmem:[%s23513_s6 + $0x20] sm:$0xff]  }
 0x6e1   : > { %v22431_v36 = vpop.permute.xlu1 %13003  ;;  %v22433_v57 = vpop.permute.xlu0 %12630  ;;  %v12960_v53 = vsel %vm4511_vm8, %v22338_v22, %v12959_v62  ;;  %v12913_v23 = vmax.bf16 %v12885_v15, %v12838_v50  ;;  %v16938_v22 = vld [vmem:[%s23513_s6 + $0x50] sm:$0xff]   ;;  %v12587_v52 = vsel %vm481_vm0, %v22291_v54, %v12586_v47  ;;  %v16945_v15 = vld [vmem:[%s23513_s6 + $0xc8] sm:$0xff]  }
 0x6e2   : > { %v13022_v38 = vrot.slane %v22431_v36, 4  ;;  %13542 = vmatprep.mubr.bf16.mxu1 %v16148_v28  ;;  %v12648_v9 = vrot.slane %v22433_v57, 4  ;;  %v12614_v54 = vmax.bf16 %v21955_v35, %v12587_v52 }
 0x6e3   : > { %13543 = vmatmul.mubr.bf16.vlgmr.msra.gmra.mrb[140].mxu1 %v16147_v21  ;;  %v12988_v59 = vmax.bf16 %v12960_v53, %v12913_v23  ;;  %v16943_v21 = vld [vmem:[%s23513_s6 + $0x80] sm:$0xff]  }
 0x6e4   : > { %v13034_v8 = vsel %vm6910_vm12, %v13021_v7, %v13022_v38  ;;  %16471 = vmatpush3.bf16.msra.mxu1 %v16935_v30 }
 0x6e5   : > { %v13035_v14 = vsel %vm5221_vm9, %v13002_v10, %v13034_v8  ;;  %v22448_v17 = vpop.permute.xlu1 %13078  ;;  %v22450_v51 = vpop.permute.xlu0 %12705  ;;  %16472 = vmatprep.subr.bf16.mxu1 %v16936_v3 }
 0x6e6   : > { %v13097_v7 = vrot.slane %v22448_v17, 4  ;;  %v13063_v63 = vmax.bf16 %v13035_v14, %v12988_v59  ;;  %v12723_v46 = vrot.slane %v22450_v51, 4 }
 0x6e8   : > { %v13109_v10 = vsel %vm6910_vm12, %v13096_v12, %v13097_v7  ;;  %16473 = vmatpush3.bf16.msra.mxu1 %v16937_v39  ;;  %v12736_v41 = vsel %vm6910_vm12, %v12722_v31, %v12723_v46 }
 0x6e9   : > { %v13110_v33 = vsel %vm5931_vm10, %v13077_v60, %v13109_v10  ;;  %v22465_v44 = vpop.permute.xlu1 %12557  ;;  %v22467_v16 = vpop.permute.xlu0 %12780  ;;  %16474 = vmatprep.subr.bf16.mxu1 %v16938_v22  ;;  %v12661_v60 = vsel %vm6910_vm12, %v12647_v43, %v12648_v9  ;;  %v16944_v43 = vld [vmem:[%s23513_s6 + $0x60] sm:$0xff]   ;;  %v12737_v11 = vsel %vm2390_vm5, %v22336_v18, %v12736_v41 }
 0x6ea   : > { %v13138_v12 = vmax.bf16 %v13110_v33, %v13063_v63  ;;  %v12798_v27 = vrot.slane %v22467_v16, 4  ;;  %v12662_v1 = vsel %vm1684_vm4, %v22313_v40, %v12661_v60  ;;  %v12574_v31 = vrot.slane %v22465_v44, 4 }
 0x6eb   : > { %v12689_v35 = vmax.bf16 %v12662_v1, %v12614_v54  ;;  %v16951_v1 = vld [vmem:[%s23513_s6 + $0x90] sm:$0xff]  }
 0x6ec   : > { %13149 = vst [vmem:[#allocation4 + $0x10] sm:$0xff] %v13138_v12  ;;  %16475 = vmatpush3.bf16.msra.mxu1 %v16939_v32  ;;  %v12811_v56 = vsel %vm6910_vm12, %v12797_v6, %v12798_v27  ;;  %v12588_v50 = vsel %vm6910_vm12, %v12573_v26, %v12574_v31 }
 0x6ed   : > { %v22485_v0 = vpop.permute.xlu1 %12632  ;;  %v22487_v45 = vpop.permute.xlu0 %12855  ;;  %16476 = vmatprep.subr.bf16.mxu1 %v16940_v20  ;;  %v12812_v18 = vsel %vm3096_vm6, %v22362_v55, %v12811_v56  ;;  %v12764_v3 = vmax.bf16 %v12737_v11, %v12689_v35  ;;  %v12589_v26 = vsel %vm481_vm0, %v22415_v19, %v12588_v50 }
 0x6ee   : > { %v12873_v37 = vrot.slane %v22487_v45, 4  ;;  %v12649_v28 = vrot.slane %v22485_v0, 4 }
 0x6ef   : > { %v12839_v39 = vmax.bf16 %v12812_v18, %v12764_v3  ;;  %v16955_v3 = vld [vmem:[%s23513_s6 + $0x98] sm:$0xff]  }
 0x6f0   : > { %16477 = vmatpush3.bf16.msra.mxu1 %v16942_v29  ;;  %v12886_v40 = vsel %vm6910_vm12, %v12872_v24, %v12873_v37  ;;  %v16948_v29 = vld [vmem:[%s23513_s6 + $0x68] sm:$0xff]  }
 0x6f1   : > { %v22508_v48 = vpop.permute.xlu1 %12707  ;;  %v22510_v62 = vpop.permute.xlu0 %12930  ;;  %16478 = vmatprep.subr.bf16.mxu1 %v16944_v43  ;;  %v12887_v55 = vsel %vm3802_vm7, %v22390_v4, %v12886_v40  ;;  %v12663_v4 = vsel %vm6910_vm12, %v12648_v9, %v12649_v28 }
 0x6f2   : > { %v12948_v6 = vrot.slane %v22510_v62, 4  ;;  %v12724_v53 = vrot.slane %v22508_v48, 4  ;;  %v12914_v63 = vmax.bf16 %v12887_v55, %v12839_v39  ;;  %v12664_v20 = vsel %vm1684_vm4, %v22433_v57, %v12663_v4 }
 0x6f3   : > { %v16927_v30 = vld [vmem:[#allocation4 + $0x10] ss:$0 sps:$4 sm:$0xff]  }
 0x6f4   : > { %v12961_v24 = vsel %vm6910_vm12, %v12947_v34, %v12948_v6  ;;  %16479 = vmatpush3.bf16.msra.mxu1 %v16946_v25  ;;  %16778 = vmatmul.mubr.msk.bf16.vlgmr.msra.gmra.mrb[144].mxu0 %vm13463_vm1, %v16927_v30  ;;  %v16947_v34 = vld [vmem:[%s23513_s6 + $0x88] sm:$0xff]   ;;  %v12738_v32 = vsel %vm6910_vm12, %v12723_v46, %v12724_v53  ;;  %v16953_v30 = vld [vmem:[%s23513_s6 + $0xd8] sm:$0xff]  }
 0x6f5   : > { %v22534_v23 = vpop.permute.xlu1 %12782  ;;  %v22536_v8 = vpop.permute.xlu0 %13005  ;;  %16493 = vmatpush3.bf16.msra.mxu0 %v16943_v21  ;;  %v12962_v22 = vsel %vm4511_vm8, %v22413_v58, %v12961_v24  ;;  %16480 = vmatprep.subr.bf16.mxu1 %v16948_v29 }
 0x6f6   : > { %v13023_v14 = vrot.slane %v22536_v8, 4  ;;  %v12799_v59 = vrot.slane %v22534_v23, 4  ;;  %16494 = vmatprep.subr.bf16.mxu0 %v16945_v15  ;;  %v12989_v19 = vmax.bf16 %v12962_v22, %v12914_v63 }
 0x6f8   : > { %v13036_v10 = vsel %vm6910_vm12, %v13022_v38, %v13023_v14  ;;  %v12615_v38 = vmax.bf16 %v21971_v61, %v12589_v26  ;;  %v12813_v46 = vsel %vm6910_vm12, %v12798_v27, %v12799_v59  ;;  %v16949_v61 = vld [vmem:[%s23513_s6 + $0xd0] sm:$0xff]   ;;  %v16950_v27 = vld [vmem:[%s23513_s6 + $0x28] sm:$0xff]  }
 0x6f9   : > { %v13037_v9 = vsel %vm5221_vm9, %v22431_v36, %v13036_v10  ;;  %v22559_v33 = vpop.permute.xlu1 %12857  ;;  %v22561_v58 = vpop.permute.xlu0 %13080  ;;  %16495 = vmatpush3.bf16.msra.mxu0 %v16947_v34  ;;  %v12739_v36 = vsel %vm2390_vm5, %v22450_v51, %v12738_v32  ;;  %v12814_v54 = vsel %vm3096_vm6, %v22467_v16, %v12813_v46  ;;  %16481 = vmatpush3.bf16.msra.mxu1 %v16950_v27  ;;  %v16959_v10 = vld [vmem:[%s23513_s6 + $0xa0] sm:$0xff]  }
 0x6fa   : > { %v12874_v47 = vrot.slane %v22559_v33, 4  ;;  %v13098_v12 = vrot.slane %v22561_v58, 4  ;;  %v13064_v60 = vmax.bf16 %v13037_v9, %v12989_v19  ;;  %v12690_v51 = vmax.bf16 %v12664_v20, %v12615_v38  ;;  %16496 = vmatprep.subr.bf16.mxu0 %v16949_v61 }
 0x6fc   : > { %v13111_v57 = vsel %vm6910_vm12, %v13097_v7, %v13098_v12  ;;  %v12888_v52 = vsel %vm6910_vm12, %v12873_v37, %v12874_v47  ;;  %v12765_v37 = vmax.bf16 %v12739_v36, %v12690_v51 }
 0x6fd   : > { %v13112_v7 = vsel %vm5931_vm10, %v22448_v17, %v13111_v57  ;;  %v22592_v43 = vpop.permute.xlu1 %12932  ;;  %v22594_v41 = vpop.permute.xlu0 %12559  ;;  %16497 = vmatpush3.bf16.msra.mxu0 %v16951_v1  ;;  %v12889_v17 = vsel %vm3802_vm7, %v22487_v45, %v12888_v52  ;;  %v16952_v45 = vld [vmem:[%s23513_s6 + $0x70] sm:$0xff]  }
 0x6fe   : > { %v13139_v56 = vmax.bf16 %v13112_v7, %v13064_v60  ;;  %v12949_v25 = vrot.slane %v22592_v43, 4  ;;  %v12575_v11 = vrot.slane %v22594_v41, 4  ;;  %v12840_v40 = vmax.bf16 %v12814_v54, %v12765_v37  ;;  %16482 = vmatprep.subr.bf16.mxu1 %v16952_v45  ;;  %16498 = vmatprep.subr.bf16.mxu0 %v16953_v30  ;;  %v16963_v37 = vld [vmem:[%s23513_s6 + $0xf0] sm:$0xff]  }
 0x700   : > { %13150 = vst [vmem:[#allocation4 + $0x18] sm:$0xff] %v13139_v56  ;;  %v12963_v35 = vsel %vm6910_vm12, %v12948_v6, %v12949_v25  ;;  %v12590_v16 = vsel %vm6910_vm12, %v12574_v31, %v12575_v11  ;;  %v16954_v6 = vld [vmem:[%s23513_s6 + $0x30] sm:$0xff]   ;;  %v12915_v24 = vmax.bf16 %v12889_v17, %v12840_v40 }
 0x701   : > { %v22613_v21 = vpop.permute.xlu1 %13007  ;;  %v22615_v18 = vpop.permute.xlu0 %12634  ;;  %v12964_v50 = vsel %vm4511_vm8, %v22510_v62, %v12963_v35  ;;  %v12591_v55 = vsel %vm481_vm0, %v22465_v44, %v12590_v16  ;;  %16483 = vmatpush3.bf16.msra.mxu1 %v16954_v6  ;;  %16499 = vmatpush3.bf16.msra.mxu0 %v16955_v3  ;;  %v16956_v44 = vld [vmem:[%s23513_s6 + $0x78] sm:$0xff]  }
 0x702   : > { %v13024_v15 = vrot.slane %v22613_v21, 4  ;;  %v12650_v31 = vrot.slane %v22615_v18, 4  ;;  %v12990_v26 = vmax.bf16 %v12964_v50, %v12915_v24  ;;  %v12616_v32 = vmax.bf16 %v21987_v42, %v12591_v55  ;;  %16484 = vmatprep.subr.bf16.mxu1 %v16956_v44  ;;  %v16966_v3 = vld [vmem:[%s23513_s6 + $0xf8] sm:$0xff]  }
 0x704   : > { %v13038_v39 = vsel %vm6910_vm12, %v13023_v14, %v13024_v15  ;;  %v12665_v34 = vsel %vm6910_vm12, %v12649_v28, %v12650_v31  ;;  %v16957_v14 = vld [vmem:[%s23513_s6 + $0xe0] sm:$0xff]   ;;  %v16958_v28 = vld [vmem:[%s23513_s6 + $0x38] sm:$0xff]  }
 0x705   : > { %v13039_v62 = vsel %vm5221_vm9, %v22536_v8, %v13038_v39  ;;  %v22645_v4 = vpop.permute.xlu1 %13082  ;;  %v22647_v22 = vpop.permute.xlu0 %12709  ;;  %v12666_v9 = vsel %vm1684_vm4, %v22485_v0, %v12665_v34  ;;  %16500 = vmatprep.subr.bf16.mxu0 %v16957_v14  ;;  %16485 = vmatpush3.bf16.msra.mxu1 %v16958_v28  ;;  %v16969_v28 = vld [vmem:[%s23513_s6 + $0x40] sm:$0xff]  }
 0x706   : > { %v13099_v63 = vrot.slane %v22645_v4, 4  ;;  %v12725_v8 = vrot.slane %v22647_v22, 4  ;;  %v13065_v19 = vmax.bf16 %v13039_v62, %v12990_v26  ;;  %16501 = vmatpush3.bf16.msra.mxu0 %v16959_v10  ;;  %16781 = vmatprep.subr.bf16.mxu1 %v17244_v49 }
 0x707   : > { %v13662_v20 = vld [vmem:[#allocation4 + $0x14] sm:$0xff] }
 0x708   : > { %v13113_v38 = vsel %vm6910_vm12, %v13098_v12, %v13099_v63  ;;  %v12740_v46 = vsel %vm6910_vm12, %v12724_v53, %v12725_v8  ;;  %v16194_v36 = vcombine.high %v13662_v20, %v13662_v20  ;;  %v16960_v12 = vld [vmem:[%s23513_s6 + $0xe8] sm:$0xff]   ;;  %v12691_v53 = vmax.bf16 %v12666_v9, %v12616_v32 }
 0x709   : > { %v13114_v42 = vsel %vm5931_vm10, %v22561_v58, %v13113_v38  ;;  %v12741_v0 = vsel %vm2390_vm5, %v22508_v48, %v12740_v46  ;;  %v22678_v60 = vpop.permute.xlu1 %12784  ;;  %v22680_v57 = vpop.permute.xlu0 %12859  ;;  %v16961_v48 = vld [vmem:[%s23513_s6 + $0xa8] sm:$0xff]   ;;  %16502 = vmatprep.subr.bf16.mxu0 %v16960_v12  ;;  %v16193_v7 = vcombine.low %v13662_v20, %v13662_v20 }
 0x70a   : > { %v13140_v29 = vmax.bf16 %v13114_v42, %v13065_v19  ;;  %v12800_v61 = vrot.slane %v22678_v60, 4  ;;  %v12875_v58 = vrot.slane %v22680_v57, 4  ;;  %13751 = vrot.lane.b32.xlu0 %v16194_v36, %s17251_s22  ;;  %v12766_v27 = vmax.bf16 %v12741_v0, %v12691_v53  ;;  %16503 = vmatpush3.bf16.msra.mxu0 %v16961_v48  ;;  %v17170_v42 = vld [vmem:[#allocation3 + $0x30] sm:$0xff] }
 0x70b   : > { %16504 = vmatprep.subr.bf16.mxu0 %v16963_v37 }
 0x70c   : > { %13151 = vst [vmem:[#allocation4 + $0x20] sm:$0xff] %v13140_v29  ;;  %v12815_v51 = vsel %vm6910_vm12, %v12799_v59, %v12800_v61  ;;  %v12890_v52 = vsel %vm6910_vm12, %v12874_v47, %v12875_v58 }
 0x70d   : > { %v12816_v1 = vsel %vm3096_vm6, %v22534_v23, %v12815_v51  ;;  %v22704_v54 = vpop.permute.xlu1 %12934  ;;  %v22706_v56 = vpop.permute.xlu0 %13009  ;;  %v16964_v23 = vld [vmem:[%s23513_s6 + $0xb0] sm:$0xff]   ;;  %v12891_v47 = vsel %vm3802_vm7, %v22559_v33, %v12890_v52 }
 0x70e   : > { %v12841_v59 = vmax.bf16 %v12816_v1, %v12766_v27  ;;  %v12950_v17 = vrot.slane %v22704_v54, 4  ;;  %v13025_v35 = vrot.slane %v22706_v56, 4  ;;  %13749 = vrot.lane.b32.xlu0 %v16193_v7, %s17251_s22  ;;  %16505 = vmatpush3.bf16.msra.mxu0 %v16964_v23 }
 0x70f   : > { %16506 = vmatprep.subr.bf16.mxu0 %v16966_v3 }
 0x710   : > { %v12916_v40 = vmax.bf16 %v12891_v47, %v12841_v59  ;;  %v12965_v16 = vsel %vm6910_vm12, %v12949_v25, %v12950_v17  ;;  %v13040_v45 = vsel %vm6910_vm12, %v13024_v15, %v13025_v35  ;;  %v16967_v15 = vld [vmem:[%s23513_s6 + $0xb8] sm:$0xff]  }
 0x711   : > { %v12966_v30 = vsel %vm4511_vm8, %v22592_v43, %v12965_v16  ;;  %v22731_v6 = vpop.permute.xlu1 %13084  ;;  %v22733_v33 = vpop.permute.xlu0 %12786  ;;  %v13041_v43 = vsel %vm5221_vm9, %v22613_v21, %v13040_v45 }
 0x712   : > { %v12991_v24 = vmax.bf16 %v12966_v30, %v12916_v40  ;;  %v13100_v25 = vrot.slane %v22731_v6, 4  ;;  %13017 = vrot.lane.b32.xlu0 %v22299_v2, %s23532_s16  ;;  %16507 = vmatpush3.bf16.msra.mxu0 %v16967_v15  ;;  %v12801_v20 = vrot.slane %v22733_v33, 4 }
 0x713   : > { %v13663_v50 = vld [vmem:[#allocation4 + $0x1c] sm:$0xff]  ;;  %16519 = vmatprep.subr.bf16.mxu0 %v16969_v28 }
 0x714   : > { %v13066_v55 = vmax.bf16 %v13041_v43, %v12991_v24  ;;  %v13115_v39 = vsel %vm6910_vm12, %v13099_v63, %v13100_v25  ;;  %v16195_v34 = vcombine.low %v13663_v50, %v13663_v50  ;;  %v16931_v63 = vld [vmem:[#allocation4 + $0x24] ss:$0 sps:$4 sm:$0xff]   ;;  %v16196_v29 = vcombine.high %v13663_v50, %v13663_v50 }
 0x715   : > { %v13116_v62 = vsel %vm5931_vm10, %v22645_v4, %v13115_v39  ;;  %v12562_v44 = vpop.permute.xlu1 %12561  ;;  %v22751_v14 = vpop.permute.xlu0 %12936 }
 0x716   : > { %v13141_v21 = vmax.bf16 %v13116_v62, %v13066_v55  ;;  %v12576_v26 = vrot.slane %v12562_v44, 4  ;;  %13753 = vrot.lane.b32.xlu1 %v16195_v34, %s17251_s22  ;;  %13092 = vrot.lane.b32.xlu0 %v22299_v2, %s23533_s26  ;;  %v17171_v34 = vld [vmem:[#allocation3 + $0x38] sm:$0xff] }
 0x718   : > { %v12592_v4 = vsel %vm6910_vm12, %v12575_v11, %v12576_v26  ;;  %v16240_v59 = vcombine.high %v13141_v21, %v13141_v21 }
 0x719   : > { %v12637_v10 = vpop.permute.xlu1 %12636  ;;  %v22762_v32 = vpop.permute.xlu0 %13086  ;;  %v12593_v19 = vsel %vm481_vm0, %v22594_v41, %v12592_v4  ;;  %v12817_v41 = vsel %vm6910_vm12, %v12800_v61, %v12801_v20 }
 0x71a   : > { %v12651_v9 = vrot.slane %v12637_v10, 4  ;;  %13015 = vrot.lane.b32.xlu1 %v22067_v13, %s23532_s16  ;;  %13757 = vrot.lane.b32.xlu0 %v16931_v63, %s17251_s22  ;;  %v12617_v0 = vmax.bf16 %v17170_v42, %v12593_v19  ;;  %v12818_v61 = vsel %vm3096_vm6, %v22678_v60, %v12817_v41  ;;  %v13101_v1 = vrot.slane %v22762_v32, 4  ;;  %s17252_s16 = smov 56  }
 0x71c   : > { %v12667_v38 = vsel %vm6910_vm12, %v12650_v31, %v12651_v9  ;;  %v12951_v31 = vrot.slane %v22751_v14, 4 }
 0x71d   : > { %v12668_v11 = vsel %vm1684_vm4, %v22615_v18, %v12667_v38  ;;  %v12712_v46 = vpop.permute.xlu1 %12711  ;;  %v22775_v36 = vpop.permute.xlu0 %12563 }
 0x71e   : > { %v12726_v12 = vrot.slane %v12712_v46, 4  ;;  %13090 = vrot.lane.b32.xlu1 %v22067_v13, %s23533_s26  ;;  %v12692_v53 = vmax.bf16 %v12668_v11, %v12617_v0  ;;  %v12577_v27 = vrot.slane %v22775_v36, 4 }
 0x720   : > { %v12742_v18 = vsel %vm6910_vm12, %v12725_v8, %v12726_v12  ;;  %v12594_v23 = vsel %vm6910_vm12, %v12576_v26, %v12577_v27 }
 0x721   : > { %v12743_v48 = vsel %vm2390_vm5, %v22647_v22, %v12742_v18  ;;  %v12862_v13 = vpop.permute.xlu1 %12861  ;;  %v22791_v51 = vpop.permute.xlu0 %12713  ;;  %v12967_v22 = vsel %vm6910_vm12, %v12950_v17, %v12951_v31  ;;  %v12595_v30 = vsel %vm481_vm0, %v12562_v44, %v12594_v23 }
 0x722   : > { %v12767_v52 = vmax.bf16 %v12743_v48, %v12692_v53  ;;  %v12876_v7 = vrot.slane %v12862_v13, 4  ;;  %13755 = vrot.lane.b32.xlu1 %v16196_v29, %s17251_s22  ;;  %v12968_v17 = vsel %vm4511_vm8, %v22704_v54, %v12967_v22  ;;  %v12727_v3 = vrot.slane %v22791_v51, 4 }
 0x723   : > { %v12618_v62 = vmax.bf16 %v17171_v34, %v12595_v30 }
 0x724   : > { %v12842_v8 = vmax.bf16 %v12818_v61, %v12767_v52  ;;  %v12892_v37 = vsel %vm6910_vm12, %v12875_v58, %v12876_v7  ;;  %v13117_v58 = vsel %vm6910_vm12, %v13100_v25, %v13101_v1  ;;  %v12744_v44 = vsel %vm6910_vm12, %v12726_v12, %v12727_v3  ;;  %v17172_v61 = vld [vmem:[#allocation3 + $0x40] sm:$0xff] }
 0x725   : > { %v12893_v47 = vsel %vm3802_vm7, %v22680_v57, %v12892_v37  ;;  %v22808_v60 = vpop.permute.xlu1 %13011  ;;  %v22810_v40 = vpop.permute.xlu0 %12863  ;;  %v16239_v57 = vcombine.low %v13141_v21, %v13141_v21  ;;  %v13118_v25 = vsel %vm5931_vm10, %v22731_v6, %v13117_v58  ;;  %v12745_v6 = vsel %vm2390_vm5, %v12712_v46, %v12744_v44 }
 0x726   : > { %v12917_v16 = vmax.bf16 %v12893_v47, %v12842_v8  ;;  %v13026_v45 = vrot.slane %v22808_v60, 4  ;;  %14263 = vrot.lane.b32.xlu1 %v16240_v59, %s17252_s16 }
 0x728   : > { %v12992_v24 = vmax.bf16 %v12968_v17, %v12917_v16  ;;  %v13042_v15 = vsel %vm6910_vm12, %v13025_v35, %v13026_v45  ;;  %v12877_v35 = vrot.slane %v22810_v40, 4 }
 0x729   : > { %v13043_v43 = vsel %vm5221_vm9, %v22706_v56, %v13042_v15  ;;  %v12639_v54 = vpop.permute.xlu1 %12638  ;;  %v22828_v50 = vpop.permute.xlu0 %13013 }
 0x72a   : > { %v13067_v55 = vmax.bf16 %v13043_v43, %v12992_v24  ;;  %v12652_v39 = vrot.slane %v12639_v54, 4  ;;  %14261 = vrot.lane.b32.xlu1 %v16239_v57, %s17252_s16  ;;  %v13027_v42 = vrot.slane %v22828_v50, 4  ;;  %v12894_v0 = vsel %vm6910_vm12, %v12876_v7, %v12877_v35 }
 0x72b   : > { %v12895_v7 = vsel %vm3802_vm7, %v12862_v13, %v12894_v0 }
 0x72c   : > { %v13142_v28 = vmax.bf16 %v13118_v25, %v13067_v55  ;;  %v12669_v21 = vsel %vm6910_vm12, %v12651_v9, %v12652_v39 }
 0x72d   : > { %v12670_v56 = vsel %vm1684_vm4, %v12637_v10, %v12669_v21  ;;  %v12789_v26 = vpop.permute.xlu1 %12788  ;;  %v22837_v4 = vpop.permute.xlu0 %12565 }
 0x72e   : > { %v12693_v63 = vmax.bf16 %v12670_v56, %v12618_v62  ;;  %v12802_v19 = vrot.slane %v12789_v26, 4  ;;  %v12578_v38 = vrot.slane %v22837_v4, 4  ;;  %v16241_v11 = vcombine.low %v13142_v28, %v13142_v28 }
 0x730   : > { %v12768_v12 = vmax.bf16 %v12745_v6, %v12693_v63  ;;  %v12819_v9 = vsel %vm6910_vm12, %v12801_v20, %v12802_v19  ;;  %v12596_v10 = vsel %vm6910_vm12, %v12577_v27, %v12578_v38  ;;  %14265 = vrot.lane.b32.xlu0 %v16241_v11, %s17252_s16  ;;  %v16242_v20 = vcombine.high %v13142_v28, %v13142_v28 }
 0x731   : > { %v12820_v41 = vsel %vm3096_vm6, %v22733_v33, %v12819_v9  ;;  %v12597_v46 = vsel %vm481_vm0, %v22775_v36, %v12596_v10  ;;  %v12939_v53 = vpop.permute.xlu1 %12938  ;;  %v22854_v18 = vpop.permute.xlu0 %12640  ;;  %v13044_v27 = vsel %vm6910_vm12, %v13026_v45, %v13027_v42 }
 0x732   : > { %v12843_v29 = vmax.bf16 %v12820_v41, %v12768_v12  ;;  %v12952_v48 = vrot.slane %v12939_v53, 4  ;;  %v12653_v52 = vrot.slane %v22854_v18, 4  ;;  %v12619_v22 = vmax.bf16 %v17172_v61, %v12597_v46 }
 0x734   : > { %v12918_v33 = vmax.bf16 %v12895_v7, %v12843_v29  ;;  %v12969_v36 = vsel %vm6910_vm12, %v12951_v31, %v12952_v48  ;;  %v12671_v8 = vsel %vm6910_vm12, %v12652_v39, %v12653_v52  ;;  %14267 = vrot.lane.b32.xlu0 %v16242_v20, %s17252_s16  ;;  %v13045_v31 = vsel %vm5221_vm9, %v22808_v60, %v13044_v27 }
 0x735   : > { %v12970_v37 = vsel %vm4511_vm8, %v22751_v14, %v12969_v36  ;;  %v12672_v13 = vsel %vm1684_vm4, %v12639_v54, %v12671_v8  ;;  %v22869_v59 = vpop.permute.xlu1 %13088  ;;  %v12716_v23 = vpop.permute.xlu0 %12715 }
 0x736   : > { %v12993_v47 = vmax.bf16 %v12970_v37, %v12918_v33  ;;  %v12694_v16 = vmax.bf16 %v12672_v13, %v12619_v22  ;;  %v13102_v45 = vrot.slane %v22869_v59, 4  ;;  %v12728_v17 = vrot.slane %v12716_v23, 4  ;;  %v17173_v37 = vld [vmem:[#allocation3 + $0x48] sm:$0xff] }
 0x738   : > { %v13068_v58 = vmax.bf16 %v13045_v31, %v12993_v47  ;;  %v13119_v14 = vsel %vm6910_vm12, %v13101_v1, %v13102_v45  ;;  %v12746_v57 = vsel %vm6910_vm12, %v12727_v3, %v12728_v17 }
 0x739   : > { %v13120_v30 = vsel %vm5931_vm10, %v22762_v32, %v13119_v14  ;;  %v12747_v24 = vsel %vm2390_vm5, %v22791_v51, %v12746_v57  ;;  %v22884_v15 = vpop.permute.xlu1 %12940  ;;  %v12791_v43 = vpop.permute.xlu0 %12790 }
 0x73a   : > { %v13143_v54 = vmax.bf16 %v13120_v30, %v13068_v58  ;;  %v12769_v60 = vmax.bf16 %v12747_v24, %v12694_v16  ;;  %v12953_v55 = vrot.slane %v22884_v15, 4  ;;  %v12803_v39 = vrot.slane %v12791_v43, 4 }
 0x73c   : > { %13154 = vst [vmem:[#allocation4 + $0x38] sm:$0xff] %v13143_v54  ;;  %v12971_v1 = vsel %vm6910_vm12, %v12952_v48, %v12953_v55  ;;  %v12821_v3 = vsel %vm6910_vm12, %v12802_v19, %v12803_v39 }
 0x73d   : > { %v12972_v32 = vsel %vm4511_vm8, %v12939_v53, %v12971_v1  ;;  %v12822_v25 = vsel %vm3096_vm6, %v12789_v26, %v12821_v3  ;;  %v12866_v51 = vpop.permute.xlu0 %12865  ;;  %v12568_v11 = vpop.permute.xlu1 %12567  ;;  %v16965_v1 = vld [vmem:[%s23513_s6 + $0x108] sm:$0xff]  }
 0x73e   : > { %v12844_v34 = vmax.bf16 %v12822_v25, %v12769_v60  ;;  %v12878_v62 = vrot.slane %v12866_v51, 4  ;;  %v12621_v26 = vmax.bf16 %v12568_v11, %v22299_v2  ;;  %v12579_v9 = vrot.slane %v12568_v11, 4 }
 0x740   : > { %v12896_v44 = vsel %vm6910_vm12, %v12877_v35, %v12878_v62 }
 0x741   : > { %v12897_v28 = vsel %vm3802_vm7, %v22810_v40, %v12896_v44  ;;  %v12643_v19 = vpop.permute.xlu1 %12642  ;;  %v12943_v0 = vpop.permute.xlu0 %12942  ;;  %v12598_v40 = vsel %vm6910_vm12, %v12578_v38, %v12579_v9 }
 0x742   : > { %v12919_v21 = vmax.bf16 %v12897_v28, %v12844_v34  ;;  %v12696_v10 = vmax.bf16 %v12643_v19, %v12621_v26  ;;  %v12654_v35 = vrot.slane %v12643_v19, 4  ;;  %v12599_v2 = vsel %vm481_vm0, %v22837_v4, %v12598_v40 }
 0x743   : > { %v16933_v56 = vld [vmem:[#allocation4 + $0x38] ss:$0 sps:$4 sm:$0xff]   ;;  %v12620_v13 = vmax.bf16 %v17173_v37, %v12599_v2  ;;  %vm13157_vm0 = vcmask 289792   ;;  %v12954_v57 = vrot.slane %v12943_v0, 4  ;;  %v16979_v2 = vld [vmem:[%s23513_s6 + $0x88] sm:$0xff]  }
 0x744   : > { %v22896_v63 = vmax.bf16 %v12972_v32, %v12919_v21  ;;  %14269 = vrot.lane.b32.xlu1 %v16933_v56, %s17252_s16  ;;  %v12673_v7 = vsel %vm6910_vm12, %v12653_v52, %v12654_v35  ;;  %v16968_v56 = vld [vmem:[%s23513_s6 + $0x110] sm:$0xff]   ;;  %s323_s16 = sand.u32 1, %s17228_s10  }
 0x745   : > { %v12718_v6 = vpop.permute.xlu1 %12717  ;;  %v12674_v36 = vsel %vm1684_vm4, %v22854_v18, %v12673_v7  ;;  %v16962_v18 = vld [vmem:[%s23513_s6 + $0x100] sm:$0xff]   ;;  %v12973_v3 = vsel %vm6910_vm12, %v12953_v55, %v12954_v57  ;;  %v16976_v7 = vld [vmem:[%s23513_s6 + $0x50] sm:$0xff]   ;;  %vm13591_vm4 = vcmask 516096   ;;  %s15655_s26 = sshll.u32 %s323_s16, 2  ;;  %s15579_s23 = scalar_lea.sflag [#allocation7], %s323_s16 }
 0x746   : > { %v12771_v46 = vmax.bf16 %v12718_v6, %v12696_v10  ;;  %v12729_v29 = vrot.slane %v12718_v6, 4  ;;  %v12695_v52 = vmax.bf16 %v12674_v36, %v12620_v13  ;;  %v12974_v44 = vsel %vm4511_vm8, %v22884_v15, %v12973_v3  ;;  %s325_s22 = scalar_lea.vmem [#allocation6], %s15655_s26 }
 0x747   : > { %s15592_s17 = sshll.u32 %s325_s22, 4  ;;  %s23467_s17 = int_to_ptr.vmem [resolvable:$true] %s15592_s17 }
 0x748   : > { %v12748_v22 = vsel %vm6910_vm12, %v12728_v17, %v12729_v29  ;;  %v16974_v29 = vld [vmem:[%s23513_s6 + $0xc0] sm:$0xff]   ;;  %s17174_s21 = scalar_lea.vmem %s23467_s17, 64 }
 0x749   : > { %v12793_v12 = vpop.permute.xlu1 %12792  ;;  %v12749_v16 = vsel %vm2390_vm5, %v12716_v23, %v12748_v22  ;;  %v16982_v22 = vld [vmem:[%s23513_s6 + $0x58] sm:$0xff]   ;;  %vm13592_vm5 = vsmask.f32 256  ;;  %p17175_p11 = scmp.ne.s32.totalorder %s23467_s17, %s17174_s21 }
 0x74a   : > { %v12846_v48 = vmax.bf16 %v12793_v12, %v12771_v46  ;;  %v12804_v27 = vrot.slane %v12793_v12, 4  ;;  %v12770_v30 = vmax.bf16 %v12749_v16, %v12695_v52  ;;  %v16985_v16 = vld [vmem:[%s23513_s6 + $0x90] sm:$0xff]  }
 0x74b   : > { %p17176_p12 = pnand %p17175_p11, %p17344_p5 }
 0x74c   : > { %v12823_v38 = vsel %vm6910_vm12, %v12803_v39, %v12804_v27  ;;  %v16978_v27 = vld [vmem:[%s23513_s6 + $0xc8] sm:$0xff]  }
 0x74d   : > { %v12868_v53 = vpop.permute.xlu1 %12867  ;;  %v12824_v4 = vsel %vm3096_vm6, %v12791_v43, %v12823_v38  ;;  %vm23137_vm6 = vmand %vm13591_vm4, %vm13592_vm5  ;;  %p17177_p13 = pneg %p17176_p12 }
 0x74e   : > { %v12921_v61 = vmax.bf16 %v12868_v53, %v12846_v48  ;;  %v12879_v33 = vrot.slane %v12868_v53, 4  ;;  %v12845_v43 = vmax.bf16 %v12824_v4, %v12770_v30  ;;  %v16973_v48 = vld [vmem:[%s23513_s6 + $0x8] sm:$0xff]   ;;  %v16988_v4 = vld [vmem:[%s23513_s6 + $0x60] sm:$0xff]  }
 0x750   : > { %v12996_v47 = vmax.bf16 %v12943_v0, %v12921_v61  ;;  %v12898_v31 = vsel %vm6910_vm12, %v12878_v62, %v12879_v33  ;;  %v16977_v61 = vld [vmem:[%s23513_s6 + $0x10] sm:$0xff]  }
 0x751   : > { %v12899_v60 = vsel %vm3802_vm7, %v12866_v51, %v12898_v31  ;;  %vm14788_vm7 = vcmask 162816  }
 0x752   : > { %v12920_v25 = vmax.bf16 %v12899_v60, %v12845_v43 }
 0x754   : > { %v12995_v19 = vmax.bf16 %v12974_v44, %v12920_v25  ;;  %v16995_v25 = vld [vmem:[%s23513_s6 + $0x28] sm:$0xff]   ;;  %v16999_v44 = vld [vmem:[%s23513_s6 + $0x30] sm:$0xff]  }
 0x77c   : > { %v13752_v41 = vpop.permute.xlu0 %13751 }
 0x780   : > { %v13750_v20 = vpop.permute.xlu0 %13749 }
 0x781   : > { %v13760_v23 = vsel %vm13759_vm2, %v13750_v20, %v13752_v41  ;;  %v16975_v20 = vld [vmem:[%s23513_s6 + $0x80] sm:$0xff]  }
 0x784   : > { %v13018_v8 = vpop.permute.xlu0 %13017 }
 0x785   : > { %v13071_v58 = vmax.bf16 %v13018_v8, %v12996_v47  ;;  %v13029_v32 = vrot.slane %v13018_v8, 4  ;;  %v16984_v8 = vld [vmem:[%s23513_s6 + $0xd0] sm:$0xff]   ;;  %v16983_v47 = vld [vmem:[%s23513_s6 + $0x18] sm:$0xff]  }
 0x788   : > { %v13754_v17 = vpop.permute.xlu1 %13753  ;;  %v13093_v14 = vpop.permute.xlu0 %13092 }
 0x789   : > { %v13146_v24 = vmax.bf16 %v13093_v14, %v13071_v58  ;;  %v13761_v54 = vsel %vm13759_vm2, %v13752_v41, %v13754_v17  ;;  %v13104_v11 = vrot.slane %v13093_v14, 4 }
 0x78a   : > { %14019 = vmatprep.mubr.bf16.mxu1 %v13761_v54  ;;  %v16989_v54 = vld [vmem:[%s23513_s6 + $0x20] sm:$0xff]  }
 0x78b   : > { %13158 = vst.msk [vmem:[#allocation4 + $0x50] sm:$0xf] %vm13157_vm0, %v13146_v24  ;;  %14020 = vmatmul.mubr.bf16.vlgmr.msra.gmra.mrb[144].mxu1 %v13760_v23  ;;  %v16991_v23 = vld [vmem:[%s23513_s6 + $0x98] sm:$0xff]   ;;  %vm23404_vm0 = vmand %vm14643_vm15, %vm14631_vm13 }
 0x78c   : > { %16782 = vmatpush3.bf16.msra.mxu1 %v16962_v18  ;;  %v13016_v39 = vpop.permute.xlu1 %13015  ;;  %16789 = vmatprep.mubr.msk.bf16.mxu1 %vm17245_vm3, %v17244_v49  ;;  %v13758_v26 = vpop.permute.xlu0 %13757 }
 0x78d   : > { %v13028_v34 = vrot.slane %v13016_v39, 4  ;;  %16783 = vmatprep.subr.bf16.mxu1 %v17244_v49 }
 0x78f   : > { %v13046_v51 = vsel %vm6910_vm12, %v13027_v42, %v13028_v34  ;;  %v13048_v62 = vsel %vm6910_vm12, %v13028_v34, %v13029_v32  ;;  %v16970_v42 = vld [vmem:[%s23513_s6 + $0x118] ss:$0 sps:$4 sm:$0xff]   ;;  %v16997_v34 = vld [vmem:[%s23513_s6 + $0xa0] sm:$0xff]  }
 0x790   : > { %v13047_v28 = vsel %vm5221_vm9, %v22828_v50, %v13046_v51  ;;  %v13049_v21 = vsel %vm5221_vm9, %v13016_v39, %v13048_v62  ;;  %16784 = vmatpush3.bf16.msra.mxu1 %v16965_v1  ;;  %v13091_v55 = vpop.permute.xlu1 %13090  ;;  %v13985_v35 = vsel %vm6910_vm12, %v16970_v42, 0  ;;  %v16994_v39 = vld [vmem:[%s23513_s6 + $0x68] sm:$0xff]   ;;  %v16996_v1 = vld [vmem:[%s23513_s6 + $0xe0] sm:$0xff]   ;;  %v16998_v51 = vld [vmem:[%s23513_s6 + $0x70] sm:$0xff]   ;;  %vm14120_vm9 = vsmask.f32 7938 }
 0x791   : > { %v13103_v6 = vrot.slane %v13091_v55, 4  ;;  %16785 = vmatprep.subr.bf16.mxu1 %v17244_v49  ;;  %v13069_v15 = vmax.bf16 %v13047_v28, %v22896_v63  ;;  %v13070_v50 = vmax.bf16 %v13049_v21, %v12995_v19  ;;  %v16971_v63 = vld [vmem:[%s23513_s6] sm:$0xff]   ;;  %v17000_v62 = vld [vmem:[%s23513_s6 + $0xe8] sm:$0xff]   ;;  %v17002_v21 = vld [vmem:[%s23513_s6 + $0x78] sm:$0xff]  }
 0x792   : > { %v17001_v28 = vld [vmem:[%s23513_s6 + $0xa8] sm:$0xff]   ;;  %v17005_v42 = vld [vmem:[%s23513_s6 + $0xb0] sm:$0xff]  }
 0x793   : > { %v13121_v0 = vsel %vm6910_vm12, %v13102_v45, %v13103_v6  ;;  %v13123_v12 = vsel %vm6910_vm12, %v13103_v6, %v13104_v11  ;;  %v17006_v11 = vld [vmem:[%s23513_s6 + $0xf8] sm:$0xff]   ;;  %v17007_v6 = vld [vmem:[%s23513_s6 + $0x100] sm:$0xff]  }
 0x794   : > { %v13122_v9 = vsel %vm5931_vm10, %v22869_v59, %v13121_v0  ;;  %v13124_v10 = vsel %vm5931_vm10, %v13091_v55, %v13123_v12  ;;  %16786 = vmatpush3.bf16.msra.mxu1 %v16968_v56  ;;  %v13756_v41 = vpop.permute.xlu1 %13755  ;;  %v16972_v59 = vld [vmem:[%s23513_s6 + $0x48] sm:$0xff]   ;;  %v17004_v55 = vld [vmem:[%s23513_s6 + $0xf0] sm:$0xff]   ;;  %v17003_v56 = vld [vmem:[%s23513_s6 + $0x38] sm:$0xff]  }
 0x795   : > { %v13144_v46 = vmax.bf16 %v13122_v9, %v13069_v15  ;;  %v13145_v53 = vmax.bf16 %v13124_v10, %v13070_v50  ;;  %v13762_v45 = vsel %vm13759_vm2, %v13754_v17, %v13756_v41  ;;  %v13763_v40 = vsel %vm13759_vm2, %v13756_v41, %v13758_v26  ;;  %16787 = vmatprep.subr.bf16.mxu1 %v17244_v49  ;;  %v16990_v17 = vld [vmem:[%s23513_s6 + $0xd8] sm:$0xff]   ;;  %vm23246_vm10 = vmand %vm13591_vm4, %vm14120_vm9 }
 0x796   : > { %14059 = vmatprep.mubr.bf16.mxu0 %v13763_v40  ;;  %v17008_v15 = vld [vmem:[%s23513_s6 + $0xb8] sm:$0xff]   ;;  %v17014_v40 = vld [vmem:[%s23513_s6 + $0x48] sm:$0xff]  }
 0x797   : > { %13155 = vst [vmem:[#allocation4 + $0x40] sm:$0xff] %v13144_v46  ;;  %13156 = vst [vmem:[#allocation4 + $0x48] sm:$0xff] %v13145_v53  ;;  %14060 = vmatmul.mubr.bf16.vlgmr.msra.gmra.mrb[148].mxu0 %v13762_v45  ;;  %v17013_v53 = vld [vmem:[%s23513_s6] sm:$0xff]  }
 0x798   : > { %16788 = vmatpush3.bf16.msra.mxu1 %v13985_v35  ;;  %16520 = vmatpush3.bf16.msra.mxu0 %v16971_v63  ;;  %v14264_v57 = vpop.permute.xlu1 %14263  ;;  %v17009_v35 = vld [vmem:[%s23513_s6 + $0x108] sm:$0xff]  }
 0x799   : > { %16521 = vmatprep.subr.bf16.mxu0 %v16972_v59  ;;  %16541 = vmatprep.subr.bf16.mxu1 %v16974_v29 }
 0x79b   : > { %16790 = vmatmul.mubr.msk.bf16.vlgmr.msra.gmra.mrb[148].mxu1 %vm13463_vm1, %v13758_v26  ;;  %v17012_v26 = vld [vmem:[%s23513_s6 + $0x40] sm:$0xff]  }
 0x79c   : > { %16522 = vmatpush3.bf16.msra.mxu0 %v16973_v48  ;;  %16542 = vmatpush3.bf16.msra.mxu1 %v16975_v20  ;;  %v14262_v19 = vpop.permute.xlu1 %14261  ;;  %v17010_v48 = vld [vmem:[%s23513_s6 + $0x110] sm:$0xff]   ;;  %v17015_v20 = vld [vmem:[%s23513_s6 + $0x8] sm:$0xff]  }
 0x79d   : > { %16523 = vmatprep.subr.bf16.mxu0 %v16976_v7  ;;  %16543 = vmatprep.subr.bf16.mxu1 %v16978_v27  ;;  %v14272_v50 = vsel %vm13463_vm1, %v14262_v19, %v14264_v57  ;;  %v17011_v7 = vld [vmem:[%s23513_s6 + $0x118] ss:$0 sps:$4 sm:$0xff]   ;;  %v17018_v27 = vld [vmem:[%s23513_s6 + $0x50] sm:$0xff]  }
 0x79e   : > { %v14687_v33 = vld [vmem:[#allocation4 + $0x3c] sm:$0xff]  ;;  %v14688_v36 = vld [vmem:[#allocation4 + $0x44] sm:$0xff]  ;;  %v14689_v60 = vld [vmem:[#allocation4 + $0x4c] sm:$0xff] }
 0x79f   : > { %v16284_v37 = vcombine.high %v14687_v33, %v14687_v33  ;;  %v16285_v13 = vcombine.low %v14688_v36, %v14688_v36  ;;  %v16437_v38 = vpop.f32.mrb[140].mxu0  ;;  %v16283_v30 = vcombine.low %v14687_v33, %v14687_v33  ;;  %v16286_v24 = vcombine.high %v14688_v36, %v14688_v36  ;;  %v17022_v33 = vld [vmem:[%s23513_s6 + $0x58] sm:$0xff]   ;;  %v17017_v36 = vld [vmem:[%s23513_s6 + $0x80] sm:$0xff]  }
 0x7a0   : > { %16524 = vmatpush3.bf16.msra.mxu0 %v16977_v61  ;;  %16544 = vmatpush3.bf16.msra.mxu1 %v16979_v2  ;;  %v16438_v52 = vpop.f32.mrb[141].mxu0  ;;  %v16287_v3 = vcombine.low %v14689_v60, %v14689_v60  ;;  %v16288_v32 = vcombine.high %v14689_v60, %v14689_v60  ;;  %v17019_v61 = vld [vmem:[%s23513_s6 + $0x10] sm:$0xff]   ;;  %v14497_v2 = vsel %vm6910_vm12, %v17011_v7, 0 }
 0x7a1   : > { %14778 = vrot.lane.b32.xlu0 %v16284_v37, %s17253_s25  ;;  %14780 = vrot.lane.b32.xlu1 %v16285_v13, %s17253_s25  ;;  %v22998_v31 = vadd.f32 %v16438_v52, %v16437_v38  ;;  %v16440_v58 = vpop.f32.mrb[142].mxu0  ;;  %v17020_v37 = vld [vmem:[%s23513_s6 + $0xc8] sm:$0xff]   ;;  %v17026_v13 = vld [vmem:[%s23513_s6 + $0x60] sm:$0xff]  }
 0x7a2   : > { %16525 = vmatprep.subr.bf16.mxu0 %v16982_v22  ;;  %16545 = vmatprep.subr.bf16.mxu1 %v16984_v8  ;;  %v16441_v14 = vpop.f32.mrb[143].mxu0  ;;  %v23006_v18 = vpop.permute.xlu0 %14265  ;;  %v17016_v22 = vld [vmem:[%s23513_s6 + $0xc0] sm:$0xff]   ;;  %v17023_v8 = vld [vmem:[%s23513_s6 + $0x18] sm:$0xff]   ;;  %v17024_v58 = vld [vmem:[%s23513_s6 + $0xd0] sm:$0xff]  }
 0x7a3   : > { %v14273_v43 = vsel %vm13463_vm1, %v14264_v57, %v23006_v18  ;;  %v13594_v14 = vld [vmem:[#allocation5] sm:$0x1] }
 0x7a4   : > { %16526 = vmatpush3.bf16.msra.mxu0 %v16983_v47  ;;  %16546 = vmatpush3.bf16.msra.mxu1 %v16985_v16  ;;  %v17021_v47 = vld [vmem:[%s23513_s6 + $0x88] sm:$0xff]   ;;  %v17027_v16 = vld [vmem:[%s23513_s6 + $0x20] sm:$0xff]  }
 0x7a5   : > { %14776 = vrot.lane.b32.xlu0 %v16283_v30, %s17253_s25  ;;  %14782 = vrot.lane.b32.xlu1 %v16286_v24, %s17253_s25  ;;  %v17025_v24 = vld [vmem:[%s23513_s6 + $0x90] sm:$0xff]  }
 0x7a6   : > { %16527 = vmatprep.subr.bf16.mxu0 %v16988_v4  ;;  %16547 = vmatprep.subr.bf16.mxu1 %v16990_v17  ;;  %v14268_v0 = vpop.permute.xlu0 %14267  ;;  %v17030_v4 = vld [vmem:[%s23513_s6 + $0x68] sm:$0xff]  }
 0x7a7   : > { %14531 = vmatprep.mubr.bf16.mxu0 %v14273_v43  ;;  %v14274_v59 = vsel %vm13463_vm1, %v23006_v18, %v14268_v0  ;;  %v17028_v43 = vld [vmem:[%s23513_s6 + $0xd8] sm:$0xff]  }
 0x7a8   : > { %16528 = vmatpush3.bf16.msra.mxu0 %v16989_v54  ;;  %16548 = vmatpush3.bf16.msra.mxu1 %v16991_v23  ;;  %v17031_v54 = vld [vmem:[%s23513_s6 + $0x28] sm:$0xff]  }
 0x7a9   : > { %14784 = vrot.lane.b32.xlu0 %v16287_v3, %s17253_s25  ;;  %14786 = vrot.lane.b32.xlu1 %v16288_v32, %s17253_s25  ;;  %s16360_s25 = sshll.u32 %s17327_s13, 6  ;;  %s17255_s13 = smov [#allocation6]  }
 0x7aa   : > { %16529 = vmatprep.subr.bf16.mxu0 %v16994_v39  ;;  %16549 = vmatprep.subr.bf16.mxu1 %v16996_v1  ;;  %v17034_v39 = vld [vmem:[%s23513_s6 + $0x70] sm:$0xff]   ;;  %v13621_v1 = vld [vmem:[#allocation5 + $0x2] sm:$0x1]  ;;  %s23465_s24 = scalar_lea.hbm %s23516_s9, %s16360_s25 }
 0x7ac   : > { %16530 = vmatpush3.bf16.msra.mxu0 %v16995_v25  ;;  %16550 = vmatpush3.bf16.msra.mxu1 %v16997_v34  ;;  %v13634_v34 = vld [vmem:[#allocation5 + $0x4] sm:$0x1] }
 0x7ad   : > { %16531 = vmatprep.subr.bf16.mxu0 %v16998_v51  ;;  %16551 = vmatprep.subr.bf16.mxu1 %v17000_v62  ;;  %v17029_v51 = vld [vmem:[%s23513_s6 + $0x98] sm:$0xff]   ;;  %v17035_v62 = vld [vmem:[%s23513_s6 + $0x30] sm:$0xff]  }
 0x7b0   : > { %16532 = vmatpush3.bf16.msra.mxu0 %v16999_v44  ;;  %16552 = vmatpush3.bf16.msra.mxu1 %v17001_v28  ;;  %v13651_v44 = vld [vmem:[#allocation5 + $0x6] sm:$0x1] }
 0x7b1   : > { %16533 = vmatprep.subr.bf16.mxu0 %v17002_v21  ;;  %16553 = vmatprep.subr.bf16.mxu1 %v17004_v55 }
 0x7b4   : > { %16534 = vmatpush3.bf16.msra.mxu0 %v17003_v56  ;;  %16554 = vmatpush3.bf16.msra.mxu1 %v17005_v42  ;;  %v17032_v56 = vld [vmem:[%s23513_s6 + $0xe0] sm:$0xff]  }
 0x7b5   : > { %16793 = vmatprep.subr.bf16.mxu0 %v17244_v49  ;;  %16555 = vmatprep.subr.bf16.mxu1 %v17006_v11  ;;  %v17038_v11 = vld [vmem:[%s23513_s6 + $0x78] sm:$0xff]  }
 0x7b6   : > { %v16459_v12 = vpop.f32.mrb[140].mxu1  ;;  %v14270_v9 = vpop.permute.xlu1 %14269 }
 0x7b7   : > { %14532 = vmatmul.mubr.bf16.vlgmr.msra.gmra.mrb[152].mxu0 %v14272_v50  ;;  %v16460_v10 = vpop.f32.mrb[141].mxu1  ;;  %v14275_v41 = vsel %vm13463_vm1, %v14268_v0, %v14270_v9  ;;  %v17039_v50 = vld [vmem:[%s23513_s6 + $0x38] sm:$0xff]  }
 0x7b8   : > { %16794 = vmatpush3.bf16.msra.mxu0 %v17007_v6  ;;  %16556 = vmatpush3.bf16.msra.mxu1 %v17008_v15  ;;  %v16461_v63 = vadd.f32 %v16460_v10, %v16459_v12  ;;  %v16462_v46 = vpop.f32.mrb[142].mxu1  ;;  %v17033_v15 = vld [vmem:[%s23513_s6 + $0xa0] sm:$0xff]   ;;  %v17036_v12 = vld [vmem:[%s23513_s6 + $0xe8] sm:$0xff]   ;;  %v17041_v10 = vld [vmem:[%s23513_s6 + $0xb0] sm:$0xff]  }
 0x7b9   : > { %14571 = vmatprep.mubr.bf16.mxu1 %v14275_v41  ;;  %16795 = vmatprep.subr.bf16.mxu0 %v17244_v49  ;;  %v16463_v45 = vpop.f32.mrb[143].mxu1  ;;  %v17043_v41 = vld [vmem:[%s23513_s6 + $0xf8] sm:$0xff]  }
 0x7ba   : > { %16801 = vmatprep.mubr.msk.bf16.mxu0 %vm17245_vm3, %v17244_v49  ;;  %v13545_v29 = vadd.f32 %v16461_v63, %v22998_v31  ;;  %16568 = vmatprep.subr.bf16.mxu1 %v17012_v26  ;;  %v17037_v26 = vld [vmem:[%s23513_s6 + $0xa8] sm:$0xff]   ;;  %v17042_v45 = vld [vmem:[%s23513_s6 + $0x100] sm:$0xff]  }
 0x7bb   : > { %14572 = vmatmul.mubr.bf16.vlgmr.msra.gmra.mrb[152].mxu1 %v14274_v59 }
 0x7bc   : > { %16796 = vmatpush3.bf16.msra.mxu0 %v17009_v35  ;;  %16569 = vmatpush3.bf16.msra.mxu1 %v17013_v53  ;;  %v17044_v35 = vld [vmem:[%s23513_s6 + $0xb8] sm:$0xff]  }
 0x7bd   : > { %16797 = vmatprep.subr.bf16.mxu0 %v17244_v49  ;;  %16570 = vmatprep.subr.bf16.mxu1 %v17014_v40 }
 0x7c0   : > { %16798 = vmatpush3.bf16.msra.mxu0 %v17010_v48  ;;  %16571 = vmatpush3.bf16.msra.mxu1 %v17015_v20  ;;  %v17045_v48 = vld [vmem:[%s23513_s6 + $0x108] sm:$0xff]  }
 0x7c1   : > { %16799 = vmatprep.subr.bf16.mxu0 %v17244_v49  ;;  %16572 = vmatprep.subr.bf16.mxu1 %v17018_v27 }
 0x7c4   : > { %16800 = vmatpush3.bf16.msra.mxu0 %v14497_v2  ;;  %16573 = vmatpush3.bf16.msra.mxu1 %v17019_v61  ;;  %v17046_v61 = vld [vmem:[%s23513_s6 + $0x110] sm:$0xff]   ;;  %v17047_v2 = vld [vmem:[%s23513_s6 + $0x118] ss:$0 sps:$4 sm:$0xff]  }
 0x7c5   : > { %16590 = vmatprep.subr.bf16.mxu0 %v17016_v22  ;;  %16574 = vmatprep.subr.bf16.mxu1 %v17022_v33  ;;  %v15015_v22 = vsel %vm6910_vm12, %v17047_v2, 0 }
 0x7c7   : > { %16802 = vmatmul.mubr.msk.bf16.vlgmr.msra.gmra.mrb[156].mxu0 %vm13463_vm1, %v14270_v9  ;;  %v13584_v38 = vpop.f32.mrb[144].mxu0  ;;  %v17040_v9 = vld [vmem:[%s23513_s6 + $0xf0] sm:$0xff]  }
 0x7c8   : > { %16591 = vmatpush3.bf16.msra.mxu0 %v17017_v36  ;;  %16575 = vmatpush3.bf16.msra.mxu1 %v17023_v8  ;;  %v13585_v52 = vadd.f32 %v13584_v38, %v13545_v29  ;;  %v16779_v31 = vpop.f32.mrb[145].mxu0 }
 0x7c9   : > { %16592 = vmatprep.subr.bf16.mxu0 %v17020_v37  ;;  %16576 = vmatprep.subr.bf16.mxu1 %v17026_v13  ;;  %v13587_v18 = vpop.f32.mrb[146].mxu0 }
 0x7ca   : > { %v13590_v57 = vpack.c.bf16 %v13585_v52, %v13585_v52  ;;  %v16780_v30 = vpop.f32.mrb[147].mxu0 }
 0x7cc   : > { %16593 = vmatpush3.bf16.msra.mxu0 %v17021_v47  ;;  %16577 = vmatpush3.bf16.msra.mxu1 %v17027_v16  ;;  %v13595_v23 = vsel %vm23137_vm6, %v13590_v57, %v13594_v14  ;;  %v13604_v60 = vrot.slane %v13590_v57, %v17359_v5 }
 0x7cd   : > { %16594 = vmatprep.subr.bf16.mxu0 %v17024_v58  ;;  %16578 = vmatprep.subr.bf16.mxu1 %v17030_v4  ;;  %13596 = vst [vmem:[#allocation5] sm:$0x1] %v13595_v23 }
 0x7ce   : > { %v16188_v3 = vrot.slane %v13604_v60, 9  ;;  %v13632_v32 = vcombine.high %v13604_v60, %v13604_v60  ;;  %v13606_v25 = vshrl.u32 %v13604_v60, 16 }
 0x7d0   : > { %16595 = vmatpush3.bf16.msra.mxu0 %v17025_v24  ;;  %16579 = vmatpush3.bf16.msra.mxu1 %v17031_v54  ;;  %v16191_v28 = vrot.slane %v13632_v32, 9  ;;  %v16189_v21 = vrot.slane %v13606_v25, 9  ;;  %v13638_v55 = vshrl.u32 %v13632_v32, 16  ;;  %v13622_v42 = vsel %vm23137_vm6, %v16188_v3, %v13621_v1 }
 0x7d1   : > { %13610 = vrot.lane.b32.xlu0 %v13606_v25, %s17254_s27  ;;  %16596 = vmatprep.subr.bf16.mxu0 %v17028_v43  ;;  %13623 = vst [vmem:[#allocation5 + $0x2] sm:$0x1] %v13622_v42  ;;  %v13635_v19 = vsel %vm23137_vm6, %v13632_v32, %v13634_v34 }
 0x7d2   : > { %16580 = vmatprep.subr.bf16.mxu1 %v17034_v39  ;;  %13626 = vrot.lane.b32.xlu1 %v16189_v21, %s17254_s27  ;;  %13636 = vst [vmem:[#allocation5 + $0x4] sm:$0x1] %v13635_v19  ;;  %v13652_v6 = vsel %vm23137_vm6, %v16191_v28, %v13651_v44  ;;  %v16192_v0 = vrot.slane %v13638_v55, 9  ;;  %v17059_v21 = vld [vmem:[%s23514_s7 + $0x90] sm:$0xff]  }
 0x7d3   : > { %13653 = vst [vmem:[#allocation5 + $0x6] sm:$0x1] %v13652_v6 }
 0x7d4   : > { %16597 = vmatpush3.bf16.msra.mxu0 %v17029_v51  ;;  %16581 = vmatpush3.bf16.msra.mxu1 %v17035_v62  ;;  %v13615_v37 = vld [vmem:[#allocation5] sm:$0x1] }
 0x7d5   : > { %13642 = vrot.lane.b32.xlu0 %v13638_v55, %s17254_s27  ;;  %16598 = vmatprep.subr.bf16.mxu0 %v17032_v56 }
 0x7d6   : > { %16582 = vmatprep.subr.bf16.mxu1 %v17038_v11  ;;  %13656 = vrot.lane.b32.xlu1 %v16192_v0, %s17254_s27 }
 0x7d8   : > { %16599 = vmatpush3.bf16.msra.mxu0 %v17033_v15  ;;  %16583 = vmatpush3.bf16.msra.mxu1 %v17039_v50  ;;  %v13629_v38 = vld [vmem:[#allocation5 + $0x2] sm:$0x1] }
 0x7d9   : > { %16600 = vmatprep.subr.bf16.mxu0 %v17036_v12  ;;  %16805 = vmatprep.subr.bf16.mxu1 %v17244_v49  ;;  %v13645_v52 = vld [vmem:[#allocation5 + $0x4] sm:$0x1] }
 0x7da   : > { %v13659_v4 = vld [vmem:[#allocation5 + $0x6] sm:$0x1] }
 0x7dc   : > { %16601 = vmatpush3.bf16.msra.mxu0 %v17037_v26 }
 0x7dd   : > { %16602 = vmatprep.subr.bf16.mxu0 %v17040_v9 }
 0x7e0   : > { %16603 = vmatpush3.bf16.msra.mxu0 %v17041_v10 }
 0x7e1   : > { %16604 = vmatprep.subr.bf16.mxu0 %v17043_v41 }
 0x7e4   : > { %16605 = vmatpush3.bf16.msra.mxu0 %v17044_v35 }
 0x813   : > { %v14781_v63 = vpop.permute.xlu1 %14780  ;;  %v14779_v46 = vpop.permute.xlu0 %14778 }
 0x814   : > { %v14790_v53 = vsel %vm14788_vm7, %v14779_v46, %v14781_v63 }
 0x815   : > { %15049 = vmatprep.mubr.bf16.mxu1 %v14790_v53 }
 0x817   : > { %v14777_v40 = vpop.permute.xlu0 %14776  ;;  %v14783_v29 = vpop.permute.xlu1 %14782 }
 0x818   : > { %v14789_v59 = vsel %vm14788_vm7, %v14777_v40, %v14779_v46  ;;  %v14791_v27 = vsel %vm14788_vm7, %v14781_v63, %v14783_v29 }
 0x819   : > { %15050 = vmatmul.mubr.bf16.vlgmr.msra.gmra.mrb[156].mxu1 %v14789_v59 }
 0x81a   : > { %16806 = vmatpush3.bf16.msra.mxu1 %v17042_v45  ;;  %16813 = vmatprep.mubr.msk.bf16.mxu1 %vm17245_vm3, %v17244_v49  ;;  %vm13613_vm3 = vcmask 1040896  }
 0x81b   : > { %v14785_v20 = vpop.permute.xlu0 %14784  ;;  %16807 = vmatprep.subr.bf16.mxu1 %v17244_v49  ;;  %v14787_v33 = vpop.permute.xlu1 %14786  ;;  %vm23229_vm8 = vmand %vm13613_vm3, %vm13592_vm5 }
 0x81c   : > { %v14792_v7 = vsel %vm14788_vm7, %v14783_v29, %v14785_v20  ;;  %v14793_v36 = vsel %vm14788_vm7, %v14785_v20, %v14787_v33  ;;  %vm23416_vm4 = vmand %vm13613_vm3, %vm14120_vm9 }
 0x81d   : > { %15089 = vmatprep.mubr.bf16.mxu0 %v14792_v7 }
 0x81e   : > { %16808 = vmatpush3.bf16.msra.mxu1 %v17045_v48  ;;  %15090 = vmatmul.mubr.bf16.vlgmr.msra.gmra.mrb[160].mxu0 %v14791_v27 }
 0x81f   : > { %16809 = vmatprep.subr.bf16.mxu1 %v17244_v49 }
 0x822   : > { %16810 = vmatpush3.bf16.msra.mxu1 %v17046_v61 }
 0x823   : > { %16811 = vmatprep.subr.bf16.mxu1 %v17244_v49 }
 0x826   : > { %16812 = vmatpush3.bf16.msra.mxu1 %v15015_v22  ;;  %v14648_v22 = vld [vmem:[#allocation5 + $0x2] sm:$0x2] }
 0x829   : > { %16814 = vmatmul.mubr.msk.bf16.vlgmr.msra.gmra.mrb[160].mxu1 %vm13463_vm1, %v14793_v36  ;;  %vm15151_vm1 = vsmask.f32 7942 }
 0x82a   : > { %vm23310_vm2 = vmand %vm14643_vm15, %vm15151_vm1 }
 0x82b   : > { %vm23424_vm5 = vmand %vm14630_vm11, %vm15151_vm1 }
 0x843   : > { %v13611_v13 = vpop.permute.xlu0 %13610 }
 0x844   : > { %v13616_v49 = vsel %vm23229_vm8, %v13611_v13, %v13615_v37  ;;  %v13627_v47 = vpop.permute.xlu1 %13626 }
 0x845   : > { %13617 = vst [vmem:[#allocation5] sm:$0x1] %v13616_v49  ;;  %v13630_v16 = vsel %vm23229_vm8, %v13627_v47, %v13629_v38  ;;  %v14633_v49 = vld [vmem:[#allocation5] sm:$0x2] }
 0x846   : > { %13631 = vst [vmem:[#allocation5 + $0x2] sm:$0x1] %v13630_v16 }
 0x847   : > { %v13643_v31 = vpop.permute.xlu0 %13642 }
 0x848   : > { %v13646_v58 = vsel %vm23229_vm8, %v13643_v31, %v13645_v52  ;;  %v13657_v17 = vpop.permute.xlu1 %13656  ;;  %v14676_v52 = vld [vmem:[#allocation5 + $0x6] sm:$0x2]  ;;  %v14662_v31 = vld [vmem:[#allocation5 + $0x4] sm:$0x2] }
 0x849   : > { %13647 = vst [vmem:[#allocation5 + $0x4] sm:$0x1] %v13646_v58  ;;  %v13660_v14 = vsel %vm23229_vm8, %v13657_v17, %v13659_v4 }
 0x84a   : > { %13661 = vst [vmem:[#allocation5 + $0x6] sm:$0x1] %v13660_v14 }
 0x84c   : > { %v14122_v42 = vld [vmem:[#allocation5] sm:$0x1] }
 0x84d   : > { %v14135_v15 = vld [vmem:[#allocation5 + $0x2] sm:$0x1] }
 0x850   : > { %v14151_v50 = vld [vmem:[#allocation5 + $0x4] sm:$0x1] }
 0x851   : > { %v14163_v9 = vld [vmem:[#allocation5 + $0x6] sm:$0x1] }
 0x85e   : > { %v16486_v18 = vpop.f32.mrb[144].mxu1 }
 0x85f   : > { %v16487_v57 = vpop.f32.mrb[145].mxu1 }
 0x860   : > { %v16488_v30 = vadd.f32 %v16487_v57, %v16486_v18  ;;  %v16489_v24 = vpop.f32.mrb[146].mxu1 }
 0x861   : > { %v16490_v54 = vpop.f32.mrb[147].mxu1  ;;  %v17049_v24 = vld [vmem:[%s23514_s7] sm:$0xff]  }
 0x862   : > { %v17050_v54 = vld [vmem:[%s23514_s7 + $0xc0] sm:$0xff]  }
 0x863   : > { %16639 = vmatprep.subr.bf16.mxu1 %v17050_v54 }
 0x86a   : > { %v16508_v23 = vpop.f32.mrb[148].mxu0 }
 0x86b   : > { %v16509_v60 = vpop.f32.mrb[149].mxu0 }
 0x86c   : > { %v16510_v43 = vadd.f32 %v16509_v60, %v16508_v23  ;;  %v16511_v39 = vpop.f32.mrb[150].mxu0  ;;  %v17051_v23 = vld [vmem:[%s23514_s7 + $0x80] sm:$0xff]   ;;  %v17052_v60 = vld [vmem:[%s23514_s7 + $0x48] sm:$0xff]  }
 0x86d   : > { %v16512_v1 = vpop.f32.mrb[151].mxu0  ;;  %v17054_v39 = vld [vmem:[%s23514_s7 + $0xc8] sm:$0xff]   ;;  %16640 = vmatpush3.bf16.msra.mxu1 %v17051_v23 }
 0x86e   : > { %v14062_v3 = vadd.f32 %v16510_v43, %v16488_v30  ;;  %v14101_v32 = vpop.f32.mrb[148].mxu1  ;;  %v17048_v30 = vld [vmem:[%s23514_s7 + $0x40] sm:$0xff]   ;;  %v17053_v1 = vld [vmem:[%s23514_s7 + $0x8] sm:$0xff]   ;;  %16641 = vmatprep.subr.bf16.mxu1 %v17054_v39 }
 0x86f   : > { %v16791_v25 = vpop.f32.mrb[149].mxu1  ;;  %16617 = vmatprep.subr.bf16.mxu0 %v17048_v30 }
 0x870   : > { %v14102_v34 = vadd.f32 %v14101_v32, %v14062_v3  ;;  %v14104_v51 = vpop.f32.mrb[150].mxu1  ;;  %16618 = vmatpush3.bf16.msra.mxu0 %v17049_v24  ;;  %v17055_v32 = vld [vmem:[%s23514_s7 + $0x88] sm:$0xff]  }
 0x871   : > { %v16792_v62 = vpop.f32.mrb[151].mxu1  ;;  %16619 = vmatprep.subr.bf16.mxu0 %v17052_v60  ;;  %v17058_v51 = vld [vmem:[%s23514_s7 + $0xd0] sm:$0xff]   ;;  %16642 = vmatpush3.bf16.msra.mxu1 %v17055_v32 }
 0x872   : > { %v14107_v44 = vpack.c.bf16 %v14102_v34, %v14102_v34  ;;  %v17056_v34 = vld [vmem:[%s23514_s7 + $0x50] sm:$0xff]   ;;  %16643 = vmatprep.subr.bf16.mxu1 %v17058_v51 }
 0x873   : > { %v17057_v62 = vld [vmem:[%s23514_s7 + $0x10] sm:$0xff]  }
 0x874   : > { %v23242_v28 = vrot.slane %v14107_v44, %v17359_v5  ;;  %16620 = vmatpush3.bf16.msra.mxu0 %v17053_v1 }
 0x875   : > { %16621 = vmatprep.subr.bf16.mxu0 %v17056_v34  ;;  %16644 = vmatpush3.bf16.msra.mxu1 %v17059_v21 }
 0x876   : > { %v14117_v55 = vshll.u32 %v23242_v28, 16  ;;  %v23253_v56 = vcombine.high %v23242_v28, %v23242_v28  ;;  %v16236_v3 = vrot.slane %v23242_v28, 9 }
 0x878   : > { %v16235_v11 = vrot.slane %v14117_v55, 9  ;;  %v14148_v19 = vshll.u32 %v23253_v56, 16  ;;  %v14123_v6 = vsel %vm23246_vm10, %v14117_v55, %v14122_v42  ;;  %v16238_v44 = vrot.slane %v23253_v56, 9  ;;  %16622 = vmatpush3.bf16.msra.mxu0 %v17057_v62 }
 0x879   : > { %14124 = vst [vmem:[#allocation5] sm:$0x1] %v14123_v6 }
 0x87a   : > { %v14136_v0 = vsel %vm23246_vm10, %v16235_v11, %v14135_v15  ;;  %v16237_v12 = vrot.slane %v14148_v19, 9  ;;  %v14152_v26 = vsel %vm23246_vm10, %v14148_v19, %v14151_v50 }
 0x87b   : > { %14137 = vst [vmem:[#allocation5 + $0x2] sm:$0x1] %v14136_v0  ;;  %14153 = vst [vmem:[#allocation5 + $0x4] sm:$0x1] %v14152_v26 }
 0x87c   : > { %v14164_v10 = vsel %vm23246_vm10, %v16237_v12, %v14163_v9  ;;  %v17060_v9 = vld [vmem:[%s23514_s7 + $0x58] sm:$0xff]  }
 0x87d   : > { %14165 = vst [vmem:[#allocation5 + $0x6] sm:$0x1] %v14164_v10  ;;  %16623 = vmatprep.subr.bf16.mxu0 %v17060_v9  ;;  %v17062_v10 = vld [vmem:[%s23514_s7 + $0xd8] sm:$0xff]  }
 0x87e   : > { %16645 = vmatprep.subr.bf16.mxu1 %v17062_v10 }
 0x882   : > { %v14143_v34 = vld [vmem:[#allocation5 + $0x2] sm:$0x1] }
 0x88a   : > { %v16535_v41 = vpop.f32.mrb[152].mxu0 }
 0x88b   : > { %v16536_v35 = vpop.f32.mrb[153].mxu0 }
 0x88c   : > { %v16537_v63 = vadd.f32 %v16536_v35, %v16535_v41  ;;  %v16538_v46 = vpop.f32.mrb[154].mxu0  ;;  %v17063_v41 = vld [vmem:[%s23514_s7 + $0x98] sm:$0xff]   ;;  %v17064_v35 = vld [vmem:[%s23514_s7 + $0x60] sm:$0xff]  }
 0x88d   : > { %v16539_v53 = vpop.f32.mrb[155].mxu0  ;;  %16646 = vmatpush3.bf16.msra.mxu1 %v17063_v41 }
 0x88e   : > { %v16557_v45 = vpop.f32.mrb[152].mxu1  ;;  %v17066_v53 = vld [vmem:[%s23514_s7 + $0xe0] sm:$0xff]  }
 0x88f   : > { %v16558_v40 = vpop.f32.mrb[153].mxu1  ;;  %16647 = vmatprep.subr.bf16.mxu1 %v17066_v53 }
 0x890   : > { %v16559_v59 = vadd.f32 %v16558_v40, %v16557_v45  ;;  %v16560_v29 = vpop.f32.mrb[154].mxu1 }
 0x891   : > { %v16561_v48 = vpop.f32.mrb[155].mxu1  ;;  %v17068_v29 = vld [vmem:[%s23514_s7 + $0x68] sm:$0xff]  }
 0x892   : > { %v14574_v20 = vadd.f32 %v16559_v59, %v16537_v63  ;;  %v17065_v63 = vld [vmem:[%s23514_s7 + $0x20] sm:$0xff]   ;;  %v17069_v48 = vld [vmem:[%s23514_s7 + $0x28] sm:$0xff]  }
 0x893   : > { %v17067_v59 = vld [vmem:[%s23514_s7 + $0xa0] sm:$0xff]  }
 0x894   : > { %16648 = vmatpush3.bf16.msra.mxu1 %v17067_v59 }
 0x89a   : > { %v14613_v7 = vpop.f32.mrb[156].mxu0 }
 0x89b   : > { %v14614_v27 = vadd.f32 %v14613_v7, %v14574_v20  ;;  %v16803_v61 = vpop.f32.mrb[157].mxu0  ;;  %v17070_v7 = vld [vmem:[%s23514_s7 + $0xe8] sm:$0xff]  }
 0x89c   : > { %v14616_v33 = vpop.f32.mrb[158].mxu0  ;;  %16649 = vmatprep.subr.bf16.mxu1 %v17070_v7 }
 0x89d   : > { %v14619_v36 = vpack.c.bf16 %v14614_v27, %v14614_v27  ;;  %v16804_v8 = vpop.f32.mrb[159].mxu0  ;;  %v17072_v27 = vld [vmem:[%s23514_s7 + $0x70] sm:$0xff]  }
 0x89e   : > { %v17074_v33 = vld [vmem:[%s23514_s7 + $0xf0] sm:$0xff]  }
 0x89f   : > { %v14627_v37 = vrot.slane %v14619_v36, %v17359_v5  ;;  %v14649_v13 = vsel %vm23266_vm14, %v14619_v36, %v14648_v22  ;;  %v17071_v22 = vld [vmem:[%s23514_s7 + $0xa8] sm:$0xff]   ;;  %v17073_v8 = vld [vmem:[%s23514_s7 + $0x30] sm:$0xff]  }
 0x8a0   : > { %14650 = vst [vmem:[#allocation5 + $0x2] sm:$0x2] %v14649_v13  ;;  %16650 = vmatpush3.bf16.msra.mxu1 %v17071_v22 }
 0x8a1   : > { %v14628_v38 = vrot.slane %v14627_v37, 7  ;;  %v14659_v47 = vcombine.high %v14627_v37, %v14627_v37  ;;  %v14637_v16 = vshrl.u32 %v14627_v37, 16  ;;  %v17076_v37 = vld [vmem:[%s23514_s7 + $0x78] sm:$0xff]   ;;  %16651 = vmatprep.subr.bf16.mxu1 %v17074_v33 }
 0x8a3   : > { %v14660_v58 = vrot.slane %v14659_v47, 7  ;;  %14653 = vrot.lane.b32.xlu1 %v14637_v16, %s17254_s27  ;;  %v14639_v4 = vrot.slane %v14637_v16, 7  ;;  %v14666_v17 = vshrl.u32 %v14659_v47, 16  ;;  %v14634_v14 = vsel %vm23266_vm14, %v14628_v38, %v14633_v49  ;;  %v17075_v38 = vld [vmem:[%s23514_s7 + $0xb0] sm:$0xff]   ;;  %v17077_v16 = vld [vmem:[%s23514_s7 + $0x38] sm:$0xff]  }
 0x8a4   : > { %14635 = vst [vmem:[#allocation5] sm:$0x2] %v14634_v14  ;;  %v14677_v18 = vsel %vm23266_vm14, %v14659_v47, %v14676_v52  ;;  %v17078_v47 = vld [vmem:[%s23514_s7 + $0xf8] sm:$0xff]   ;;  %16652 = vmatpush3.bf16.msra.mxu1 %v17075_v38 }
 0x8a5   : > { %14640 = vrot.lane.b32.xlu0 %v14639_v4, %s17254_s27  ;;  %14678 = vst [vmem:[#allocation5 + $0x6] sm:$0x2] %v14677_v18  ;;  %v14663_v57 = vsel %vm23266_vm14, %v14660_v58, %v14662_v31  ;;  %v14668_v43 = vrot.slane %v14666_v17, 7  ;;  %16653 = vmatprep.subr.bf16.mxu1 %v17078_v47  ;;  %v17079_v31 = vld [vmem:[%s23514_s7 + $0xb8] sm:$0xff]   ;;  %v16326_v47 = vld [vmem:[%s23515_s8] ss:$0 sm:$0xff] }
 0x8a6   : > { %14664 = vst [vmem:[#allocation5 + $0x4] sm:$0x2] %v14663_v57 }
 0x8a7   : > { %14681 = vrot.lane.b32.xlu1 %v14666_v17, %s17254_s27  ;;  %v14656_v4 = vld [vmem:[#allocation5 + $0x2] sm:$0x2] }
 0x8a8   : > { %16654 = vmatpush3.bf16.msra.mxu1 %v17079_v31 }
 0x8a9   : > { %14669 = vrot.lane.b32.xlu0 %v14668_v43, %s17254_s27 }
 0x8ab   : > { %14140 = vrot.lane.b32.xlu1 %v16236_v3, %s17254_s27  ;;  %v14645_v18 = vld [vmem:[#allocation5] sm:$0x2] }
 0x8ac   : > { %v14684_v24 = vld [vmem:[#allocation5 + $0x6] sm:$0x2] }
 0x8ad   : > { %14125 = vrot.lane.b32.xlu0 %v23242_v28, %s17254_s27  ;;  %v14672_v43 = vld [vmem:[#allocation5 + $0x4] sm:$0x2] }
 0x8af   : > { %14168 = vrot.lane.b32.xlu1 %v16238_v44, %s17254_s27 }
 0x8b1   : > { %14154 = vrot.lane.b32.xlu0 %v23253_v56, %s17254_s27  ;;  %v17061_v56 = vld [vmem:[%s23514_s7 + $0x18] sm:$0xff]  }
 0x8b2   : > { %16624 = vmatpush3.bf16.msra.mxu0 %v17061_v56  ;;  %v14157_v56 = vld [vmem:[#allocation5 + $0x4] sm:$0x1] }
 0x8b3   : > { %16625 = vmatprep.subr.bf16.mxu0 %v17064_v35 }
 0x8b6   : > { %16626 = vmatpush3.bf16.msra.mxu0 %v17065_v63 }
 0x8b7   : > { %16627 = vmatprep.subr.bf16.mxu0 %v17068_v29 }
 0x8ba   : > { %16628 = vmatpush3.bf16.msra.mxu0 %v17069_v48 }
 0x8bb   : > { %16629 = vmatprep.subr.bf16.mxu0 %v17072_v27 }
 0x8be   : > { %16630 = vmatpush3.bf16.msra.mxu0 %v17073_v8 }
 0x8bf   : > { %16631 = vmatprep.subr.bf16.mxu0 %v17076_v37 }
 0x8c2   : > { %16632 = vmatpush3.bf16.msra.mxu0 %v17077_v16 }
 0x8ec   : > { %v16584_v55 = vpop.f32.mrb[156].mxu1 }
 0x8ed   : > { %v16585_v42 = vpop.f32.mrb[157].mxu1 }
 0x8ee   : > { %v16586_v11 = vadd.f32 %v16585_v42, %v16584_v55  ;;  %v16587_v28 = vpop.f32.mrb[158].mxu1  ;;  %v14129_v42 = vld [vmem:[#allocation5] sm:$0x1] }
 0x8ef   : > { %v16588_v19 = vpop.f32.mrb[159].mxu1 }
 0x8f1   : > { %v16606_v6 = vpop.f32.mrb[160].mxu0 }
 0x8f2   : > { %v16607_v15 = vpop.f32.mrb[161].mxu0 }
 0x8f3   : > { %v16608_v50 = vadd.f32 %v16607_v15, %v16606_v6  ;;  %v16609_v0 = vpop.f32.mrb[162].mxu0  ;;  %v14171_v15 = vld [vmem:[#allocation5 + $0x6] sm:$0x1] }
 0x8f4   : > { %v16610_v12 = vpop.f32.mrb[163].mxu0 }
 0x8f5   : > { %v15092_v26 = vadd.f32 %v16608_v50, %v16586_v11 }
 0x8fc   : > { %v15131_v46 = vpop.f32.mrb[160].mxu1 }
 0x8fd   : > { %v15132_v45 = vadd.f32 %v15131_v46, %v15092_v26  ;;  %v16815_v40 = vpop.f32.mrb[161].mxu1 }
 0x8fe   : > { %v15134_v20 = vpop.f32.mrb[162].mxu1 }
 0x8ff   : > { %v15137_v61 = vpack.c.bf16 %v15132_v45, %v15132_v45  ;;  %v16816_v2 = vpop.f32.mrb[163].mxu1 }
 0x901   : > { %v15145_v36 = vrot.slane %v15137_v61, %v17359_v5 }
 0x903   : > { %15168 = vrot.lane.b32.xlu1 %v15145_v36, %s17254_s27  ;;  %v15156_v13 = vrot.slane %v15145_v36, 7  ;;  %v23383_v49 = vcombine.high %v15145_v36, %v15145_v36  ;;  %v15147_v60 = vshll.u32 %v15145_v36, 16 }
 0x905   : > { %15157 = vrot.lane.b32.xlu0 %v15156_v13, %s17254_s27  ;;  %v15183_v52 = vrot.slane %v23383_v49, 7  ;;  %v15149_v21 = vrot.slane %v15147_v60, 7  ;;  %v15176_v55 = vshll.u32 %v23383_v49, 16 }
 0x907   : > { %15194 = vrot.lane.b32.xlu1 %v23383_v49, %s17254_s27  ;;  %v15178_v9 = vrot.slane %v15176_v55, 7 }
 0x909   : > { %15184 = vrot.lane.b32.xlu0 %v15183_v52, %s17254_s27  ;;  %s17178_s27 = sshll.u32 %s17255_s13, 4  ;;  %s17179_s27 = int_to_ptr.vmem [resolvable:$false] %s17178_s27 }
 0x90a   : > { %s17180_s28 = scalar_lea.vmem %s17179_s27, 128  ;;  %p17181_p0 = scmp.lt.s32.totalorder %s23467_s17, %s17179_s27 }
 0x90b   : > { %p17182_p1 = scmp.lt.s32.totalorder %s17180_s28, %s17174_s21 }
 0x90d   : > { %p17183_p2 = por %p17182_p1, %p17181_p0 }
 0x90f   : > { %p17184_p3 = pnand %p17183_p2, %p17177_p13 }
 0x915   : > { %v14654_v17 = vpop.permute.xlu1 %14653 }
 0x916   : > { %v14657_v14 = vsel %vm23404_vm0, %v14654_v17, %v14656_v4 }
 0x917   : > { %14658 = vst [vmem:[#allocation5 + $0x2] sm:$0x2] %v14657_v14  ;;  %v14641_v57 = vpop.permute.xlu0 %14640 }
 0x918   : > { %v14646_v30 = vsel %vm23404_vm0, %v14641_v57, %v14645_v18 }
 0x919   : > { %14647 = vst [vmem:[#allocation5] sm:$0x2] %v14646_v30  ;;  %v14682_v54 = vpop.permute.xlu1 %14681 }
 0x91a   : > { %v14685_v23 = vsel %vm23404_vm0, %v14682_v54, %v14684_v24 }
 0x91b   : > { %14686 = vst [vmem:[#allocation5 + $0x6] sm:$0x2] %v14685_v23  ;;  %v14670_v39 = vpop.permute.xlu0 %14669 }
 0x91c   : > { %v14673_v3 = vsel %vm23404_vm0, %v14670_v39, %v14672_v43 }
 0x91d   : > { %14674 = vst [vmem:[#allocation5 + $0x4] sm:$0x2] %v14673_v3  ;;  %v14141_v51 = vpop.permute.xlu1 %14140 }
 0x91e   : > { %v14144_v62 = vsel %vm23416_vm4, %v14141_v51, %v14143_v34  ;;  %v15165_v44 = vld [vmem:[#allocation5 + $0x2] sm:$0x2] }
 0x91f   : > { %14145 = vst [vmem:[#allocation5 + $0x2] sm:$0x1] %v14144_v62  ;;  %v14126_v11 = vpop.permute.xlu0 %14125  ;;  %v15166_v28 = vsel %vm23424_vm5, %v15147_v60, %v15165_v44 }
 0x920   : > { %v14130_v19 = vsel %vm23416_vm4, %v14126_v11, %v14129_v42  ;;  %v15153_v6 = vld [vmem:[#allocation5] sm:$0x2]  ;;  %15167 = vst [vmem:[#allocation5 + $0x2] sm:$0x2] %v15166_v28 }
 0x921   : > { %14131 = vst [vmem:[#allocation5] sm:$0x1] %v14130_v19  ;;  %v14169_v50 = vpop.permute.xlu1 %14168  ;;  %v15154_v0 = vsel %vm23424_vm5, %v15149_v21, %v15153_v6 }
 0x922   : > { %v14172_v12 = vsel %vm23416_vm4, %v14169_v50, %v14171_v15  ;;  %v15191_v26 = vld [vmem:[#allocation5 + $0x6] sm:$0x2]  ;;  %15155 = vst [vmem:[#allocation5] sm:$0x2] %v15154_v0 }
 0x923   : > { %14173 = vst [vmem:[#allocation5 + $0x6] sm:$0x1] %v14172_v12  ;;  %v14155_v10 = vpop.permute.xlu0 %14154  ;;  %v15192_v41 = vsel %vm23424_vm5, %v15176_v55, %v15191_v26 }
 0x924   : > { %v14158_v35 = vsel %vm23416_vm4, %v14155_v10, %v14157_v56  ;;  %v15180_v63 = vld [vmem:[#allocation5 + $0x4] sm:$0x2]  ;;  %15193 = vst [vmem:[#allocation5 + $0x6] sm:$0x2] %v15192_v41 }
 0x925   : > { %14159 = vst [vmem:[#allocation5 + $0x4] sm:$0x1] %v14158_v35  ;;  %v15181_v46 = vsel %vm23424_vm5, %v15178_v9, %v15180_v63 }
 0x926   : > { %15182 = vst [vmem:[#allocation5 + $0x4] sm:$0x2] %v15181_v46 }
 0x927   : > { %v15171_v45 = vld [vmem:[#allocation5 + $0x2] sm:$0x2] }
 0x929   : > { %v15161_v59 = vld [vmem:[#allocation5] sm:$0x2] }
 0x92b   : > { %v15197_v7 = vld [vmem:[#allocation5 + $0x6] sm:$0x2] }
 0x92d   : > { %v15187_v61 = vld [vmem:[#allocation5 + $0x4] sm:$0x2] }
 0x975   : > { %v15169_v53 = vpop.permute.xlu1 %15168 }
 0x976   : > { %v15172_v40 = vsel %vm23310_vm2, %v15169_v53, %v15171_v45 }
 0x977   : > { %15173 = vst [vmem:[#allocation5 + $0x2] sm:$0x2] %v15172_v40  ;;  %v15158_v29 = vpop.permute.xlu0 %15157 }
 0x978   : > { %v15162_v48 = vsel %vm23310_vm2, %v15158_v29, %v15161_v59 }
 0x979   : > { %15163 = vst [vmem:[#allocation5] sm:$0x2] %v15162_v48  ;;  %v15195_v20 = vpop.permute.xlu1 %15194 }
 0x97a   : > { %v15198_v27 = vsel %vm23310_vm2, %v15195_v20, %v15197_v7 }
 0x97b   : > { %15199 = vst [vmem:[#allocation5 + $0x6] sm:$0x2] %v15198_v27  ;;  %v15185_v2 = vpop.permute.xlu0 %15184 }
 0x97c   : > { %v15188_v22 = vsel %vm23310_vm2, %v15185_v2, %v15187_v61 }
 0x97d   : > { %15189 = vst [vmem:[#allocation5 + $0x4] sm:$0x2] %v15188_v22 }
 0x984   : > { %v15200_v33 = vld [vmem:[#allocation5] sm:$0xff] }
 0x985   : > { %v15280_v36 = vrot.slane %v15200_v33, %v17359_v5  ;;  %v15273_v8 = vcombine.high %v15200_v33, %v15200_v33 }
 0x987   : > { %v15288_v37 = vcombine.high %v15280_v36, %v15280_v36  ;;  %v15287_v13 = vrot.slane %v15273_v8, %v17359_v5 }
 0x989   : > { %15518 = vmatprep.mubr.bf16.mxu0 %v15288_v37  ;;  %v15289_v49 = vcombine.high %v15287_v13, %v15287_v13 }
 0x98a   : > { %15519 = vmatmul.mubr.bf16.vlgmr.msra.gmra.mrb[164].mxu0 %v15280_v36 }
 0x98b   : > { %15558 = vmatprep.mubr.bf16.mxu1 %v15289_v49 }
 0x98c   : > { %15559 = vmatmul.mubr.bf16.vlgmr.msra.gmra.mrb[164].mxu1 %v15287_v13 }
 0xa5d   : > { %v16633_v38 = vpop.f32.mrb[164].mxu0 }
 0xa5e   : > { %v16634_v25 = vpop.f32.mrb[165].mxu0 }
 0xa5f   : > { %v16635_v16 = vadd.f32 %v16634_v25, %v16633_v38  ;;  %v16636_v52 = vpop.f32.mrb[166].mxu0  ;;  %v16655_v31 = vpop.f32.mrb[164].mxu1 }
 0xa60   : > { %v16637_v58 = vpop.f32.mrb[167].mxu0  ;;  %v16656_v4 = vpop.f32.mrb[165].mxu1 }
 0xa61   : > { %v15521_v17 = vadd.f32 %v16635_v16, %v16326_v47  ;;  %v16657_v14 = vadd.f32 %v16656_v4, %v16655_v31  ;;  %v16658_v5 = vpop.f32.mrb[166].mxu1 }
 0xa62   : > { %v16659_v18 = vpop.f32.mrb[167].mxu1 }
 0xa63   : > { %v15561_v57 = vadd.f32 %v16657_v14, %v15521_v17 }
 0xa65   : > { %v15566_v30 = vsel %vm6910_vm12, %v15561_v57, -inf }
 0xa66   : > { %15567 = vmax.xlane.f32.xlu0 %v15566_v30 }
 0xaf3   : > { %v15568_v24 = vpop.xlane.xlu0 %15567 }
 0xaf4   : > { %v15569_v54 = vsub.f32 %v15561_v57, %v15568_v24 }
 0xaf6   : > { %v15570_v23 = vmul.f32 1.442695, %v15569_v54 }
 0xaf8   : > { %17165 = vpow2.f32 %v15570_v23 }
 0xb02   : > { %v17166_v60 = vpop.eup %17165 }
 0xb03   : > { %v15572_v43 = vsel %vm6910_vm12, %v17166_v60, 0.0 }
 0xb04   : > { %15573 = vadd.xlane.f32.xlu1 %v15572_v43 }
 0xb91   : > { %v15574_v39 = vpop.xlane.xlu1 %15573 }
 0xb92   : > { %17167 = vrcp.f32 %v15574_v39 }
 0xb9c   : > { %v17168_v1 = vpop.eup %17167 }
 0xb9d   : > { %v15576_v3 = vmul.f32 %v17168_v1, %v17166_v60 }
 0xb9f   : > { %15577 = vst [vmem:[%s325_s22] sm:$0xf] %v15576_v3 }
 0xba0   : > { %17187 = shalt.err (!%p17184_p3)
}
 0xba1   : > { %s17188_s16 = scalar_lea.hbm %s23465_s24, 64  ;;  %s17192_s22 = scalar_lea.hbm %s23516_s9, 128 }
 0xba2   : > { %p17189_p4 = scmp.ne.s32.totalorder %s23465_s24, %s17188_s16  ;;  %p17193_p9 = scmp.lt.u32.totalorder %s23465_s24, %s23516_s9 }
 0xba3   : > { %p17194_p10 = scmp.lt.u32.totalorder %s17192_s22, %s17188_s16  ;;  %p17196_p12 = scmp.lt.u32.totalorder %s17188_s16, %s23465_s24 }
 0xba4   : > { %p17190_p7 = pnand %p17189_p4, %p17344_p5 }
 0xba5   : > { %p17195_p11 = por %p17194_p10, %p17193_p9 }
 0xba6   : > { %p17191_p8 = pneg %p17190_p7 }
 0xba7   : > { %p17197_p13 = por %p17196_p12, %p17195_p11 }
 0xba9   : > { %p17198_p0 = pnand %p17197_p13, %p17191_p8 }
 0xbab   : > { %17201 = shalt.err (!%p17198_p0)
}
 0xbac   : > { %16818 = dma.vmem_to_hbm [thread:$0]  (%p17344_p5), %s23467_s17, 64, %s23465_s24, %s15579_s23  }
 0xbad PF: > { %p16824_p1 = scmp.ge.s32.totalorder %s17236_s12, 2  ;;  %s15604_s21 = sand.u32 1, %s17224_s30  }
 0xbae   : > { %s15605_s13 = scalar_lea.sflag [#allocation7], %s15604_s21 }
 0xbaf   : > { %p16821_p2 = pnand %p16824_p1, %p17348_p6 }
 0xbb1   : > { %17219 = dma.done.wait (!%p16821_p2), %s15605_s13, 64  }
 0xbb2   : > { %17221 = vsyncadd (!%p16821_p2), %s15605_s13, 4294967232  ;;  %p19_p3 = scmp.ge.s32.totalorder %s17331_s15, 4   ;;  %s23550_s30 = smov %s17228_s10 }
 0xbb3   : > { %s23551_s10 = smov %s17232_s11  ;;  %s23552_s11 = smov %s17342_s18 }
 0xbb4   : > { %s23553_s12 = smov %s17331_s15  ;;  %21 = sbr.rel (!%p19_p3) target bundleno = 3 (0x3), region = 107 }
 0xbbb   :  { %15610 = vsyncpa [#allocation7], 1 }
 0xbbc   :  { %15612 = vsyncpa [#allocation7 + $0x1], 1 }

</bundles_post_ra>
